<compile_context>
chip_gen: v6e
topology: v6e:2x2x1
jax: 0.10.0
libtpu: 0.0.40
codegen_flags: <defaults>
</compile_context>

<pallas_src>
import functools
import math

import numpy as np
import jax
import jax.numpy as jnp
from jax import lax
from jax.experimental import pallas as pl
from jax.experimental.pallas import tpu as pltpu

BN_EPS = 1e-5
LEAKY_SLOPE = 0.1


def _leaky(y):
    return jnp.where(y >= 0, y, LEAKY_SLOPE * y)


@functools.lru_cache(maxsize=1)
def _vmem_capacity_bytes():
    try:
        return int(pltpu.get_tpu_info().vmem_capacity_bytes)
    except Exception:
        return 128 << 20


@functools.lru_cache(maxsize=1)
def _row_tile():
    # Smaller row tiles on 64 MiB-VMEM parts (v7x), bigger on 128 MiB (v5e/v6e).
    return 256 if _vmem_capacity_bytes() <= (64 << 20) else 512


@functools.lru_cache(maxsize=1)
def _compiler_params():
    return pltpu.CompilerParams(
        dimension_semantics=("parallel",),
        vmem_limit_bytes=int(min(96 << 20, (_vmem_capacity_bytes() * 3) // 4)),
    )


def _round_up(x, m):
    return (x + m - 1) // m * m


def _pad_rows(a, rows):
    return a if a.shape[0] == rows else jnp.pad(a, ((0, rows - a.shape[0]), (0, 0)))


def _im2col3x3(x):
    """(N, H, W, C) -> (N*H*W, 9*C) patches; tap order (dy, dx, c) matches
    w.reshape(9*C, Cout) of an HWIO 3x3 kernel (SAME padding, pad=1)."""
    n, h, w, c = x.shape
    xp = jnp.pad(x, ((0, 0), (1, 1), (1, 1), (0, 0)))
    cols = [xp[:, dy:dy + h, dx:dx + w, :] for dy in range(3) for dx in range(3)]
    return jnp.concatenate(cols, axis=-1).reshape(n * h * w, 9 * c)


# ---------------------------- Pallas kernels ----------------------------

def _mm_bias_kernel(p_ref, w_ref, b_ref, o_ref, *, relu):
    # (TM, K) x (K, Cout) on the MXU, f32 accumulation, bias (+ LeakyReLU) epilogue.
    acc = jnp.dot(p_ref[...], w_ref[...], preferred_element_type=jnp.float32)
    y = acc + b_ref[...]
    if relu:
        y = _leaky(y)
    o_ref[...] = y.astype(o_ref.dtype)


def _mm_residual_kernel(p_ref, w_ref, b_ref, x_ref, wd_ref, bd_ref, o_ref):
    # conv3(+bn3) fused with the 1x1 downsample(+bn), residual add and LeakyReLU.
    acc = jnp.dot(p_ref[...], w_ref[...], preferred_element_type=jnp.float32) + b_ref[...]
    idt = jnp.dot(x_ref[...], wd_ref[...], preferred_element_type=jnp.float32) + bd_ref[...]
    o_ref[...] = _leaky(acc + idt).astype(o_ref.dtype)


def _maxpool_kernel(x_ref, o_ref):
    # x_ref: (1, 2, WO, 2, C) -- one 2-row strip of pre-split 2x2 pooling windows.
    x = x_ref[...].astype(jnp.float32)
    m = jnp.max(jnp.max(x, axis=3), axis=1)          # (1, WO, C)
    o_ref[...] = m.astype(o_ref.dtype)


def _attention_kernel(x_ref, xp_ref, dct_ref, w1_ref, w2_ref, o_ref):
    # FcaNet multi-spectral channel attention for one image of the batch grid.
    xp = xp_ref[0].astype(jnp.float32)                              # (dh*dw, C)
    y = jnp.sum(xp * dct_ref[...], axis=0, keepdims=True)           # (1, C)
    h = jnp.maximum(jnp.dot(y, w1_ref[...], preferred_element_type=jnp.float32), 0.0)
    z = jnp.dot(h, w2_ref[...], preferred_element_type=jnp.float32)
    s = 1.0 / (1.0 + jnp.exp(-z))                                   # sigmoid, (1, C)
    o_ref[...] = x_ref[...].astype(jnp.float32) * s[None, :, :]


# ------------------------------ wrappers ------------------------------

def conv3x3_bn_lrelu(x, w, b, relu=True):
    """3x3 conv (BN folded into w) + optional LeakyReLU.
    x: (N,H,W,Cin) bf16, w: (9*Cin, Cout) bf16, b: (1, Cout) f32."""
    n, h, wdim, cin = x.shape
    k, cout = w.shape
    m = n * h * wdim
    patches = _im2col3x3(x)
    tm = min(_row_tile(), _round_up(m, 8))
    mp = _round_up(m, tm)
    patches = _pad_rows(patches, mp)
    out = pl.pallas_call(
        functools.partial(_mm_bias_kernel, relu=relu),
        grid=(mp // tm,),
        in_specs=[
            pl.BlockSpec((tm, k), lambda i: (i, 0)),
            pl.BlockSpec((k, cout), lambda i: (0, 0)),
            pl.BlockSpec((1, cout), lambda i: (0, 0)),
        ],
        out_specs=pl.BlockSpec((tm, cout), lambda i: (i, 0)),
        out_shape=jax.ShapeDtypeStruct((mp, cout), x.dtype),
        compiler_params=_compiler_params(),
    )(patches, w, b)
    return out[:m].reshape(n, h, wdim, cout)


def conv3x3_residual_lrelu(out2, x_in, w3, b3, wd, bd):
    """Fused: conv3(+bn3) of out2, 1x1 downsample(+bn) of x_in, residual add,
    LeakyReLU.  Returns (N, H, W, Cout) bf16."""
    n, h, wdim, _ = out2.shape
    cin = x_in.shape[-1]
    k, cout = w3.shape
    m = n * h * wdim
    patches = _im2col3x3(out2)
    xrows = x_in.reshape(m, cin)
    tm = min(_row_tile(), _round_up(m, 8))
    mp = _round_up(m, tm)
    patches = _pad_rows(patches, mp)
    xrows = _pad_rows(xrows, mp)
    out = pl.pallas_call(
        _mm_residual_kernel,
        grid=(mp // tm,),
        in_specs=[
            pl.BlockSpec((tm, k), lambda i: (i, 0)),
            pl.BlockSpec((k, cout), lambda i: (0, 0)),
            pl.BlockSpec((1, cout), lambda i: (0, 0)),
            pl.BlockSpec((tm, cin), lambda i: (i, 0)),
            pl.BlockSpec((cin, cout), lambda i: (0, 0)),
            pl.BlockSpec((1, cout), lambda i: (0, 0)),
        ],
        out_specs=pl.BlockSpec((tm, cout), lambda i: (i, 0)),
        out_shape=jax.ShapeDtypeStruct((mp, cout), out2.dtype),
        compiler_params=_compiler_params(),
    )(patches, w3, b3, xrows, wd, bd)
    return out[:m].reshape(n, h, wdim, cout)


def maxpool2x2(y):
    """2x2 / stride-2 max pool (floor mode).  Free row-major reshape into
    (N*Ho, 2, Wo, 2, C) pooling strips -- no HBM transposes."""
    n, h, w, c = y.shape
    ho, wo = h // 2, w // 2
    y = y[:, :2 * ho, :2 * wo, :]
    y5 = y.reshape(n * ho, 2, wo, 2, c)
    out = pl.pallas_call(
        _maxpool_kernel,
        grid=(n * ho,),
        in_specs=[pl.BlockSpec((1, 2, wo, 2, c), lambda i: (i, 0, 0, 0, 0))],
        out_specs=pl.BlockSpec((1, wo, c), lambda i: (i, 0, 0)),
        out_shape=jax.ShapeDtypeStruct((n * ho, wo, c), y.dtype),
        compiler_params=_compiler_params(),
    )(y5)
    return out.reshape(n, ho, wo, c)


def _adaptive_pool_matrix(n_in, n_out):
    p = np.zeros((n_out, n_in), np.float32)
    for i in range(n_out):
        s = (i * n_in) // n_out
        e = -((-(i + 1) * n_in) // n_out)
        p[i, s:e] = 1.0 / (e - s)
    return p


def adaptive_avg_pool(x, oh, ow):
    _, h, w, _ = x.shape
    ph = jnp.asarray(_adaptive_pool_matrix(h, oh))
    pw = jnp.asarray(_adaptive_pool_matrix(w, ow))
    return jnp.einsum('ph,qw,nhwc->npqc', ph, pw, x.astype(jnp.float32))


def attention(x, att):
    """FcaNet MultiSpectralAttentionLayer, gridded over the batch."""
    n, h, w, c = x.shape
    dh, dw = att['dct_h'], att['dct_w']
    xp = x.astype(jnp.float32) if (h == dh and w == dw) else adaptive_avg_pool(x, dh, dw)
    cr = att['fc1'].shape[-1]
    out = pl.pallas_call(
        _attention_kernel,
        grid=(n,),
        in_specs=[
            pl.BlockSpec((1, h * w, c), lambda i: (i, 0, 0)),
            pl.BlockSpec((1, dh * dw, c), lambda i: (i, 0, 0)),
            pl.BlockSpec((dh * dw, c), lambda i: (0, 0)),
            pl.BlockSpec((c, cr), lambda i: (0, 0)),
            pl.BlockSpec((cr, c), lambda i: (0, 0)),
        ],
        out_specs=pl.BlockSpec((1, h * w, c), lambda i: (i, 0, 0)),
        out_shape=jax.ShapeDtypeStruct((n, h * w, c), jnp.float32),
        compiler_params=_compiler_params(),
    )(x.reshape(n, h * w, c), xp.reshape(n, dh * dw, c),
      att['dct'], att['fc1'], att['fc2'])
    return out.reshape(n, h, w, c)


def block_forward(x, p):
    out = conv3x3_bn_lrelu(x, p['w1'], p['b1'], relu=True)
    out = conv3x3_bn_lrelu(out, p['w2'], p['b2'], relu=True)
    y = conv3x3_residual_lrelu(out, x, p['w3'], p['b3'], p['wd'], p['bd'])
    return maxpool2x2(y)


def resnet12_forward(x_nchw, params):
    x = jnp.transpose(x_nchw, (0, 2, 3, 1)).astype(jnp.bfloat16)   # NCHW -> NHWC bf16
    for p in params['blocks']:
        x = block_forward(x, p)
    x = attention(x, params['att'])
    return jnp.transpose(x, (0, 3, 1, 2)).astype(jnp.float32)      # back to NCHW


# --------------------------- parameter setup ---------------------------

def _get_freq_indices(method='top16'):
    num = int(method[3:])
    all_x = [0, 0, 6, 0, 0, 1, 1, 4, 5, 1, 3, 0, 0, 0, 3, 2,
             4, 6, 3, 5, 5, 2, 6, 5, 5, 3, 3, 4, 2, 2, 6, 1]
    all_y = [0, 1, 0, 5, 2, 0, 2, 0, 0, 6, 0, 4, 6, 3, 5, 2,
             6, 3, 3, 3, 5, 1, 1, 2, 4, 2, 1, 1, 3, 0, 5, 3]
    return all_x[:num], all_y[:num]


def _dct_filter(dh, dw, mx, my, channel):
    n_freq = len(mx)
    c_part = channel // n_freq
    filt = np.zeros((channel, dh, dw), np.float32)

    def bf(pos, freq, n):
        r = np.cos(np.pi * freq * (pos + 0.5) / n) / math.sqrt(n)
        return r if freq == 0 else r * math.sqrt(2)

    tx = np.arange(dh, dtype=np.float64)
    ty = np.arange(dw, dtype=np.float64)
    for i, (ux, vy) in enumerate(zip(mx, my)):
        f2d = bf(tx, ux, dh)[:, None] * bf(ty, vy, dw)[None, :]
        filt[i * c_part:(i + 1) * c_part] = f2d
    return filt


def init_params(key, channels):
    c2wh = {64: 42, 160: 21, 320: 10, 640: 5}
    blocks = []
    inplanes = 3
    for planes in channels:
        key, *ks = jax.random.split(key, 5)

        def conv_w(k, kh, kw, cin, cout):
            fan_out = cout * kh * kw
            std = math.sqrt(2.0 / fan_out)   # kaiming_normal, fan_out, leaky_relu(a=0)
            return std * jax.random.normal(k, (kh, kw, cin, cout), jnp.float32)

        # inference-mode BN fold (gamma=1, beta=0, running mean=0, running var=1)
        bn_scale = jnp.full((planes,), 1.0 / math.sqrt(1.0 + BN_EPS), jnp.float32)
        bn_bias = jnp.zeros((1, planes), jnp.float32)

        def fold3(w):          # (3,3,Cin,Cout) * scale -> (9*Cin, Cout) bf16
            return (w * bn_scale).reshape(-1, planes).astype(jnp.bfloat16)

        blocks.append(dict(
            w1=fold3(conv_w(ks[0], 3, 3, inplanes, planes)),
            w2=fold3(conv_w(ks[1], 3, 3, planes, planes)),
            w3=fold3(conv_w(ks[2], 3, 3, planes, planes)),
            wd=(conv_w(ks[3], 1, 1, inplanes, planes) * bn_scale
                ).reshape(inplanes, planes).astype(jnp.bfloat16),
            b1=bn_bias, b2=bn_bias, b3=bn_bias, bd=bn_bias,
        ))
        inplanes = planes

    c = channels[3]
    dh = dw = c2wh[c]
    mx, my = _get_freq_indices('top16')
    mx = [v * (dh // 7) for v in mx]
    my = [v * (dw // 7) for v in my]
    dct = _dct_filter(dh, dw, mx, my, c)                       # (C, dh, dw)
    dct = jnp.asarray(dct.transpose(1, 2, 0).reshape(dh * dw, c))
    key, k1, k2 = jax.random.split(key, 3)
    red = 16
    fc1 = jax.random.normal(k1, (c, c // red), jnp.float32) * math.sqrt(1.0 / c)
    fc2 = jax.random.normal(k2, (c // red, c), jnp.float32) * math.sqrt(1.0 / (c // red))
    att = dict(dct_h=dh, dct_w=dw, dct=dct, fc1=fc1, fc2=fc2)
    return dict(blocks=blocks, att=att)


# ----------------------- pure-JAX reference check -----------------------

def _ref_forward(x_nchw, params):
    # Mirrors the kernels' bf16 storage / f32 accumulation points.
    x = jnp.transpose(x_nchw, (0, 2, 3, 1)).astype(jnp.bfloat16)

    def conv3(inp, w9, b):
        cin = w9.shape[0] // 9
        w = w9.astype(jnp.float32).reshape(3, 3, cin, w9.shape[1])
        y = lax.conv_general_dilated(inp.astype(jnp.float32), w, (1, 1), 'SAME',
                                     dimension_numbers=('NHWC', 'HWIO', 'NHWC'))
        return y + b.reshape(1, 1, 1, -1)

    for p in params['blocks']:
        out = _leaky(conv3(x, p['w1'], p['b1'])).astype(jnp.bfloat16)
        out = _leaky(conv3(out, p['w2'], p['b2'])).astype(jnp.bfloat16)
        idt = jnp.einsum('nhwc,cd->nhwd', x.astype(jnp.float32),
                         p['wd'].astype(jnp.float32)) + p['bd'].reshape(1, 1, 1, -1)
        y = _leaky(conv3(out, p['w3'], p['b3']) + idt).astype(jnp.bfloat16)
        n, h, w, c = y.shape
        ho, wo = h // 2, w // 2
        x = y[:, :2 * ho, :2 * wo, :].reshape(n, ho, 2, wo, 2, c).max(axis=(2, 4))

    att = params['att']
    n, h, w, c = x.shape
    dh, dw = att['dct_h'], att['dct_w']
    xf = x.astype(jnp.float32)
    xp = xf if (h == dh and w == dw) else adaptive_avg_pool(x, dh, dw)
    y = jnp.sum(xp.reshape(n, dh * dw, c) * att['dct'][None], axis=1)
    hdn = jnp.maximum(y @ att['fc1'], 0.0)
    s = jax.nn.sigmoid(hdn @ att['fc2'])
    out = xf * s[:, None, None, :]
    return jnp.transpose(out, (0, 3, 1, 2))


if __name__ == "__main__":
    key = jax.random.PRNGKey(0)
    kx, kp = jax.random.split(key)
    channels = [8, 16, 32, 64]               # channels[3] must be a c2wh key
    params = init_params(kp, channels)
    x = jax.random.normal(kx, (2, 3, 16, 16), jnp.float32)   # NCHW, like PyTorch
    fwd = jax.jit(lambda inp: resnet12_forward(inp, params))
    out = jax.block_until_ready(fwd(x))
    assert out.shape == (2, channels[3], 1, 1), out.shape
    ref = _ref_forward(x, params)
    np.testing.assert_allclose(np.asarray(out), np.asarray(ref), rtol=2e-2, atol=2e-2)
    print("KERNEL_OK")
</pallas_src>

<mosaic_0001>
module attributes {stable_mosaic.version = 11 : i64} {
  func.func @_mm_bias_kernel(%arg0: i32, %arg1: memref<512x27xbf16, #tpu.memory_space<vmem>>, %arg2: memref<27x8xbf16, #tpu.memory_space<vmem>>, %arg3: memref<1x8xf32, #tpu.memory_space<vmem>>, %arg4: memref<512x8xbf16, #tpu.memory_space<vmem>>) attributes {dimension_semantics = [#tpu.dimension_semantics<parallel>], iteration_bounds = array<i64: 1>, scalar_prefetch = 0 : i64, scratch_operands = 0 : i64, tpu.core_type = #tpu.core_type<tc>, window_params = [{transform_indices = @transform_0, window_bounds = array<i64: 512, 27>}, {pipeline_mode = #tpu.pipeline_mode<synchronous>, transform_indices = @transform_1, window_bounds = array<i64: 27, 8>}, {pipeline_mode = #tpu.pipeline_mode<synchronous>, transform_indices = @transform_2, window_bounds = array<i64: 1, 8>}, {transform_indices = @transform_3, window_bounds = array<i64: 512, 8>}]} {
    %c0 = arith.constant 0 : index
    %c0_0 = arith.constant 0 : index
    %0 = vector.load %arg1[%c0, %c0_0] : memref<512x27xbf16, #tpu.memory_space<vmem>>, vector<512x27xbf16>
    %c0_1 = arith.constant 0 : index
    %c0_2 = arith.constant 0 : index
    %1 = vector.load %arg2[%c0_1, %c0_2] : memref<27x8xbf16, #tpu.memory_space<vmem>>, vector<27x8xbf16>
    %cst = arith.constant dense<0.000000e+00> : vector<512x8xf32>
    %2 = tpu.matmul %0, %1, %cst {dimension_numbers = #tpu.dot_dimension_numbers<[1], [0], [0], [1], [0, 0, 1, 1], [], []>} : vector<512x27xbf16>, vector<27x8xbf16>, vector<512x8xf32> -> vector<512x8xf32>
    %c0_3 = arith.constant 0 : index
    %c0_4 = arith.constant 0 : index
    %3 = vector.load %arg3[%c0_3, %c0_4] : memref<1x8xf32, #tpu.memory_space<vmem>>, vector<1x8xf32>
    %4 = vector.broadcast %3 : vector<1x8xf32> to vector<512x8xf32>
    %5 = arith.addf %2, %4 : vector<512x8xf32>
    %cst_5 = arith.constant 0.000000e+00 : f32
    %6 = vector.broadcast %cst_5 : f32 to vector<512x8xf32>
    %7 = arith.cmpf oge, %5, %6 : vector<512x8xf32>
    %cst_6 = arith.constant 1.000000e-01 : f32
    %8 = vector.broadcast %cst_6 : f32 to vector<512x8xf32>
    %9 = arith.mulf %8, %5 : vector<512x8xf32>
    %10 = arith.select %7, %5, %9 : vector<512x8xi1>, vector<512x8xf32>
    %11 = arith.truncf %10 : vector<512x8xf32> to vector<512x8xbf16>
    %c0_7 = arith.constant 0 : index
    %c0_8 = arith.constant 0 : index
    %12 = vector.load %arg4[%c0_7, %c0_8] : memref<512x8xbf16, #tpu.memory_space<vmem>>, vector<512x8xbf16>
    tpu.vector_store %arg4[%c0_7, %c0_8], %11 {strides = array<i32>} : memref<512x8xbf16, #tpu.memory_space<vmem>>, vector<512x8xbf16>,
    return
  }
  func.func @transform_0(%arg0: i32) -> (i32, i32) {
    %c0_i32 = arith.constant 0 : i32
    %c0_i32_0 = arith.constant 0 : i32
    return %arg0, %c0_i32 : i32, i32
  }
  func.func @transform_1(%arg0: i32) -> (i32, i32) {
    %c0_i32 = arith.constant 0 : i32
    %c0_i32_0 = arith.constant 0 : i32
    %c0_i32_1 = arith.constant 0 : i32
    return %c0_i32, %c0_i32_0 : i32, i32
  }
  func.func @transform_2(%arg0: i32) -> (i32, i32) {
    %c0_i32 = arith.constant 0 : i32
    %c0_i32_0 = arith.constant 0 : i32
    %c0_i32_1 = arith.constant 0 : i32
    return %c0_i32, %c0_i32_0 : i32, i32
  }
  func.func @transform_3(%arg0: i32) -> (i32, i32) {
    %c0_i32 = arith.constant 0 : i32
    %c0_i32_0 = arith.constant 0 : i32
    return %arg0, %c0_i32 : i32, i32
  }
}

module attributes {stable_mosaic.version = 11 : i64} {
  func.func @_mm_bias_kernel(%arg0: i32, %arg1: memref<512x72xbf16, #tpu.memory_space<vmem>>, %arg2: memref<72x8xbf16, #tpu.memory_space<vmem>>, %arg3: memref<1x8xf32, #tpu.memory_space<vmem>>, %arg4: memref<512x8xbf16, #tpu.memory_space<vmem>>) attributes {dimension_semantics = [#tpu.dimension_semantics<parallel>], iteration_bounds = array<i64: 1>, scalar_prefetch = 0 : i64, scratch_operands = 0 : i64, tpu.core_type = #tpu.core_type<tc>, window_params = [{transform_indices = @transform_0, window_bounds = array<i64: 512, 72>}, {pipeline_mode = #tpu.pipeline_mode<synchronous>, transform_indices = @transform_1, window_bounds = array<i64: 72, 8>}, {pipeline_mode = #tpu.pipeline_mode<synchronous>, transform_indices = @transform_2, window_bounds = array<i64: 1, 8>}, {transform_indices = @transform_3, window_bounds = array<i64: 512, 8>}]} {
    %c0 = arith.constant 0 : index
    %c0_0 = arith.constant 0 : index
    %0 = vector.load %arg1[%c0, %c0_0] : memref<512x72xbf16, #tpu.memory_space<vmem>>, vector<512x72xbf16>
    %c0_1 = arith.constant 0 : index
    %c0_2 = arith.constant 0 : index
    %1 = vector.load %arg2[%c0_1, %c0_2] : memref<72x8xbf16, #tpu.memory_space<vmem>>, vector<72x8xbf16>
    %cst = arith.constant dense<0.000000e+00> : vector<512x8xf32>
    %2 = tpu.matmul %0, %1, %cst {dimension_numbers = #tpu.dot_dimension_numbers<[1], [0], [0], [1], [0, 0, 1, 1], [], []>} : vector<512x72xbf16>, vector<72x8xbf16>, vector<512x8xf32> -> vector<512x8xf32>
    %c0_3 = arith.constant 0 : index
    %c0_4 = arith.constant 0 : index
    %3 = vector.load %arg3[%c0_3, %c0_4] : memref<1x8xf32, #tpu.memory_space<vmem>>, vector<1x8xf32>
    %4 = vector.broadcast %3 : vector<1x8xf32> to vector<512x8xf32>
    %5 = arith.addf %2, %4 : vector<512x8xf32>
    %cst_5 = arith.constant 0.000000e+00 : f32
    %6 = vector.broadcast %cst_5 : f32 to vector<512x8xf32>
    %7 = arith.cmpf oge, %5, %6 : vector<512x8xf32>
    %cst_6 = arith.constant 1.000000e-01 : f32
    %8 = vector.broadcast %cst_6 : f32 to vector<512x8xf32>
    %9 = arith.mulf %8, %5 : vector<512x8xf32>
    %10 = arith.select %7, %5, %9 : vector<512x8xi1>, vector<512x8xf32>
    %11 = arith.truncf %10 : vector<512x8xf32> to vector<512x8xbf16>
    %c0_7 = arith.constant 0 : index
    %c0_8 = arith.constant 0 : index
    %12 = vector.load %arg4[%c0_7, %c0_8] : memref<512x8xbf16, #tpu.memory_space<vmem>>, vector<512x8xbf16>
    tpu.vector_store %arg4[%c0_7, %c0_8], %11 {strides = array<i32>} : memref<512x8xbf16, #tpu.memory_space<vmem>>, vector<512x8xbf16>,
    return
  }
  func.func @transform_0(%arg0: i32) -> (i32, i32) {
    %c0_i32 = arith.constant 0 : i32
    %c0_i32_0 = arith.constant 0 : i32
    return %arg0, %c0_i32 : i32, i32
  }
  func.func @transform_1(%arg0: i32) -> (i32, i32) {
    %c0_i32 = arith.constant 0 : i32
    %c0_i32_0 = arith.constant 0 : i32
    %c0_i32_1 = arith.constant 0 : i32
    return %c0_i32, %c0_i32_0 : i32, i32
  }
  func.func @transform_2(%arg0: i32) -> (i32, i32) {
    %c0_i32 = arith.constant 0 : i32
    %c0_i32_0 = arith.constant 0 : i32
    %c0_i32_1 = arith.constant 0 : i32
    return %c0_i32, %c0_i32_0 : i32, i32
  }
  func.func @transform_3(%arg0: i32) -> (i32, i32) {
    %c0_i32 = arith.constant 0 : i32
    %c0_i32_0 = arith.constant 0 : i32
    return %arg0, %c0_i32 : i32, i32
  }
}

module attributes {stable_mosaic.version = 11 : i64} {
  func.func @_mm_residual_kernel(%arg0: i32, %arg1: memref<512x72xbf16, #tpu.memory_space<vmem>>, %arg2: memref<72x8xbf16, #tpu.memory_space<vmem>>, %arg3: memref<1x8xf32, #tpu.memory_space<vmem>>, %arg4: memref<512x3xbf16, #tpu.memory_space<vmem>>, %arg5: memref<3x8xbf16, #tpu.memory_space<vmem>>, %arg6: memref<1x8xf32, #tpu.memory_space<vmem>>, %arg7: memref<512x8xbf16, #tpu.memory_space<vmem>>) attributes {dimension_semantics = [#tpu.dimension_semantics<parallel>], iteration_bounds = array<i64: 1>, scalar_prefetch = 0 : i64, scratch_operands = 0 : i64, tpu.core_type = #tpu.core_type<tc>, window_params = [{transform_indices = @transform_0, window_bounds = array<i64: 512, 72>}, {pipeline_mode = #tpu.pipeline_mode<synchronous>, transform_indices = @transform_1, window_bounds = array<i64: 72, 8>}, {pipeline_mode = #tpu.pipeline_mode<synchronous>, transform_indices = @transform_2, window_bounds = array<i64: 1, 8>}, {transform_indices = @transform_3, window_bounds = array<i64: 512, 3>}, {pipeline_mode = #tpu.pipeline_mode<synchronous>, transform_indices = @transform_4, window_bounds = array<i64: 3, 8>}, {pipeline_mode = #tpu.pipeline_mode<synchronous>, transform_indices = @transform_5, window_bounds = array<i64: 1, 8>}, {transform_indices = @transform_6, window_bounds = array<i64: 512, 8>}]} {
    %c0 = arith.constant 0 : index
    %c0_0 = arith.constant 0 : index
    %0 = vector.load %arg1[%c0, %c0_0] : memref<512x72xbf16, #tpu.memory_space<vmem>>, vector<512x72xbf16>
    %c0_1 = arith.constant 0 : index
    %c0_2 = arith.constant 0 : index
    %1 = vector.load %arg2[%c0_1, %c0_2] : memref<72x8xbf16, #tpu.memory_space<vmem>>, vector<72x8xbf16>
    %cst = arith.constant dense<0.000000e+00> : vector<512x8xf32>
    %2 = tpu.matmul %0, %1, %cst {dimension_numbers = #tpu.dot_dimension_numbers<[1], [0], [0], [1], [0, 0, 1, 1], [], []>} : vector<512x72xbf16>, vector<72x8xbf16>, vector<512x8xf32> -> vector<512x8xf32>
    %c0_3 = arith.constant 0 : index
    %c0_4 = arith.constant 0 : index
    %3 = vector.load %arg3[%c0_3, %c0_4] : memref<1x8xf32, #tpu.memory_space<vmem>>, vector<1x8xf32>
    %4 = vector.broadcast %3 : vector<1x8xf32> to vector<512x8xf32>
    %5 = arith.addf %2, %4 : vector<512x8xf32>
    %c0_5 = arith.constant 0 : index
    %c0_6 = arith.constant 0 : index
    %6 = vector.load %arg4[%c0_5, %c0_6] : memref<512x3xbf16, #tpu.memory_space<vmem>>, vector<512x3xbf16>
    %c0_7 = arith.constant 0 : index
    %c0_8 = arith.constant 0 : index
    %7 = vector.load %arg5[%c0_7, %c0_8] : memref<3x8xbf16, #tpu.memory_space<vmem>>, vector<3x8xbf16>
    %cst_9 = arith.constant dense<0.000000e+00> : vector<512x8xf32>
    %8 = tpu.matmul %6, %7, %cst_9 {dimension_numbers = #tpu.dot_dimension_numbers<[1], [0], [0], [1], [0, 0, 1, 1], [], []>} : vector<512x3xbf16>, vector<3x8xbf16>, vector<512x8xf32> -> vector<512x8xf32>
    %c0_10 = arith.constant 0 : index
    %c0_11 = arith.constant 0 : index
    %9 = vector.load %arg6[%c0_10, %c0_11] : memref<1x8xf32, #tpu.memory_space<vmem>>, vector<1x8xf32>
    %10 = vector.broadcast %9 : vector<1x8xf32> to vector<512x8xf32>
    %11 = arith.addf %8, %10 : vector<512x8xf32>
    %12 = arith.addf %5, %11 : vector<512x8xf32>
    %cst_12 = arith.constant 0.000000e+00 : f32
    %13 = vector.broadcast %cst_12 : f32 to vector<512x8xf32>
    %14 = arith.cmpf oge, %12, %13 : vector<512x8xf32>
    %cst_13 = arith.constant 1.000000e-01 : f32
    %15 = vector.broadcast %cst_13 : f32 to vector<512x8xf32>
    %16 = arith.mulf %15, %12 : vector<512x8xf32>
    %17 = arith.select %14, %12, %16 : vector<512x8xi1>, vector<512x8xf32>
    %18 = arith.truncf %17 : vector<512x8xf32> to vector<512x8xbf16>
    %c0_14 = arith.constant 0 : index
    %c0_15 = arith.constant 0 : index
    %19 = vector.load %arg7[%c0_14, %c0_15] : memref<512x8xbf16, #tpu.memory_space<vmem>>, vector<512x8xbf16>
    tpu.vector_store %arg7[%c0_14, %c0_15], %18 {strides = array<i32>} : memref<512x8xbf16, #tpu.memory_space<vmem>>, vector<512x8xbf16>,
    return
  }
  func.func @transform_0(%arg0: i32) -> (i32, i32) {
    %c0_i32 = arith.constant 0 : i32
    %c0_i32_0 = arith.constant 0 : i32
    return %arg0, %c0_i32 : i32, i32
  }
  func.func @transform_1(%arg0: i32) -> (i32, i32) {
    %c0_i32 = arith.constant 0 : i32
    %c0_i32_0 = arith.constant 0 : i32
    %c0_i32_1 = arith.constant 0 : i32
    return %c0_i32, %c0_i32_0 : i32, i32
  }
  func.func @transform_2(%arg0: i32) -> (i32, i32) {
    %c0_i32 = arith.constant 0 : i32
    %c0_i32_0 = arith.constant 0 : i32
    %c0_i32_1 = arith.constant 0 : i32
    return %c0_i32, %c0_i32_0 : i32, i32
  }
  func.func @transform_3(%arg0: i32) -> (i32, i32) {
    %c0_i32 = arith.constant 0 : i32
    %c0_i32_0 = arith.constant 0 : i32
    return %arg0, %c0_i32 : i32, i32
  }
  func.func @transform_4(%arg0: i32) -> (i32, i32) {
    %c0_i32 = arith.constant 0 : i32
    %c0_i32_0 = arith.constant 0 : i32
    %c0_i32_1 = arith.constant 0 : i32
    return %c0_i32, %c0_i32_0 : i32, i32
  }
  func.func @transform_5(%arg0: i32) -> (i32, i32) {
    %c0_i32 = arith.constant 0 : i32
    %c0_i32_0 = arith.constant 0 : i32
    %c0_i32_1 = arith.constant 0 : i32
    return %c0_i32, %c0_i32_0 : i32, i32
  }
  func.func @transform_6(%arg0: i32) -> (i32, i32) {
    %c0_i32 = arith.constant 0 : i32
    %c0_i32_0 = arith.constant 0 : i32
    return %arg0, %c0_i32 : i32, i32
  }
}

module attributes {stable_mosaic.version = 11 : i64} {
  func.func @_maxpool_kernel(%arg0: i32, %arg1: memref<1x2x8x2x8xbf16, #tpu.memory_space<vmem>>, %arg2: memref<1x8x8xbf16, #tpu.memory_space<vmem>>) attributes {dimension_semantics = [#tpu.dimension_semantics<parallel>], iteration_bounds = array<i64: 16>, scalar_prefetch = 0 : i64, scratch_operands = 0 : i64, tpu.core_type = #tpu.core_type<tc>, window_params = [{transform_indices = @transform_0, window_bounds = array<i64: 1, 2, 8, 2, 8>}, {transform_indices = @transform_1, window_bounds = array<i64: 1, 8, 8>}]} {
    %c0 = arith.constant 0 : index
    %c0_0 = arith.constant 0 : index
    %c0_1 = arith.constant 0 : index
    %c0_2 = arith.constant 0 : index
    %c0_3 = arith.constant 0 : index
    %0 = vector.load %arg1[%c0, %c0_0, %c0_1, %c0_2, %c0_3] : memref<1x2x8x2x8xbf16, #tpu.memory_space<vmem>>, vector<1x2x8x2x8xbf16>
    %1 = arith.extf %0 : vector<1x2x8x2x8xbf16> to vector<1x2x8x2x8xf32>
    %cst = arith.constant dense<0xFF800000> : vector<1x2x8x8xf32>
    %2 = vector.multi_reduction <maximumf>, %1, %cst [3] : vector<1x2x8x2x8xf32> to vector<1x2x8x8xf32>
    %cst_4 = arith.constant dense<0xFF800000> : vector<1x8x8xf32>
    %3 = vector.multi_reduction <maximumf>, %2, %cst_4 [1] : vector<1x2x8x8xf32> to vector<1x8x8xf32>
    %4 = arith.truncf %3 : vector<1x8x8xf32> to vector<1x8x8xbf16>
    %c0_5 = arith.constant 0 : index
    %c0_6 = arith.constant 0 : index
    %c0_7 = arith.constant 0 : index
    %5 = vector.load %arg2[%c0_5, %c0_6, %c0_7] : memref<1x8x8xbf16, #tpu.memory_space<vmem>>, vector<1x8x8xbf16>
    tpu.vector_store %arg2[%c0_5, %c0_6, %c0_7], %4 {strides = array<i32>} : memref<1x8x8xbf16, #tpu.memory_space<vmem>>, vector<1x8x8xbf16>,
    return
  }
  func.func @transform_0(%arg0: i32) -> (i32, i32, i32, i32, i32) {
    %c0_i32 = arith.constant 0 : i32
    %c0_i32_0 = arith.constant 0 : i32
    %c0_i32_1 = arith.constant 0 : i32
    %c0_i32_2 = arith.constant 0 : i32
    %c0_i32_3 = arith.constant 0 : i32
    return %arg0, %c0_i32, %c0_i32_0, %c0_i32_1, %c0_i32_2 : i32, i32, i32, i32, i32
  }
  func.func @transform_1(%arg0: i32) -> (i32, i32, i32) {
    %c0_i32 = arith.constant 0 : i32
    %c0_i32_0 = arith.constant 0 : i32
    %c0_i32_1 = arith.constant 0 : i32
    return %arg0, %c0_i32, %c0_i32_0 : i32, i32, i32
  }
}

module attributes {stable_mosaic.version = 11 : i64} {
  func.func @_mm_bias_kernel(%arg0: i32, %arg1: memref<128x72xbf16, #tpu.memory_space<vmem>>, %arg2: memref<72x16xbf16, #tpu.memory_space<vmem>>, %arg3: memref<1x16xf32, #tpu.memory_space<vmem>>, %arg4: memref<128x16xbf16, #tpu.memory_space<vmem>>) attributes {dimension_semantics = [#tpu.dimension_semantics<parallel>], iteration_bounds = array<i64: 1>, scalar_prefetch = 0 : i64, scratch_operands = 0 : i64, tpu.core_type = #tpu.core_type<tc>, window_params = [{transform_indices = @transform_0, window_bounds = array<i64: 128, 72>}, {pipeline_mode = #tpu.pipeline_mode<synchronous>, transform_indices = @transform_1, window_bounds = array<i64: 72, 16>}, {pipeline_mode = #tpu.pipeline_mode<synchronous>, transform_indices = @transform_2, window_bounds = array<i64: 1, 16>}, {transform_indices = @transform_3, window_bounds = array<i64: 128, 16>}]} {
    %c0 = arith.constant 0 : index
    %c0_0 = arith.constant 0 : index
    %0 = vector.load %arg1[%c0, %c0_0] : memref<128x72xbf16, #tpu.memory_space<vmem>>, vector<128x72xbf16>
    %c0_1 = arith.constant 0 : index
    %c0_2 = arith.constant 0 : index
    %1 = vector.load %arg2[%c0_1, %c0_2] : memref<72x16xbf16, #tpu.memory_space<vmem>>, vector<72x16xbf16>
    %cst = arith.constant dense<0.000000e+00> : vector<128x16xf32>
    %2 = tpu.matmul %0, %1, %cst {dimension_numbers = #tpu.dot_dimension_numbers<[1], [0], [0], [1], [0, 0, 1, 1], [], []>} : vector<128x72xbf16>, vector<72x16xbf16>, vector<128x16xf32> -> vector<128x16xf32>
    %c0_3 = arith.constant 0 : index
    %c0_4 = arith.constant 0 : index
    %3 = vector.load %arg3[%c0_3, %c0_4] : memref<1x16xf32, #tpu.memory_space<vmem>>, vector<1x16xf32>
    %4 = vector.broadcast %3 : vector<1x16xf32> to vector<128x16xf32>
    %5 = arith.addf %2, %4 : vector<128x16xf32>
    %cst_5 = arith.constant 0.000000e+00 : f32
    %6 = vector.broadcast %cst_5 : f32 to vector<128x16xf32>
    %7 = arith.cmpf oge, %5, %6 : vector<128x16xf32>
    %cst_6 = arith.constant 1.000000e-01 : f32
    %8 = vector.broadcast %cst_6 : f32 to vector<128x16xf32>
    %9 = arith.mulf %8, %5 : vector<128x16xf32>
    %10 = arith.select %7, %5, %9 : vector<128x16xi1>, vector<128x16xf32>
    %11 = arith.truncf %10 : vector<128x16xf32> to vector<128x16xbf16>
    %c0_7 = arith.constant 0 : index
    %c0_8 = arith.constant 0 : index
    %12 = vector.load %arg4[%c0_7, %c0_8] : memref<128x16xbf16, #tpu.memory_space<vmem>>, vector<128x16xbf16>
    tpu.vector_store %arg4[%c0_7, %c0_8], %11 {strides = array<i32>} : memref<128x16xbf16, #tpu.memory_space<vmem>>, vector<128x16xbf16>,
    return
  }
  func.func @transform_0(%arg0: i32) -> (i32, i32) {
    %c0_i32 = arith.constant 0 : i32
    %c0_i32_0 = arith.constant 0 : i32
    return %arg0, %c0_i32 : i32, i32
  }
  func.func @transform_1(%arg0: i32) -> (i32, i32) {
    %c0_i32 = arith.constant 0 : i32
    %c0_i32_0 = arith.constant 0 : i32
    %c0_i32_1 = arith.constant 0 : i32
    return %c0_i32, %c0_i32_0 : i32, i32
  }
  func.func @transform_2(%arg0: i32) -> (i32, i32) {
    %c0_i32 = arith.constant 0 : i32
    %c0_i32_0 = arith.constant 0 : i32
    %c0_i32_1 = arith.constant 0 : i32
    return %c0_i32, %c0_i32_0 : i32, i32
  }
  func.func @transform_3(%arg0: i32) -> (i32, i32) {
    %c0_i32 = arith.constant 0 : i32
    %c0_i32_0 = arith.constant 0 : i32
    return %arg0, %c0_i32 : i32, i32
  }
}

module attributes {stable_mosaic.version = 11 : i64} {
  func.func @_mm_bias_kernel(%arg0: i32, %arg1: memref<128x144xbf16, #tpu.memory_space<vmem>>, %arg2: memref<144x16xbf16, #tpu.memory_space<vmem>>, %arg3: memref<1x16xf32, #tpu.memory_space<vmem>>, %arg4: memref<128x16xbf16, #tpu.memory_space<vmem>>) attributes {dimension_semantics = [#tpu.dimension_semantics<parallel>], iteration_bounds = array<i64: 1>, scalar_prefetch = 0 : i64, scratch_operands = 0 : i64, tpu.core_type = #tpu.core_type<tc>, window_params = [{transform_indices = @transform_0, window_bounds = array<i64: 128, 144>}, {pipeline_mode = #tpu.pipeline_mode<synchronous>, transform_indices = @transform_1, window_bounds = array<i64: 144, 16>}, {pipeline_mode = #tpu.pipeline_mode<synchronous>, transform_indices = @transform_2, window_bounds = array<i64: 1, 16>}, {transform_indices = @transform_3, window_bounds = array<i64: 128, 16>}]} {
    %c0 = arith.constant 0 : index
    %c0_0 = arith.constant 0 : index
    %0 = vector.load %arg1[%c0, %c0_0] : memref<128x144xbf16, #tpu.memory_space<vmem>>, vector<128x144xbf16>
    %c0_1 = arith.constant 0 : index
    %c0_2 = arith.constant 0 : index
    %1 = vector.load %arg2[%c0_1, %c0_2] : memref<144x16xbf16, #tpu.memory_space<vmem>>, vector<144x16xbf16>
    %cst = arith.constant dense<0.000000e+00> : vector<128x16xf32>
    %2 = tpu.matmul %0, %1, %cst {dimension_numbers = #tpu.dot_dimension_numbers<[1], [0], [0], [1], [0, 0, 1, 1], [], []>} : vector<128x144xbf16>, vector<144x16xbf16>, vector<128x16xf32> -> vector<128x16xf32>
    %c0_3 = arith.constant 0 : index
    %c0_4 = arith.constant 0 : index
    %3 = vector.load %arg3[%c0_3, %c0_4] : memref<1x16xf32, #tpu.memory_space<vmem>>, vector<1x16xf32>
    %4 = vector.broadcast %3 : vector<1x16xf32> to vector<128x16xf32>
    %5 = arith.addf %2, %4 : vector<128x16xf32>
    %cst_5 = arith.constant 0.000000e+00 : f32
    %6 = vector.broadcast %cst_5 : f32 to vector<128x16xf32>
    %7 = arith.cmpf oge, %5, %6 : vector<128x16xf32>
    %cst_6 = arith.constant 1.000000e-01 : f32
    %8 = vector.broadcast %cst_6 : f32 to vector<128x16xf32>
    %9 = arith.mulf %8, %5 : vector<128x16xf32>
    %10 = arith.select %7, %5, %9 : vector<128x16xi1>, vector<128x16xf32>
    %11 = arith.truncf %10 : vector<128x16xf32> to vector<128x16xbf16>
    %c0_7 = arith.constant 0 : index
    %c0_8 = arith.constant 0 : index
    %12 = vector.load %arg4[%c0_7, %c0_8] : memref<128x16xbf16, #tpu.memory_space<vmem>>, vector<128x16xbf16>
    tpu.vector_store %arg4[%c0_7, %c0_8], %11 {strides = array<i32>} : memref<128x16xbf16, #tpu.memory_space<vmem>>, vector<128x16xbf16>,
    return
  }
  func.func @transform_0(%arg0: i32) -> (i32, i32) {
    %c0_i32 = arith.constant 0 : i32
    %c0_i32_0 = arith.constant 0 : i32
    return %arg0, %c0_i32 : i32, i32
  }
  func.func @transform_1(%arg0: i32) -> (i32, i32) {
    %c0_i32 = arith.constant 0 : i32
    %c0_i32_0 = arith.constant 0 : i32
    %c0_i32_1 = arith.constant 0 : i32
    return %c0_i32, %c0_i32_0 : i32, i32
  }
  func.func @transform_2(%arg0: i32) -> (i32, i32) {
    %c0_i32 = arith.constant 0 : i32
    %c0_i32_0 = arith.constant 0 : i32
    %c0_i32_1 = arith.constant 0 : i32
    return %c0_i32, %c0_i32_0 : i32, i32
  }
  func.func @transform_3(%arg0: i32) -> (i32, i32) {
    %c0_i32 = arith.constant 0 : i32
    %c0_i32_0 = arith.constant 0 : i32
    return %arg0, %c0_i32 : i32, i32
  }
}

module attributes {stable_mosaic.version = 11 : i64} {
  func.func @_mm_residual_kernel(%arg0: i32, %arg1: memref<128x144xbf16, #tpu.memory_space<vmem>>, %arg2: memref<144x16xbf16, #tpu.memory_space<vmem>>, %arg3: memref<1x16xf32, #tpu.memory_space<vmem>>, %arg4: memref<128x8xbf16, #tpu.memory_space<vmem>>, %arg5: memref<8x16xbf16, #tpu.memory_space<vmem>>, %arg6: memref<1x16xf32, #tpu.memory_space<vmem>>, %arg7: memref<128x16xbf16, #tpu.memory_space<vmem>>) attributes {dimension_semantics = [#tpu.dimension_semantics<parallel>], iteration_bounds = array<i64: 1>, scalar_prefetch = 0 : i64, scratch_operands = 0 : i64, tpu.core_type = #tpu.core_type<tc>, window_params = [{transform_indices = @transform_0, window_bounds = array<i64: 128, 144>}, {pipeline_mode = #tpu.pipeline_mode<synchronous>, transform_indices = @transform_1, window_bounds = array<i64: 144, 16>}, {pipeline_mode = #tpu.pipeline_mode<synchronous>, transform_indices = @transform_2, window_bounds = array<i64: 1, 16>}, {transform_indices = @transform_3, window_bounds = array<i64: 128, 8>}, {pipeline_mode = #tpu.pipeline_mode<synchronous>, transform_indices = @transform_4, window_bounds = array<i64: 8, 16>}, {pipeline_mode = #tpu.pipeline_mode<synchronous>, transform_indices = @transform_5, window_bounds = array<i64: 1, 16>}, {transform_indices = @transform_6, window_bounds = array<i64: 128, 16>}]} {
    %c0 = arith.constant 0 : index
    %c0_0 = arith.constant 0 : index
    %0 = vector.load %arg1[%c0, %c0_0] : memref<128x144xbf16, #tpu.memory_space<vmem>>, vector<128x144xbf16>
    %c0_1 = arith.constant 0 : index
    %c0_2 = arith.constant 0 : index
    %1 = vector.load %arg2[%c0_1, %c0_2] : memref<144x16xbf16, #tpu.memory_space<vmem>>, vector<144x16xbf16>
    %cst = arith.constant dense<0.000000e+00> : vector<128x16xf32>
    %2 = tpu.matmul %0, %1, %cst {dimension_numbers = #tpu.dot_dimension_numbers<[1], [0], [0], [1], [0, 0, 1, 1], [], []>} : vector<128x144xbf16>, vector<144x16xbf16>, vector<128x16xf32> -> vector<128x16xf32>
    %c0_3 = arith.constant 0 : index
    %c0_4 = arith.constant 0 : index
    %3 = vector.load %arg3[%c0_3, %c0_4] : memref<1x16xf32, #tpu.memory_space<vmem>>, vector<1x16xf32>
    %4 = vector.broadcast %3 : vector<1x16xf32> to vector<128x16xf32>
    %5 = arith.addf %2, %4 : vector<128x16xf32>
    %c0_5 = arith.constant 0 : index
    %c0_6 = arith.constant 0 : index
    %6 = vector.load %arg4[%c0_5, %c0_6] : memref<128x8xbf16, #tpu.memory_space<vmem>>, vector<128x8xbf16>
    %c0_7 = arith.constant 0 : index
    %c0_8 = arith.constant 0 : index
    %7 = vector.load %arg5[%c0_7, %c0_8] : memref<8x16xbf16, #tpu.memory_space<vmem>>, vector<8x16xbf16>
    %cst_9 = arith.constant dense<0.000000e+00> : vector<128x16xf32>
    %8 = tpu.matmul %6, %7, %cst_9 {dimension_numbers = #tpu.dot_dimension_numbers<[1], [0], [0], [1], [0, 0, 1, 1], [], []>} : vector<128x8xbf16>, vector<8x16xbf16>, vector<128x16xf32> -> vector<128x16xf32>
    %c0_10 = arith.constant 0 : index
    %c0_11 = arith.constant 0 : index
    %9 = vector.load %arg6[%c0_10, %c0_11] : memref<1x16xf32, #tpu.memory_space<vmem>>, vector<1x16xf32>
    %10 = vector.broadcast %9 : vector<1x16xf32> to vector<128x16xf32>
    %11 = arith.addf %8, %10 : vector<128x16xf32>
    %12 = arith.addf %5, %11 : vector<128x16xf32>
    %cst_12 = arith.constant 0.000000e+00 : f32
    %13 = vector.broadcast %cst_12 : f32 to vector<128x16xf32>
    %14 = arith.cmpf oge, %12, %13 : vector<128x16xf32>
    %cst_13 = arith.constant 1.000000e-01 : f32
    %15 = vector.broadcast %cst_13 : f32 to vector<128x16xf32>
    %16 = arith.mulf %15, %12 : vector<128x16xf32>
    %17 = arith.select %14, %12, %16 : vector<128x16xi1>, vector<128x16xf32>
    %18 = arith.truncf %17 : vector<128x16xf32> to vector<128x16xbf16>
    %c0_14 = arith.constant 0 : index
    %c0_15 = arith.constant 0 : index
    %19 = vector.load %arg7[%c0_14, %c0_15] : memref<128x16xbf16, #tpu.memory_space<vmem>>, vector<128x16xbf16>
    tpu.vector_store %arg7[%c0_14, %c0_15], %18 {strides = array<i32>} : memref<128x16xbf16, #tpu.memory_space<vmem>>, vector<128x16xbf16>,
    return
  }
  func.func @transform_0(%arg0: i32) -> (i32, i32) {
    %c0_i32 = arith.constant 0 : i32
    %c0_i32_0 = arith.constant 0 : i32
    return %arg0, %c0_i32 : i32, i32
  }
  func.func @transform_1(%arg0: i32) -> (i32, i32) {
    %c0_i32 = arith.constant 0 : i32
    %c0_i32_0 = arith.constant 0 : i32
    %c0_i32_1 = arith.constant 0 : i32
    return %c0_i32, %c0_i32_0 : i32, i32
  }
  func.func @transform_2(%arg0: i32) -> (i32, i32) {
    %c0_i32 = arith.constant 0 : i32
    %c0_i32_0 = arith.constant 0 : i32
    %c0_i32_1 = arith.constant 0 : i32
    return %c0_i32, %c0_i32_0 : i32, i32
  }
  func.func @transform_3(%arg0: i32) -> (i32, i32) {
    %c0_i32 = arith.constant 0 : i32
    %c0_i32_0 = arith.constant 0 : i32
    return %arg0, %c0_i32 : i32, i32
  }
  func.func @transform_4(%arg0: i32) -> (i32, i32) {
    %c0_i32 = arith.constant 0 : i32
    %c0_i32_0 = arith.constant 0 : i32
    %c0_i32_1 = arith.constant 0 : i32
    return %c0_i32, %c0_i32_0 : i32, i32
  }
  func.func @transform_5(%arg0: i32) -> (i32, i32) {
    %c0_i32 = arith.constant 0 : i32
    %c0_i32_0 = arith.constant 0 : i32
    %c0_i32_1 = arith.constant 0 : i32
    return %c0_i32, %c0_i32_0 : i32, i32
  }
  func.func @transform_6(%arg0: i32) -> (i32, i32) {
    %c0_i32 = arith.constant 0 : i32
    %c0_i32_0 = arith.constant 0 : i32
    return %arg0, %c0_i32 : i32, i32
  }
}

module attributes {stable_mosaic.version = 11 : i64} {
  func.func @_maxpool_kernel(%arg0: i32, %arg1: memref<1x2x4x2x16xbf16, #tpu.memory_space<vmem>>, %arg2: memref<1x4x16xbf16, #tpu.memory_space<vmem>>) attributes {dimension_semantics = [#tpu.dimension_semantics<parallel>], iteration_bounds = array<i64: 8>, scalar_prefetch = 0 : i64, scratch_operands = 0 : i64, tpu.core_type = #tpu.core_type<tc>, window_params = [{transform_indices = @transform_0, window_bounds = array<i64: 1, 2, 4, 2, 16>}, {transform_indices = @transform_1, window_bounds = array<i64: 1, 4, 16>}]} {
    %c0 = arith.constant 0 : index
    %c0_0 = arith.constant 0 : index
    %c0_1 = arith.constant 0 : index
    %c0_2 = arith.constant 0 : index
    %c0_3 = arith.constant 0 : index
    %0 = vector.load %arg1[%c0, %c0_0, %c0_1, %c0_2, %c0_3] : memref<1x2x4x2x16xbf16, #tpu.memory_space<vmem>>, vector<1x2x4x2x16xbf16>
    %1 = arith.extf %0 : vector<1x2x4x2x16xbf16> to vector<1x2x4x2x16xf32>
    %cst = arith.constant dense<0xFF800000> : vector<1x2x4x16xf32>
    %2 = vector.multi_reduction <maximumf>, %1, %cst [3] : vector<1x2x4x2x16xf32> to vector<1x2x4x16xf32>
    %cst_4 = arith.constant dense<0xFF800000> : vector<1x4x16xf32>
    %3 = vector.multi_reduction <maximumf>, %2, %cst_4 [1] : vector<1x2x4x16xf32> to vector<1x4x16xf32>
    %4 = arith.truncf %3 : vector<1x4x16xf32> to vector<1x4x16xbf16>
    %c0_5 = arith.constant 0 : index
    %c0_6 = arith.constant 0 : index
    %c0_7 = arith.constant 0 : index
    %5 = vector.load %arg2[%c0_5, %c0_6, %c0_7] : memref<1x4x16xbf16, #tpu.memory_space<vmem>>, vector<1x4x16xbf16>
    tpu.vector_store %arg2[%c0_5, %c0_6, %c0_7], %4 {strides = array<i32>} : memref<1x4x16xbf16, #tpu.memory_space<vmem>>, vector<1x4x16xbf16>,
    return
  }
  func.func @transform_0(%arg0: i32) -> (i32, i32, i32, i32, i32) {
    %c0_i32 = arith.constant 0 : i32
    %c0_i32_0 = arith.constant 0 : i32
    %c0_i32_1 = arith.constant 0 : i32
    %c0_i32_2 = arith.constant 0 : i32
    %c0_i32_3 = arith.constant 0 : i32
    return %arg0, %c0_i32, %c0_i32_0, %c0_i32_1, %c0_i32_2 : i32, i32, i32, i32, i32
  }
  func.func @transform_1(%arg0: i32) -> (i32, i32, i32) {
    %c0_i32 = arith.constant 0 : i32
    %c0_i32_0 = arith.constant 0 : i32
    %c0_i32_1 = arith.constant 0 : i32
    return %arg0, %c0_i32, %c0_i32_0 : i32, i32, i32
  }
}

module attributes {stable_mosaic.version = 11 : i64} {
  func.func @_mm_bias_kernel(%arg0: i32, %arg1: memref<32x144xbf16, #tpu.memory_space<vmem>>, %arg2: memref<144x32xbf16, #tpu.memory_space<vmem>>, %arg3: memref<1x32xf32, #tpu.memory_space<vmem>>, %arg4: memref<32x32xbf16, #tpu.memory_space<vmem>>) attributes {dimension_semantics = [#tpu.dimension_semantics<parallel>], iteration_bounds = array<i64: 1>, scalar_prefetch = 0 : i64, scratch_operands = 0 : i64, tpu.core_type = #tpu.core_type<tc>, window_params = [{transform_indices = @transform_0, window_bounds = array<i64: 32, 144>}, {pipeline_mode = #tpu.pipeline_mode<synchronous>, transform_indices = @transform_1, window_bounds = array<i64: 144, 32>}, {pipeline_mode = #tpu.pipeline_mode<synchronous>, transform_indices = @transform_2, window_bounds = array<i64: 1, 32>}, {transform_indices = @transform_3, window_bounds = array<i64: 32, 32>}]} {
    %c0 = arith.constant 0 : index
    %c0_0 = arith.constant 0 : index
    %0 = vector.load %arg1[%c0, %c0_0] : memref<32x144xbf16, #tpu.memory_space<vmem>>, vector<32x144xbf16>
    %c0_1 = arith.constant 0 : index
    %c0_2 = arith.constant 0 : index
    %1 = vector.load %arg2[%c0_1, %c0_2] : memref<144x32xbf16, #tpu.memory_space<vmem>>, vector<144x32xbf16>
    %cst = arith.constant dense<0.000000e+00> : vector<32x32xf32>
    %2 = tpu.matmul %0, %1, %cst {dimension_numbers = #tpu.dot_dimension_numbers<[1], [0], [0], [1], [0, 0, 1, 1], [], []>} : vector<32x144xbf16>, vector<144x32xbf16>, vector<32x32xf32> -> vector<32x32xf32>
    %c0_3 = arith.constant 0 : index
    %c0_4 = arith.constant 0 : index
    %3 = vector.load %arg3[%c0_3, %c0_4] : memref<1x32xf32, #tpu.memory_space<vmem>>, vector<1x32xf32>
    %4 = vector.broadcast %3 : vector<1x32xf32> to vector<32x32xf32>
    %5 = arith.addf %2, %4 : vector<32x32xf32>
    %cst_5 = arith.constant 0.000000e+00 : f32
    %6 = vector.broadcast %cst_5 : f32 to vector<32x32xf32>
    %7 = arith.cmpf oge, %5, %6 : vector<32x32xf32>
    %cst_6 = arith.constant 1.000000e-01 : f32
    %8 = vector.broadcast %cst_6 : f32 to vector<32x32xf32>
    %9 = arith.mulf %8, %5 : vector<32x32xf32>
    %10 = arith.select %7, %5, %9 : vector<32x32xi1>, vector<32x32xf32>
    %11 = arith.truncf %10 : vector<32x32xf32> to vector<32x32xbf16>
    %c0_7 = arith.constant 0 : index
    %c0_8 = arith.constant 0 : index
    %12 = vector.load %arg4[%c0_7, %c0_8] : memref<32x32xbf16, #tpu.memory_space<vmem>>, vector<32x32xbf16>
    tpu.vector_store %arg4[%c0_7, %c0_8], %11 {strides = array<i32>} : memref<32x32xbf16, #tpu.memory_space<vmem>>, vector<32x32xbf16>,
    return
  }
  func.func @transform_0(%arg0: i32) -> (i32, i32) {
    %c0_i32 = arith.constant 0 : i32
    %c0_i32_0 = arith.constant 0 : i32
    return %arg0, %c0_i32 : i32, i32
  }
  func.func @transform_1(%arg0: i32) -> (i32, i32) {
    %c0_i32 = arith.constant 0 : i32
    %c0_i32_0 = arith.constant 0 : i32
    %c0_i32_1 = arith.constant 0 : i32
    return %c0_i32, %c0_i32_0 : i32, i32
  }
  func.func @transform_2(%arg0: i32) -> (i32, i32) {
    %c0_i32 = arith.constant 0 : i32
    %c0_i32_0 = arith.constant 0 : i32
    %c0_i32_1 = arith.constant 0 : i32
    return %c0_i32, %c0_i32_0 : i32, i32
  }
  func.func @transform_3(%arg0: i32) -> (i32, i32) {
    %c0_i32 = arith.constant 0 : i32
    %c0_i32_0 = arith.constant 0 : i32
    return %arg0, %c0_i32 : i32, i32
  }
}

module attributes {stable_mosaic.version = 11 : i64} {
  func.func @_mm_bias_kernel(%arg0: i32, %arg1: memref<32x288xbf16, #tpu.memory_space<vmem>>, %arg2: memref<288x32xbf16, #tpu.memory_space<vmem>>, %arg3: memref<1x32xf32, #tpu.memory_space<vmem>>, %arg4: memref<32x32xbf16, #tpu.memory_space<vmem>>) attributes {dimension_semantics = [#tpu.dimension_semantics<parallel>], iteration_bounds = array<i64: 1>, scalar_prefetch = 0 : i64, scratch_operands = 0 : i64, tpu.core_type = #tpu.core_type<tc>, window_params = [{transform_indices = @transform_0, window_bounds = array<i64: 32, 288>}, {pipeline_mode = #tpu.pipeline_mode<synchronous>, transform_indices = @transform_1, window_bounds = array<i64: 288, 32>}, {pipeline_mode = #tpu.pipeline_mode<synchronous>, transform_indices = @transform_2, window_bounds = array<i64: 1, 32>}, {transform_indices = @transform_3, window_bounds = array<i64: 32, 32>}]} {
    %c0 = arith.constant 0 : index
    %c0_0 = arith.constant 0 : index
    %0 = vector.load %arg1[%c0, %c0_0] : memref<32x288xbf16, #tpu.memory_space<vmem>>, vector<32x288xbf16>
    %c0_1 = arith.constant 0 : index
    %c0_2 = arith.constant 0 : index
    %1 = vector.load %arg2[%c0_1, %c0_2] : memref<288x32xbf16, #tpu.memory_space<vmem>>, vector<288x32xbf16>
    %cst = arith.constant dense<0.000000e+00> : vector<32x32xf32>
    %2 = tpu.matmul %0, %1, %cst {dimension_numbers = #tpu.dot_dimension_numbers<[1], [0], [0], [1], [0, 0, 1, 1], [], []>} : vector<32x288xbf16>, vector<288x32xbf16>, vector<32x32xf32> -> vector<32x32xf32>
    %c0_3 = arith.constant 0 : index
    %c0_4 = arith.constant 0 : index
    %3 = vector.load %arg3[%c0_3, %c0_4] : memref<1x32xf32, #tpu.memory_space<vmem>>, vector<1x32xf32>
    %4 = vector.broadcast %3 : vector<1x32xf32> to vector<32x32xf32>
    %5 = arith.addf %2, %4 : vector<32x32xf32>
    %cst_5 = arith.constant 0.000000e+00 : f32
    %6 = vector.broadcast %cst_5 : f32 to vector<32x32xf32>
    %7 = arith.cmpf oge, %5, %6 : vector<32x32xf32>
    %cst_6 = arith.constant 1.000000e-01 : f32
    %8 = vector.broadcast %cst_6 : f32 to vector<32x32xf32>
    %9 = arith.mulf %8, %5 : vector<32x32xf32>
    %10 = arith.select %7, %5, %9 : vector<32x32xi1>, vector<32x32xf32>
    %11 = arith.truncf %10 : vector<32x32xf32> to vector<32x32xbf16>
    %c0_7 = arith.constant 0 : index
    %c0_8 = arith.constant 0 : index
    %12 = vector.load %arg4[%c0_7, %c0_8] : memref<32x32xbf16, #tpu.memory_space<vmem>>, vector<32x32xbf16>
    tpu.vector_store %arg4[%c0_7, %c0_8], %11 {strides = array<i32>} : memref<32x32xbf16, #tpu.memory_space<vmem>>, vector<32x32xbf16>,
    return
  }
  func.func @transform_0(%arg0: i32) -> (i32, i32) {
    %c0_i32 = arith.constant 0 : i32
    %c0_i32_0 = arith.constant 0 : i32
    return %arg0, %c0_i32 : i32, i32
  }
  func.func @transform_1(%arg0: i32) -> (i32, i32) {
    %c0_i32 = arith.constant 0 : i32
    %c0_i32_0 = arith.constant 0 : i32
    %c0_i32_1 = arith.constant 0 : i32
    return %c0_i32, %c0_i32_0 : i32, i32
  }
  func.func @transform_2(%arg0: i32) -> (i32, i32) {
    %c0_i32 = arith.constant 0 : i32
    %c0_i32_0 = arith.constant 0 : i32
    %c0_i32_1 = arith.constant 0 : i32
    return %c0_i32, %c0_i32_0 : i32, i32
  }
  func.func @transform_3(%arg0: i32) -> (i32, i32) {
    %c0_i32 = arith.constant 0 : i32
    %c0_i32_0 = arith.constant 0 : i32
    return %arg0, %c0_i32 : i32, i32
  }
}

module attributes {stable_mosaic.version = 11 : i64} {
  func.func @_maxpool_kernel(%arg0: i32, %arg1: memref<1x2x2x2x32xbf16, #tpu.memory_space<vmem>>, %arg2: memref<1x2x32xbf16, #tpu.memory_space<vmem>>) attributes {dimension_semantics = [#tpu.dimension_semantics<parallel>], iteration_bounds = array<i64: 4>, scalar_prefetch = 0 : i64, scratch_operands = 0 : i64, tpu.core_type = #tpu.core_type<tc>, window_params = [{transform_indices = @transform_0, window_bounds = array<i64: 1, 2, 2, 2, 32>}, {transform_indices = @transform_1, window_bounds = array<i64: 1, 2, 32>}]} {
    %c0 = arith.constant 0 : index
    %c0_0 = arith.constant 0 : index
    %c0_1 = arith.constant 0 : index
    %c0_2 = arith.constant 0 : index
    %c0_3 = arith.constant 0 : index
    %0 = vector.load %arg1[%c0, %c0_0, %c0_1, %c0_2, %c0_3] : memref<1x2x2x2x32xbf16, #tpu.memory_space<vmem>>, vector<1x2x2x2x32xbf16>
    %1 = arith.extf %0 : vector<1x2x2x2x32xbf16> to vector<1x2x2x2x32xf32>
    %cst = arith.constant dense<0xFF800000> : vector<1x2x2x32xf32>
    %2 = vector.multi_reduction <maximumf>, %1, %cst [3] : vector<1x2x2x2x32xf32> to vector<1x2x2x32xf32>
    %cst_4 = arith.constant dense<0xFF800000> : vector<1x2x32xf32>
    %3 = vector.multi_reduction <maximumf>, %2, %cst_4 [1] : vector<1x2x2x32xf32> to vector<1x2x32xf32>
    %4 = arith.truncf %3 : vector<1x2x32xf32> to vector<1x2x32xbf16>
    %c0_5 = arith.constant 0 : index
    %c0_6 = arith.constant 0 : index
    %c0_7 = arith.constant 0 : index
    %5 = vector.load %arg2[%c0_5, %c0_6, %c0_7] : memref<1x2x32xbf16, #tpu.memory_space<vmem>>, vector<1x2x32xbf16>
    tpu.vector_store %arg2[%c0_5, %c0_6, %c0_7], %4 {strides = array<i32>} : memref<1x2x32xbf16, #tpu.memory_space<vmem>>, vector<1x2x32xbf16>,
    return
  }
  func.func @transform_0(%arg0: i32) -> (i32, i32, i32, i32, i32) {
    %c0_i32 = arith.constant 0 : i32
    %c0_i32_0 = arith.constant 0 : i32
    %c0_i32_1 = arith.constant 0 : i32
    %c0_i32_2 = arith.constant 0 : i32
    %c0_i32_3 = arith.constant 0 : i32
    return %arg0, %c0_i32, %c0_i32_0, %c0_i32_1, %c0_i32_2 : i32, i32, i32, i32, i32
  }
  func.func @transform_1(%arg0: i32) -> (i32, i32, i32) {
    %c0_i32 = arith.constant 0 : i32
    %c0_i32_0 = arith.constant 0 : i32
    %c0_i32_1 = arith.constant 0 : i32
    return %arg0, %c0_i32, %c0_i32_0 : i32, i32, i32
  }
}

module attributes {stable_mosaic.version = 11 : i64} {
  func.func @_mm_residual_kernel(%arg0: i32, %arg1: memref<32x288xbf16, #tpu.memory_space<vmem>>, %arg2: memref<288x32xbf16, #tpu.memory_space<vmem>>, %arg3: memref<1x32xf32, #tpu.memory_space<vmem>>, %arg4: memref<32x16xbf16, #tpu.memory_space<vmem>>, %arg5: memref<16x32xbf16, #tpu.memory_space<vmem>>, %arg6: memref<1x32xf32, #tpu.memory_space<vmem>>, %arg7: memref<32x32xbf16, #tpu.memory_space<vmem>>) attributes {dimension_semantics = [#tpu.dimension_semantics<parallel>], iteration_bounds = array<i64: 1>, scalar_prefetch = 0 : i64, scratch_operands = 0 : i64, tpu.core_type = #tpu.core_type<tc>, window_params = [{transform_indices = @transform_0, window_bounds = array<i64: 32, 288>}, {pipeline_mode = #tpu.pipeline_mode<synchronous>, transform_indices = @transform_1, window_bounds = array<i64: 288, 32>}, {pipeline_mode = #tpu.pipeline_mode<synchronous>, transform_indices = @transform_2, window_bounds = array<i64: 1, 32>}, {transform_indices = @transform_3, window_bounds = array<i64: 32, 16>}, {pipeline_mode = #tpu.pipeline_mode<synchronous>, transform_indices = @transform_4, window_bounds = array<i64: 16, 32>}, {pipeline_mode = #tpu.pipeline_mode<synchronous>, transform_indices = @transform_5, window_bounds = array<i64: 1, 32>}, {transform_indices = @transform_6, window_bounds = array<i64: 32, 32>}]} {
    %c0 = arith.constant 0 : index
    %c0_0 = arith.constant 0 : index
    %0 = vector.load %arg1[%c0, %c0_0] : memref<32x288xbf16, #tpu.memory_space<vmem>>, vector<32x288xbf16>
    %c0_1 = arith.constant 0 : index
    %c0_2 = arith.constant 0 : index
    %1 = vector.load %arg2[%c0_1, %c0_2] : memref<288x32xbf16, #tpu.memory_space<vmem>>, vector<288x32xbf16>
    %cst = arith.constant dense<0.000000e+00> : vector<32x32xf32>
    %2 = tpu.matmul %0, %1, %cst {dimension_numbers = #tpu.dot_dimension_numbers<[1], [0], [0], [1], [0, 0, 1, 1], [], []>} : vector<32x288xbf16>, vector<288x32xbf16>, vector<32x32xf32> -> vector<32x32xf32>
    %c0_3 = arith.constant 0 : index
    %c0_4 = arith.constant 0 : index
    %3 = vector.load %arg3[%c0_3, %c0_4] : memref<1x32xf32, #tpu.memory_space<vmem>>, vector<1x32xf32>
    %4 = vector.broadcast %3 : vector<1x32xf32> to vector<32x32xf32>
    %5 = arith.addf %2, %4 : vector<32x32xf32>
    %c0_5 = arith.constant 0 : index
    %c0_6 = arith.constant 0 : index
    %6 = vector.load %arg4[%c0_5, %c0_6] : memref<32x16xbf16, #tpu.memory_space<vmem>>, vector<32x16xbf16>
    %c0_7 = arith.constant 0 : index
    %c0_8 = arith.constant 0 : index
    %7 = vector.load %arg5[%c0_7, %c0_8] : memref<16x32xbf16, #tpu.memory_space<vmem>>, vector<16x32xbf16>
    %cst_9 = arith.constant dense<0.000000e+00> : vector<32x32xf32>
    %8 = tpu.matmul %6, %7, %cst_9 {dimension_numbers = #tpu.dot_dimension_numbers<[1], [0], [0], [1], [0, 0, 1, 1], [], []>} : vector<32x16xbf16>, vector<16x32xbf16>, vector<32x32xf32> -> vector<32x32xf32>
    %c0_10 = arith.constant 0 : index
    %c0_11 = arith.constant 0 : index
    %9 = vector.load %arg6[%c0_10, %c0_11] : memref<1x32xf32, #tpu.memory_space<vmem>>, vector<1x32xf32>
    %10 = vector.broadcast %9 : vector<1x32xf32> to vector<32x32xf32>
    %11 = arith.addf %8, %10 : vector<32x32xf32>
    %12 = arith.addf %5, %11 : vector<32x32xf32>
    %cst_12 = arith.constant 0.000000e+00 : f32
    %13 = vector.broadcast %cst_12 : f32 to vector<32x32xf32>
    %14 = arith.cmpf oge, %12, %13 : vector<32x32xf32>
    %cst_13 = arith.constant 1.000000e-01 : f32
    %15 = vector.broadcast %cst_13 : f32 to vector<32x32xf32>
    %16 = arith.mulf %15, %12 : vector<32x32xf32>
    %17 = arith.select %14, %12, %16 : vector<32x32xi1>, vector<32x32xf32>
    %18 = arith.truncf %17 : vector<32x32xf32> to vector<32x32xbf16>
    %c0_14 = arith.constant 0 : index
    %c0_15 = arith.constant 0 : index
    %19 = vector.load %arg7[%c0_14, %c0_15] : memref<32x32xbf16, #tpu.memory_space<vmem>>, vector<32x32xbf16>
    tpu.vector_store %arg7[%c0_14, %c0_15], %18 {strides = array<i32>} : memref<32x32xbf16, #tpu.memory_space<vmem>>, vector<32x32xbf16>,
    return
  }
  func.func @transform_0(%arg0: i32) -> (i32, i32) {
    %c0_i32 = arith.constant 0 : i32
    %c0_i32_0 = arith.constant 0 : i32
    return %arg0, %c0_i32 : i32, i32
  }
  func.func @transform_1(%arg0: i32) -> (i32, i32) {
    %c0_i32 = arith.constant 0 : i32
    %c0_i32_0 = arith.constant 0 : i32
    %c0_i32_1 = arith.constant 0 : i32
    return %c0_i32, %c0_i32_0 : i32, i32
  }
  func.func @transform_2(%arg0: i32) -> (i32, i32) {
    %c0_i32 = arith.constant 0 : i32
    %c0_i32_0 = arith.constant 0 : i32
    %c0_i32_1 = arith.constant 0 : i32
    return %c0_i32, %c0_i32_0 : i32, i32
  }
  func.func @transform_3(%arg0: i32) -> (i32, i32) {
    %c0_i32 = arith.constant 0 : i32
    %c0_i32_0 = arith.constant 0 : i32
    return %arg0, %c0_i32 : i32, i32
  }
  func.func @transform_4(%arg0: i32) -> (i32, i32) {
    %c0_i32 = arith.constant 0 : i32
    %c0_i32_0 = arith.constant 0 : i32
    %c0_i32_1 = arith.constant 0 : i32
    return %c0_i32, %c0_i32_0 : i32, i32
  }
  func.func @transform_5(%arg0: i32) -> (i32, i32) {
    %c0_i32 = arith.constant 0 : i32
    %c0_i32_0 = arith.constant 0 : i32
    %c0_i32_1 = arith.constant 0 : i32
    return %c0_i32, %c0_i32_0 : i32, i32
  }
  func.func @transform_6(%arg0: i32) -> (i32, i32) {
    %c0_i32 = arith.constant 0 : i32
    %c0_i32_0 = arith.constant 0 : i32
    return %arg0, %c0_i32 : i32, i32
  }
}

module attributes {stable_mosaic.version = 11 : i64} {
  func.func @_mm_bias_kernel(%arg0: i32, %arg1: memref<8x288xbf16, #tpu.memory_space<vmem>>, %arg2: memref<288x64xbf16, #tpu.memory_space<vmem>>, %arg3: memref<1x64xf32, #tpu.memory_space<vmem>>, %arg4: memref<8x64xbf16, #tpu.memory_space<vmem>>) attributes {dimension_semantics = [#tpu.dimension_semantics<parallel>], iteration_bounds = array<i64: 1>, scalar_prefetch = 0 : i64, scratch_operands = 0 : i64, tpu.core_type = #tpu.core_type<tc>, window_params = [{transform_indices = @transform_0, window_bounds = array<i64: 8, 288>}, {pipeline_mode = #tpu.pipeline_mode<synchronous>, transform_indices = @transform_1, window_bounds = array<i64: 288, 64>}, {pipeline_mode = #tpu.pipeline_mode<synchronous>, transform_indices = @transform_2, window_bounds = array<i64: 1, 64>}, {transform_indices = @transform_3, window_bounds = array<i64: 8, 64>}]} {
    %c0 = arith.constant 0 : index
    %c0_0 = arith.constant 0 : index
    %0 = vector.load %arg1[%c0, %c0_0] : memref<8x288xbf16, #tpu.memory_space<vmem>>, vector<8x288xbf16>
    %c0_1 = arith.constant 0 : index
    %c0_2 = arith.constant 0 : index
    %1 = vector.load %arg2[%c0_1, %c0_2] : memref<288x64xbf16, #tpu.memory_space<vmem>>, vector<288x64xbf16>
    %cst = arith.constant dense<0.000000e+00> : vector<8x64xf32>
    %2 = tpu.matmul %0, %1, %cst {dimension_numbers = #tpu.dot_dimension_numbers<[1], [0], [0], [1], [0, 0, 1, 1], [], []>} : vector<8x288xbf16>, vector<288x64xbf16>, vector<8x64xf32> -> vector<8x64xf32>
    %c0_3 = arith.constant 0 : index
    %c0_4 = arith.constant 0 : index
    %3 = vector.load %arg3[%c0_3, %c0_4] : memref<1x64xf32, #tpu.memory_space<vmem>>, vector<1x64xf32>
    %4 = vector.broadcast %3 : vector<1x64xf32> to vector<8x64xf32>
    %5 = arith.addf %2, %4 : vector<8x64xf32>
    %cst_5 = arith.constant 0.000000e+00 : f32
    %6 = vector.broadcast %cst_5 : f32 to vector<8x64xf32>
    %7 = arith.cmpf oge, %5, %6 : vector<8x64xf32>
    %cst_6 = arith.constant 1.000000e-01 : f32
    %8 = vector.broadcast %cst_6 : f32 to vector<8x64xf32>
    %9 = arith.mulf %8, %5 : vector<8x64xf32>
    %10 = arith.select %7, %5, %9 : vector<8x64xi1>, vector<8x64xf32>
    %11 = arith.truncf %10 : vector<8x64xf32> to vector<8x64xbf16>
    %c0_7 = arith.constant 0 : index
    %c0_8 = arith.constant 0 : index
    %12 = vector.load %arg4[%c0_7, %c0_8] : memref<8x64xbf16, #tpu.memory_space<vmem>>, vector<8x64xbf16>
    tpu.vector_store %arg4[%c0_7, %c0_8], %11 {strides = array<i32>} : memref<8x64xbf16, #tpu.memory_space<vmem>>, vector<8x64xbf16>,
    return
  }
  func.func @transform_0(%arg0: i32) -> (i32, i32) {
    %c0_i32 = arith.constant 0 : i32
    %c0_i32_0 = arith.constant 0 : i32
    return %arg0, %c0_i32 : i32, i32
  }
  func.func @transform_1(%arg0: i32) -> (i32, i32) {
    %c0_i32 = arith.constant 0 : i32
    %c0_i32_0 = arith.constant 0 : i32
    %c0_i32_1 = arith.constant 0 : i32
    return %c0_i32, %c0_i32_0 : i32, i32
  }
  func.func @transform_2(%arg0: i32) -> (i32, i32) {
    %c0_i32 = arith.constant 0 : i32
    %c0_i32_0 = arith.constant 0 : i32
    %c0_i32_1 = arith.constant 0 : i32
    return %c0_i32, %c0_i32_0 : i32, i32
  }
  func.func @transform_3(%arg0: i32) -> (i32, i32) {
    %c0_i32 = arith.constant 0 : i32
    %c0_i32_0 = arith.constant 0 : i32
    return %arg0, %c0_i32 : i32, i32
  }
}

module attributes {stable_mosaic.version = 11 : i64} {
  func.func @_mm_bias_kernel(%arg0: i32, %arg1: memref<8x576xbf16, #tpu.memory_space<vmem>>, %arg2: memref<576x64xbf16, #tpu.memory_space<vmem>>, %arg3: memref<1x64xf32, #tpu.memory_space<vmem>>, %arg4: memref<8x64xbf16, #tpu.memory_space<vmem>>) attributes {dimension_semantics = [#tpu.dimension_semantics<parallel>], iteration_bounds = array<i64: 1>, scalar_prefetch = 0 : i64, scratch_operands = 0 : i64, tpu.core_type = #tpu.core_type<tc>, window_params = [{transform_indices = @transform_0, window_bounds = array<i64: 8, 576>}, {pipeline_mode = #tpu.pipeline_mode<synchronous>, transform_indices = @transform_1, window_bounds = array<i64: 576, 64>}, {pipeline_mode = #tpu.pipeline_mode<synchronous>, transform_indices = @transform_2, window_bounds = array<i64: 1, 64>}, {transform_indices = @transform_3, window_bounds = array<i64: 8, 64>}]} {
    %c0 = arith.constant 0 : index
    %c0_0 = arith.constant 0 : index
    %0 = vector.load %arg1[%c0, %c0_0] : memref<8x576xbf16, #tpu.memory_space<vmem>>, vector<8x576xbf16>
    %c0_1 = arith.constant 0 : index
    %c0_2 = arith.constant 0 : index
    %1 = vector.load %arg2[%c0_1, %c0_2] : memref<576x64xbf16, #tpu.memory_space<vmem>>, vector<576x64xbf16>
    %cst = arith.constant dense<0.000000e+00> : vector<8x64xf32>
    %2 = tpu.matmul %0, %1, %cst {dimension_numbers = #tpu.dot_dimension_numbers<[1], [0], [0], [1], [0, 0, 1, 1], [], []>} : vector<8x576xbf16>, vector<576x64xbf16>, vector<8x64xf32> -> vector<8x64xf32>
    %c0_3 = arith.constant 0 : index
    %c0_4 = arith.constant 0 : index
    %3 = vector.load %arg3[%c0_3, %c0_4] : memref<1x64xf32, #tpu.memory_space<vmem>>, vector<1x64xf32>
    %4 = vector.broadcast %3 : vector<1x64xf32> to vector<8x64xf32>
    %5 = arith.addf %2, %4 : vector<8x64xf32>
    %cst_5 = arith.constant 0.000000e+00 : f32
    %6 = vector.broadcast %cst_5 : f32 to vector<8x64xf32>
    %7 = arith.cmpf oge, %5, %6 : vector<8x64xf32>
    %cst_6 = arith.constant 1.000000e-01 : f32
    %8 = vector.broadcast %cst_6 : f32 to vector<8x64xf32>
    %9 = arith.mulf %8, %5 : vector<8x64xf32>
    %10 = arith.select %7, %5, %9 : vector<8x64xi1>, vector<8x64xf32>
    %11 = arith.truncf %10 : vector<8x64xf32> to vector<8x64xbf16>
    %c0_7 = arith.constant 0 : index
    %c0_8 = arith.constant 0 : index
    %12 = vector.load %arg4[%c0_7, %c0_8] : memref<8x64xbf16, #tpu.memory_space<vmem>>, vector<8x64xbf16>
    tpu.vector_store %arg4[%c0_7, %c0_8], %11 {strides = array<i32>} : memref<8x64xbf16, #tpu.memory_space<vmem>>, vector<8x64xbf16>,
    return
  }
  func.func @transform_0(%arg0: i32) -> (i32, i32) {
    %c0_i32 = arith.constant 0 : i32
    %c0_i32_0 = arith.constant 0 : i32
    return %arg0, %c0_i32 : i32, i32
  }
  func.func @transform_1(%arg0: i32) -> (i32, i32) {
    %c0_i32 = arith.constant 0 : i32
    %c0_i32_0 = arith.constant 0 : i32
    %c0_i32_1 = arith.constant 0 : i32
    return %c0_i32, %c0_i32_0 : i32, i32
  }
  func.func @transform_2(%arg0: i32) -> (i32, i32) {
    %c0_i32 = arith.constant 0 : i32
    %c0_i32_0 = arith.constant 0 : i32
    %c0_i32_1 = arith.constant 0 : i32
    return %c0_i32, %c0_i32_0 : i32, i32
  }
  func.func @transform_3(%arg0: i32) -> (i32, i32) {
    %c0_i32 = arith.constant 0 : i32
    %c0_i32_0 = arith.constant 0 : i32
    return %arg0, %c0_i32 : i32, i32
  }
}

module attributes {stable_mosaic.version = 11 : i64} {
  func.func @_mm_residual_kernel(%arg0: i32, %arg1: memref<8x576xbf16, #tpu.memory_space<vmem>>, %arg2: memref<576x64xbf16, #tpu.memory_space<vmem>>, %arg3: memref<1x64xf32, #tpu.memory_space<vmem>>, %arg4: memref<8x32xbf16, #tpu.memory_space<vmem>>, %arg5: memref<32x64xbf16, #tpu.memory_space<vmem>>, %arg6: memref<1x64xf32, #tpu.memory_space<vmem>>, %arg7: memref<8x64xbf16, #tpu.memory_space<vmem>>) attributes {dimension_semantics = [#tpu.dimension_semantics<parallel>], iteration_bounds = array<i64: 1>, scalar_prefetch = 0 : i64, scratch_operands = 0 : i64, tpu.core_type = #tpu.core_type<tc>, window_params = [{transform_indices = @transform_0, window_bounds = array<i64: 8, 576>}, {pipeline_mode = #tpu.pipeline_mode<synchronous>, transform_indices = @transform_1, window_bounds = array<i64: 576, 64>}, {pipeline_mode = #tpu.pipeline_mode<synchronous>, transform_indices = @transform_2, window_bounds = array<i64: 1, 64>}, {transform_indices = @transform_3, window_bounds = array<i64: 8, 32>}, {pipeline_mode = #tpu.pipeline_mode<synchronous>, transform_indices = @transform_4, window_bounds = array<i64: 32, 64>}, {pipeline_mode = #tpu.pipeline_mode<synchronous>, transform_indices = @transform_5, window_bounds = array<i64: 1, 64>}, {transform_indices = @transform_6, window_bounds = array<i64: 8, 64>}]} {
    %c0 = arith.constant 0 : index
    %c0_0 = arith.constant 0 : index
    %0 = vector.load %arg1[%c0, %c0_0] : memref<8x576xbf16, #tpu.memory_space<vmem>>, vector<8x576xbf16>
    %c0_1 = arith.constant 0 : index
    %c0_2 = arith.constant 0 : index
    %1 = vector.load %arg2[%c0_1, %c0_2] : memref<576x64xbf16, #tpu.memory_space<vmem>>, vector<576x64xbf16>
    %cst = arith.constant dense<0.000000e+00> : vector<8x64xf32>
    %2 = tpu.matmul %0, %1, %cst {dimension_numbers = #tpu.dot_dimension_numbers<[1], [0], [0], [1], [0, 0, 1, 1], [], []>} : vector<8x576xbf16>, vector<576x64xbf16>, vector<8x64xf32> -> vector<8x64xf32>
    %c0_3 = arith.constant 0 : index
    %c0_4 = arith.constant 0 : index
    %3 = vector.load %arg3[%c0_3, %c0_4] : memref<1x64xf32, #tpu.memory_space<vmem>>, vector<1x64xf32>
    %4 = vector.broadcast %3 : vector<1x64xf32> to vector<8x64xf32>
    %5 = arith.addf %2, %4 : vector<8x64xf32>
    %c0_5 = arith.constant 0 : index
    %c0_6 = arith.constant 0 : index
    %6 = vector.load %arg4[%c0_5, %c0_6] : memref<8x32xbf16, #tpu.memory_space<vmem>>, vector<8x32xbf16>
    %c0_7 = arith.constant 0 : index
    %c0_8 = arith.constant 0 : index
    %7 = vector.load %arg5[%c0_7, %c0_8] : memref<32x64xbf16, #tpu.memory_space<vmem>>, vector<32x64xbf16>
    %cst_9 = arith.constant dense<0.000000e+00> : vector<8x64xf32>
    %8 = tpu.matmul %6, %7, %cst_9 {dimension_numbers = #tpu.dot_dimension_numbers<[1], [0], [0], [1], [0, 0, 1, 1], [], []>} : vector<8x32xbf16>, vector<32x64xbf16>, vector<8x64xf32> -> vector<8x64xf32>
    %c0_10 = arith.constant 0 : index
    %c0_11 = arith.constant 0 : index
    %9 = vector.load %arg6[%c0_10, %c0_11] : memref<1x64xf32, #tpu.memory_space<vmem>>, vector<1x64xf32>
    %10 = vector.broadcast %9 : vector<1x64xf32> to vector<8x64xf32>
    %11 = arith.addf %8, %10 : vector<8x64xf32>
    %12 = arith.addf %5, %11 : vector<8x64xf32>
    %cst_12 = arith.constant 0.000000e+00 : f32
    %13 = vector.broadcast %cst_12 : f32 to vector<8x64xf32>
    %14 = arith.cmpf oge, %12, %13 : vector<8x64xf32>
    %cst_13 = arith.constant 1.000000e-01 : f32
    %15 = vector.broadcast %cst_13 : f32 to vector<8x64xf32>
    %16 = arith.mulf %15, %12 : vector<8x64xf32>
    %17 = arith.select %14, %12, %16 : vector<8x64xi1>, vector<8x64xf32>
    %18 = arith.truncf %17 : vector<8x64xf32> to vector<8x64xbf16>
    %c0_14 = arith.constant 0 : index
    %c0_15 = arith.constant 0 : index
    %19 = vector.load %arg7[%c0_14, %c0_15] : memref<8x64xbf16, #tpu.memory_space<vmem>>, vector<8x64xbf16>
    tpu.vector_store %arg7[%c0_14, %c0_15], %18 {strides = array<i32>} : memref<8x64xbf16, #tpu.memory_space<vmem>>, vector<8x64xbf16>,
    return
  }
  func.func @transform_0(%arg0: i32) -> (i32, i32) {
    %c0_i32 = arith.constant 0 : i32
    %c0_i32_0 = arith.constant 0 : i32
    return %arg0, %c0_i32 : i32, i32
  }
  func.func @transform_1(%arg0: i32) -> (i32, i32) {
    %c0_i32 = arith.constant 0 : i32
    %c0_i32_0 = arith.constant 0 : i32
    %c0_i32_1 = arith.constant 0 : i32
    return %c0_i32, %c0_i32_0 : i32, i32
  }
  func.func @transform_2(%arg0: i32) -> (i32, i32) {
    %c0_i32 = arith.constant 0 : i32
    %c0_i32_0 = arith.constant 0 : i32
    %c0_i32_1 = arith.constant 0 : i32
    return %c0_i32, %c0_i32_0 : i32, i32
  }
  func.func @transform_3(%arg0: i32) -> (i32, i32) {
    %c0_i32 = arith.constant 0 : i32
    %c0_i32_0 = arith.constant 0 : i32
    return %arg0, %c0_i32 : i32, i32
  }
  func.func @transform_4(%arg0: i32) -> (i32, i32) {
    %c0_i32 = arith.constant 0 : i32
    %c0_i32_0 = arith.constant 0 : i32
    %c0_i32_1 = arith.constant 0 : i32
    return %c0_i32, %c0_i32_0 : i32, i32
  }
  func.func @transform_5(%arg0: i32) -> (i32, i32) {
    %c0_i32 = arith.constant 0 : i32
    %c0_i32_0 = arith.constant 0 : i32
    %c0_i32_1 = arith.constant 0 : i32
    return %c0_i32, %c0_i32_0 : i32, i32
  }
  func.func @transform_6(%arg0: i32) -> (i32, i32) {
    %c0_i32 = arith.constant 0 : i32
    %c0_i32_0 = arith.constant 0 : i32
    return %arg0, %c0_i32 : i32, i32
  }
}

module attributes {stable_mosaic.version = 11 : i64} {
  func.func @_maxpool_kernel(%arg0: i32, %arg1: memref<1x2x1x2x64xbf16, #tpu.memory_space<vmem>>, %arg2: memref<1x1x64xbf16, #tpu.memory_space<vmem>>) attributes {dimension_semantics = [#tpu.dimension_semantics<parallel>], iteration_bounds = array<i64: 2>, scalar_prefetch = 0 : i64, scratch_operands = 0 : i64, tpu.core_type = #tpu.core_type<tc>, window_params = [{transform_indices = @transform_0, window_bounds = array<i64: 1, 2, 1, 2, 64>}, {transform_indices = @transform_1, window_bounds = array<i64: 1, 1, 64>}]} {
    %c0 = arith.constant 0 : index
    %c0_0 = arith.constant 0 : index
    %c0_1 = arith.constant 0 : index
    %c0_2 = arith.constant 0 : index
    %c0_3 = arith.constant 0 : index
    %0 = vector.load %arg1[%c0, %c0_0, %c0_1, %c0_2, %c0_3] : memref<1x2x1x2x64xbf16, #tpu.memory_space<vmem>>, vector<1x2x1x2x64xbf16>
    %1 = arith.extf %0 : vector<1x2x1x2x64xbf16> to vector<1x2x1x2x64xf32>
    %cst = arith.constant dense<0xFF800000> : vector<1x2x1x64xf32>
    %2 = vector.multi_reduction <maximumf>, %1, %cst [3] : vector<1x2x1x2x64xf32> to vector<1x2x1x64xf32>
    %cst_4 = arith.constant dense<0xFF800000> : vector<1x1x64xf32>
    %3 = vector.multi_reduction <maximumf>, %2, %cst_4 [1] : vector<1x2x1x64xf32> to vector<1x1x64xf32>
    %4 = arith.truncf %3 : vector<1x1x64xf32> to vector<1x1x64xbf16>
    %c0_5 = arith.constant 0 : index
    %c0_6 = arith.constant 0 : index
    %c0_7 = arith.constant 0 : index
    %5 = vector.load %arg2[%c0_5, %c0_6, %c0_7] : memref<1x1x64xbf16, #tpu.memory_space<vmem>>, vector<1x1x64xbf16>
    tpu.vector_store %arg2[%c0_5, %c0_6, %c0_7], %4 {strides = array<i32>} : memref<1x1x64xbf16, #tpu.memory_space<vmem>>, vector<1x1x64xbf16>,
    return
  }
  func.func @transform_0(%arg0: i32) -> (i32, i32, i32, i32, i32) {
    %c0_i32 = arith.constant 0 : i32
    %c0_i32_0 = arith.constant 0 : i32
    %c0_i32_1 = arith.constant 0 : i32
    %c0_i32_2 = arith.constant 0 : i32
    %c0_i32_3 = arith.constant 0 : i32
    return %arg0, %c0_i32, %c0_i32_0, %c0_i32_1, %c0_i32_2 : i32, i32, i32, i32, i32
  }
  func.func @transform_1(%arg0: i32) -> (i32, i32, i32) {
    %c0_i32 = arith.constant 0 : i32
    %c0_i32_0 = arith.constant 0 : i32
    %c0_i32_1 = arith.constant 0 : i32
    return %arg0, %c0_i32, %c0_i32_0 : i32, i32, i32
  }
}

module attributes {stable_mosaic.version = 11 : i64} {
  func.func @_attention_kernel(%arg0: i32, %arg1: memref<1x1x64xbf16, #tpu.memory_space<vmem>>, %arg2: memref<1x1764x64xf32, #tpu.memory_space<vmem>>, %arg3: memref<1764x64xf32, #tpu.memory_space<vmem>>, %arg4: memref<64x4xf32, #tpu.memory_space<vmem>>, %arg5: memref<4x64xf32, #tpu.memory_space<vmem>>, %arg6: memref<1x1x64xf32, #tpu.memory_space<vmem>>) attributes {dimension_semantics = [#tpu.dimension_semantics<parallel>], iteration_bounds = array<i64: 2>, scalar_prefetch = 0 : i64, scratch_operands = 0 : i64, tpu.core_type = #tpu.core_type<tc>, window_params = [{transform_indices = @transform_0, window_bounds = array<i64: 1, 1, 64>}, {transform_indices = @transform_1, window_bounds = array<i64: 1, 1764, 64>}, {pipeline_mode = #tpu.pipeline_mode<synchronous>, transform_indices = @transform_2, window_bounds = array<i64: 1764, 64>}, {pipeline_mode = #tpu.pipeline_mode<synchronous>, transform_indices = @transform_3, window_bounds = array<i64: 64, 4>}, {pipeline_mode = #tpu.pipeline_mode<synchronous>, transform_indices = @transform_4, window_bounds = array<i64: 4, 64>}, {transform_indices = @transform_5, window_bounds = array<i64: 1, 1, 64>}]} {
    %c0 = arith.constant 0 : index
    %c0_0 = arith.constant 0 : index
    %c0_1 = arith.constant 0 : index
    %0 = vector.load %arg2[%c0, %c0_0, %c0_1] : memref<1x1764x64xf32, #tpu.memory_space<vmem>>, vector<1x1764x64xf32>
    %1 = vector.shape_cast %0 : vector<1x1764x64xf32> to vector<1764x64xf32>
    %c0_2 = arith.constant 0 : index
    %c0_3 = arith.constant 0 : index
    %2 = vector.load %arg3[%c0_2, %c0_3] : memref<1764x64xf32, #tpu.memory_space<vmem>>, vector<1764x64xf32>
    %3 = arith.mulf %1, %2 : vector<1764x64xf32>
    %cst = arith.constant dense<0.000000e+00> : vector<64xf32>
    %4 = vector.multi_reduction <add>, %3, %cst [0] : vector<1764x64xf32> to vector<64xf32>
    %5 = vector.shape_cast %4 : vector<64xf32> to vector<1x64xf32>
    %c0_4 = arith.constant 0 : index
    %c0_5 = arith.constant 0 : index
    %6 = vector.load %arg4[%c0_4, %c0_5] : memref<64x4xf32, #tpu.memory_space<vmem>>, vector<64x4xf32>
    %cst_6 = arith.constant dense<0.000000e+00> : vector<1x4xf32>
    %7 = tpu.matmul %5, %6, %cst_6 {dimension_numbers = #tpu.dot_dimension_numbers<[1], [0], [0], [1], [0, 0, 1, 1], [], []>} : vector<1x64xf32>, vector<64x4xf32>, vector<1x4xf32> -> vector<1x4xf32>
    %cst_7 = arith.constant 0.000000e+00 : f32
    %8 = vector.broadcast %cst_7 : f32 to vector<1x4xf32>
    %9 = arith.maximumf %7, %8 : vector<1x4xf32>
    %c0_8 = arith.constant 0 : index
    %c0_9 = arith.constant 0 : index
    %10 = vector.load %arg5[%c0_8, %c0_9] : memref<4x64xf32, #tpu.memory_space<vmem>>, vector<4x64xf32>
    %cst_10 = arith.constant dense<0.000000e+00> : vector<1x64xf32>
    %11 = tpu.matmul %9, %10, %cst_10 {dimension_numbers = #tpu.dot_dimension_numbers<[1], [0], [0], [1], [0, 0, 1, 1], [], []>} : vector<1x4xf32>, vector<4x64xf32>, vector<1x64xf32> -> vector<1x64xf32>
    %cst_11 = arith.constant 0.000000e+00 : f32
    %12 = vector.broadcast %cst_11 : f32 to vector<1x64xf32>
    %13 = arith.subf %12, %11 : vector<1x64xf32>
    %14 = math.exp %13 : vector<1x64xf32>
    %cst_12 = arith.constant 1.000000e+00 : f32
    %15 = vector.broadcast %cst_12 : f32 to vector<1x64xf32>
    %16 = arith.addf %15, %14 : vector<1x64xf32>
    %cst_13 = arith.constant 1.000000e+00 : f32
    %17 = vector.broadcast %cst_13 : f32 to vector<1x64xf32>
    %18 = arith.divf %17, %16 : vector<1x64xf32>
    %c0_14 = arith.constant 0 : index
    %c0_15 = arith.constant 0 : index
    %c0_16 = arith.constant 0 : index
    %19 = vector.load %arg1[%c0_14, %c0_15, %c0_16] : memref<1x1x64xbf16, #tpu.memory_space<vmem>>, vector<1x1x64xbf16>
    %20 = arith.extf %19 : vector<1x1x64xbf16> to vector<1x1x64xf32>
    %21 = vector.shape_cast %18 : vector<1x64xf32> to vector<1x1x64xf32>
    %22 = arith.mulf %20, %21 : vector<1x1x64xf32>
    %c0_17 = arith.constant 0 : index
    %c0_18 = arith.constant 0 : index
    %c0_19 = arith.constant 0 : index
    %23 = vector.load %arg6[%c0_17, %c0_18, %c0_19] : memref<1x1x64xf32, #tpu.memory_space<vmem>>, vector<1x1x64xf32>
    tpu.vector_store %arg6[%c0_17, %c0_18, %c0_19], %22 {strides = array<i32>} : memref<1x1x64xf32, #tpu.memory_space<vmem>>, vector<1x1x64xf32>,
    return
  }
  func.func @transform_0(%arg0: i32) -> (i32, i32, i32) {
    %c0_i32 = arith.constant 0 : i32
    %c0_i32_0 = arith.constant 0 : i32
    %c0_i32_1 = arith.constant 0 : i32
    return %arg0, %c0_i32, %c0_i32_0 : i32, i32, i32
  }
  func.func @transform_1(%arg0: i32) -> (i32, i32, i32) {
    %c0_i32 = arith.constant 0 : i32
    %c0_i32_0 = arith.constant 0 : i32
    %c0_i32_1 = arith.constant 0 : i32
    return %arg0, %c0_i32, %c0_i32_0 : i32, i32, i32
  }
  func.func @transform_2(%arg0: i32) -> (i32, i32) {
    %c0_i32 = arith.constant 0 : i32
    %c0_i32_0 = arith.constant 0 : i32
    %c0_i32_1 = arith.constant 0 : i32
    return %c0_i32, %c0_i32_0 : i32, i32
  }
  func.func @transform_3(%arg0: i32) -> (i32, i32) {
    %c0_i32 = arith.constant 0 : i32
    %c0_i32_0 = arith.constant 0 : i32
    %c0_i32_1 = arith.constant 0 : i32
    return %c0_i32, %c0_i32_0 : i32, i32
  }
  func.func @transform_4(%arg0: i32) -> (i32, i32) {
    %c0_i32 = arith.constant 0 : i32
    %c0_i32_0 = arith.constant 0 : i32
    %c0_i32_1 = arith.constant 0 : i32
    return %c0_i32, %c0_i32_0 : i32, i32
  }
  func.func @transform_5(%arg0: i32) -> (i32, i32, i32) {
    %c0_i32 = arith.constant 0 : i32
    %c0_i32_0 = arith.constant 0 : i32
    %c0_i32_1 = arith.constant 0 : i32
    return %arg0, %c0_i32, %c0_i32_0 : i32, i32, i32
  }
}

</mosaic_0001>

<bundles_post_ra>
// kernel: _lambda_.17
= control target key start
LH: loop header
LB: loop body
LE: loop exit
PB: predicated region body
PF: predicated region fallthrough
CT: control target
= control target key end

     0   :  { %8 = vsyncpa [#allocation3], 0  ;;  %s1547_s12 = smov [#allocation2]   ;;  %s2054_s0 = inlined_call_operand.vmem [shape: bf16[512,27], index: 0, kind: input, shape index: {}]   ;;  %s2055_s1 = inlined_call_operand.hbm [shape: bf16[27,8], index: 1, kind: input, shape index: {}]   ;;  %s2056_s2 = inlined_call_operand.vmem [shape: f32[1,8], index: 2, kind: input, shape index: {}]   ;;  %s2057_s3 = inlined_call_operand.vmem [shape: bf16[512,8], index: 3, kind: output, shape index: {}]  }
   0x1   :  { %s16_s13 = sshll.u32 %s1547_s12, 4  ;;  %s17_s13 = int_to_ptr.vmem [resolvable:$true] %s16_s13 }
   0x2   :  { %s1533_s14 = scalar_lea.vmem %s17_s13, 256  ;;  %p1538_p1 = scmp.lt.s32.totalorder %s17_s13, %s17_s13 }
   0x3   :  { %p1534_p0 = scmp.ne.s32.totalorder %s17_s13, %s1533_s14  ;;  %p1539_p2 = scmp.lt.s32.totalorder %s1533_s14, %s1533_s14 }
   0x5   :  { %p1540_p3 = por %p1539_p2, %p1538_p1 }
   0x7   :  { %p1541_p4 = pnand %p1540_p3, %p1534_p0 }
   0x9   :  { %1544 = shalt.err (!%p1541_p4)
}
   0xa   :  { %s1548_s15 = smov 64   ;;  %s1549_s16 = smov 4  }
   0xb   :  { %22 = dma.hbm_to_vmem [thread:$0]  %s2055_s1, 256, %s17_s13, [#allocation3], %s1548_s15, %s1548_s15, %s1549_s16  }
   0xc   :  { %1545 = dma.done.wait [#allocation3], 256  }
   0xd   :  { %1546 = vsyncadd [#allocation3], 4294967040  ;;  %vm372_vm0 = vcmask 1044480   ;;  %vm373_vm1 = vcmask 1045504   ;;  %v1550_v0 = vmov 65535   ;;  %v1492_v4 = vld [vmem:[#allocation2] sm:$0xff]  }
   0xe   :  { %v374_v1 = vsel %vm372_vm0, 4294967295, %v1550_v0  ;;  %v1491_v3 = vld [vmem:[#allocation2 + $0x8] sm:$0x3f]   ;;  %v1493_v6 = vld [vmem:[%s2054_s0] sm:$0xff]   ;;  %vm275_vm2 = vcmask 220160   ;;  %v1497_v10 = vld [vmem:[%s2054_s0 + $0x10] sm:$0xff]  }
   0xf   :  { %v375_v2 = vsel %vm373_vm1, %v374_v1, 0  ;;  %v1494_v7 = vld [vmem:[%s2054_s0 + $0x80] sm:$0xff]   ;;  %v1495_v8 = vld [vmem:[%s2054_s0 + $0x8] sm:$0xff]   ;;  %1419 = vmatprep.mubr.msk.bf16.mxu0 %vm275_vm2, %v1493_v6  ;;  %v1498_v11 = vld [vmem:[%s2054_s0 + $0x90] sm:$0xff]   ;;  %vm1116_vm5 = vcmask 60416  }
  0x10   :  { %v377_v5 = vand.u32 %v1491_v3, %v375_v2  ;;  %1451 = vmatprep.mubr.msk.bf16.mxu1 %vm275_vm2, %v1494_v7  ;;  %v1496_v9 = vld [vmem:[%s2054_s0 + $0x88] sm:$0xff]   ;;  %v1499_v12 = vld [vmem:[%s2054_s0 + $0x18] sm:$0xff]   ;;  %v1501_v14 = vld [vmem:[%s2054_s0 + $0x20] sm:$0xff]  }
  0x11   :  { %v1500_v13 = vld [vmem:[%s2054_s0 + $0x98] sm:$0xff]   ;;  %v1502_v15 = vld [vmem:[%s2054_s0 + $0xa0] sm:$0xff]   ;;  %v1503_v16 = vld [vmem:[%s2054_s0 + $0x28] sm:$0xff]  }
  0x12   :  { %1415 = vmatprep.subr.bf16.mxu0 %v377_v5  ;;  %1483 = vmatprep.subr.bf16.mxu1 %v377_v5  ;;  %v1504_v17 = vld [vmem:[%s2054_s0 + $0xa8] sm:$0xff]   ;;  %v1505_v18 = vld [vmem:[%s2054_s0 + $0x30] sm:$0xff]   ;;  %v1507_v20 = vld [vmem:[%s2054_s0 + $0x38] sm:$0xff]  }
  0x13   :  { %1416 = vmatpush3.bf16.msra.mxu0 %v377_v5  ;;  %1485 = vmatpush3.bf16.msra.mxu1 %v377_v5  ;;  %v1506_v19 = vld [vmem:[%s2054_s0 + $0xb0] sm:$0xff]   ;;  %v1508_v21 = vld [vmem:[%s2054_s0 + $0xb8] sm:$0xff]   ;;  %v1509_v22 = vld [vmem:[%s2054_s0 + $0x40] sm:$0xff]  }
  0x14   :  { %1417 = vmatprep.subr.bf16.mxu0 %v1492_v4  ;;  %1484 = vmatprep.subr.bf16.mxu1 %v1492_v4  ;;  %v1510_v23 = vld [vmem:[%s2054_s0 + $0xc0] sm:$0xff]   ;;  %v1511_v24 = vld [vmem:[%s2054_s0 + $0x48] sm:$0xff]   ;;  %v1513_v26 = vld [vmem:[%s2054_s0 + $0x50] sm:$0xff]  }
  0x15   :  { %v1512_v25 = vld [vmem:[%s2054_s0 + $0xc8] sm:$0xff]   ;;  %v1514_v27 = vld [vmem:[%s2054_s0 + $0xd0] sm:$0xff]   ;;  %v1515_v28 = vld [vmem:[%s2054_s0 + $0x58] sm:$0xff]  }
  0x16   :  { %v1516_v29 = vld [vmem:[%s2054_s0 + $0xd8] sm:$0xff]   ;;  %v1517_v30 = vld [vmem:[%s2054_s0 + $0x60] sm:$0xff]   ;;  %v1519_v32 = vld [vmem:[%s2054_s0 + $0x68] sm:$0xff]  }
  0x17   :  { %1418 = vmatpush3.bf16.msra.mxu0 %v1492_v4  ;;  %1486 = vmatpush3.bf16.msra.mxu1 %v1492_v4  ;;  %v1518_v31 = vld [vmem:[%s2054_s0 + $0xe0] sm:$0xff]   ;;  %v1520_v33 = vld [vmem:[%s2054_s0 + $0xe8] sm:$0xff]   ;;  %v1521_v34 = vld [vmem:[%s2054_s0 + $0x70] sm:$0xff]  }
  0x18   :  { %v1522_v35 = vld [vmem:[%s2054_s0 + $0xf0] sm:$0xff]   ;;  %v1523_v36 = vld [vmem:[%s2054_s0 + $0x78] sm:$0xff]   ;;  %v1705_v38 = vld [vmem:[%s2056_s2] ss:$0 sm:$0xff] }
  0x19   :  { %v1524_v37 = vld [vmem:[%s2054_s0 + $0xf8] sm:$0xff]  }
  0x1a   :  { %1420 = vmatmul.mubr.msk.bf16.vlgmr.msra.gmra.mxu0 %vm275_vm2, %v1495_v8  ;;  %1452 = vmatmul.mubr.msk.bf16.vlgmr.msra.gmra.mxu1 %vm275_vm2, %v1496_v9 }
  0x1b   :  { %1423 = vmatprep.mubr.msk.bf16.mxu0 %vm275_vm2, %v1497_v10  ;;  %1455 = vmatprep.mubr.msk.bf16.mxu1 %vm275_vm2, %v1498_v11 }
  0x22   :  { %1424 = vmatmul.mubr.msk.bf16.gmra.mxu0 %vm275_vm2, %v1499_v12  ;;  %1456 = vmatmul.mubr.msk.bf16.gmra.mxu1 %vm275_vm2, %v1500_v13 }
  0x23   :  { %1427 = vmatprep.mubr.msk.bf16.mxu0 %vm275_vm2, %v1501_v14  ;;  %1459 = vmatprep.mubr.msk.bf16.mxu1 %vm275_vm2, %v1502_v15 }
  0x2a   :  { %1428 = vmatmul.mubr.msk.bf16.gmra.mxu0 %vm275_vm2, %v1503_v16  ;;  %1460 = vmatmul.mubr.msk.bf16.gmra.mxu1 %vm275_vm2, %v1504_v17 }
  0x2b   :  { %1431 = vmatprep.mubr.msk.bf16.mxu0 %vm275_vm2, %v1505_v18  ;;  %1463 = vmatprep.mubr.msk.bf16.mxu1 %vm275_vm2, %v1506_v19 }
  0x32   :  { %1432 = vmatmul.mubr.msk.bf16.gmra.mxu0 %vm275_vm2, %v1507_v20  ;;  %1464 = vmatmul.mubr.msk.bf16.gmra.mxu1 %vm275_vm2, %v1508_v21 }
  0x33   :  { %1435 = vmatprep.mubr.msk.bf16.mxu0 %vm275_vm2, %v1509_v22  ;;  %1467 = vmatprep.mubr.msk.bf16.mxu1 %vm275_vm2, %v1510_v23 }
  0x3a   :  { %1436 = vmatmul.mubr.msk.bf16.gmra.mxu0 %vm275_vm2, %v1511_v24  ;;  %1468 = vmatmul.mubr.msk.bf16.gmra.mxu1 %vm275_vm2, %v1512_v25 }
  0x3b   :  { %1439 = vmatprep.mubr.msk.bf16.mxu0 %vm275_vm2, %v1513_v26  ;;  %1471 = vmatprep.mubr.msk.bf16.mxu1 %vm275_vm2, %v1514_v27 }
  0x42   :  { %1440 = vmatmul.mubr.msk.bf16.gmra.mxu0 %vm275_vm2, %v1515_v28  ;;  %1472 = vmatmul.mubr.msk.bf16.gmra.mxu1 %vm275_vm2, %v1516_v29 }
  0x43   :  { %1443 = vmatprep.mubr.msk.bf16.mxu0 %vm275_vm2, %v1517_v30  ;;  %1475 = vmatprep.mubr.msk.bf16.mxu1 %vm275_vm2, %v1518_v31 }
  0x4a   :  { %1444 = vmatmul.mubr.msk.bf16.gmra.mxu0 %vm275_vm2, %v1519_v32  ;;  %1476 = vmatmul.mubr.msk.bf16.gmra.mxu1 %vm275_vm2, %v1520_v33 }
  0x4b   :  { %1447 = vmatprep.mubr.msk.bf16.mxu0 %vm275_vm2, %v1521_v34  ;;  %1479 = vmatprep.mubr.msk.bf16.mxu1 %vm275_vm2, %v1522_v35 }
  0x52   :  { %1448 = vmatmul.mubr.msk.bf16.gmra.mxu0 %vm275_vm2, %v1523_v36  ;;  %1480 = vmatmul.mubr.msk.bf16.gmra.mxu1 %vm275_vm2, %v1524_v37 }
  0xda   :  { %v1421_v39 = vpop.f32.mrf.mxu0  ;;  %v1453_v40 = vpop.f32.mrf.mxu1 }
  0xdb   :  { %v422_v41 = vadd.f32 %v1421_v39, %v1705_v38  ;;  %v550_v42 = vadd.f32 %v1453_v40, %v1705_v38 }
  0xdc   :  { %v413_v43 = vpop.f32.mrf.mxu0  ;;  %v541_v44 = vpop.f32.mrf.mxu1 }
  0xdd   :  { %vm670_vm3 = vcmp.ge.f32.partialorder %v422_v41, 0.0  ;;  %v734_v45 = vmul.f32 0.1, %v422_v41  ;;  %vm702_vm4 = vcmp.ge.f32.partialorder %v550_v42, 0.0  ;;  %v766_v46 = vmul.f32 0.1, %v550_v42 }
  0xde   :  { %v414_v47 = vadd.f32 %v1705_v38, %v413_v43  ;;  %v542_v48 = vadd.f32 %v1705_v38, %v541_v44  ;;  %v1422_v49 = vpop.f32.mrf.mxu0  ;;  %v1454_v50 = vpop.f32.mrf.mxu1 }
  0xdf   :  { %v798_v51 = vsel %vm670_vm3, %v422_v41, %v734_v45  ;;  %v830_v52 = vsel %vm702_vm4, %v550_v42, %v766_v46  ;;  %v425_v53 = vadd.f32 %v1422_v49, %v1705_v38  ;;  %v553_v54 = vadd.f32 %v1454_v50, %v1705_v38 }
  0xe0   :  { %v1319_v55 = vpack.c.bf16 %v798_v51, %v798_v51  ;;  %v1351_v56 = vpack.c.bf16 %v830_v52, %v830_v52  ;;  %vm668_vm6 = vcmp.ge.f32.partialorder %v414_v47, 0.0  ;;  %v732_v57 = vmul.f32 0.1, %v414_v47  ;;  %v416_v58 = vpop.f32.mrf.mxu0  ;;  %v544_v59 = vpop.f32.mrf.mxu1 }
  0xe1   :  { %vm700_vm7 = vcmp.ge.f32.partialorder %v542_v48, 0.0  ;;  %v764_v60 = vmul.f32 0.1, %v542_v48  ;;  %vm671_vm8 = vcmp.ge.f32.partialorder %v425_v53, 0.0  ;;  %v735_v61 = vmul.f32 0.1, %v425_v53 }
  0xe2   :  { %1119 = vst.msk [vmem:[%s2057_s3 + $0x8] sm:$0xf] %vm1116_vm5, %v1319_v55  ;;  %1151 = vst.msk [vmem:[%s2057_s3 + $0x88] sm:$0xf] %vm1116_vm5, %v1351_v56  ;;  %v796_v62 = vsel %vm668_vm6, %v414_v47, %v732_v57  ;;  %vm703_vm9 = vcmp.ge.f32.partialorder %v553_v54, 0.0  ;;  %v417_v0 = vadd.f32 %v1705_v38, %v416_v58  ;;  %v1425_v1 = vpop.f32.mrf.mxu0  ;;  %v1457_v2 = vpop.f32.mrf.mxu1  ;;  %v545_v6 = vadd.f32 %v1705_v38, %v544_v59 }
  0xe3   :  { %v767_v63 = vmul.f32 0.1, %v553_v54  ;;  %v1317_v3 = vpack.c.bf16 %v796_v62, %v796_v62  ;;  %v828_v4 = vsel %vm700_vm7, %v542_v48, %v764_v60  ;;  %v799_v5 = vsel %vm671_vm8, %v425_v53, %v735_v61 }
  0xe4   :  { %v1349_v7 = vpack.c.bf16 %v828_v4, %v828_v4  ;;  %v1320_v8 = vpack.c.bf16 %v799_v5, %v799_v5  ;;  %vm669_vm10 = vcmp.ge.f32.partialorder %v417_v0, 0.0  ;;  %v429_v10 = vpop.f32.mrf.mxu0  ;;  %v557_v11 = vpop.f32.mrf.mxu1  ;;  %v733_v13 = vmul.f32 0.1, %v417_v0 }
  0xe5   :  { %v831_v9 = vsel %vm703_vm9, %v553_v54, %v767_v63  ;;  %1117 = vst.msk [vmem:[%s2057_s3] sm:$0xf] %vm1116_vm5, %v1317_v3  ;;  %vm701_vm11 = vcmp.ge.f32.partialorder %v545_v6, 0.0  ;;  %v765_v14 = vmul.f32 0.1, %v545_v6  ;;  %v438_v15 = vadd.f32 %v1425_v1, %v1705_v38 }
  0xe6   :  { %v1352_v12 = vpack.c.bf16 %v831_v9, %v831_v9  ;;  %1149 = vst.msk [vmem:[%s2057_s3 + $0x80] sm:$0xf] %vm1116_vm5, %v1349_v7  ;;  %1120 = vst.msk [vmem:[%s2057_s3 + $0xc] sm:$0xf] %vm1116_vm5, %v1320_v8  ;;  %v566_v16 = vadd.f32 %v1457_v2, %v1705_v38  ;;  %v430_v17 = vadd.f32 %v1705_v38, %v429_v10  ;;  %v1426_v19 = vpop.f32.mrf.mxu0  ;;  %v1458_v20 = vpop.f32.mrf.mxu1 }
  0xe7   :  { %v558_v18 = vadd.f32 %v1705_v38, %v557_v11  ;;  %v797_v21 = vsel %vm669_vm10, %v417_v0, %v733_v13  ;;  %v829_v22 = vsel %vm701_vm11, %v545_v6, %v765_v14  ;;  %v441_v23 = vadd.f32 %v1426_v19, %v1705_v38 }
  0xe8   :  { %1152 = vst.msk [vmem:[%s2057_s3 + $0x8c] sm:$0xf] %vm1116_vm5, %v1352_v12  ;;  %v569_v24 = vadd.f32 %v1458_v20, %v1705_v38  ;;  %v1318_v25 = vpack.c.bf16 %v797_v21, %v797_v21  ;;  %v1350_v26 = vpack.c.bf16 %v829_v22, %v829_v22  ;;  %vm674_vm12 = vcmp.ge.f32.partialorder %v438_v15, 0.0  ;;  %v432_v28 = vpop.f32.mrf.mxu0  ;;  %v560_v29 = vpop.f32.mrf.mxu1 }
  0xe9   :  { %v738_v27 = vmul.f32 0.1, %v438_v15  ;;  %vm706_vm13 = vcmp.ge.f32.partialorder %v566_v16, 0.0  ;;  %v770_v30 = vmul.f32 0.1, %v566_v16  ;;  %vm672_vm14 = vcmp.ge.f32.partialorder %v430_v17, 0.0 }
  0xea   :  { %v736_v31 = vmul.f32 0.1, %v430_v17  ;;  %1118 = vst.msk [vmem:[%s2057_s3 + $0x4] sm:$0xf] %vm1116_vm5, %v1318_v25  ;;  %1150 = vst.msk [vmem:[%s2057_s3 + $0x84] sm:$0xf] %vm1116_vm5, %v1350_v26  ;;  %v1429_v34 = vpop.f32.mrf.mxu0  ;;  %v1461_v35 = vpop.f32.mrf.mxu1  ;;  %v433_v49 = vadd.f32 %v1705_v38, %v432_v28  ;;  %v561_v51 = vadd.f32 %v1705_v38, %v560_v29 }
  0xeb   :  { %v802_v32 = vsel %vm674_vm12, %v438_v15, %v738_v27  ;;  %vm704_vm15 = vcmp.ge.f32.partialorder %v558_v18, 0.0  ;;  %v768_v33 = vmul.f32 0.1, %v558_v18  ;;  %vm675_vm0 = vcmp.ge.f32.partialorder %v441_v23, 0.0 }
  0xec   :  { %v1323_v36 = vpack.c.bf16 %v802_v32, %v802_v32  ;;  %v834_v37 = vsel %vm706_vm13, %v566_v16, %v770_v30  ;;  %v800_v39 = vsel %vm672_vm14, %v430_v17, %v736_v31  ;;  %v739_v40 = vmul.f32 0.1, %v441_v23  ;;  %v445_v44 = vpop.f32.mrf.mxu0  ;;  %v573_v45 = vpop.f32.mrf.mxu1 }
  0xed   :  { %v1355_v41 = vpack.c.bf16 %v834_v37, %v834_v37  ;;  %v1321_v42 = vpack.c.bf16 %v800_v39, %v800_v39  ;;  %v832_v43 = vsel %vm704_vm15, %v558_v18, %v768_v33  ;;  %vm707_vm1 = vcmp.ge.f32.partialorder %v569_v24, 0.0 }
  0xee   :  { %1123 = vst.msk [vmem:[%s2057_s3 + $0x18] sm:$0xf] %vm1116_vm5, %v1323_v36  ;;  %v1353_v46 = vpack.c.bf16 %v832_v43, %v832_v43  ;;  %v803_v47 = vsel %vm675_vm0, %v441_v23, %v739_v40  ;;  %v771_v48 = vmul.f32 0.1, %v569_v24  ;;  %v454_v52 = vadd.f32 %v1429_v34, %v1705_v38  ;;  %v1430_v54 = vpop.f32.mrf.mxu0  ;;  %v1462_v55 = vpop.f32.mrf.mxu1 }
  0xef   :  { %1155 = vst.msk [vmem:[%s2057_s3 + $0x98] sm:$0xf] %vm1116_vm5, %v1355_v41  ;;  %1121 = vst.msk [vmem:[%s2057_s3 + $0x10] sm:$0xf] %vm1116_vm5, %v1321_v42  ;;  %v1324_v50 = vpack.c.bf16 %v803_v47, %v803_v47  ;;  %v582_v53 = vadd.f32 %v1461_v35, %v1705_v38  ;;  %vm673_vm2 = vcmp.ge.f32.partialorder %v433_v49, 0.0  ;;  %v446_v58 = vadd.f32 %v1705_v38, %v445_v44 }
  0xf0   :  { %1153 = vst.msk [vmem:[%s2057_s3 + $0x90] sm:$0xf] %vm1116_vm5, %v1353_v46  ;;  %v835_v56 = vsel %vm707_vm1, %v569_v24, %v771_v48  ;;  %v737_v57 = vmul.f32 0.1, %v433_v49  ;;  %vm705_vm3 = vcmp.ge.f32.partialorder %v561_v51, 0.0  ;;  %vm678_vm4 = vcmp.ge.f32.partialorder %v454_v52, 0.0  ;;  %v448_v61 = vpop.f32.mrf.mxu0  ;;  %v576_v62 = vpop.f32.mrf.mxu1 }
  0xf1   :  { %1124 = vst.msk [vmem:[%s2057_s3 + $0x1c] sm:$0xf] %vm1116_vm5, %v1324_v50  ;;  %v1356_v59 = vpack.c.bf16 %v835_v56, %v835_v56  ;;  %v769_v60 = vmul.f32 0.1, %v561_v51  ;;  %v742_v0 = vmul.f32 0.1, %v454_v52  ;;  %v574_v10 = vadd.f32 %v1705_v38, %v573_v45 }
  0xf2   :  { %v801_v63 = vsel %vm673_vm2, %v433_v49, %v737_v57  ;;  %vm710_vm6 = vcmp.ge.f32.partialorder %v582_v53, 0.0  ;;  %v774_v1 = vmul.f32 0.1, %v582_v53  ;;  %vm676_vm7 = vcmp.ge.f32.partialorder %v446_v58, 0.0  ;;  %v1433_v5 = vpop.f32.mrf.mxu0  ;;  %v1465_v6 = vpop.f32.mrf.mxu1 }
  0xf3   :  { %1156 = vst.msk [vmem:[%s2057_s3 + $0x9c] sm:$0xf] %vm1116_vm5, %v1356_v59  ;;  %v1322_v2 = vpack.c.bf16 %v801_v63, %v801_v63  ;;  %v833_v3 = vsel %vm705_vm3, %v561_v51, %v769_v60  ;;  %v740_v4 = vmul.f32 0.1, %v446_v58  ;;  %v806_v8 = vsel %vm678_vm4, %v454_v52, %v742_v0 }
  0xf4   :  { %v1354_v7 = vpack.c.bf16 %v833_v3, %v833_v3  ;;  %v838_v9 = vsel %vm710_vm6, %v582_v53, %v774_v1  ;;  %v1327_v11 = vpack.c.bf16 %v806_v8, %v806_v8  ;;  %v457_v14 = vadd.f32 %v1430_v54, %v1705_v38  ;;  %v461_v15 = vpop.f32.mrf.mxu0  ;;  %v589_v16 = vpop.f32.mrf.mxu1 }
  0xf5   :  { %1122 = vst.msk [vmem:[%s2057_s3 + $0x14] sm:$0xf] %vm1116_vm5, %v1322_v2  ;;  %v1359_v12 = vpack.c.bf16 %v838_v9, %v838_v9  ;;  %v804_v13 = vsel %vm676_vm7, %v446_v58, %v740_v4  ;;  %vm708_vm8 = vcmp.ge.f32.partialorder %v574_v10, 0.0  ;;  %v772_v18 = vmul.f32 0.1, %v574_v10 }
  0xf6   :  { %1154 = vst.msk [vmem:[%s2057_s3 + $0x94] sm:$0xf] %vm1116_vm5, %v1354_v7  ;;  %v1325_v17 = vpack.c.bf16 %v804_v13, %v804_v13  ;;  %v585_v19 = vadd.f32 %v1462_v55, %v1705_v38  ;;  %1127 = vst.msk [vmem:[%s2057_s3 + $0x28] sm:$0xf] %vm1116_vm5, %v1327_v11  ;;  %vm679_vm9 = vcmp.ge.f32.partialorder %v457_v14, 0.0  ;;  %v449_v21 = vadd.f32 %v1705_v38, %v448_v61  ;;  %v1434_v23 = vpop.f32.mrf.mxu0  ;;  %v1466_v24 = vpop.f32.mrf.mxu1 }
  0xf7   :  { %1159 = vst.msk [vmem:[%s2057_s3 + $0xa8] sm:$0xf] %vm1116_vm5, %v1359_v12  ;;  %v743_v20 = vmul.f32 0.1, %v457_v14  ;;  %v577_v22 = vadd.f32 %v1705_v38, %v576_v62  ;;  %v836_v25 = vsel %vm708_vm8, %v574_v10, %v772_v18  ;;  %v470_v27 = vadd.f32 %v1433_v5, %v1705_v38 }
  0xf8   :  { %1125 = vst.msk [vmem:[%s2057_s3 + $0x20] sm:$0xf] %vm1116_vm5, %v1325_v17  ;;  %vm711_vm10 = vcmp.ge.f32.partialorder %v585_v19, 0.0  ;;  %v775_v26 = vmul.f32 0.1, %v585_v19  ;;  %v1357_v28 = vpack.c.bf16 %v836_v25, %v836_v25  ;;  %vm677_vm11 = vcmp.ge.f32.partialorder %v449_v21, 0.0  ;;  %v464_v31 = vpop.f32.mrf.mxu0  ;;  %v592_v32 = vpop.f32.mrf.mxu1 }
  0xf9   :  { %v807_v29 = vsel %vm679_vm9, %v457_v14, %v743_v20  ;;  %v741_v30 = vmul.f32 0.1, %v449_v21  ;;  %vm709_vm12 = vcmp.ge.f32.partialorder %v577_v22, 0.0  ;;  %v773_v35 = vmul.f32 0.1, %v577_v22 }
  0xfa   :  { %v1328_v33 = vpack.c.bf16 %v807_v29, %v807_v29  ;;  %v839_v34 = vsel %vm711_vm10, %v585_v19, %v775_v26  ;;  %1157 = vst.msk [vmem:[%s2057_s3 + $0xa0] sm:$0xf] %vm1116_vm5, %v1357_v28  ;;  %vm682_vm13 = vcmp.ge.f32.partialorder %v470_v27, 0.0  ;;  %v746_v39 = vmul.f32 0.1, %v470_v27  ;;  %v1437_v40 = vpop.f32.mrf.mxu0  ;;  %v1469_v41 = vpop.f32.mrf.mxu1 }
  0xfb   :  { %v1360_v36 = vpack.c.bf16 %v839_v34, %v839_v34  ;;  %v805_v37 = vsel %vm677_vm11, %v449_v21, %v741_v30  ;;  %v837_v43 = vsel %vm709_vm12, %v577_v22, %v773_v35  ;;  %v598_v44 = vadd.f32 %v1465_v6, %v1705_v38 }
  0xfc   :  { %1128 = vst.msk [vmem:[%s2057_s3 + $0x2c] sm:$0xf] %vm1116_vm5, %v1328_v33  ;;  %v1326_v42 = vpack.c.bf16 %v805_v37, %v805_v37  ;;  %v462_v45 = vadd.f32 %v1705_v38, %v461_v15  ;;  %v1358_v46 = vpack.c.bf16 %v837_v43, %v837_v43  ;;  %v810_v47 = vsel %vm682_vm13, %v470_v27, %v746_v39  ;;  %v477_v50 = vpop.f32.mrf.mxu0  ;;  %v605_v51 = vpop.f32.mrf.mxu1 }
  0xfd   :  { %1160 = vst.msk [vmem:[%s2057_s3 + $0xac] sm:$0xf] %vm1116_vm5, %v1360_v36  ;;  %v590_v48 = vadd.f32 %v1705_v38, %v589_v16  ;;  %v473_v49 = vadd.f32 %v1434_v23, %v1705_v38  ;;  %v1331_v52 = vpack.c.bf16 %v810_v47, %v810_v47  ;;  %vm714_vm14 = vcmp.ge.f32.partialorder %v598_v44, 0.0 }
  0xfe   :  { %1126 = vst.msk [vmem:[%s2057_s3 + $0x24] sm:$0xf] %vm1116_vm5, %v1326_v42  ;;  %v778_v53 = vmul.f32 0.1, %v598_v44  ;;  %vm680_vm15 = vcmp.ge.f32.partialorder %v462_v45, 0.0  ;;  %v1438_v56 = vpop.f32.mrf.mxu0  ;;  %v1470_v57 = vpop.f32.mrf.mxu1  ;;  %v601_v60 = vadd.f32 %v1466_v24, %v1705_v38  ;;  %v465_v61 = vadd.f32 %v1705_v38, %v464_v31 }
  0xff   :  { %1158 = vst.msk [vmem:[%s2057_s3 + $0xa4] sm:$0xf] %vm1116_vm5, %v1358_v46  ;;  %v744_v54 = vmul.f32 0.1, %v462_v45  ;;  %vm712_vm0 = vcmp.ge.f32.partialorder %v590_v48, 0.0  ;;  %vm683_vm1 = vcmp.ge.f32.partialorder %v473_v49, 0.0  ;;  %v593_v1 = vadd.f32 %v1705_v38, %v592_v32 }
 0x100   :  { %v776_v55 = vmul.f32 0.1, %v590_v48  ;;  %1131 = vst.msk [vmem:[%s2057_s3 + $0x38] sm:$0xf] %vm1116_vm5, %v1331_v52  ;;  %v842_v58 = vsel %vm714_vm14, %v598_v44, %v778_v53  ;;  %v747_v59 = vmul.f32 0.1, %v473_v49  ;;  %v1841_v2 = vpop.f32.mrf.mxu0  ;;  %v1843_v3 = vpop.f32.mrf.mxu1  ;;  %v486_v13 = vadd.f32 %v1437_v40, %v1705_v38 }
 0x101   :  { %v1363_v62 = vpack.c.bf16 %v842_v58, %v842_v58  ;;  %v808_v63 = vsel %vm680_vm15, %v462_v45, %v744_v54  ;;  %vm715_vm2 = vcmp.ge.f32.partialorder %v601_v60, 0.0  ;;  %v779_v8 = vmul.f32 0.1, %v601_v60 }
 0x102   :  { %v840_v0 = vsel %vm712_vm0, %v590_v48, %v776_v55  ;;  %v1329_v4 = vpack.c.bf16 %v808_v63, %v808_v63  ;;  %v811_v6 = vsel %vm683_vm1, %v473_v49, %v747_v59  ;;  %vm681_vm3 = vcmp.ge.f32.partialorder %v465_v61, 0.0  ;;  %v1441_v10 = vpop.f32.mrf.mxu0  ;;  %v1473_v11 = vpop.f32.mrf.mxu1 }
 0x103   :  { %v1361_v5 = vpack.c.bf16 %v840_v0, %v840_v0  ;;  %1163 = vst.msk [vmem:[%s2057_s3 + $0xb8] sm:$0xf] %vm1116_vm5, %v1363_v62  ;;  %v1332_v7 = vpack.c.bf16 %v811_v6, %v811_v6  ;;  %v745_v9 = vmul.f32 0.1, %v465_v61  ;;  %vm713_vm4 = vcmp.ge.f32.partialorder %v593_v1, 0.0 }
 0x104   :  { %1129 = vst.msk [vmem:[%s2057_s3 + $0x30] sm:$0xf] %vm1116_vm5, %v1329_v4  ;;  %v777_v12 = vmul.f32 0.1, %v593_v1  ;;  %v614_v14 = vadd.f32 %v1469_v41, %v1705_v38  ;;  %v843_v15 = vsel %vm715_vm2, %v601_v60, %v779_v8  ;;  %v478_v17 = vadd.f32 %v1705_v38, %v477_v50  ;;  %v493_v19 = vpop.f32.mrf.mxu0  ;;  %v1866_v20 = vpop.f32.mrf.mxu1 }
 0x105   :  { %1161 = vst.msk [vmem:[%s2057_s3 + $0xb0] sm:$0xf] %vm1116_vm5, %v1361_v5  ;;  %1132 = vst.msk [vmem:[%s2057_s3 + $0x3c] sm:$0xf] %vm1116_vm5, %v1332_v7  ;;  %v809_v16 = vsel %vm681_vm3, %v465_v61, %v745_v9  ;;  %v606_v18 = vadd.f32 %v1705_v38, %v605_v51  ;;  %v1364_v21 = vpack.c.bf16 %v843_v15, %v843_v15  ;;  %vm686_vm6 = vcmp.ge.f32.partialorder %v486_v13, 0.0 }
 0x106   :  { %v1330_v22 = vpack.c.bf16 %v809_v16, %v809_v16  ;;  %v841_v23 = vsel %vm713_vm4, %v593_v1, %v777_v12  ;;  %v750_v25 = vmul.f32 0.1, %v486_v13  ;;  %vm718_vm7 = vcmp.ge.f32.partialorder %v614_v14, 0.0  ;;  %v1868_v27 = vpop.f32.mrf.mxu0  ;;  %v1870_v28 = vpop.f32.mrf.mxu1 }
 0x107   :  { %v1362_v24 = vpack.c.bf16 %v841_v23, %v841_v23  ;;  %v782_v26 = vmul.f32 0.1, %v614_v14  ;;  %1164 = vst.msk [vmem:[%s2057_s3 + $0xbc] sm:$0xf] %vm1116_vm5, %v1364_v21  ;;  %vm684_vm8 = vcmp.ge.f32.partialorder %v478_v17, 0.0  ;;  %vm716_vm9 = vcmp.ge.f32.partialorder %v606_v18, 0.0 }
 0x108   :  { %1130 = vst.msk [vmem:[%s2057_s3 + $0x34] sm:$0xf] %vm1116_vm5, %v1330_v22  ;;  %v748_v29 = vmul.f32 0.1, %v478_v17  ;;  %v780_v30 = vmul.f32 0.1, %v606_v18  ;;  %v814_v31 = vsel %vm686_vm6, %v486_v13, %v750_v25  ;;  %v489_v33 = vadd.f32 %v1438_v56, %v1705_v38  ;;  %v1886_v35 = vpop.f32.mrf.mxu0  ;;  %v1888_v36 = vpop.f32.mrf.mxu1 }
 0x109   :  { %1162 = vst.msk [vmem:[%s2057_s3 + $0xb4] sm:$0xf] %vm1116_vm5, %v1362_v24  ;;  %v846_v32 = vsel %vm718_vm7, %v614_v14, %v782_v26  ;;  %v617_v34 = vadd.f32 %v1470_v57, %v1705_v38  ;;  %v1335_v37 = vpack.c.bf16 %v814_v31, %v814_v31  ;;  %v481_v48 = vadd.f32 %v1705_v38, %v1841_v2 }
 0x10a   :  { %v1367_v39 = vpack.c.bf16 %v846_v32, %v846_v32  ;;  %v812_v40 = vsel %vm684_vm8, %v478_v17, %v748_v29  ;;  %v844_v41 = vsel %vm716_vm9, %v606_v18, %v780_v30  ;;  %vm687_vm10 = vcmp.ge.f32.partialorder %v489_v33, 0.0  ;;  %v1445_v45 = vpop.f32.mrf.mxu0  ;;  %v1890_v46 = vpop.f32.mrf.mxu1 }
 0x10b   :  { %v1333_v42 = vpack.c.bf16 %v812_v40, %v812_v40  ;;  %v1365_v43 = vpack.c.bf16 %v844_v41, %v844_v41  ;;  %v751_v44 = vmul.f32 0.1, %v489_v33  ;;  %1135 = vst.msk [vmem:[%s2057_s3 + $0x48] sm:$0xf] %vm1116_vm5, %v1335_v37  ;;  %vm719_vm11 = vcmp.ge.f32.partialorder %v617_v34, 0.0 }
 0x10c   :  { %1167 = vst.msk [vmem:[%s2057_s3 + $0xc8] sm:$0xf] %vm1116_vm5, %v1367_v39  ;;  %v783_v47 = vmul.f32 0.1, %v617_v34  ;;  %v609_v49 = vadd.f32 %v1705_v38, %v1843_v3  ;;  %v502_v51 = vadd.f32 %v1441_v10, %v1705_v38  ;;  %v630_v52 = vadd.f32 %v1473_v11, %v1705_v38  ;;  %v509_v59 = vpop.f32.mrf.mxu0  ;;  %v637_v60 = vpop.f32.mrf.mxu1 }
 0x10d   :  { %1133 = vst.msk [vmem:[%s2057_s3 + $0x40] sm:$0xf] %vm1116_vm5, %v1333_v42  ;;  %1165 = vst.msk [vmem:[%s2057_s3 + $0xc0] sm:$0xf] %vm1116_vm5, %v1365_v43  ;;  %v815_v50 = vsel %vm687_vm10, %v489_v33, %v751_v44  ;;  %v494_v53 = vadd.f32 %v1705_v38, %v493_v19  ;;  %vm685_vm12 = vcmp.ge.f32.partialorder %v481_v48, 0.0  ;;  %v622_v6 = vadd.f32 %v1705_v38, %v1866_v20 }
 0x10e   :  { %v1336_v54 = vpack.c.bf16 %v815_v50, %v815_v50  ;;  %v847_v55 = vsel %vm719_vm11, %v617_v34, %v783_v47  ;;  %v749_v56 = vmul.f32 0.1, %v481_v48  ;;  %vm717_vm13 = vcmp.ge.f32.partialorder %v609_v49, 0.0  ;;  %v1446_v11 = vpop.f32.mrf.mxu0  ;;  %v1478_v12 = vpop.f32.mrf.mxu1 }
 0x10f   :  { %v1368_v57 = vpack.c.bf16 %v847_v55, %v847_v55  ;;  %v781_v58 = vmul.f32 0.1, %v609_v49  ;;  %vm690_vm14 = vcmp.ge.f32.partialorder %v502_v51, 0.0  ;;  %v754_v62 = vmul.f32 0.1, %v502_v51 }
 0x110   :  { %1136 = vst.msk [vmem:[%s2057_s3 + $0x4c] sm:$0xf] %vm1116_vm5, %v1336_v54  ;;  %v813_v61 = vsel %vm685_vm12, %v481_v48, %v749_v56  ;;  %vm722_vm15 = vcmp.ge.f32.partialorder %v630_v52, 0.0  ;;  %v786_v63 = vmul.f32 0.1, %v630_v52  ;;  %vm688_vm0 = vcmp.ge.f32.partialorder %v494_v53, 0.0  ;;  %v512_v25 = vpop.f32.mrf.mxu0  ;;  %v640_v26 = vpop.f32.mrf.mxu1 }
 0x111   :  { %1168 = vst.msk [vmem:[%s2057_s3 + $0xcc] sm:$0xf] %vm1116_vm5, %v1368_v57  ;;  %v1334_v0 = vpack.c.bf16 %v813_v61, %v813_v61  ;;  %v845_v1 = vsel %vm717_vm13, %v609_v49, %v781_v58  ;;  %v752_v2 = vmul.f32 0.1, %v494_v53  ;;  %v818_v4 = vsel %vm690_vm14, %v502_v51, %v754_v62 }
 0x112   :  { %v1366_v3 = vpack.c.bf16 %v845_v1, %v845_v1  ;;  %v850_v5 = vsel %vm722_vm15, %v630_v52, %v786_v63  ;;  %v1339_v7 = vpack.c.bf16 %v818_v4, %v818_v4  ;;  %v505_v10 = vadd.f32 %v1868_v27, %v1705_v38  ;;  %v1449_v42 = vpop.f32.mrf.mxu0  ;;  %v1481_v43 = vpop.f32.mrf.mxu1 }
 0x113   :  { %1134 = vst.msk [vmem:[%s2057_s3 + $0x44] sm:$0xf] %vm1116_vm5, %v1334_v0  ;;  %v1371_v8 = vpack.c.bf16 %v850_v5, %v850_v5  ;;  %v816_v9 = vsel %vm688_vm0, %v494_v53, %v752_v2  ;;  %vm720_vm1 = vcmp.ge.f32.partialorder %v622_v6, 0.0  ;;  %v784_v14 = vmul.f32 0.1, %v622_v6 }
 0x114   :  { %1166 = vst.msk [vmem:[%s2057_s3 + $0xc4] sm:$0xf] %vm1116_vm5, %v1366_v3  ;;  %v1337_v13 = vpack.c.bf16 %v816_v9, %v816_v9  ;;  %v633_v15 = vadd.f32 %v1870_v28, %v1705_v38  ;;  %1139 = vst.msk [vmem:[%s2057_s3 + $0x58] sm:$0xf] %vm1116_vm5, %v1339_v7  ;;  %vm691_vm2 = vcmp.ge.f32.partialorder %v505_v10, 0.0  ;;  %v497_v17 = vadd.f32 %v1705_v38, %v1886_v35  ;;  %v525_v56 = vpop.f32.mrf.mxu0  ;;  %v653_v57 = vpop.f32.mrf.mxu1 }
 0x115   :  { %1171 = vst.msk [vmem:[%s2057_s3 + $0xd8] sm:$0xf] %vm1116_vm5, %v1371_v8  ;;  %v755_v16 = vmul.f32 0.1, %v505_v10  ;;  %v625_v18 = vadd.f32 %v1705_v38, %v1888_v36  ;;  %v848_v19 = vsel %vm720_vm1, %v622_v6, %v784_v14  ;;  %v518_v21 = vadd.f32 %v1445_v45, %v1705_v38 }
 0x116   :  { %1137 = vst.msk [vmem:[%s2057_s3 + $0x50] sm:$0xf] %vm1116_vm5, %v1337_v13  ;;  %vm723_vm3 = vcmp.ge.f32.partialorder %v633_v15, 0.0  ;;  %v787_v20 = vmul.f32 0.1, %v633_v15  ;;  %v1369_v22 = vpack.c.bf16 %v848_v19, %v848_v19  ;;  %vm689_vm4 = vcmp.ge.f32.partialorder %v497_v17, 0.0  ;;  %v1450_v7 = vpop.f32.mrf.mxu0  ;;  %v1482_v8 = vpop.f32.mrf.mxu1 }
 0x117   :  { %v819_v23 = vsel %vm691_vm2, %v505_v10, %v755_v16  ;;  %v753_v24 = vmul.f32 0.1, %v497_v17  ;;  %vm721_vm6 = vcmp.ge.f32.partialorder %v625_v18, 0.0  ;;  %v785_v29 = vmul.f32 0.1, %v625_v18 }
 0x118   :  { %v1340_v27 = vpack.c.bf16 %v819_v23, %v819_v23  ;;  %v851_v28 = vsel %vm723_vm3, %v633_v15, %v787_v20  ;;  %1169 = vst.msk [vmem:[%s2057_s3 + $0xd0] sm:$0xf] %vm1116_vm5, %v1369_v22  ;;  %vm694_vm7 = vcmp.ge.f32.partialorder %v518_v21, 0.0  ;;  %v758_v32 = vmul.f32 0.1, %v518_v21  ;;  %v656_v22 = vpop.f32.mrf.mxu1 }
 0x119   :  { %v1372_v30 = vpack.c.bf16 %v851_v28, %v851_v28  ;;  %v817_v31 = vsel %vm689_vm4, %v497_v17, %v753_v24  ;;  %v849_v34 = vsel %vm721_vm6, %v625_v18, %v785_v29  ;;  %v646_v35 = vadd.f32 %v1890_v46, %v1705_v38 }
 0x11a   :  { %1140 = vst.msk [vmem:[%s2057_s3 + $0x5c] sm:$0xf] %vm1116_vm5, %v1340_v27  ;;  %v1338_v33 = vpack.c.bf16 %v817_v31, %v817_v31  ;;  %v510_v36 = vadd.f32 %v1705_v38, %v509_v59  ;;  %v1370_v37 = vpack.c.bf16 %v849_v34, %v849_v34  ;;  %v822_v39 = vsel %vm694_vm7, %v518_v21, %v758_v32  ;;  %v528_v21 = vpop.f32.mrf.mxu0 }
 0x11b   :  { %1172 = vst.msk [vmem:[%s2057_s3 + $0xdc] sm:$0xf] %vm1116_vm5, %v1372_v30  ;;  %v638_v40 = vadd.f32 %v1705_v38, %v637_v60  ;;  %v521_v41 = vadd.f32 %v1446_v11, %v1705_v38  ;;  %v1343_v44 = vpack.c.bf16 %v822_v39, %v822_v39  ;;  %vm726_vm8 = vcmp.ge.f32.partialorder %v646_v35, 0.0 }
 0x11c   :  { %1138 = vst.msk [vmem:[%s2057_s3 + $0x54] sm:$0xf] %vm1116_vm5, %v1338_v33  ;;  %v790_v45 = vmul.f32 0.1, %v646_v35  ;;  %vm692_vm9 = vcmp.ge.f32.partialorder %v510_v36, 0.0  ;;  %v649_v50 = vadd.f32 %v1478_v12, %v1705_v38  ;;  %v513_v51 = vadd.f32 %v1705_v38, %v512_v25 }
 0x11d   :  { %1170 = vst.msk [vmem:[%s2057_s3 + $0xd4] sm:$0xf] %vm1116_vm5, %v1370_v37  ;;  %v756_v46 = vmul.f32 0.1, %v510_v36  ;;  %vm724_vm10 = vcmp.ge.f32.partialorder %v638_v40, 0.0  ;;  %vm695_vm11 = vcmp.ge.f32.partialorder %v521_v41, 0.0  ;;  %v641_v55 = vadd.f32 %v1705_v38, %v640_v26 }
 0x11e   :  { %v788_v47 = vmul.f32 0.1, %v638_v40  ;;  %1143 = vst.msk [vmem:[%s2057_s3 + $0x68] sm:$0xf] %vm1116_vm5, %v1343_v44  ;;  %v854_v48 = vsel %vm726_vm8, %v646_v35, %v790_v45  ;;  %v759_v49 = vmul.f32 0.1, %v521_v41  ;;  %v534_v1 = vadd.f32 %v1449_v42, %v1705_v38 }
 0x11f   :  { %v1375_v52 = vpack.c.bf16 %v854_v48, %v854_v48  ;;  %v820_v53 = vsel %vm692_vm9, %v510_v36, %v756_v46  ;;  %vm727_vm12 = vcmp.ge.f32.partialorder %v649_v50, 0.0  ;;  %v791_v62 = vmul.f32 0.1, %v649_v50 }
 0x120   :  { %v852_v54 = vsel %vm724_vm10, %v638_v40, %v788_v47  ;;  %v1341_v58 = vpack.c.bf16 %v820_v53, %v820_v53  ;;  %v823_v60 = vsel %vm695_vm11, %v521_v41, %v759_v49  ;;  %vm693_vm13 = vcmp.ge.f32.partialorder %v513_v51, 0.0 }
 0x121   :  { %v1373_v59 = vpack.c.bf16 %v852_v54, %v852_v54  ;;  %1175 = vst.msk [vmem:[%s2057_s3 + $0xe8] sm:$0xf] %vm1116_vm5, %v1375_v52  ;;  %v1344_v61 = vpack.c.bf16 %v823_v60, %v823_v60  ;;  %v757_v63 = vmul.f32 0.1, %v513_v51  ;;  %vm725_vm14 = vcmp.ge.f32.partialorder %v641_v55, 0.0 }
 0x122   :  { %1141 = vst.msk [vmem:[%s2057_s3 + $0x60] sm:$0xf] %vm1116_vm5, %v1341_v58  ;;  %v789_v0 = vmul.f32 0.1, %v641_v55  ;;  %v662_v2 = vadd.f32 %v1481_v43, %v1705_v38  ;;  %v855_v3 = vsel %vm727_vm12, %v649_v50, %v791_v62  ;;  %v526_v5 = vadd.f32 %v1705_v38, %v525_v56 }
 0x123   :  { %1173 = vst.msk [vmem:[%s2057_s3 + $0xe0] sm:$0xf] %vm1116_vm5, %v1373_v59  ;;  %1144 = vst.msk [vmem:[%s2057_s3 + $0x6c] sm:$0xf] %vm1116_vm5, %v1344_v61  ;;  %v821_v4 = vsel %vm693_vm13, %v513_v51, %v757_v63  ;;  %v654_v6 = vadd.f32 %v1705_v38, %v653_v57  ;;  %v1376_v9 = vpack.c.bf16 %v855_v3, %v855_v3  ;;  %vm698_vm15 = vcmp.ge.f32.partialorder %v534_v1, 0.0 }
 0x124   :  { %v1342_v10 = vpack.c.bf16 %v821_v4, %v821_v4  ;;  %v853_v11 = vsel %vm725_vm14, %v641_v55, %v789_v0  ;;  %v762_v13 = vmul.f32 0.1, %v534_v1  ;;  %vm730_vm0 = vcmp.ge.f32.partialorder %v662_v2, 0.0 }
 0x125   :  { %v1374_v12 = vpack.c.bf16 %v853_v11, %v853_v11  ;;  %v794_v14 = vmul.f32 0.1, %v662_v2  ;;  %1176 = vst.msk [vmem:[%s2057_s3 + $0xec] sm:$0xf] %vm1116_vm5, %v1376_v9  ;;  %vm696_vm1 = vcmp.ge.f32.partialorder %v526_v5, 0.0  ;;  %vm728_vm2 = vcmp.ge.f32.partialorder %v654_v6, 0.0 }
 0x126   :  { %1142 = vst.msk [vmem:[%s2057_s3 + $0x64] sm:$0xf] %vm1116_vm5, %v1342_v10  ;;  %v760_v15 = vmul.f32 0.1, %v526_v5  ;;  %v792_v16 = vmul.f32 0.1, %v654_v6  ;;  %v826_v17 = vsel %vm698_vm15, %v534_v1, %v762_v13  ;;  %v537_v19 = vadd.f32 %v1450_v7, %v1705_v38 }
 0x127   :  { %1174 = vst.msk [vmem:[%s2057_s3 + $0xe4] sm:$0xf] %vm1116_vm5, %v1374_v12  ;;  %v858_v18 = vsel %vm730_vm0, %v662_v2, %v794_v14  ;;  %v665_v20 = vadd.f32 %v1482_v8, %v1705_v38  ;;  %v1347_v23 = vpack.c.bf16 %v826_v17, %v826_v17  ;;  %v529_v31 = vadd.f32 %v1705_v38, %v528_v21 }
 0x128   :  { %v1379_v24 = vpack.c.bf16 %v858_v18, %v858_v18  ;;  %v824_v25 = vsel %vm696_vm1, %v526_v5, %v760_v15  ;;  %v856_v26 = vsel %vm728_vm2, %v654_v6, %v792_v16  ;;  %vm699_vm3 = vcmp.ge.f32.partialorder %v537_v19, 0.0 }
 0x129   :  { %v1345_v27 = vpack.c.bf16 %v824_v25, %v824_v25  ;;  %v1377_v28 = vpack.c.bf16 %v856_v26, %v856_v26  ;;  %v763_v29 = vmul.f32 0.1, %v537_v19  ;;  %1147 = vst.msk [vmem:[%s2057_s3 + $0x78] sm:$0xf] %vm1116_vm5, %v1347_v23  ;;  %vm731_vm4 = vcmp.ge.f32.partialorder %v665_v20, 0.0 }
 0x12a   :  { %1179 = vst.msk [vmem:[%s2057_s3 + $0xf8] sm:$0xf] %vm1116_vm5, %v1379_v24  ;;  %v795_v30 = vmul.f32 0.1, %v665_v20  ;;  %v657_v32 = vadd.f32 %v1705_v38, %v656_v22  ;;  %vm697_vm6 = vcmp.ge.f32.partialorder %v529_v31, 0.0 }
 0x12b   :  { %1145 = vst.msk [vmem:[%s2057_s3 + $0x70] sm:$0xf] %vm1116_vm5, %v1345_v27  ;;  %1177 = vst.msk [vmem:[%s2057_s3 + $0xf0] sm:$0xf] %vm1116_vm5, %v1377_v28  ;;  %v827_v33 = vsel %vm699_vm3, %v537_v19, %v763_v29  ;;  %v761_v36 = vmul.f32 0.1, %v529_v31 }
 0x12c   :  { %v1348_v34 = vpack.c.bf16 %v827_v33, %v827_v33  ;;  %v859_v35 = vsel %vm731_vm4, %v665_v20, %v795_v30  ;;  %vm729_vm7 = vcmp.ge.f32.partialorder %v657_v32, 0.0  ;;  %v793_v39 = vmul.f32 0.1, %v657_v32 }
 0x12d   :  { %v1380_v37 = vpack.c.bf16 %v859_v35, %v859_v35  ;;  %v825_v38 = vsel %vm697_vm6, %v529_v31, %v761_v36 }
 0x12e   :  { %1148 = vst.msk [vmem:[%s2057_s3 + $0x7c] sm:$0xf] %vm1116_vm5, %v1348_v34  ;;  %v1346_v40 = vpack.c.bf16 %v825_v38, %v825_v38  ;;  %v857_v41 = vsel %vm729_vm7, %v657_v32, %v793_v39 }
 0x12f   :  { %1180 = vst.msk [vmem:[%s2057_s3 + $0xfc] sm:$0xf] %vm1116_vm5, %v1380_v37  ;;  %v1378_v42 = vpack.c.bf16 %v857_v41, %v857_v41 }
 0x130   :  { %1146 = vst.msk [vmem:[%s2057_s3 + $0x74] sm:$0xf] %vm1116_vm5, %v1346_v40 }
 0x131   :  { %1178 = vst.msk [vmem:[%s2057_s3 + $0xf4] sm:$0xf] %vm1116_vm5, %v1378_v42 }
 0x132   :  { %1185 = vsyncpa [#allocation3], 1 }

// kernel: _lambda_.18
= control target key start
LH: loop header
LB: loop body
LE: loop exit
PB: predicated region body
PF: predicated region fallthrough
CT: control target
= control target key end

     0   :  { %vm379_vm0 = vcmask 1043456   ;;  %vm282_vm1 = vcmask 588800   ;;  %vm1120_vm4 = vcmask 60416   ;;  %s2062_s1 = inlined_call_operand.vmem [shape: bf16[72,8], index: 1, kind: input, shape index: {}]   ;;  %s2063_s0 = inlined_call_operand.vmem [shape: bf16[512,72], index: 0, kind: input, shape index: {}]   ;;  %s2064_s2 = inlined_call_operand.vmem [shape: f32[1,8], index: 2, kind: input, shape index: {}]   ;;  %s2065_s3 = inlined_call_operand.vmem [shape: bf16[512,8], index: 3, kind: output, shape index: {}]  }
   0x1   :  { %v1510_v0 = vld [vmem:[%s2062_s1 + $0x20] ss:$0 sps:$4 sm:$0xff]   ;;  %v1511_v1 = vld [vmem:[%s2062_s1 + $0x18] sm:$0xff]   ;;  %v1512_v3 = vld [vmem:[%s2062_s1 + $0x10] sm:$0xff]  }
   0x2   :  { %1508 = vmatprep.subr.msk.bf16.mxu0 %vm379_vm0, %v1510_v0  ;;  %1509 = vmatprep.subr.msk.bf16.mxu1 %vm379_vm0, %v1510_v0  ;;  %v381_v2 = vsel %vm379_vm0, %v1510_v0, 0  ;;  %v1515_v4 = vld [vmem:[%s2063_s0] sm:$0xff]   ;;  %v1513_v6 = vld [vmem:[%s2062_s1 + $0x8] sm:$0xff]   ;;  %v1519_v10 = vld [vmem:[%s2063_s0 + $0x10] sm:$0xff]  }
   0x3   :  { %1425 = vmatpush3.bf16.msra.mxu0 %v381_v2  ;;  %1503 = vmatpush3.bf16.msra.mxu1 %v381_v2  ;;  %v1516_v5 = vld [vmem:[%s2063_s0 + $0x80] sm:$0xff]   ;;  %v1517_v8 = vld [vmem:[%s2063_s0 + $0x8] sm:$0xff]   ;;  %v1520_v11 = vld [vmem:[%s2063_s0 + $0x90] sm:$0xff]  }
   0x4   :  { %1426 = vmatprep.subr.bf16.mxu0 %v1511_v1  ;;  %1499 = vmatprep.subr.bf16.mxu1 %v1511_v1  ;;  %v1514_v7 = vld [vmem:[%s2062_s1] sm:$0xff]   ;;  %v1518_v9 = vld [vmem:[%s2063_s0 + $0x88] sm:$0xff]   ;;  %v1521_v12 = vld [vmem:[%s2063_s0 + $0x18] sm:$0xff]  }
   0x5   :  { %1434 = vmatprep.mubr.msk.bf16.mxu0 %vm282_vm1, %v1515_v4  ;;  %1466 = vmatprep.mubr.msk.bf16.mxu1 %vm282_vm1, %v1516_v5  ;;  %v1522_v13 = vld [vmem:[%s2063_s0 + $0x98] sm:$0xff]   ;;  %v1523_v14 = vld [vmem:[%s2063_s0 + $0x20] sm:$0xff]   ;;  %v1525_v16 = vld [vmem:[%s2063_s0 + $0x28] sm:$0xff]  }
   0x6   :  { %v1524_v15 = vld [vmem:[%s2063_s0 + $0xa0] sm:$0xff]   ;;  %v1526_v17 = vld [vmem:[%s2063_s0 + $0xa8] sm:$0xff]   ;;  %v1527_v18 = vld [vmem:[%s2063_s0 + $0x30] sm:$0xff]  }
   0x7   :  { %1427 = vmatpush3.bf16.msra.mxu0 %v1511_v1  ;;  %1504 = vmatpush3.bf16.msra.mxu1 %v1511_v1  ;;  %v1528_v19 = vld [vmem:[%s2063_s0 + $0xb0] sm:$0xff]   ;;  %v1529_v20 = vld [vmem:[%s2063_s0 + $0x38] sm:$0xff]   ;;  %v1531_v22 = vld [vmem:[%s2063_s0 + $0x40] sm:$0xff]  }
   0x8   :  { %1428 = vmatprep.subr.bf16.mxu0 %v1512_v3  ;;  %1500 = vmatprep.subr.bf16.mxu1 %v1512_v3  ;;  %v1530_v21 = vld [vmem:[%s2063_s0 + $0xb8] sm:$0xff]   ;;  %v1532_v23 = vld [vmem:[%s2063_s0 + $0xc0] sm:$0xff]   ;;  %v1533_v24 = vld [vmem:[%s2063_s0 + $0x48] sm:$0xff]  }
   0x9   :  { %v1534_v25 = vld [vmem:[%s2063_s0 + $0xc8] sm:$0xff]   ;;  %v1535_v26 = vld [vmem:[%s2063_s0 + $0x50] sm:$0xff]   ;;  %v1537_v28 = vld [vmem:[%s2063_s0 + $0x58] sm:$0xff]  }
   0xa   :  { %v1536_v27 = vld [vmem:[%s2063_s0 + $0xd0] sm:$0xff]   ;;  %v1538_v29 = vld [vmem:[%s2063_s0 + $0xd8] sm:$0xff]   ;;  %v1539_v30 = vld [vmem:[%s2063_s0 + $0x60] sm:$0xff]  }
   0xb   :  { %1429 = vmatpush3.bf16.msra.mxu0 %v1512_v3  ;;  %1505 = vmatpush3.bf16.msra.mxu1 %v1512_v3  ;;  %v1540_v31 = vld [vmem:[%s2063_s0 + $0xe0] sm:$0xff]   ;;  %v1541_v32 = vld [vmem:[%s2063_s0 + $0x68] sm:$0xff]   ;;  %v1543_v34 = vld [vmem:[%s2063_s0 + $0x70] sm:$0xff]  }
   0xc   :  { %1430 = vmatprep.subr.bf16.mxu0 %v1513_v6  ;;  %1501 = vmatprep.subr.bf16.mxu1 %v1513_v6  ;;  %v1542_v33 = vld [vmem:[%s2063_s0 + $0xe8] sm:$0xff]   ;;  %v1544_v35 = vld [vmem:[%s2063_s0 + $0xf0] sm:$0xff]   ;;  %v1545_v36 = vld [vmem:[%s2063_s0 + $0x78] sm:$0xff]  }
   0xd   :  { %v1546_v37 = vld [vmem:[%s2063_s0 + $0xf8] sm:$0xff]   ;;  %v1713_v38 = vld [vmem:[%s2064_s2] ss:$0 sm:$0xff] }
   0xf   :  { %1431 = vmatpush3.bf16.msra.mxu0 %v1513_v6  ;;  %1506 = vmatpush3.bf16.msra.mxu1 %v1513_v6 }
  0x10   :  { %1432 = vmatprep.subr.bf16.mxu0 %v1514_v7  ;;  %1502 = vmatprep.subr.bf16.mxu1 %v1514_v7 }
  0x13   :  { %1433 = vmatpush3.bf16.msra.mxu0 %v1514_v7  ;;  %1507 = vmatpush3.bf16.msra.mxu1 %v1514_v7 }
  0x16   :  { %1435 = vmatmul.mubr.msk.bf16.vlgmr.msra.gmra.mxu0 %vm282_vm1, %v1517_v8  ;;  %1467 = vmatmul.mubr.msk.bf16.vlgmr.msra.gmra.mxu1 %vm282_vm1, %v1518_v9 }
  0x17   :  { %1438 = vmatprep.mubr.msk.bf16.mxu0 %vm282_vm1, %v1519_v10  ;;  %1470 = vmatprep.mubr.msk.bf16.mxu1 %vm282_vm1, %v1520_v11 }
  0x1e   :  { %1439 = vmatmul.mubr.msk.bf16.gmra.mxu0 %vm282_vm1, %v1521_v12  ;;  %1471 = vmatmul.mubr.msk.bf16.gmra.mxu1 %vm282_vm1, %v1522_v13 }
  0x1f   :  { %1442 = vmatprep.mubr.msk.bf16.mxu0 %vm282_vm1, %v1523_v14  ;;  %1474 = vmatprep.mubr.msk.bf16.mxu1 %vm282_vm1, %v1524_v15 }
  0x26   :  { %1443 = vmatmul.mubr.msk.bf16.gmra.mxu0 %vm282_vm1, %v1525_v16  ;;  %1475 = vmatmul.mubr.msk.bf16.gmra.mxu1 %vm282_vm1, %v1526_v17 }
  0x27   :  { %1446 = vmatprep.mubr.msk.bf16.mxu0 %vm282_vm1, %v1527_v18  ;;  %1478 = vmatprep.mubr.msk.bf16.mxu1 %vm282_vm1, %v1528_v19 }
  0x2e   :  { %1447 = vmatmul.mubr.msk.bf16.gmra.mxu0 %vm282_vm1, %v1529_v20  ;;  %1479 = vmatmul.mubr.msk.bf16.gmra.mxu1 %vm282_vm1, %v1530_v21 }
  0x2f   :  { %1450 = vmatprep.mubr.msk.bf16.mxu0 %vm282_vm1, %v1531_v22  ;;  %1482 = vmatprep.mubr.msk.bf16.mxu1 %vm282_vm1, %v1532_v23 }
  0x36   :  { %1451 = vmatmul.mubr.msk.bf16.gmra.mxu0 %vm282_vm1, %v1533_v24  ;;  %1483 = vmatmul.mubr.msk.bf16.gmra.mxu1 %vm282_vm1, %v1534_v25 }
  0x37   :  { %1454 = vmatprep.mubr.msk.bf16.mxu0 %vm282_vm1, %v1535_v26  ;;  %1486 = vmatprep.mubr.msk.bf16.mxu1 %vm282_vm1, %v1536_v27 }
  0x3e   :  { %1455 = vmatmul.mubr.msk.bf16.gmra.mxu0 %vm282_vm1, %v1537_v28  ;;  %1487 = vmatmul.mubr.msk.bf16.gmra.mxu1 %vm282_vm1, %v1538_v29 }
  0x3f   :  { %1458 = vmatprep.mubr.msk.bf16.mxu0 %vm282_vm1, %v1539_v30  ;;  %1490 = vmatprep.mubr.msk.bf16.mxu1 %vm282_vm1, %v1540_v31 }
  0x46   :  { %1459 = vmatmul.mubr.msk.bf16.gmra.mxu0 %vm282_vm1, %v1541_v32  ;;  %1491 = vmatmul.mubr.msk.bf16.gmra.mxu1 %vm282_vm1, %v1542_v33 }
  0x47   :  { %1462 = vmatprep.mubr.msk.bf16.mxu0 %vm282_vm1, %v1543_v34  ;;  %1494 = vmatprep.mubr.msk.bf16.mxu1 %vm282_vm1, %v1544_v35 }
  0x4e   :  { %1463 = vmatmul.mubr.msk.bf16.gmra.mxu0 %vm282_vm1, %v1545_v36  ;;  %1495 = vmatmul.mubr.msk.bf16.gmra.mxu1 %vm282_vm1, %v1546_v37 }
  0xd6   :  { %v1436_v39 = vpop.f32.mrf.mxu0  ;;  %v1468_v40 = vpop.f32.mrf.mxu1 }
  0xd7   :  { %v426_v41 = vadd.f32 %v1436_v39, %v1713_v38  ;;  %v554_v42 = vadd.f32 %v1468_v40, %v1713_v38 }
  0xd8   :  { %v417_v43 = vpop.f32.mrf.mxu0  ;;  %v545_v44 = vpop.f32.mrf.mxu1 }
  0xd9   :  { %vm674_vm2 = vcmp.ge.f32.partialorder %v426_v41, 0.0  ;;  %v738_v45 = vmul.f32 0.1, %v426_v41  ;;  %vm706_vm3 = vcmp.ge.f32.partialorder %v554_v42, 0.0  ;;  %v770_v46 = vmul.f32 0.1, %v554_v42 }
  0xda   :  { %v418_v47 = vadd.f32 %v1713_v38, %v417_v43  ;;  %v546_v48 = vadd.f32 %v1713_v38, %v545_v44  ;;  %v1437_v49 = vpop.f32.mrf.mxu0  ;;  %v1469_v50 = vpop.f32.mrf.mxu1 }
  0xdb   :  { %v802_v51 = vsel %vm674_vm2, %v426_v41, %v738_v45  ;;  %v834_v52 = vsel %vm706_vm3, %v554_v42, %v770_v46  ;;  %v429_v53 = vadd.f32 %v1437_v49, %v1713_v38  ;;  %v557_v54 = vadd.f32 %v1469_v50, %v1713_v38 }
  0xdc   :  { %v1325_v55 = vpack.c.bf16 %v802_v51, %v802_v51  ;;  %v1357_v56 = vpack.c.bf16 %v834_v52, %v834_v52  ;;  %vm672_vm5 = vcmp.ge.f32.partialorder %v418_v47, 0.0  ;;  %v736_v57 = vmul.f32 0.1, %v418_v47  ;;  %v420_v58 = vpop.f32.mrf.mxu0  ;;  %v548_v59 = vpop.f32.mrf.mxu1 }
  0xdd   :  { %vm704_vm6 = vcmp.ge.f32.partialorder %v546_v48, 0.0  ;;  %v768_v60 = vmul.f32 0.1, %v546_v48  ;;  %vm675_vm7 = vcmp.ge.f32.partialorder %v429_v53, 0.0  ;;  %v739_v61 = vmul.f32 0.1, %v429_v53 }
  0xde   :  { %1123 = vst.msk [vmem:[%s2065_s3 + $0x8] sm:$0xf] %vm1120_vm4, %v1325_v55  ;;  %1155 = vst.msk [vmem:[%s2065_s3 + $0x88] sm:$0xf] %vm1120_vm4, %v1357_v56  ;;  %v800_v62 = vsel %vm672_vm5, %v418_v47, %v736_v57  ;;  %vm707_vm8 = vcmp.ge.f32.partialorder %v557_v54, 0.0  ;;  %v421_v0 = vadd.f32 %v1713_v38, %v420_v58  ;;  %v1440_v1 = vpop.f32.mrf.mxu0  ;;  %v1472_v2 = vpop.f32.mrf.mxu1  ;;  %v549_v6 = vadd.f32 %v1713_v38, %v548_v59 }
  0xdf   :  { %v771_v63 = vmul.f32 0.1, %v557_v54  ;;  %v1323_v3 = vpack.c.bf16 %v800_v62, %v800_v62  ;;  %v832_v4 = vsel %vm704_vm6, %v546_v48, %v768_v60  ;;  %v803_v5 = vsel %vm675_vm7, %v429_v53, %v739_v61 }
  0xe0   :  { %v1355_v7 = vpack.c.bf16 %v832_v4, %v832_v4  ;;  %v1326_v8 = vpack.c.bf16 %v803_v5, %v803_v5  ;;  %vm673_vm9 = vcmp.ge.f32.partialorder %v421_v0, 0.0  ;;  %v433_v10 = vpop.f32.mrf.mxu0  ;;  %v561_v11 = vpop.f32.mrf.mxu1  ;;  %v737_v13 = vmul.f32 0.1, %v421_v0 }
  0xe1   :  { %v835_v9 = vsel %vm707_vm8, %v557_v54, %v771_v63  ;;  %1121 = vst.msk [vmem:[%s2065_s3] sm:$0xf] %vm1120_vm4, %v1323_v3  ;;  %vm705_vm10 = vcmp.ge.f32.partialorder %v549_v6, 0.0  ;;  %v769_v14 = vmul.f32 0.1, %v549_v6  ;;  %v442_v15 = vadd.f32 %v1440_v1, %v1713_v38 }
  0xe2   :  { %v1358_v12 = vpack.c.bf16 %v835_v9, %v835_v9  ;;  %1153 = vst.msk [vmem:[%s2065_s3 + $0x80] sm:$0xf] %vm1120_vm4, %v1355_v7  ;;  %1124 = vst.msk [vmem:[%s2065_s3 + $0xc] sm:$0xf] %vm1120_vm4, %v1326_v8  ;;  %v570_v16 = vadd.f32 %v1472_v2, %v1713_v38  ;;  %v434_v17 = vadd.f32 %v1713_v38, %v433_v10  ;;  %v1441_v19 = vpop.f32.mrf.mxu0  ;;  %v1473_v20 = vpop.f32.mrf.mxu1 }
  0xe3   :  { %v562_v18 = vadd.f32 %v1713_v38, %v561_v11  ;;  %v801_v21 = vsel %vm673_vm9, %v421_v0, %v737_v13  ;;  %v833_v22 = vsel %vm705_vm10, %v549_v6, %v769_v14  ;;  %v445_v23 = vadd.f32 %v1441_v19, %v1713_v38 }
  0xe4   :  { %1156 = vst.msk [vmem:[%s2065_s3 + $0x8c] sm:$0xf] %vm1120_vm4, %v1358_v12  ;;  %v573_v24 = vadd.f32 %v1473_v20, %v1713_v38  ;;  %v1324_v25 = vpack.c.bf16 %v801_v21, %v801_v21  ;;  %v1356_v26 = vpack.c.bf16 %v833_v22, %v833_v22  ;;  %vm678_vm11 = vcmp.ge.f32.partialorder %v442_v15, 0.0  ;;  %v436_v28 = vpop.f32.mrf.mxu0  ;;  %v564_v29 = vpop.f32.mrf.mxu1 }
  0xe5   :  { %v742_v27 = vmul.f32 0.1, %v442_v15  ;;  %vm710_vm12 = vcmp.ge.f32.partialorder %v570_v16, 0.0  ;;  %v774_v30 = vmul.f32 0.1, %v570_v16  ;;  %vm676_vm13 = vcmp.ge.f32.partialorder %v434_v17, 0.0 }
  0xe6   :  { %v740_v31 = vmul.f32 0.1, %v434_v17  ;;  %1122 = vst.msk [vmem:[%s2065_s3 + $0x4] sm:$0xf] %vm1120_vm4, %v1324_v25  ;;  %1154 = vst.msk [vmem:[%s2065_s3 + $0x84] sm:$0xf] %vm1120_vm4, %v1356_v26  ;;  %v1444_v34 = vpop.f32.mrf.mxu0  ;;  %v1476_v35 = vpop.f32.mrf.mxu1  ;;  %v437_v49 = vadd.f32 %v1713_v38, %v436_v28  ;;  %v565_v51 = vadd.f32 %v1713_v38, %v564_v29 }
  0xe7   :  { %v806_v32 = vsel %vm678_vm11, %v442_v15, %v742_v27  ;;  %vm708_vm14 = vcmp.ge.f32.partialorder %v562_v18, 0.0  ;;  %v772_v33 = vmul.f32 0.1, %v562_v18  ;;  %vm679_vm15 = vcmp.ge.f32.partialorder %v445_v23, 0.0 }
  0xe8   :  { %v1329_v36 = vpack.c.bf16 %v806_v32, %v806_v32  ;;  %v838_v37 = vsel %vm710_vm12, %v570_v16, %v774_v30  ;;  %v804_v39 = vsel %vm676_vm13, %v434_v17, %v740_v31  ;;  %v743_v40 = vmul.f32 0.1, %v445_v23  ;;  %v449_v44 = vpop.f32.mrf.mxu0  ;;  %v577_v45 = vpop.f32.mrf.mxu1 }
  0xe9   :  { %v1361_v41 = vpack.c.bf16 %v838_v37, %v838_v37  ;;  %v1327_v42 = vpack.c.bf16 %v804_v39, %v804_v39  ;;  %v836_v43 = vsel %vm708_vm14, %v562_v18, %v772_v33  ;;  %vm711_vm0 = vcmp.ge.f32.partialorder %v573_v24, 0.0 }
  0xea   :  { %1127 = vst.msk [vmem:[%s2065_s3 + $0x18] sm:$0xf] %vm1120_vm4, %v1329_v36  ;;  %v1359_v46 = vpack.c.bf16 %v836_v43, %v836_v43  ;;  %v807_v47 = vsel %vm679_vm15, %v445_v23, %v743_v40  ;;  %v775_v48 = vmul.f32 0.1, %v573_v24  ;;  %v458_v52 = vadd.f32 %v1444_v34, %v1713_v38  ;;  %v1445_v54 = vpop.f32.mrf.mxu0  ;;  %v1477_v55 = vpop.f32.mrf.mxu1 }
  0xeb   :  { %1159 = vst.msk [vmem:[%s2065_s3 + $0x98] sm:$0xf] %vm1120_vm4, %v1361_v41  ;;  %1125 = vst.msk [vmem:[%s2065_s3 + $0x10] sm:$0xf] %vm1120_vm4, %v1327_v42  ;;  %v1330_v50 = vpack.c.bf16 %v807_v47, %v807_v47  ;;  %v586_v53 = vadd.f32 %v1476_v35, %v1713_v38  ;;  %vm677_vm1 = vcmp.ge.f32.partialorder %v437_v49, 0.0  ;;  %v450_v58 = vadd.f32 %v1713_v38, %v449_v44 }
  0xec   :  { %1157 = vst.msk [vmem:[%s2065_s3 + $0x90] sm:$0xf] %vm1120_vm4, %v1359_v46  ;;  %v839_v56 = vsel %vm711_vm0, %v573_v24, %v775_v48  ;;  %v741_v57 = vmul.f32 0.1, %v437_v49  ;;  %vm709_vm2 = vcmp.ge.f32.partialorder %v565_v51, 0.0  ;;  %vm682_vm3 = vcmp.ge.f32.partialorder %v458_v52, 0.0  ;;  %v452_v61 = vpop.f32.mrf.mxu0  ;;  %v580_v62 = vpop.f32.mrf.mxu1 }
  0xed   :  { %1128 = vst.msk [vmem:[%s2065_s3 + $0x1c] sm:$0xf] %vm1120_vm4, %v1330_v50  ;;  %v1362_v59 = vpack.c.bf16 %v839_v56, %v839_v56  ;;  %v773_v60 = vmul.f32 0.1, %v565_v51  ;;  %v746_v0 = vmul.f32 0.1, %v458_v52  ;;  %v578_v10 = vadd.f32 %v1713_v38, %v577_v45 }
  0xee   :  { %v805_v63 = vsel %vm677_vm1, %v437_v49, %v741_v57  ;;  %vm714_vm5 = vcmp.ge.f32.partialorder %v586_v53, 0.0  ;;  %v778_v1 = vmul.f32 0.1, %v586_v53  ;;  %vm680_vm6 = vcmp.ge.f32.partialorder %v450_v58, 0.0  ;;  %v1448_v5 = vpop.f32.mrf.mxu0  ;;  %v1480_v6 = vpop.f32.mrf.mxu1 }
  0xef   :  { %1160 = vst.msk [vmem:[%s2065_s3 + $0x9c] sm:$0xf] %vm1120_vm4, %v1362_v59  ;;  %v1328_v2 = vpack.c.bf16 %v805_v63, %v805_v63  ;;  %v837_v3 = vsel %vm709_vm2, %v565_v51, %v773_v60  ;;  %v744_v4 = vmul.f32 0.1, %v450_v58  ;;  %v810_v8 = vsel %vm682_vm3, %v458_v52, %v746_v0 }
  0xf0   :  { %v1360_v7 = vpack.c.bf16 %v837_v3, %v837_v3  ;;  %v842_v9 = vsel %vm714_vm5, %v586_v53, %v778_v1  ;;  %v1333_v11 = vpack.c.bf16 %v810_v8, %v810_v8  ;;  %v461_v14 = vadd.f32 %v1445_v54, %v1713_v38  ;;  %v465_v15 = vpop.f32.mrf.mxu0  ;;  %v593_v16 = vpop.f32.mrf.mxu1 }
  0xf1   :  { %1126 = vst.msk [vmem:[%s2065_s3 + $0x14] sm:$0xf] %vm1120_vm4, %v1328_v2  ;;  %v1365_v12 = vpack.c.bf16 %v842_v9, %v842_v9  ;;  %v808_v13 = vsel %vm680_vm6, %v450_v58, %v744_v4  ;;  %vm712_vm7 = vcmp.ge.f32.partialorder %v578_v10, 0.0  ;;  %v776_v18 = vmul.f32 0.1, %v578_v10 }
  0xf2   :  { %1158 = vst.msk [vmem:[%s2065_s3 + $0x94] sm:$0xf] %vm1120_vm4, %v1360_v7  ;;  %v1331_v17 = vpack.c.bf16 %v808_v13, %v808_v13  ;;  %v589_v19 = vadd.f32 %v1477_v55, %v1713_v38  ;;  %1131 = vst.msk [vmem:[%s2065_s3 + $0x28] sm:$0xf] %vm1120_vm4, %v1333_v11  ;;  %vm683_vm8 = vcmp.ge.f32.partialorder %v461_v14, 0.0  ;;  %v453_v21 = vadd.f32 %v1713_v38, %v452_v61  ;;  %v1449_v23 = vpop.f32.mrf.mxu0  ;;  %v1481_v24 = vpop.f32.mrf.mxu1 }
  0xf3   :  { %1163 = vst.msk [vmem:[%s2065_s3 + $0xa8] sm:$0xf] %vm1120_vm4, %v1365_v12  ;;  %v747_v20 = vmul.f32 0.1, %v461_v14  ;;  %v581_v22 = vadd.f32 %v1713_v38, %v580_v62  ;;  %v840_v25 = vsel %vm712_vm7, %v578_v10, %v776_v18  ;;  %v474_v27 = vadd.f32 %v1448_v5, %v1713_v38 }
  0xf4   :  { %1129 = vst.msk [vmem:[%s2065_s3 + $0x20] sm:$0xf] %vm1120_vm4, %v1331_v17  ;;  %vm715_vm9 = vcmp.ge.f32.partialorder %v589_v19, 0.0  ;;  %v779_v26 = vmul.f32 0.1, %v589_v19  ;;  %v1363_v28 = vpack.c.bf16 %v840_v25, %v840_v25  ;;  %vm681_vm10 = vcmp.ge.f32.partialorder %v453_v21, 0.0  ;;  %v468_v31 = vpop.f32.mrf.mxu0  ;;  %v596_v32 = vpop.f32.mrf.mxu1 }
  0xf5   :  { %v811_v29 = vsel %vm683_vm8, %v461_v14, %v747_v20  ;;  %v745_v30 = vmul.f32 0.1, %v453_v21  ;;  %vm713_vm11 = vcmp.ge.f32.partialorder %v581_v22, 0.0  ;;  %v777_v35 = vmul.f32 0.1, %v581_v22 }
  0xf6   :  { %v1334_v33 = vpack.c.bf16 %v811_v29, %v811_v29  ;;  %v843_v34 = vsel %vm715_vm9, %v589_v19, %v779_v26  ;;  %1161 = vst.msk [vmem:[%s2065_s3 + $0xa0] sm:$0xf] %vm1120_vm4, %v1363_v28  ;;  %vm686_vm12 = vcmp.ge.f32.partialorder %v474_v27, 0.0  ;;  %v750_v39 = vmul.f32 0.1, %v474_v27  ;;  %v1452_v40 = vpop.f32.mrf.mxu0  ;;  %v1484_v41 = vpop.f32.mrf.mxu1 }
  0xf7   :  { %v1366_v36 = vpack.c.bf16 %v843_v34, %v843_v34  ;;  %v809_v37 = vsel %vm681_vm10, %v453_v21, %v745_v30  ;;  %v841_v43 = vsel %vm713_vm11, %v581_v22, %v777_v35  ;;  %v602_v44 = vadd.f32 %v1480_v6, %v1713_v38 }
  0xf8   :  { %1132 = vst.msk [vmem:[%s2065_s3 + $0x2c] sm:$0xf] %vm1120_vm4, %v1334_v33  ;;  %v1332_v42 = vpack.c.bf16 %v809_v37, %v809_v37  ;;  %v466_v45 = vadd.f32 %v1713_v38, %v465_v15  ;;  %v1364_v46 = vpack.c.bf16 %v841_v43, %v841_v43  ;;  %v814_v47 = vsel %vm686_vm12, %v474_v27, %v750_v39  ;;  %v481_v50 = vpop.f32.mrf.mxu0  ;;  %v609_v51 = vpop.f32.mrf.mxu1 }
  0xf9   :  { %1164 = vst.msk [vmem:[%s2065_s3 + $0xac] sm:$0xf] %vm1120_vm4, %v1366_v36  ;;  %v594_v48 = vadd.f32 %v1713_v38, %v593_v16  ;;  %v477_v49 = vadd.f32 %v1449_v23, %v1713_v38  ;;  %v1337_v52 = vpack.c.bf16 %v814_v47, %v814_v47  ;;  %vm718_vm13 = vcmp.ge.f32.partialorder %v602_v44, 0.0 }
  0xfa   :  { %1130 = vst.msk [vmem:[%s2065_s3 + $0x24] sm:$0xf] %vm1120_vm4, %v1332_v42  ;;  %v782_v53 = vmul.f32 0.1, %v602_v44  ;;  %vm684_vm14 = vcmp.ge.f32.partialorder %v466_v45, 0.0  ;;  %v1453_v56 = vpop.f32.mrf.mxu0  ;;  %v1485_v57 = vpop.f32.mrf.mxu1  ;;  %v605_v60 = vadd.f32 %v1481_v24, %v1713_v38  ;;  %v469_v61 = vadd.f32 %v1713_v38, %v468_v31 }
  0xfb   :  { %1162 = vst.msk [vmem:[%s2065_s3 + $0xa4] sm:$0xf] %vm1120_vm4, %v1364_v46  ;;  %v748_v54 = vmul.f32 0.1, %v466_v45  ;;  %vm716_vm15 = vcmp.ge.f32.partialorder %v594_v48, 0.0  ;;  %vm687_vm0 = vcmp.ge.f32.partialorder %v477_v49, 0.0  ;;  %v597_v1 = vadd.f32 %v1713_v38, %v596_v32 }
  0xfc   :  { %v780_v55 = vmul.f32 0.1, %v594_v48  ;;  %1135 = vst.msk [vmem:[%s2065_s3 + $0x38] sm:$0xf] %vm1120_vm4, %v1337_v52  ;;  %v846_v58 = vsel %vm718_vm13, %v602_v44, %v782_v53  ;;  %v751_v59 = vmul.f32 0.1, %v477_v49  ;;  %v1849_v2 = vpop.f32.mrf.mxu0  ;;  %v1851_v3 = vpop.f32.mrf.mxu1  ;;  %v490_v13 = vadd.f32 %v1452_v40, %v1713_v38 }
  0xfd   :  { %v1369_v62 = vpack.c.bf16 %v846_v58, %v846_v58  ;;  %v812_v63 = vsel %vm684_vm14, %v466_v45, %v748_v54  ;;  %vm719_vm1 = vcmp.ge.f32.partialorder %v605_v60, 0.0  ;;  %v783_v8 = vmul.f32 0.1, %v605_v60 }
  0xfe   :  { %v844_v0 = vsel %vm716_vm15, %v594_v48, %v780_v55  ;;  %v1335_v4 = vpack.c.bf16 %v812_v63, %v812_v63  ;;  %v815_v6 = vsel %vm687_vm0, %v477_v49, %v751_v59  ;;  %vm685_vm2 = vcmp.ge.f32.partialorder %v469_v61, 0.0  ;;  %v1456_v10 = vpop.f32.mrf.mxu0  ;;  %v1488_v11 = vpop.f32.mrf.mxu1 }
  0xff   :  { %v1367_v5 = vpack.c.bf16 %v844_v0, %v844_v0  ;;  %1167 = vst.msk [vmem:[%s2065_s3 + $0xb8] sm:$0xf] %vm1120_vm4, %v1369_v62  ;;  %v1338_v7 = vpack.c.bf16 %v815_v6, %v815_v6  ;;  %v749_v9 = vmul.f32 0.1, %v469_v61  ;;  %vm717_vm3 = vcmp.ge.f32.partialorder %v597_v1, 0.0 }
 0x100   :  { %1133 = vst.msk [vmem:[%s2065_s3 + $0x30] sm:$0xf] %vm1120_vm4, %v1335_v4  ;;  %v781_v12 = vmul.f32 0.1, %v597_v1  ;;  %v618_v14 = vadd.f32 %v1484_v41, %v1713_v38  ;;  %v847_v15 = vsel %vm719_vm1, %v605_v60, %v783_v8  ;;  %v482_v17 = vadd.f32 %v1713_v38, %v481_v50  ;;  %v497_v19 = vpop.f32.mrf.mxu0  ;;  %v1874_v20 = vpop.f32.mrf.mxu1 }
 0x101   :  { %1165 = vst.msk [vmem:[%s2065_s3 + $0xb0] sm:$0xf] %vm1120_vm4, %v1367_v5  ;;  %1136 = vst.msk [vmem:[%s2065_s3 + $0x3c] sm:$0xf] %vm1120_vm4, %v1338_v7  ;;  %v813_v16 = vsel %vm685_vm2, %v469_v61, %v749_v9  ;;  %v610_v18 = vadd.f32 %v1713_v38, %v609_v51  ;;  %v1370_v21 = vpack.c.bf16 %v847_v15, %v847_v15  ;;  %vm690_vm5 = vcmp.ge.f32.partialorder %v490_v13, 0.0 }
 0x102   :  { %v1336_v22 = vpack.c.bf16 %v813_v16, %v813_v16  ;;  %v845_v23 = vsel %vm717_vm3, %v597_v1, %v781_v12  ;;  %v754_v25 = vmul.f32 0.1, %v490_v13  ;;  %vm722_vm6 = vcmp.ge.f32.partialorder %v618_v14, 0.0  ;;  %v1876_v27 = vpop.f32.mrf.mxu0  ;;  %v1878_v28 = vpop.f32.mrf.mxu1 }
 0x103   :  { %v1368_v24 = vpack.c.bf16 %v845_v23, %v845_v23  ;;  %v786_v26 = vmul.f32 0.1, %v618_v14  ;;  %1168 = vst.msk [vmem:[%s2065_s3 + $0xbc] sm:$0xf] %vm1120_vm4, %v1370_v21  ;;  %vm688_vm7 = vcmp.ge.f32.partialorder %v482_v17, 0.0  ;;  %vm720_vm8 = vcmp.ge.f32.partialorder %v610_v18, 0.0 }
 0x104   :  { %1134 = vst.msk [vmem:[%s2065_s3 + $0x34] sm:$0xf] %vm1120_vm4, %v1336_v22  ;;  %v752_v29 = vmul.f32 0.1, %v482_v17  ;;  %v784_v30 = vmul.f32 0.1, %v610_v18  ;;  %v818_v31 = vsel %vm690_vm5, %v490_v13, %v754_v25  ;;  %v493_v33 = vadd.f32 %v1453_v56, %v1713_v38  ;;  %v1894_v35 = vpop.f32.mrf.mxu0  ;;  %v1896_v36 = vpop.f32.mrf.mxu1 }
 0x105   :  { %1166 = vst.msk [vmem:[%s2065_s3 + $0xb4] sm:$0xf] %vm1120_vm4, %v1368_v24  ;;  %v850_v32 = vsel %vm722_vm6, %v618_v14, %v786_v26  ;;  %v621_v34 = vadd.f32 %v1485_v57, %v1713_v38  ;;  %v1341_v37 = vpack.c.bf16 %v818_v31, %v818_v31  ;;  %v485_v48 = vadd.f32 %v1713_v38, %v1849_v2 }
 0x106   :  { %v1373_v39 = vpack.c.bf16 %v850_v32, %v850_v32  ;;  %v816_v40 = vsel %vm688_vm7, %v482_v17, %v752_v29  ;;  %v848_v41 = vsel %vm720_vm8, %v610_v18, %v784_v30  ;;  %vm691_vm9 = vcmp.ge.f32.partialorder %v493_v33, 0.0  ;;  %v1460_v45 = vpop.f32.mrf.mxu0  ;;  %v1898_v46 = vpop.f32.mrf.mxu1 }
 0x107   :  { %v1339_v42 = vpack.c.bf16 %v816_v40, %v816_v40  ;;  %v1371_v43 = vpack.c.bf16 %v848_v41, %v848_v41  ;;  %v755_v44 = vmul.f32 0.1, %v493_v33  ;;  %1139 = vst.msk [vmem:[%s2065_s3 + $0x48] sm:$0xf] %vm1120_vm4, %v1341_v37  ;;  %vm723_vm10 = vcmp.ge.f32.partialorder %v621_v34, 0.0 }
 0x108   :  { %1171 = vst.msk [vmem:[%s2065_s3 + $0xc8] sm:$0xf] %vm1120_vm4, %v1373_v39  ;;  %v787_v47 = vmul.f32 0.1, %v621_v34  ;;  %v613_v49 = vadd.f32 %v1713_v38, %v1851_v3  ;;  %v506_v51 = vadd.f32 %v1456_v10, %v1713_v38  ;;  %v634_v52 = vadd.f32 %v1488_v11, %v1713_v38  ;;  %v513_v59 = vpop.f32.mrf.mxu0  ;;  %v641_v60 = vpop.f32.mrf.mxu1 }
 0x109   :  { %1137 = vst.msk [vmem:[%s2065_s3 + $0x40] sm:$0xf] %vm1120_vm4, %v1339_v42  ;;  %1169 = vst.msk [vmem:[%s2065_s3 + $0xc0] sm:$0xf] %vm1120_vm4, %v1371_v43  ;;  %v819_v50 = vsel %vm691_vm9, %v493_v33, %v755_v44  ;;  %v498_v53 = vadd.f32 %v1713_v38, %v497_v19  ;;  %vm689_vm11 = vcmp.ge.f32.partialorder %v485_v48, 0.0  ;;  %v626_v6 = vadd.f32 %v1713_v38, %v1874_v20 }
 0x10a   :  { %v1342_v54 = vpack.c.bf16 %v819_v50, %v819_v50  ;;  %v851_v55 = vsel %vm723_vm10, %v621_v34, %v787_v47  ;;  %v753_v56 = vmul.f32 0.1, %v485_v48  ;;  %vm721_vm12 = vcmp.ge.f32.partialorder %v613_v49, 0.0  ;;  %v1461_v11 = vpop.f32.mrf.mxu0  ;;  %v1493_v12 = vpop.f32.mrf.mxu1 }
 0x10b   :  { %v1374_v57 = vpack.c.bf16 %v851_v55, %v851_v55  ;;  %v785_v58 = vmul.f32 0.1, %v613_v49  ;;  %vm694_vm13 = vcmp.ge.f32.partialorder %v506_v51, 0.0  ;;  %v758_v62 = vmul.f32 0.1, %v506_v51 }
 0x10c   :  { %1140 = vst.msk [vmem:[%s2065_s3 + $0x4c] sm:$0xf] %vm1120_vm4, %v1342_v54  ;;  %v817_v61 = vsel %vm689_vm11, %v485_v48, %v753_v56  ;;  %vm726_vm14 = vcmp.ge.f32.partialorder %v634_v52, 0.0  ;;  %v790_v63 = vmul.f32 0.1, %v634_v52  ;;  %vm692_vm15 = vcmp.ge.f32.partialorder %v498_v53, 0.0  ;;  %v516_v25 = vpop.f32.mrf.mxu0  ;;  %v644_v26 = vpop.f32.mrf.mxu1 }
 0x10d   :  { %1172 = vst.msk [vmem:[%s2065_s3 + $0xcc] sm:$0xf] %vm1120_vm4, %v1374_v57  ;;  %v1340_v0 = vpack.c.bf16 %v817_v61, %v817_v61  ;;  %v849_v1 = vsel %vm721_vm12, %v613_v49, %v785_v58  ;;  %v756_v2 = vmul.f32 0.1, %v498_v53  ;;  %v822_v4 = vsel %vm694_vm13, %v506_v51, %v758_v62 }
 0x10e   :  { %v1372_v3 = vpack.c.bf16 %v849_v1, %v849_v1  ;;  %v854_v5 = vsel %vm726_vm14, %v634_v52, %v790_v63  ;;  %v1345_v7 = vpack.c.bf16 %v822_v4, %v822_v4  ;;  %v509_v10 = vadd.f32 %v1876_v27, %v1713_v38  ;;  %v1464_v42 = vpop.f32.mrf.mxu0  ;;  %v1496_v43 = vpop.f32.mrf.mxu1 }
 0x10f   :  { %1138 = vst.msk [vmem:[%s2065_s3 + $0x44] sm:$0xf] %vm1120_vm4, %v1340_v0  ;;  %v1377_v8 = vpack.c.bf16 %v854_v5, %v854_v5  ;;  %v820_v9 = vsel %vm692_vm15, %v498_v53, %v756_v2  ;;  %vm724_vm0 = vcmp.ge.f32.partialorder %v626_v6, 0.0  ;;  %v788_v14 = vmul.f32 0.1, %v626_v6 }
 0x110   :  { %1170 = vst.msk [vmem:[%s2065_s3 + $0xc4] sm:$0xf] %vm1120_vm4, %v1372_v3  ;;  %v1343_v13 = vpack.c.bf16 %v820_v9, %v820_v9  ;;  %v637_v15 = vadd.f32 %v1878_v28, %v1713_v38  ;;  %1143 = vst.msk [vmem:[%s2065_s3 + $0x58] sm:$0xf] %vm1120_vm4, %v1345_v7  ;;  %vm695_vm1 = vcmp.ge.f32.partialorder %v509_v10, 0.0  ;;  %v501_v17 = vadd.f32 %v1713_v38, %v1894_v35  ;;  %v529_v56 = vpop.f32.mrf.mxu0  ;;  %v657_v57 = vpop.f32.mrf.mxu1 }
 0x111   :  { %1175 = vst.msk [vmem:[%s2065_s3 + $0xd8] sm:$0xf] %vm1120_vm4, %v1377_v8  ;;  %v759_v16 = vmul.f32 0.1, %v509_v10  ;;  %v629_v18 = vadd.f32 %v1713_v38, %v1896_v36  ;;  %v852_v19 = vsel %vm724_vm0, %v626_v6, %v788_v14  ;;  %v522_v21 = vadd.f32 %v1460_v45, %v1713_v38 }
 0x112   :  { %1141 = vst.msk [vmem:[%s2065_s3 + $0x50] sm:$0xf] %vm1120_vm4, %v1343_v13  ;;  %vm727_vm2 = vcmp.ge.f32.partialorder %v637_v15, 0.0  ;;  %v791_v20 = vmul.f32 0.1, %v637_v15  ;;  %v1375_v22 = vpack.c.bf16 %v852_v19, %v852_v19  ;;  %vm693_vm3 = vcmp.ge.f32.partialorder %v501_v17, 0.0  ;;  %v1465_v7 = vpop.f32.mrf.mxu0  ;;  %v1497_v8 = vpop.f32.mrf.mxu1 }
 0x113   :  { %v823_v23 = vsel %vm695_vm1, %v509_v10, %v759_v16  ;;  %v757_v24 = vmul.f32 0.1, %v501_v17  ;;  %vm725_vm5 = vcmp.ge.f32.partialorder %v629_v18, 0.0  ;;  %v789_v29 = vmul.f32 0.1, %v629_v18 }
 0x114   :  { %v1346_v27 = vpack.c.bf16 %v823_v23, %v823_v23  ;;  %v855_v28 = vsel %vm727_vm2, %v637_v15, %v791_v20  ;;  %1173 = vst.msk [vmem:[%s2065_s3 + $0xd0] sm:$0xf] %vm1120_vm4, %v1375_v22  ;;  %vm698_vm6 = vcmp.ge.f32.partialorder %v522_v21, 0.0  ;;  %v762_v32 = vmul.f32 0.1, %v522_v21  ;;  %v660_v22 = vpop.f32.mrf.mxu1 }
 0x115   :  { %v1378_v30 = vpack.c.bf16 %v855_v28, %v855_v28  ;;  %v821_v31 = vsel %vm693_vm3, %v501_v17, %v757_v24  ;;  %v853_v34 = vsel %vm725_vm5, %v629_v18, %v789_v29  ;;  %v650_v35 = vadd.f32 %v1898_v46, %v1713_v38 }
 0x116   :  { %1144 = vst.msk [vmem:[%s2065_s3 + $0x5c] sm:$0xf] %vm1120_vm4, %v1346_v27  ;;  %v1344_v33 = vpack.c.bf16 %v821_v31, %v821_v31  ;;  %v514_v36 = vadd.f32 %v1713_v38, %v513_v59  ;;  %v1376_v37 = vpack.c.bf16 %v853_v34, %v853_v34  ;;  %v826_v39 = vsel %vm698_vm6, %v522_v21, %v762_v32  ;;  %v532_v21 = vpop.f32.mrf.mxu0 }
 0x117   :  { %1176 = vst.msk [vmem:[%s2065_s3 + $0xdc] sm:$0xf] %vm1120_vm4, %v1378_v30  ;;  %v642_v40 = vadd.f32 %v1713_v38, %v641_v60  ;;  %v525_v41 = vadd.f32 %v1461_v11, %v1713_v38  ;;  %v1349_v44 = vpack.c.bf16 %v826_v39, %v826_v39  ;;  %vm730_vm7 = vcmp.ge.f32.partialorder %v650_v35, 0.0 }
 0x118   :  { %1142 = vst.msk [vmem:[%s2065_s3 + $0x54] sm:$0xf] %vm1120_vm4, %v1344_v33  ;;  %v794_v45 = vmul.f32 0.1, %v650_v35  ;;  %vm696_vm8 = vcmp.ge.f32.partialorder %v514_v36, 0.0  ;;  %v653_v50 = vadd.f32 %v1493_v12, %v1713_v38  ;;  %v517_v51 = vadd.f32 %v1713_v38, %v516_v25 }
 0x119   :  { %1174 = vst.msk [vmem:[%s2065_s3 + $0xd4] sm:$0xf] %vm1120_vm4, %v1376_v37  ;;  %v760_v46 = vmul.f32 0.1, %v514_v36  ;;  %vm728_vm9 = vcmp.ge.f32.partialorder %v642_v40, 0.0  ;;  %vm699_vm10 = vcmp.ge.f32.partialorder %v525_v41, 0.0  ;;  %v645_v55 = vadd.f32 %v1713_v38, %v644_v26 }
 0x11a   :  { %v792_v47 = vmul.f32 0.1, %v642_v40  ;;  %1147 = vst.msk [vmem:[%s2065_s3 + $0x68] sm:$0xf] %vm1120_vm4, %v1349_v44  ;;  %v858_v48 = vsel %vm730_vm7, %v650_v35, %v794_v45  ;;  %v763_v49 = vmul.f32 0.1, %v525_v41  ;;  %v538_v1 = vadd.f32 %v1464_v42, %v1713_v38 }
 0x11b   :  { %v1381_v52 = vpack.c.bf16 %v858_v48, %v858_v48  ;;  %v824_v53 = vsel %vm696_vm8, %v514_v36, %v760_v46  ;;  %vm731_vm11 = vcmp.ge.f32.partialorder %v653_v50, 0.0  ;;  %v795_v62 = vmul.f32 0.1, %v653_v50 }
 0x11c   :  { %v856_v54 = vsel %vm728_vm9, %v642_v40, %v792_v47  ;;  %v1347_v58 = vpack.c.bf16 %v824_v53, %v824_v53  ;;  %v827_v60 = vsel %vm699_vm10, %v525_v41, %v763_v49  ;;  %vm697_vm12 = vcmp.ge.f32.partialorder %v517_v51, 0.0 }
 0x11d   :  { %v1379_v59 = vpack.c.bf16 %v856_v54, %v856_v54  ;;  %1179 = vst.msk [vmem:[%s2065_s3 + $0xe8] sm:$0xf] %vm1120_vm4, %v1381_v52  ;;  %v1350_v61 = vpack.c.bf16 %v827_v60, %v827_v60  ;;  %v761_v63 = vmul.f32 0.1, %v517_v51  ;;  %vm729_vm13 = vcmp.ge.f32.partialorder %v645_v55, 0.0 }
 0x11e   :  { %1145 = vst.msk [vmem:[%s2065_s3 + $0x60] sm:$0xf] %vm1120_vm4, %v1347_v58  ;;  %v793_v0 = vmul.f32 0.1, %v645_v55  ;;  %v666_v2 = vadd.f32 %v1496_v43, %v1713_v38  ;;  %v859_v3 = vsel %vm731_vm11, %v653_v50, %v795_v62  ;;  %v530_v5 = vadd.f32 %v1713_v38, %v529_v56 }
 0x11f   :  { %1177 = vst.msk [vmem:[%s2065_s3 + $0xe0] sm:$0xf] %vm1120_vm4, %v1379_v59  ;;  %1148 = vst.msk [vmem:[%s2065_s3 + $0x6c] sm:$0xf] %vm1120_vm4, %v1350_v61  ;;  %v825_v4 = vsel %vm697_vm12, %v517_v51, %v761_v63  ;;  %v658_v6 = vadd.f32 %v1713_v38, %v657_v57  ;;  %v1382_v9 = vpack.c.bf16 %v859_v3, %v859_v3  ;;  %vm702_vm14 = vcmp.ge.f32.partialorder %v538_v1, 0.0 }
 0x120   :  { %v1348_v10 = vpack.c.bf16 %v825_v4, %v825_v4  ;;  %v857_v11 = vsel %vm729_vm13, %v645_v55, %v793_v0  ;;  %v766_v13 = vmul.f32 0.1, %v538_v1  ;;  %vm734_vm15 = vcmp.ge.f32.partialorder %v666_v2, 0.0 }
 0x121   :  { %v1380_v12 = vpack.c.bf16 %v857_v11, %v857_v11  ;;  %v798_v14 = vmul.f32 0.1, %v666_v2  ;;  %1180 = vst.msk [vmem:[%s2065_s3 + $0xec] sm:$0xf] %vm1120_vm4, %v1382_v9  ;;  %vm700_vm0 = vcmp.ge.f32.partialorder %v530_v5, 0.0  ;;  %vm732_vm1 = vcmp.ge.f32.partialorder %v658_v6, 0.0 }
 0x122   :  { %1146 = vst.msk [vmem:[%s2065_s3 + $0x64] sm:$0xf] %vm1120_vm4, %v1348_v10  ;;  %v764_v15 = vmul.f32 0.1, %v530_v5  ;;  %v796_v16 = vmul.f32 0.1, %v658_v6  ;;  %v830_v17 = vsel %vm702_vm14, %v538_v1, %v766_v13  ;;  %v541_v19 = vadd.f32 %v1465_v7, %v1713_v38 }
 0x123   :  { %1178 = vst.msk [vmem:[%s2065_s3 + $0xe4] sm:$0xf] %vm1120_vm4, %v1380_v12  ;;  %v862_v18 = vsel %vm734_vm15, %v666_v2, %v798_v14  ;;  %v669_v20 = vadd.f32 %v1497_v8, %v1713_v38  ;;  %v1353_v23 = vpack.c.bf16 %v830_v17, %v830_v17  ;;  %v533_v31 = vadd.f32 %v1713_v38, %v532_v21 }
 0x124   :  { %v1385_v24 = vpack.c.bf16 %v862_v18, %v862_v18  ;;  %v828_v25 = vsel %vm700_vm0, %v530_v5, %v764_v15  ;;  %v860_v26 = vsel %vm732_vm1, %v658_v6, %v796_v16  ;;  %vm703_vm2 = vcmp.ge.f32.partialorder %v541_v19, 0.0 }
 0x125   :  { %v1351_v27 = vpack.c.bf16 %v828_v25, %v828_v25  ;;  %v1383_v28 = vpack.c.bf16 %v860_v26, %v860_v26  ;;  %v767_v29 = vmul.f32 0.1, %v541_v19  ;;  %1151 = vst.msk [vmem:[%s2065_s3 + $0x78] sm:$0xf] %vm1120_vm4, %v1353_v23  ;;  %vm735_vm3 = vcmp.ge.f32.partialorder %v669_v20, 0.0 }
 0x126   :  { %1183 = vst.msk [vmem:[%s2065_s3 + $0xf8] sm:$0xf] %vm1120_vm4, %v1385_v24  ;;  %v799_v30 = vmul.f32 0.1, %v669_v20  ;;  %v661_v32 = vadd.f32 %v1713_v38, %v660_v22  ;;  %vm701_vm5 = vcmp.ge.f32.partialorder %v533_v31, 0.0 }
 0x127   :  { %1149 = vst.msk [vmem:[%s2065_s3 + $0x70] sm:$0xf] %vm1120_vm4, %v1351_v27  ;;  %1181 = vst.msk [vmem:[%s2065_s3 + $0xf0] sm:$0xf] %vm1120_vm4, %v1383_v28  ;;  %v831_v33 = vsel %vm703_vm2, %v541_v19, %v767_v29  ;;  %v765_v36 = vmul.f32 0.1, %v533_v31 }
 0x128   :  { %v1354_v34 = vpack.c.bf16 %v831_v33, %v831_v33  ;;  %v863_v35 = vsel %vm735_vm3, %v669_v20, %v799_v30  ;;  %vm733_vm6 = vcmp.ge.f32.partialorder %v661_v32, 0.0  ;;  %v797_v39 = vmul.f32 0.1, %v661_v32 }
 0x129   :  { %v1386_v37 = vpack.c.bf16 %v863_v35, %v863_v35  ;;  %v829_v38 = vsel %vm701_vm5, %v533_v31, %v765_v36 }
 0x12a   :  { %1152 = vst.msk [vmem:[%s2065_s3 + $0x7c] sm:$0xf] %vm1120_vm4, %v1354_v34  ;;  %v1352_v40 = vpack.c.bf16 %v829_v38, %v829_v38  ;;  %v861_v41 = vsel %vm733_vm6, %v661_v32, %v797_v39 }
 0x12b   :  { %1184 = vst.msk [vmem:[%s2065_s3 + $0xfc] sm:$0xf] %vm1120_vm4, %v1386_v37  ;;  %v1384_v42 = vpack.c.bf16 %v861_v41, %v861_v41 }
 0x12c   :  { %1150 = vst.msk [vmem:[%s2065_s3 + $0x74] sm:$0xf] %vm1120_vm4, %v1352_v40 }
 0x12d   :  { %1182 = vst.msk [vmem:[%s2065_s3 + $0xf4] sm:$0xf] %vm1120_vm4, %v1384_v42 }

// kernel: _lambda_.20
= control target key start
LH: loop header
LB: loop body
LE: loop exit
PB: predicated region body
PF: predicated region fallthrough
CT: control target
= control target key end

     0   :  { %s444_s6 = smov 0   ;;  %s561_s0 = inlined_call_operand.vmem [shape: bf16[16,2,8,2,8], index: 0, kind: input, shape index: {}]   ;;  %s562_s1 = inlined_call_operand.vmem [shape: bf16[16,8,8], index: 1, kind: output, shape index: {}]  }
   0x1 LB: > { %s393_s7 = sadd.s32 4294967295, %s432_s6   ;;  %p397_p0 = scmp.ge.s32.totalorder %s432_s6, 1  ;;  %s432_s6 = sphi %s444_s6, %s11_s6  }
   0x2   : > { %p86_p1 = scmp.lt.s32.totalorder %s432_s6, 17 }
   0x4   : > { %p87_p2 = pnand %p397_p0, %p86_p1 }
   0x5   : > { %p104_p3 = scmp.lt.s32.totalorder (!%p87_p2), %s393_s7, 15 }
   0x6   : > { %90 = sbr.rel (%p87_p2) target bundleno = 68 (0x44), region = 24 }
   0xb   : > { %s564_s7 = smov (!%p104_p3, %s393_s7), 15  ;;  %vm144_vm0 = vcmask 58368   ;;  %vm257_vm1 = vcmask 64512   ;;  %vm322_vm2 = vcmask 1041409   ;;  %vm324_vm3 = vcmask 1042434  }
   0xc   : > { %s398_s8 = sshll.u32 %s564_s7, 4  ;;  %vm326_vm4 = vcmask 1043459   ;;  %vm328_vm5 = vcmask 1044484   ;;  %vm330_vm6 = vcmask 1045509   ;;  %vm332_vm7 = vcmask 1046534   ;;  %s399_s12 = sshll.u32 %s564_s7, 2 }
   0xd   : > { %s107_s11 = scalar_lea.vmem %s561_s0, %s398_s8  ;;  %vm334_vm8 = vcmask 1047559   ;;  %s111_s15 = scalar_lea.vmem %s562_s1, %s399_s12  ;;  %vm338_vm9 = vcmask 60416  }
   0xe   : > { %v112_v0 = vld [vmem:[%s107_s11] sm:$0x1]  ;;  %v113_v1 = vld [vmem:[%s107_s11 + $0x1] sm:$0x1]  ;;  %v114_v2 = vld [vmem:[%s107_s11 + $0x2] sm:$0x1] }
   0xf   : > { %v115_v3 = vld [vmem:[%s107_s11 + $0x3] sm:$0x1]  ;;  %v116_v4 = vld [vmem:[%s107_s11 + $0x4] sm:$0x1]  ;;  %v117_v5 = vld [vmem:[%s107_s11 + $0x5] sm:$0x1]  ;;  %v128_v6 = vunpack.c.l.bf16 %v112_v0  ;;  %v129_v10 = vunpack.c.l.bf16 %v113_v1  ;;  %v130_v11 = vunpack.c.l.bf16 %v114_v2 }
  0x10   : > { %v118_v7 = vld [vmem:[%s107_s11 + $0x6] sm:$0x1]  ;;  %v119_v8 = vld [vmem:[%s107_s11 + $0x7] sm:$0x1]  ;;  %v458_v9 = vld [vmem:[%s107_s11 + $0x8] sm:$0x1]  ;;  %v131_v12 = vunpack.c.l.bf16 %v115_v3  ;;  %v132_v16 = vunpack.c.l.bf16 %v116_v4  ;;  %v133_v17 = vunpack.c.l.bf16 %v117_v5 }
  0x11   : > { %v460_v13 = vld [vmem:[%s107_s11 + $0x9] sm:$0x1]  ;;  %v462_v14 = vld [vmem:[%s107_s11 + $0xa] sm:$0x1]  ;;  %v464_v15 = vld [vmem:[%s107_s11 + $0xb] sm:$0x1]  ;;  %v134_v18 = vunpack.c.l.bf16 %v118_v7  ;;  %v135_v19 = vunpack.c.l.bf16 %v119_v8  ;;  %v136_v23 = vunpack.c.l.bf16 %v458_v9 }
  0x12   : > { %v466_v20 = vld [vmem:[%s107_s11 + $0xc] sm:$0x1]  ;;  %v468_v21 = vld [vmem:[%s107_s11 + $0xd] sm:$0x1]  ;;  %v470_v22 = vld [vmem:[%s107_s11 + $0xe] sm:$0x1]  ;;  %v137_v24 = vunpack.c.l.bf16 %v460_v13  ;;  %v138_v25 = vunpack.c.l.bf16 %v462_v14  ;;  %v139_v26 = vunpack.c.l.bf16 %v464_v15 }
  0x13   : > { %v476_v27 = vld [vmem:[%s107_s11 + $0xf] sm:$0x1]  ;;  %v140_v28 = vunpack.c.l.bf16 %v466_v20  ;;  %v141_v29 = vunpack.c.l.bf16 %v468_v21  ;;  %v142_v30 = vunpack.c.l.bf16 %v470_v22  ;;  %v145_v31 = vsel %vm144_vm0, %v128_v6, -inf }
  0x14   : > { %v143_v32 = vunpack.c.l.bf16 %v476_v27  ;;  %v146_v33 = vrot.slane %v145_v31, 4  ;;  %v152_v34 = vsel %vm144_vm0, %v129_v10, -inf  ;;  %v159_v35 = vsel %vm144_vm0, %v130_v11, -inf }
  0x15   : > { %v153_v36 = vrot.slane %v152_v34, 4  ;;  %v160_v37 = vrot.slane %v159_v35, 4  ;;  %v166_v38 = vsel %vm144_vm0, %v131_v12, -inf  ;;  %v173_v39 = vsel %vm144_vm0, %v132_v16, -inf }
  0x16   : > { %v147_v40 = vmax.f32 %v145_v31, %v146_v33  ;;  %v167_v41 = vrot.slane %v166_v38, 4  ;;  %v174_v42 = vrot.slane %v173_v39, 4  ;;  %v180_v43 = vsel %vm144_vm0, %v133_v17, -inf }
  0x17   : > { %v154_v44 = vmax.f32 %v152_v34, %v153_v36  ;;  %v161_v45 = vmax.f32 %v159_v35, %v160_v37  ;;  %v181_v46 = vrot.slane %v180_v43, 4  ;;  %v187_v47 = vsel %vm144_vm0, %v134_v18, -inf }
  0x18   : > { %v148_v48 = vrot.slane %v147_v40, 2  ;;  %v168_v49 = vmax.f32 %v166_v38, %v167_v41  ;;  %v175_v50 = vmax.f32 %v173_v39, %v174_v42  ;;  %v188_v51 = vrot.slane %v187_v47, 4 }
  0x19   : > { %v155_v52 = vrot.slane %v154_v44, 2  ;;  %v162_v53 = vrot.slane %v161_v45, 2  ;;  %v182_v54 = vmax.f32 %v180_v43, %v181_v46  ;;  %v194_v55 = vsel %vm144_vm0, %v135_v19, -inf }
  0x1a   : > { %v149_v56 = vmax.f32 %v147_v40, %v148_v48  ;;  %v169_v57 = vrot.slane %v168_v49, 2  ;;  %v176_v58 = vrot.slane %v175_v50, 2  ;;  %v189_v59 = vmax.f32 %v187_v47, %v188_v51 }
  0x1b   : > { %v156_v60 = vmax.f32 %v154_v44, %v155_v52  ;;  %v163_v61 = vmax.f32 %v161_v45, %v162_v53  ;;  %v183_v62 = vrot.slane %v182_v54, 2  ;;  %v195_v63 = vrot.slane %v194_v55, 4 }
  0x1c   : > { %v150_v0 = vrot.slane %v149_v56, 1  ;;  %v170_v1 = vmax.f32 %v168_v49, %v169_v57  ;;  %v177_v2 = vmax.f32 %v175_v50, %v176_v58  ;;  %v190_v3 = vrot.slane %v189_v59, 2 }
  0x1d   : > { %v157_v4 = vrot.slane %v156_v60, 1  ;;  %v164_v5 = vrot.slane %v163_v61, 1  ;;  %v184_v6 = vmax.f32 %v182_v54, %v183_v62  ;;  %v196_v7 = vmax.f32 %v194_v55, %v195_v63 }
  0x1e   : > { %v490_v8 = vmax.f32 %v149_v56, %v150_v0  ;;  %v171_v9 = vrot.slane %v170_v1, 1  ;;  %v178_v10 = vrot.slane %v177_v2, 1  ;;  %v191_v11 = vmax.f32 %v189_v59, %v190_v3 }
  0x1f   : > { %v492_v12 = vmax.f32 %v156_v60, %v157_v4  ;;  %v494_v16 = vmax.f32 %v163_v61, %v164_v5  ;;  %v185_v17 = vrot.slane %v184_v6, 1  ;;  %v197_v18 = vrot.slane %v196_v7, 2 }
  0x20   : > { %v496_v19 = vmax.f32 %v170_v1, %v171_v9  ;;  %v498_v31 = vmax.f32 %v177_v2, %v178_v10  ;;  %v192_v33 = vrot.slane %v191_v11, 1  ;;  %v201_v34 = vsel %vm144_vm0, %v136_v23, -inf }
  0x21   : > { %v501_v35 = vmax.f32 %v184_v6, %v185_v17  ;;  %v198_v36 = vmax.f32 %v196_v7, %v197_v18  ;;  %v202_v37 = vrot.slane %v201_v34, 4  ;;  %v208_v38 = vsel %vm144_vm0, %v137_v24, -inf }
  0x22   : > { %v506_v39 = vmax.f32 %v191_v11, %v192_v33  ;;  %v209_v40 = vrot.slane %v208_v38, 4  ;;  %v215_v41 = vsel %vm144_vm0, %v138_v25, -inf  ;;  %v222_v42 = vsel %vm144_vm0, %v139_v26, -inf }
  0x23   : > { %v199_v23 = vrot.slane %v198_v36, 1  ;;  %v203_v43 = vmax.f32 %v201_v34, %v202_v37  ;;  %v216_v44 = vrot.slane %v215_v41, 4  ;;  %v223_v45 = vrot.slane %v222_v42, 4 }
  0x24   : > { %v210_v46 = vmax.f32 %v208_v38, %v209_v40  ;;  %v229_v13 = vsel %vm144_vm0, %v140_v28, -inf  ;;  %v236_v14 = vsel %vm144_vm0, %v141_v29, -inf  ;;  %v243_v15 = vsel %vm144_vm0, %v142_v30, -inf }
  0x25   : > { %v523_v24 = vmax.f32 %v198_v36, %v199_v23  ;;  %v204_v25 = vrot.slane %v203_v43, 2  ;;  %v217_v26 = vmax.f32 %v215_v41, %v216_v44  ;;  %v224_v47 = vmax.f32 %v222_v42, %v223_v45 }
  0x26   : > { %v211_v48 = vrot.slane %v210_v46, 2  ;;  %v230_v49 = vrot.slane %v229_v13, 4  ;;  %v237_v50 = vrot.slane %v236_v14, 4  ;;  %v244_v51 = vrot.slane %v243_v15, 4 }
  0x27   : > { %v205_v20 = vmax.f32 %v203_v43, %v204_v25  ;;  %v218_v52 = vrot.slane %v217_v26, 2  ;;  %v225_v28 = vrot.slane %v224_v47, 2  ;;  %v250_v21 = vsel %vm144_vm0, %v143_v32, -inf }
  0x28   : > { %v212_v29 = vmax.f32 %v210_v46, %v211_v48  ;;  %v231_v22 = vmax.f32 %v229_v13, %v230_v49  ;;  %v238_v53 = vmax.f32 %v236_v14, %v237_v50  ;;  %v245_v30 = vmax.f32 %v243_v15, %v244_v51 }
  0x29   : > { %v206_v54 = vrot.slane %v205_v20, 1  ;;  %v219_v55 = vmax.f32 %v217_v26, %v218_v52  ;;  %v226_v56 = vmax.f32 %v224_v47, %v225_v28  ;;  %v251_v57 = vrot.slane %v250_v21, 4 }
  0x2a   : > { %v213_v58 = vrot.slane %v212_v29, 1  ;;  %v232_v59 = vrot.slane %v231_v22, 2  ;;  %v239_v60 = vrot.slane %v238_v53, 2  ;;  %v246_v61 = vrot.slane %v245_v30, 2 }
  0x2b   : > { %v207_v62 = vmax.f32 %v205_v20, %v206_v54  ;;  %v220_v63 = vrot.slane %v219_v55, 1  ;;  %v227_v0 = vrot.slane %v226_v56, 1  ;;  %v252_v1 = vmax.f32 %v250_v21, %v251_v57 }
  0x2c   : > { %v214_v2 = vmax.f32 %v212_v29, %v213_v58  ;;  %v233_v27 = vmax.f32 %v231_v22, %v232_v59  ;;  %v240_v3 = vmax.f32 %v238_v53, %v239_v60  ;;  %v247_v32 = vmax.f32 %v245_v30, %v246_v61 }
  0x2d   : > { %v221_v4 = vmax.f32 %v219_v55, %v220_v63  ;;  %v228_v5 = vmax.f32 %v226_v56, %v227_v0  ;;  %v253_v6 = vrot.slane %v252_v1, 2  ;;  %v258_v7 = vsel %vm257_vm1, %v490_v8, -inf }
  0x2e   : > { %v234_v9 = vrot.slane %v233_v27, 1  ;;  %v241_v10 = vrot.slane %v240_v3, 1  ;;  %v248_v11 = vrot.slane %v247_v32, 1  ;;  %v259_v17 = vsel %vm257_vm1, %v207_v62, -inf }
  0x2f   : > { %v254_v18 = vmax.f32 %v252_v1, %v253_v6  ;;  %v260_v33 = vmax.f32 %v258_v7, %v259_v17  ;;  %v261_v34 = vsel %vm257_vm1, %v492_v12, -inf  ;;  %v262_v36 = vsel %vm257_vm1, %v214_v2, -inf }
  0x30   : > { %v235_v37 = vmax.f32 %v233_v27, %v234_v9  ;;  %v242_v38 = vmax.f32 %v240_v3, %v241_v10  ;;  %v249_v40 = vmax.f32 %v247_v32, %v248_v11  ;;  %v263_v41 = vmax.f32 %v261_v34, %v262_v36 }
  0x31   : > { %v255_v42 = vrot.slane %v254_v18, 1  ;;  %v264_v8 = vsel %vm257_vm1, %v494_v16, -inf  ;;  %v265_v23 = vsel %vm257_vm1, %v221_v4, -inf  ;;  %v267_v43 = vsel %vm257_vm1, %v496_v19, -inf }
  0x32   : > { %v266_v44 = vmax.f32 %v264_v8, %v265_v23  ;;  %v268_v12 = vsel %vm257_vm1, %v228_v5, -inf  ;;  %v270_v45 = vsel %vm257_vm1, %v498_v31, -inf  ;;  %v271_v46 = vsel %vm257_vm1, %v235_v37, -inf }
  0x33   : > { %v256_v13 = vmax.f32 %v254_v18, %v255_v42  ;;  %v269_v14 = vmax.f32 %v267_v43, %v268_v12  ;;  %v272_v15 = vmax.f32 %v270_v45, %v271_v46  ;;  %v273_v25 = vsel %vm257_vm1, %v501_v35, -inf }
  0x34   : > { %v274_v16 = vsel %vm257_vm1, %v242_v38, -inf  ;;  %v276_v26 = vsel %vm257_vm1, %v506_v39, -inf  ;;  %v277_v19 = vsel %vm257_vm1, %v249_v40, -inf  ;;  %v279_v47 = vsel %vm257_vm1, %v523_v24, -inf }
  0x35   : > { %v275_v48 = vmax.f32 %v273_v25, %v274_v16  ;;  %v278_v31 = vmax.f32 %v276_v26, %v277_v19  ;;  %v280_v49 = vsel %vm257_vm1, %v256_v13, -inf  ;;  %v410_v50 = vpack.c.bf16 %v260_v33, %v260_v33 }
  0x36   : > { %v281_v51 = vmax.f32 %v279_v47, %v280_v49  ;;  %v411_v20 = vpack.c.bf16 %v263_v41, %v263_v41  ;;  %v412_v52 = vpack.c.bf16 %v266_v44, %v266_v44  ;;  %v413_v28 = vpack.c.bf16 %v269_v14, %v269_v14 }
  0x37   : > { %v414_v35 = vpack.c.bf16 %v272_v15, %v272_v15  ;;  %v415_v21 = vpack.c.bf16 %v275_v48, %v275_v48  ;;  %v416_v29 = vpack.c.bf16 %v278_v31, %v278_v31  ;;  %v314_v22 = vunpack.c.l.b16 %v410_v50 }
  0x38   : > { %v417_v39 = vpack.c.bf16 %v281_v51, %v281_v51  ;;  %v315_v53 = vunpack.c.l.b16 %v411_v20  ;;  %v316_v30 = vunpack.c.l.b16 %v412_v52  ;;  %v317_v54 = vunpack.c.l.b16 %v413_v28 }
  0x39   : > { %v318_v55 = vunpack.c.l.b16 %v414_v35  ;;  %v319_v24 = vunpack.c.l.b16 %v415_v21  ;;  %v320_v57 = vunpack.c.l.b16 %v416_v29 }
  0x3a   : > { %v323_v56 = vsel %vm322_vm2, %v315_v53, %v314_v22  ;;  %v321_v59 = vunpack.c.l.b16 %v417_v39 }
  0x3b   : > { %v325_v58 = vsel %vm324_vm3, %v316_v30, %v323_v56 }
  0x3c   : > { %v327_v60 = vsel %vm326_vm4, %v317_v54, %v325_v58 }
  0x3d   : > { %v329_v61 = vsel %vm328_vm5, %v318_v55, %v327_v60 }
  0x3e   : > { %v331_v62 = vsel %vm330_vm6, %v319_v24, %v329_v61 }
  0x3f   : > { %v333_v63 = vsel %vm332_vm7, %v320_v57, %v331_v62 }
  0x40   : > { %v335_v0 = vsel %vm334_vm8, %v321_v59, %v333_v63 }
  0x41   : > { %v336_v1 = vpack.c.b16 %v335_v0, %v335_v0 }
  0x43   : > { %339 = vst.msk [vmem:[%s111_s15] sm:$0xf] %vm338_vm9, %v336_v1 }
  0x44 PF: > { %s11_s6 = sadd.s32 1, %s432_s6  }
  0x45   : > { %p8_p4 = scmp.ge.s32.totalorder %s11_s6, 18  }
  0x47   :  { %10 = sbr.rel (!%p8_p4) target bundleno = 1 (0x1), region = 54 }

// kernel: _lambda_.19
= control target key start
LH: loop header
LB: loop body
LE: loop exit
PB: predicated region body
PF: predicated region fallthrough
CT: control target
= control target key end

     0   :  { %vm388_vm0 = vcmask 1043456   ;;  %vm1010_vm1 = vcmask 1040384   ;;  %vm1011_vm2 = vcmask 1041408   ;;  %v2433_v2 = vmov 65535   ;;  %s3222_s1 = inlined_call_operand.vmem [shape: bf16[72,8], index: 1, kind: input, shape index: {}]   ;;  %s3223_s4 = inlined_call_operand.vmem [shape: bf16[3,8], index: 4, kind: input, shape index: {}]   ;;  %s3224_s3 = inlined_call_operand.vmem [shape: bf16[512,3], index: 3, kind: input, shape index: {}]   ;;  %s3225_s0 = inlined_call_operand.vmem [shape: bf16[512,72], index: 0, kind: input, shape index: {}]   ;;  %s3226_s5 = inlined_call_operand.vmem [shape: f32[1,8], index: 5, kind: input, shape index: {}, may-alias: {2,5}]   ;;  %s3227_s2 = inlined_call_operand.vmem [shape: f32[1,8], index: 2, kind: input, shape index: {}, may-alias: {2,5}]   ;;  %s3228_s6 = inlined_call_operand.vmem [shape: bf16[512,8], index: 6, kind: output, shape index: {}]  }
   0x1   :  { %v2362_v0 = vld [vmem:[%s3222_s1 + $0x20] ss:$0 sps:$4 sm:$0xff]   ;;  %v2363_v1 = vld [vmem:[%s3222_s1 + $0x18] sm:$0xff]   ;;  %v1012_v3 = vsel %vm1010_vm1, 4294967295, %v2433_v2  ;;  %v2364_v6 = vld [vmem:[%s3222_s1 + $0x10] sm:$0xff]   ;;  %vm913_vm3 = vcmask 23552  }
   0x2   :  { %2360 = vmatprep.subr.msk.bf16.mxu0 %vm388_vm0, %v2362_v0  ;;  %v390_v4 = vsel %vm388_vm0, %v2362_v0, 0  ;;  %v745_v5 = vld [vmem:[%s3223_s4] sm:$0x3]  ;;  %v1013_v7 = vsel %vm1011_vm2, %v1012_v3, 0  ;;  %v2367_v10 = vld [vmem:[%s3224_s3 + $0x8] sm:$0xff]   ;;  %vm291_vm4 = vcmask 588800  }
   0x3   :  { %2221 = vmatpush3.bf16.msra.mxu0 %v390_v4  ;;  %v1015_v8 = vand.u32 %v1013_v7, %v745_v5  ;;  %v2366_v9 = vld [vmem:[%s3224_s3] sm:$0xff]   ;;  %v2365_v12 = vld [vmem:[%s3222_s1 + $0x8] sm:$0xff]   ;;  %v2371_v13 = vld [vmem:[%s3224_s3 + $0x10] sm:$0xff]   ;;  %vm1818_vm6 = vcmask 60416  }
   0x4   :  { %2222 = vmatprep.subr.bf16.mxu0 %v2363_v1  ;;  %2296 = vmatprep.mubr.msk.bf16.mxu1 %vm913_vm3, %v2366_v9  ;;  %v2369_v11 = vld [vmem:[%s3225_s0] sm:$0xff]   ;;  %v2372_v15 = vld [vmem:[%s3224_s3 + $0x18] sm:$0xff]   ;;  %v2370_v17 = vld [vmem:[%s3225_s0 + $0x8] sm:$0xff]  }
   0x5   :  { %2294 = vmatprep.subr.bf16.mxu1 %v1015_v8  ;;  %2230 = vmatprep.mubr.msk.bf16.mxu0 %vm291_vm4, %v2369_v11  ;;  %v2368_v14 = vld [vmem:[%s3222_s1] sm:$0xff]   ;;  %v2373_v18 = vld [vmem:[%s3225_s0 + $0x10] sm:$0xff]   ;;  %v2376_v19 = vld [vmem:[%s3224_s3 + $0x28] sm:$0xff]  }
   0x6   :  { %2295 = vmatpush3.bf16.msra.mxu1 %v1015_v8  ;;  %v2375_v16 = vld [vmem:[%s3224_s3 + $0x20] sm:$0xff]   ;;  %v2379_v20 = vld [vmem:[%s3224_s3 + $0x30] sm:$0xff]   ;;  %v2374_v21 = vld [vmem:[%s3225_s0 + $0x18] sm:$0xff]  }
   0x7   :  { %2223 = vmatpush3.bf16.msra.mxu0 %v2363_v1  ;;  %v2377_v22 = vld [vmem:[%s3225_s0 + $0x20] sm:$0xff]   ;;  %v2380_v23 = vld [vmem:[%s3224_s3 + $0x38] sm:$0xff]   ;;  %v2378_v25 = vld [vmem:[%s3225_s0 + $0x28] sm:$0xff]  }
   0x8   :  { %2224 = vmatprep.subr.bf16.mxu0 %v2364_v6  ;;  %v2383_v24 = vld [vmem:[%s3224_s3 + $0x40] sm:$0xff]   ;;  %v2381_v26 = vld [vmem:[%s3225_s0 + $0x30] sm:$0xff]   ;;  %v2384_v27 = vld [vmem:[%s3224_s3 + $0x48] sm:$0xff]  }
   0x9   :  { %2297 = vmatmul.mubr.msk.bf16.vlgmr.msra.gmra.mxu1 %vm913_vm3, %v2367_v10  ;;  %v2387_v28 = vld [vmem:[%s3224_s3 + $0x50] sm:$0xff]   ;;  %v2382_v29 = vld [vmem:[%s3225_s0 + $0x38] sm:$0xff]   ;;  %v2385_v30 = vld [vmem:[%s3225_s0 + $0x40] sm:$0xff]  }
   0xa   :  { %2300 = vmatprep.mubr.msk.bf16.mxu1 %vm913_vm3, %v2371_v13  ;;  %v2388_v31 = vld [vmem:[%s3224_s3 + $0x58] sm:$0xff]   ;;  %v2391_v32 = vld [vmem:[%s3224_s3 + $0x60] sm:$0xff]   ;;  %v2386_v33 = vld [vmem:[%s3225_s0 + $0x48] sm:$0xff]  }
   0xb   :  { %2225 = vmatpush3.bf16.msra.mxu0 %v2364_v6  ;;  %v2389_v34 = vld [vmem:[%s3225_s0 + $0x50] sm:$0xff]   ;;  %v2392_v35 = vld [vmem:[%s3224_s3 + $0x68] sm:$0xff]   ;;  %v2390_v37 = vld [vmem:[%s3225_s0 + $0x58] sm:$0xff]  }
   0xc   :  { %2226 = vmatprep.subr.bf16.mxu0 %v2365_v12  ;;  %v2395_v36 = vld [vmem:[%s3224_s3 + $0x70] sm:$0xff]   ;;  %v2393_v38 = vld [vmem:[%s3225_s0 + $0x60] sm:$0xff]   ;;  %v2396_v39 = vld [vmem:[%s3224_s3 + $0x78] sm:$0xff]  }
   0xd   :  { %v2399_v40 = vld [vmem:[%s3224_s3 + $0x80] sm:$0xff]   ;;  %v2394_v41 = vld [vmem:[%s3225_s0 + $0x68] sm:$0xff]   ;;  %v2397_v42 = vld [vmem:[%s3225_s0 + $0x70] sm:$0xff]  }
   0xe   :  { %v2400_v43 = vld [vmem:[%s3224_s3 + $0x88] sm:$0xff]   ;;  %v2403_v44 = vld [vmem:[%s3224_s3 + $0x90] sm:$0xff]   ;;  %v2398_v45 = vld [vmem:[%s3225_s0 + $0x78] sm:$0xff]  }
   0xf   :  { %2227 = vmatpush3.bf16.msra.mxu0 %v2365_v12  ;;  %v2401_v46 = vld [vmem:[%s3225_s0 + $0x80] sm:$0xff]   ;;  %v2404_v47 = vld [vmem:[%s3224_s3 + $0x98] sm:$0xff]   ;;  %v2402_v49 = vld [vmem:[%s3225_s0 + $0x88] sm:$0xff]  }
  0x10   :  { %2228 = vmatprep.subr.bf16.mxu0 %v2368_v14  ;;  %v2407_v48 = vld [vmem:[%s3224_s3 + $0xa0] sm:$0xff]   ;;  %v2405_v50 = vld [vmem:[%s3225_s0 + $0x90] sm:$0xff]   ;;  %v2408_v51 = vld [vmem:[%s3224_s3 + $0xa8] sm:$0xff]  }
  0x11   :  { %2301 = vmatmul.mubr.msk.bf16.gmra.mxu1 %vm913_vm3, %v2372_v15  ;;  %v2411_v52 = vld [vmem:[%s3224_s3 + $0xb0] sm:$0xff]   ;;  %v2406_v53 = vld [vmem:[%s3225_s0 + $0x98] sm:$0xff]   ;;  %v2409_v54 = vld [vmem:[%s3225_s0 + $0xa0] sm:$0xff]  }
  0x12   :  { %2304 = vmatprep.mubr.msk.bf16.mxu1 %vm913_vm3, %v2375_v16  ;;  %v2412_v55 = vld [vmem:[%s3224_s3 + $0xb8] sm:$0xff]   ;;  %v2415_v56 = vld [vmem:[%s3224_s3 + $0xc0] sm:$0xff]   ;;  %v2410_v57 = vld [vmem:[%s3225_s0 + $0xa8] sm:$0xff]  }
  0x13   :  { %2229 = vmatpush3.bf16.msra.mxu0 %v2368_v14  ;;  %v2413_v58 = vld [vmem:[%s3225_s0 + $0xb0] sm:$0xff]   ;;  %v2416_v59 = vld [vmem:[%s3224_s3 + $0xc8] sm:$0xff]   ;;  %v2414_v61 = vld [vmem:[%s3225_s0 + $0xb8] sm:$0xff]  }
  0x14   :  { %v2419_v60 = vld [vmem:[%s3224_s3 + $0xd0] sm:$0xff]   ;;  %v2417_v62 = vld [vmem:[%s3225_s0 + $0xc0] sm:$0xff]   ;;  %v2420_v63 = vld [vmem:[%s3224_s3 + $0xd8] sm:$0xff]  }
  0x15   :  { %v2423_v0 = vld [vmem:[%s3224_s3 + $0xe0] sm:$0xff]   ;;  %v2418_v1 = vld [vmem:[%s3225_s0 + $0xc8] sm:$0xff]   ;;  %v2421_v2 = vld [vmem:[%s3225_s0 + $0xd0] sm:$0xff]  }
  0x16   :  { %2231 = vmatmul.mubr.msk.bf16.vlgmr.msra.gmra.mxu0 %vm291_vm4, %v2370_v17  ;;  %v2424_v3 = vld [vmem:[%s3224_s3 + $0xe8] sm:$0xff]   ;;  %v2427_v4 = vld [vmem:[%s3224_s3 + $0xf0] sm:$0xff]   ;;  %v2422_v5 = vld [vmem:[%s3225_s0 + $0xd8] sm:$0xff]  }
  0x17   :  { %2234 = vmatprep.mubr.msk.bf16.mxu0 %vm291_vm4, %v2373_v18  ;;  %v2425_v6 = vld [vmem:[%s3225_s0 + $0xe0] sm:$0xff]   ;;  %v2428_v7 = vld [vmem:[%s3224_s3 + $0xf8] sm:$0xff]   ;;  %v2426_v8 = vld [vmem:[%s3225_s0 + $0xe8] sm:$0xff]  }
  0x18   :  { %v2429_v9 = vld [vmem:[%s3225_s0 + $0xf0] sm:$0xff]   ;;  %v2430_v10 = vld [vmem:[%s3225_s0 + $0xf8] sm:$0xff]   ;;  %v2746_v15 = vld [vmem:[%s3226_s5] ss:$0 sm:$0xff] }
  0x19   :  { %2305 = vmatmul.mubr.msk.bf16.gmra.mxu1 %vm913_vm3, %v2376_v19  ;;  %v2751_v17 = vld [vmem:[%s3227_s2] ss:$0 sm:$0xff] }
  0x1a   :  { %2308 = vmatprep.mubr.msk.bf16.mxu1 %vm913_vm3, %v2379_v20 }
  0x1e   :  { %2235 = vmatmul.mubr.msk.bf16.gmra.mxu0 %vm291_vm4, %v2374_v21 }
  0x1f   :  { %2238 = vmatprep.mubr.msk.bf16.mxu0 %vm291_vm4, %v2377_v22 }
  0x21   :  { %2309 = vmatmul.mubr.msk.bf16.gmra.mxu1 %vm913_vm3, %v2380_v23 }
  0x22   :  { %2312 = vmatprep.mubr.msk.bf16.mxu1 %vm913_vm3, %v2383_v24 }
  0x26   :  { %2239 = vmatmul.mubr.msk.bf16.gmra.mxu0 %vm291_vm4, %v2378_v25 }
  0x27   :  { %2242 = vmatprep.mubr.msk.bf16.mxu0 %vm291_vm4, %v2381_v26 }
  0x29   :  { %2313 = vmatmul.mubr.msk.bf16.gmra.mxu1 %vm913_vm3, %v2384_v27 }
  0x2a   :  { %2316 = vmatprep.mubr.msk.bf16.mxu1 %vm913_vm3, %v2387_v28 }
  0x2e   :  { %2243 = vmatmul.mubr.msk.bf16.gmra.mxu0 %vm291_vm4, %v2382_v29 }
  0x2f   :  { %2246 = vmatprep.mubr.msk.bf16.mxu0 %vm291_vm4, %v2385_v30 }
  0x31   :  { %2317 = vmatmul.mubr.msk.bf16.gmra.mxu1 %vm913_vm3, %v2388_v31 }
  0x32   :  { %2320 = vmatprep.mubr.msk.bf16.mxu1 %vm913_vm3, %v2391_v32 }
  0x36   :  { %2247 = vmatmul.mubr.msk.bf16.gmra.mxu0 %vm291_vm4, %v2386_v33 }
  0x37   :  { %2250 = vmatprep.mubr.msk.bf16.mxu0 %vm291_vm4, %v2389_v34 }
  0x39   :  { %2321 = vmatmul.mubr.msk.bf16.gmra.mxu1 %vm913_vm3, %v2392_v35 }
  0x3a   :  { %2324 = vmatprep.mubr.msk.bf16.mxu1 %vm913_vm3, %v2395_v36 }
  0x3e   :  { %2251 = vmatmul.mubr.msk.bf16.gmra.mxu0 %vm291_vm4, %v2390_v37 }
  0x3f   :  { %2254 = vmatprep.mubr.msk.bf16.mxu0 %vm291_vm4, %v2393_v38 }
  0x41   :  { %2325 = vmatmul.mubr.msk.bf16.gmra.mxu1 %vm913_vm3, %v2396_v39 }
  0x42   :  { %2328 = vmatprep.mubr.msk.bf16.mxu1 %vm913_vm3, %v2399_v40 }
  0x46   :  { %2255 = vmatmul.mubr.msk.bf16.gmra.mxu0 %vm291_vm4, %v2394_v41 }
  0x47   :  { %2258 = vmatprep.mubr.msk.bf16.mxu0 %vm291_vm4, %v2397_v42 }
  0x49   :  { %2329 = vmatmul.mubr.msk.bf16.gmra.mxu1 %vm913_vm3, %v2400_v43 }
  0x4a   :  { %2332 = vmatprep.mubr.msk.bf16.mxu1 %vm913_vm3, %v2403_v44 }
  0x4e   :  { %2259 = vmatmul.mubr.msk.bf16.gmra.mxu0 %vm291_vm4, %v2398_v45 }
  0x4f   :  { %2262 = vmatprep.mubr.msk.bf16.mxu0 %vm291_vm4, %v2401_v46 }
  0x51   :  { %2333 = vmatmul.mubr.msk.bf16.gmra.mxu1 %vm913_vm3, %v2404_v47 }
  0x52   :  { %2336 = vmatprep.mubr.msk.bf16.mxu1 %vm913_vm3, %v2407_v48 }
  0x56   :  { %2263 = vmatmul.mubr.msk.bf16.gmra.mxu0 %vm291_vm4, %v2402_v49 }
  0x57   :  { %2266 = vmatprep.mubr.msk.bf16.mxu0 %vm291_vm4, %v2405_v50 }
  0x59   :  { %2337 = vmatmul.mubr.msk.bf16.gmra.mxu1 %vm913_vm3, %v2408_v51 }
  0x5a   :  { %2340 = vmatprep.mubr.msk.bf16.mxu1 %vm913_vm3, %v2411_v52 }
  0x5e   :  { %2267 = vmatmul.mubr.msk.bf16.gmra.mxu0 %vm291_vm4, %v2406_v53 }
  0x5f   :  { %2270 = vmatprep.mubr.msk.bf16.mxu0 %vm291_vm4, %v2409_v54 }
  0x61   :  { %2341 = vmatmul.mubr.msk.bf16.gmra.mxu1 %vm913_vm3, %v2412_v55 }
  0x62   :  { %2344 = vmatprep.mubr.msk.bf16.mxu1 %vm913_vm3, %v2415_v56 }
  0x66   :  { %2271 = vmatmul.mubr.msk.bf16.gmra.mxu0 %vm291_vm4, %v2410_v57 }
  0x67   :  { %2274 = vmatprep.mubr.msk.bf16.mxu0 %vm291_vm4, %v2413_v58 }
  0x69   :  { %2345 = vmatmul.mubr.msk.bf16.gmra.mxu1 %vm913_vm3, %v2416_v59 }
  0x6a   :  { %2348 = vmatprep.mubr.msk.bf16.mxu1 %vm913_vm3, %v2419_v60 }
  0x6e   :  { %2275 = vmatmul.mubr.msk.bf16.gmra.mxu0 %vm291_vm4, %v2414_v61 }
  0x6f   :  { %2278 = vmatprep.mubr.msk.bf16.mxu0 %vm291_vm4, %v2417_v62 }
  0x71   :  { %2349 = vmatmul.mubr.msk.bf16.gmra.mxu1 %vm913_vm3, %v2420_v63 }
  0x72   :  { %2352 = vmatprep.mubr.msk.bf16.mxu1 %vm913_vm3, %v2423_v0 }
  0x76   :  { %2279 = vmatmul.mubr.msk.bf16.gmra.mxu0 %vm291_vm4, %v2418_v1 }
  0x77   :  { %2282 = vmatprep.mubr.msk.bf16.mxu0 %vm291_vm4, %v2421_v2 }
  0x79   :  { %2353 = vmatmul.mubr.msk.bf16.gmra.mxu1 %vm913_vm3, %v2424_v3 }
  0x7a   :  { %2356 = vmatprep.mubr.msk.bf16.mxu1 %vm913_vm3, %v2427_v4 }
  0x7e   :  { %2283 = vmatmul.mubr.msk.bf16.gmra.mxu0 %vm291_vm4, %v2422_v5 }
  0x7f   :  { %2286 = vmatprep.mubr.msk.bf16.mxu0 %vm291_vm4, %v2425_v6 }
  0x81   :  { %2357 = vmatmul.mubr.msk.bf16.gmra.mxu1 %vm913_vm3, %v2428_v7 }
  0x86   :  { %2287 = vmatmul.mubr.msk.bf16.gmra.mxu0 %vm291_vm4, %v2426_v8 }
  0x87   :  { %2290 = vmatprep.mubr.msk.bf16.mxu0 %vm291_vm4, %v2429_v9 }
  0x8e   :  { %2291 = vmatmul.mubr.msk.bf16.gmra.mxu0 %vm291_vm4, %v2430_v10 }
  0xc9   :  { %v2298_v11 = vpop.f32.mrf.mxu1 }
  0xca   :  { %v1060_v19 = vadd.f32 %v2298_v11, %v2746_v15 }
  0xcb   :  { %v1051_v12 = vpop.f32.mrf.mxu1 }
  0xcc   :  { %v1052_v25 = vadd.f32 %v2746_v15, %v1051_v12 }
  0xcd   :  { %v2299_v13 = vpop.f32.mrf.mxu1 }
  0xce   :  { %v1063_v28 = vadd.f32 %v2299_v13, %v2746_v15 }
  0xcf   :  { %v1054_v14 = vpop.f32.mrf.mxu1 }
  0xd0   :  { %v1055_v41 = vadd.f32 %v2746_v15, %v1054_v14 }
  0xd1   :  { %v2302_v16 = vpop.f32.mrf.mxu1 }
  0xd2   :  { %v1076_v34 = vadd.f32 %v2302_v16, %v2746_v15 }
  0xd3   :  { %v1067_v18 = vpop.f32.mrf.mxu1 }
  0xd4   :  { %v1068_v53 = vadd.f32 %v2746_v15, %v1067_v18 }
  0xd5   :  { %v2303_v21 = vpop.f32.mrf.mxu1 }
  0xd6   :  { %v2232_v20 = vpop.f32.mrf.mxu0  ;;  %v1079_v0 = vadd.f32 %v2303_v21, %v2746_v15 }
  0xd7   :  { %v435_v22 = vadd.f32 %v2232_v20, %v2751_v17  ;;  %v1070_v24 = vpop.f32.mrf.mxu1 }
  0xd8   :  { %v426_v23 = vpop.f32.mrf.mxu0  ;;  %v1071_v8 = vadd.f32 %v2746_v15, %v1070_v24 }
  0xd9   :  { %v1308_v26 = vadd.f32 %v1060_v19, %v435_v22  ;;  %v427_v27 = vadd.f32 %v2751_v17, %v426_v23  ;;  %v2306_v30 = vpop.f32.mrf.mxu1 }
  0xda   :  { %v2233_v29 = vpop.f32.mrf.mxu0  ;;  %v1092_v1 = vadd.f32 %v2306_v30, %v2746_v15 }
  0xdb   :  { %vm1372_vm5 = vcmp.ge.f32.partialorder %v1308_v26, 0.0  ;;  %v1436_v31 = vmul.f32 0.1, %v1308_v26  ;;  %v1306_v32 = vadd.f32 %v1052_v25, %v427_v27  ;;  %v438_v33 = vadd.f32 %v2233_v29, %v2751_v17  ;;  %v1083_v36 = vpop.f32.mrf.mxu1 }
  0xdc   :  { %v429_v35 = vpop.f32.mrf.mxu0  ;;  %v1084_v22 = vadd.f32 %v2746_v15, %v1083_v36 }
  0xdd   :  { %v1500_v37 = vsel %vm1372_vm5, %v1308_v26, %v1436_v31  ;;  %vm1370_vm7 = vcmp.ge.f32.partialorder %v1306_v32, 0.0  ;;  %v1434_v38 = vmul.f32 0.1, %v1306_v32  ;;  %v1309_v39 = vadd.f32 %v1063_v28, %v438_v33  ;;  %v2762_v44 = vpop.f32.mrf.mxu1 }
  0xde   :  { %v2088_v40 = vpack.c.bf16 %v1500_v37, %v1500_v37  ;;  %v430_v42 = vadd.f32 %v2751_v17, %v429_v35  ;;  %v2236_v43 = vpop.f32.mrf.mxu0  ;;  %v1095_v33 = vadd.f32 %v2762_v44, %v2746_v15 }
  0xdf   :  { %v1498_v45 = vsel %vm1370_vm7, %v1306_v32, %v1434_v38  ;;  %vm1373_vm8 = vcmp.ge.f32.partialorder %v1309_v39, 0.0  ;;  %v1437_v46 = vmul.f32 0.1, %v1309_v39  ;;  %v451_v47 = vadd.f32 %v2236_v43, %v2751_v17  ;;  %v2769_v51 = vpop.f32.mrf.mxu1 }
  0xe0   :  { %1821 = vst.msk [vmem:[%s3228_s6 + $0x8] sm:$0xf] %vm1818_vm6, %v2088_v40  ;;  %v2086_v48 = vpack.c.bf16 %v1498_v45, %v1498_v45  ;;  %v1307_v49 = vadd.f32 %v1055_v41, %v430_v42  ;;  %v442_v50 = vpop.f32.mrf.mxu0  ;;  %v1087_v42 = vadd.f32 %v2746_v15, %v2769_v51 }
  0xe1   :  { %v1501_v52 = vsel %vm1373_vm8, %v1309_v39, %v1437_v46  ;;  %v1312_v54 = vadd.f32 %v1076_v34, %v451_v47  ;;  %v443_v55 = vadd.f32 %v2751_v17, %v442_v50  ;;  %v2310_v59 = vpop.f32.mrf.mxu1 }
  0xe2   :  { %1819 = vst.msk [vmem:[%s3228_s6] sm:$0xf] %vm1818_vm6, %v2086_v48  ;;  %v2089_v56 = vpack.c.bf16 %v1501_v52, %v1501_v52  ;;  %vm1371_vm9 = vcmp.ge.f32.partialorder %v1307_v49, 0.0  ;;  %v1435_v57 = vmul.f32 0.1, %v1307_v49  ;;  %v2237_v58 = vpop.f32.mrf.mxu0  ;;  %v1108_v34 = vadd.f32 %v2310_v59, %v2746_v15 }
  0xe3   :  { %vm1376_vm10 = vcmp.ge.f32.partialorder %v1312_v54, 0.0  ;;  %v1440_v60 = vmul.f32 0.1, %v1312_v54  ;;  %v1310_v61 = vadd.f32 %v1068_v53, %v443_v55  ;;  %v454_v62 = vadd.f32 %v2237_v58, %v2751_v17  ;;  %v1099_v3 = vpop.f32.mrf.mxu1 }
  0xe4   :  { %1822 = vst.msk [vmem:[%s3228_s6 + $0xc] sm:$0xf] %vm1818_vm6, %v2089_v56  ;;  %v1499_v63 = vsel %vm1371_vm9, %v1307_v49, %v1435_v57  ;;  %v445_v2 = vpop.f32.mrf.mxu0 }
  0xe5   :  { %v2087_v4 = vpack.c.bf16 %v1499_v63, %v1499_v63  ;;  %v1504_v5 = vsel %vm1376_vm10, %v1312_v54, %v1440_v60  ;;  %vm1374_vm11 = vcmp.ge.f32.partialorder %v1310_v61, 0.0  ;;  %v1438_v6 = vmul.f32 0.1, %v1310_v61  ;;  %v2786_v12 = vpop.f32.mrf.mxu1 }
  0xe6   :  { %v2092_v7 = vpack.c.bf16 %v1504_v5, %v1504_v5  ;;  %v1313_v9 = vadd.f32 %v1079_v0, %v454_v62  ;;  %v446_v10 = vadd.f32 %v2751_v17, %v445_v2  ;;  %v2240_v11 = vpop.f32.mrf.mxu0  ;;  %v1100_v54 = vadd.f32 %v2746_v15, %v1099_v3 }
  0xe7   :  { %1820 = vst.msk [vmem:[%s3228_s6 + $0x4] sm:$0xf] %vm1818_vm6, %v2087_v4  ;;  %v1502_v13 = vsel %vm1374_vm11, %v1310_v61, %v1438_v6  ;;  %v467_v14 = vadd.f32 %v2240_v11, %v2751_v17  ;;  %v2797_v21 = vpop.f32.mrf.mxu1 }
  0xe8   :  { %1825 = vst.msk [vmem:[%s3228_s6 + $0x18] sm:$0xf] %vm1818_vm6, %v2092_v7  ;;  %v2090_v16 = vpack.c.bf16 %v1502_v13, %v1502_v13  ;;  %vm1377_vm12 = vcmp.ge.f32.partialorder %v1313_v9, 0.0  ;;  %v1441_v18 = vmul.f32 0.1, %v1313_v9  ;;  %v1311_v19 = vadd.f32 %v1071_v8, %v446_v10  ;;  %v458_v20 = vpop.f32.mrf.mxu0 }
  0xe9   :  { %v1316_v23 = vadd.f32 %v1092_v1, %v467_v14  ;;  %v459_v24 = vadd.f32 %v2751_v17, %v458_v20  ;;  %v2314_v28 = vpop.f32.mrf.mxu1  ;;  %v1111_v1 = vadd.f32 %v2786_v12, %v2746_v15  ;;  %v1103_v10 = vadd.f32 %v2746_v15, %v2797_v21 }
  0xea   :  { %1823 = vst.msk [vmem:[%s3228_s6 + $0x10] sm:$0xf] %vm1818_vm6, %v2090_v16  ;;  %v1505_v25 = vsel %vm1377_vm12, %v1313_v9, %v1441_v18  ;;  %vm1375_vm13 = vcmp.ge.f32.partialorder %v1311_v19, 0.0  ;;  %v1439_v26 = vmul.f32 0.1, %v1311_v19  ;;  %v2241_v27 = vpop.f32.mrf.mxu0  ;;  %v1124_v2 = vadd.f32 %v2314_v28, %v2746_v15 }
  0xeb   :  { %v2093_v29 = vpack.c.bf16 %v1505_v25, %v1505_v25  ;;  %vm1380_vm14 = vcmp.ge.f32.partialorder %v1316_v23, 0.0  ;;  %v1444_v30 = vmul.f32 0.1, %v1316_v23  ;;  %v1314_v31 = vadd.f32 %v1084_v22, %v459_v24  ;;  %v1115_v37 = vpop.f32.mrf.mxu1 }
  0xec   :  { %v1503_v32 = vsel %vm1375_vm13, %v1311_v19, %v1439_v26  ;;  %v470_v35 = vadd.f32 %v2241_v27, %v2751_v17  ;;  %v461_v36 = vpop.f32.mrf.mxu0  ;;  %v1116_v24 = vadd.f32 %v2746_v15, %v1115_v37 }
  0xed   :  { %1826 = vst.msk [vmem:[%s3228_s6 + $0x1c] sm:$0xf] %vm1818_vm6, %v2093_v29  ;;  %v2091_v38 = vpack.c.bf16 %v1503_v32, %v1503_v32  ;;  %v1508_v39 = vsel %vm1380_vm14, %v1316_v23, %v1444_v30  ;;  %vm1378_vm15 = vcmp.ge.f32.partialorder %v1314_v31, 0.0  ;;  %v1442_v40 = vmul.f32 0.1, %v1314_v31  ;;  %v2816_v46 = vpop.f32.mrf.mxu1 }
  0xee   :  { %v2096_v41 = vpack.c.bf16 %v1508_v39, %v1508_v39  ;;  %v1317_v43 = vadd.f32 %v1095_v33, %v470_v35  ;;  %v462_v44 = vadd.f32 %v2751_v17, %v461_v36  ;;  %v2244_v45 = vpop.f32.mrf.mxu0  ;;  %v1127_v35 = vadd.f32 %v2816_v46, %v2746_v15 }
  0xef   :  { %1824 = vst.msk [vmem:[%s3228_s6 + $0x14] sm:$0xf] %vm1818_vm6, %v2091_v38  ;;  %v1506_v47 = vsel %vm1378_vm15, %v1314_v31, %v1442_v40  ;;  %v483_v48 = vadd.f32 %v2244_v45, %v2751_v17  ;;  %v2827_v53 = vpop.f32.mrf.mxu1 }
  0xf0   :  { %1829 = vst.msk [vmem:[%s3228_s6 + $0x28] sm:$0xf] %vm1818_vm6, %v2096_v41  ;;  %v2094_v49 = vpack.c.bf16 %v1506_v47, %v1506_v47  ;;  %vm1381_vm0 = vcmp.ge.f32.partialorder %v1317_v43, 0.0  ;;  %v1445_v50 = vmul.f32 0.1, %v1317_v43  ;;  %v1315_v51 = vadd.f32 %v1087_v42, %v462_v44  ;;  %v474_v52 = vpop.f32.mrf.mxu0 }
  0xf1   :  { %v1320_v55 = vadd.f32 %v1108_v34, %v483_v48  ;;  %v475_v56 = vadd.f32 %v2751_v17, %v474_v52  ;;  %v2318_v60 = vpop.f32.mrf.mxu1  ;;  %v1119_v44 = vadd.f32 %v2746_v15, %v2827_v53 }
  0xf2   :  { %1827 = vst.msk [vmem:[%s3228_s6 + $0x20] sm:$0xf] %vm1818_vm6, %v2094_v49  ;;  %v1509_v57 = vsel %vm1381_vm0, %v1317_v43, %v1445_v50  ;;  %vm1379_vm1 = vcmp.ge.f32.partialorder %v1315_v51, 0.0  ;;  %v1443_v58 = vmul.f32 0.1, %v1315_v51  ;;  %v2245_v59 = vpop.f32.mrf.mxu0  ;;  %v1140_v36 = vadd.f32 %v2318_v60, %v2746_v15 }
  0xf3   :  { %v2097_v61 = vpack.c.bf16 %v1509_v57, %v1509_v57  ;;  %vm1384_vm2 = vcmp.ge.f32.partialorder %v1320_v55, 0.0  ;;  %v1448_v62 = vmul.f32 0.1, %v1320_v55  ;;  %v1318_v63 = vadd.f32 %v1100_v54, %v475_v56  ;;  %v1131_v5 = vpop.f32.mrf.mxu1 }
  0xf4   :  { %v1507_v0 = vsel %vm1379_vm1, %v1315_v51, %v1443_v58  ;;  %v486_v3 = vadd.f32 %v2245_v59, %v2751_v17  ;;  %v477_v4 = vpop.f32.mrf.mxu0  ;;  %v1132_v56 = vadd.f32 %v2746_v15, %v1131_v5 }
  0xf5   :  { %1830 = vst.msk [vmem:[%s3228_s6 + $0x2c] sm:$0xf] %vm1818_vm6, %v2097_v61  ;;  %v2095_v6 = vpack.c.bf16 %v1507_v0, %v1507_v0  ;;  %v1512_v7 = vsel %vm1384_vm2, %v1320_v55, %v1448_v62  ;;  %vm1382_vm3 = vcmp.ge.f32.partialorder %v1318_v63, 0.0  ;;  %v1446_v8 = vmul.f32 0.1, %v1318_v63  ;;  %v2846_v14 = vpop.f32.mrf.mxu1 }
  0xf6   :  { %v2100_v9 = vpack.c.bf16 %v1512_v7, %v1512_v7  ;;  %v1321_v11 = vadd.f32 %v1111_v1, %v486_v3  ;;  %v478_v12 = vadd.f32 %v2751_v17, %v477_v4  ;;  %v2248_v13 = vpop.f32.mrf.mxu0  ;;  %v1143_v3 = vadd.f32 %v2846_v14, %v2746_v15 }
  0xf7   :  { %1828 = vst.msk [vmem:[%s3228_s6 + $0x24] sm:$0xf] %vm1818_vm6, %v2095_v6  ;;  %v1510_v16 = vsel %vm1382_vm3, %v1318_v63, %v1446_v8  ;;  %v499_v18 = vadd.f32 %v2248_v13, %v2751_v17  ;;  %v2857_v23 = vpop.f32.mrf.mxu1 }
  0xf8   :  { %1833 = vst.msk [vmem:[%s3228_s6 + $0x38] sm:$0xf] %vm1818_vm6, %v2100_v9  ;;  %v2098_v19 = vpack.c.bf16 %v1510_v16, %v1510_v16  ;;  %vm1385_vm4 = vcmp.ge.f32.partialorder %v1321_v11, 0.0  ;;  %v1449_v20 = vmul.f32 0.1, %v1321_v11  ;;  %v1319_v21 = vadd.f32 %v1103_v10, %v478_v12  ;;  %v490_v22 = vpop.f32.mrf.mxu0 }
  0xf9   :  { %v1324_v25 = vadd.f32 %v1124_v2, %v499_v18  ;;  %v491_v26 = vadd.f32 %v2751_v17, %v490_v22  ;;  %v2322_v30 = vpop.f32.mrf.mxu1  ;;  %v1135_v12 = vadd.f32 %v2746_v15, %v2857_v23 }
  0xfa   :  { %1831 = vst.msk [vmem:[%s3228_s6 + $0x30] sm:$0xf] %vm1818_vm6, %v2098_v19  ;;  %v1513_v27 = vsel %vm1385_vm4, %v1321_v11, %v1449_v20  ;;  %vm1383_vm5 = vcmp.ge.f32.partialorder %v1319_v21, 0.0  ;;  %v1447_v28 = vmul.f32 0.1, %v1319_v21  ;;  %v2249_v29 = vpop.f32.mrf.mxu0  ;;  %v1156_v4 = vadd.f32 %v2322_v30, %v2746_v15 }
  0xfb   :  { %v2101_v31 = vpack.c.bf16 %v1513_v27, %v1513_v27  ;;  %vm1388_vm7 = vcmp.ge.f32.partialorder %v1324_v25, 0.0  ;;  %v1452_v32 = vmul.f32 0.1, %v1324_v25  ;;  %v1322_v33 = vadd.f32 %v1116_v24, %v491_v26  ;;  %v1147_v39 = vpop.f32.mrf.mxu1 }
  0xfc   :  { %v1511_v34 = vsel %vm1383_vm5, %v1319_v21, %v1447_v28  ;;  %v502_v37 = vadd.f32 %v2249_v29, %v2751_v17  ;;  %v493_v38 = vpop.f32.mrf.mxu0  ;;  %v1148_v26 = vadd.f32 %v2746_v15, %v1147_v39 }
  0xfd   :  { %1834 = vst.msk [vmem:[%s3228_s6 + $0x3c] sm:$0xf] %vm1818_vm6, %v2101_v31  ;;  %v2099_v40 = vpack.c.bf16 %v1511_v34, %v1511_v34  ;;  %v1516_v41 = vsel %vm1388_vm7, %v1324_v25, %v1452_v32  ;;  %vm1386_vm8 = vcmp.ge.f32.partialorder %v1322_v33, 0.0  ;;  %v1450_v42 = vmul.f32 0.1, %v1322_v33  ;;  %v2876_v48 = vpop.f32.mrf.mxu1 }
  0xfe   :  { %v2104_v43 = vpack.c.bf16 %v1516_v41, %v1516_v41  ;;  %v1325_v45 = vadd.f32 %v1127_v35, %v502_v37  ;;  %v494_v46 = vadd.f32 %v2751_v17, %v493_v38  ;;  %v2252_v47 = vpop.f32.mrf.mxu0  ;;  %v1159_v37 = vadd.f32 %v2876_v48, %v2746_v15 }
  0xff   :  { %1832 = vst.msk [vmem:[%s3228_s6 + $0x34] sm:$0xf] %vm1818_vm6, %v2099_v40  ;;  %v1514_v49 = vsel %vm1386_vm8, %v1322_v33, %v1450_v42  ;;  %v515_v50 = vadd.f32 %v2252_v47, %v2751_v17  ;;  %v2887_v55 = vpop.f32.mrf.mxu1 }
 0x100   :  { %1837 = vst.msk [vmem:[%s3228_s6 + $0x48] sm:$0xf] %vm1818_vm6, %v2104_v43  ;;  %v2102_v51 = vpack.c.bf16 %v1514_v49, %v1514_v49  ;;  %vm1389_vm9 = vcmp.ge.f32.partialorder %v1325_v45, 0.0  ;;  %v1453_v52 = vmul.f32 0.1, %v1325_v45  ;;  %v1323_v53 = vadd.f32 %v1119_v44, %v494_v46  ;;  %v506_v54 = vpop.f32.mrf.mxu0 }
 0x101   :  { %v1328_v57 = vadd.f32 %v1140_v36, %v515_v50  ;;  %v507_v58 = vadd.f32 %v2751_v17, %v506_v54  ;;  %v2326_v62 = vpop.f32.mrf.mxu1  ;;  %v1151_v46 = vadd.f32 %v2746_v15, %v2887_v55 }
 0x102   :  { %1835 = vst.msk [vmem:[%s3228_s6 + $0x40] sm:$0xf] %vm1818_vm6, %v2102_v51  ;;  %v1517_v59 = vsel %vm1389_vm9, %v1325_v45, %v1453_v52  ;;  %vm1387_vm10 = vcmp.ge.f32.partialorder %v1323_v53, 0.0  ;;  %v1451_v60 = vmul.f32 0.1, %v1323_v53  ;;  %v2253_v61 = vpop.f32.mrf.mxu0  ;;  %v1172_v38 = vadd.f32 %v2326_v62, %v2746_v15 }
 0x103   :  { %v2105_v63 = vpack.c.bf16 %v1517_v59, %v1517_v59  ;;  %vm1392_vm11 = vcmp.ge.f32.partialorder %v1328_v57, 0.0  ;;  %v1456_v0 = vmul.f32 0.1, %v1328_v57  ;;  %v1326_v1 = vadd.f32 %v1132_v56, %v507_v58  ;;  %v1163_v7 = vpop.f32.mrf.mxu1 }
 0x104   :  { %v1515_v2 = vsel %vm1387_vm10, %v1323_v53, %v1451_v60  ;;  %v518_v5 = vadd.f32 %v2253_v61, %v2751_v17  ;;  %v509_v6 = vpop.f32.mrf.mxu0  ;;  %v1164_v58 = vadd.f32 %v2746_v15, %v1163_v7 }
 0x105   :  { %1838 = vst.msk [vmem:[%s3228_s6 + $0x4c] sm:$0xf] %vm1818_vm6, %v2105_v63  ;;  %v2103_v8 = vpack.c.bf16 %v1515_v2, %v1515_v2  ;;  %v1520_v9 = vsel %vm1392_vm11, %v1328_v57, %v1456_v0  ;;  %vm1390_vm12 = vcmp.ge.f32.partialorder %v1326_v1, 0.0  ;;  %v1454_v10 = vmul.f32 0.1, %v1326_v1  ;;  %v2906_v18 = vpop.f32.mrf.mxu1 }
 0x106   :  { %v2108_v11 = vpack.c.bf16 %v1520_v9, %v1520_v9  ;;  %v1329_v13 = vadd.f32 %v1143_v3, %v518_v5  ;;  %v510_v14 = vadd.f32 %v2751_v17, %v509_v6  ;;  %v2256_v16 = vpop.f32.mrf.mxu0  ;;  %v1175_v5 = vadd.f32 %v2906_v18, %v2746_v15 }
 0x107   :  { %1836 = vst.msk [vmem:[%s3228_s6 + $0x44] sm:$0xf] %vm1818_vm6, %v2103_v8  ;;  %v1518_v19 = vsel %vm1390_vm12, %v1326_v1, %v1454_v10  ;;  %v531_v20 = vadd.f32 %v2256_v16, %v2751_v17  ;;  %v2917_v25 = vpop.f32.mrf.mxu1 }
 0x108   :  { %1841 = vst.msk [vmem:[%s3228_s6 + $0x58] sm:$0xf] %vm1818_vm6, %v2108_v11  ;;  %v2106_v21 = vpack.c.bf16 %v1518_v19, %v1518_v19  ;;  %vm1393_vm13 = vcmp.ge.f32.partialorder %v1329_v13, 0.0  ;;  %v1457_v22 = vmul.f32 0.1, %v1329_v13  ;;  %v1327_v23 = vadd.f32 %v1135_v12, %v510_v14  ;;  %v522_v24 = vpop.f32.mrf.mxu0 }
 0x109   :  { %v1332_v27 = vadd.f32 %v1156_v4, %v531_v20  ;;  %v523_v28 = vadd.f32 %v2751_v17, %v522_v24  ;;  %v2330_v32 = vpop.f32.mrf.mxu1  ;;  %v1167_v14 = vadd.f32 %v2746_v15, %v2917_v25 }
 0x10a   :  { %1839 = vst.msk [vmem:[%s3228_s6 + $0x50] sm:$0xf] %vm1818_vm6, %v2106_v21  ;;  %v1521_v29 = vsel %vm1393_vm13, %v1329_v13, %v1457_v22  ;;  %vm1391_vm14 = vcmp.ge.f32.partialorder %v1327_v23, 0.0  ;;  %v1455_v30 = vmul.f32 0.1, %v1327_v23  ;;  %v2257_v31 = vpop.f32.mrf.mxu0  ;;  %v1188_v6 = vadd.f32 %v2330_v32, %v2746_v15 }
 0x10b   :  { %v2109_v33 = vpack.c.bf16 %v1521_v29, %v1521_v29  ;;  %vm1396_vm15 = vcmp.ge.f32.partialorder %v1332_v27, 0.0  ;;  %v1460_v34 = vmul.f32 0.1, %v1332_v27  ;;  %v1330_v35 = vadd.f32 %v1148_v26, %v523_v28  ;;  %v1179_v41 = vpop.f32.mrf.mxu1 }
 0x10c   :  { %v1519_v36 = vsel %vm1391_vm14, %v1327_v23, %v1455_v30  ;;  %v534_v39 = vadd.f32 %v2257_v31, %v2751_v17  ;;  %v525_v40 = vpop.f32.mrf.mxu0  ;;  %v1180_v28 = vadd.f32 %v2746_v15, %v1179_v41 }
 0x10d   :  { %1842 = vst.msk [vmem:[%s3228_s6 + $0x5c] sm:$0xf] %vm1818_vm6, %v2109_v33  ;;  %v2107_v42 = vpack.c.bf16 %v1519_v36, %v1519_v36  ;;  %v1524_v43 = vsel %vm1396_vm15, %v1332_v27, %v1460_v34  ;;  %vm1394_vm0 = vcmp.ge.f32.partialorder %v1330_v35, 0.0  ;;  %v1458_v44 = vmul.f32 0.1, %v1330_v35  ;;  %v2936_v50 = vpop.f32.mrf.mxu1 }
 0x10e   :  { %v2112_v45 = vpack.c.bf16 %v1524_v43, %v1524_v43  ;;  %v1333_v47 = vadd.f32 %v1159_v37, %v534_v39  ;;  %v526_v48 = vadd.f32 %v2751_v17, %v525_v40  ;;  %v2260_v49 = vpop.f32.mrf.mxu0  ;;  %v1191_v39 = vadd.f32 %v2936_v50, %v2746_v15 }
 0x10f   :  { %1840 = vst.msk [vmem:[%s3228_s6 + $0x54] sm:$0xf] %vm1818_vm6, %v2107_v42  ;;  %v1522_v51 = vsel %vm1394_vm0, %v1330_v35, %v1458_v44  ;;  %v547_v52 = vadd.f32 %v2260_v49, %v2751_v17  ;;  %v2947_v57 = vpop.f32.mrf.mxu1 }
 0x110   :  { %1845 = vst.msk [vmem:[%s3228_s6 + $0x68] sm:$0xf] %vm1818_vm6, %v2112_v45  ;;  %v2110_v53 = vpack.c.bf16 %v1522_v51, %v1522_v51  ;;  %vm1397_vm1 = vcmp.ge.f32.partialorder %v1333_v47, 0.0  ;;  %v1461_v54 = vmul.f32 0.1, %v1333_v47  ;;  %v1331_v55 = vadd.f32 %v1151_v46, %v526_v48  ;;  %v538_v56 = vpop.f32.mrf.mxu0 }
 0x111   :  { %v1336_v59 = vadd.f32 %v1172_v38, %v547_v52  ;;  %v539_v60 = vadd.f32 %v2751_v17, %v538_v56  ;;  %v2334_v0 = vpop.f32.mrf.mxu1  ;;  %v1183_v48 = vadd.f32 %v2746_v15, %v2947_v57 }
 0x112   :  { %1843 = vst.msk [vmem:[%s3228_s6 + $0x60] sm:$0xf] %vm1818_vm6, %v2110_v53  ;;  %v1525_v61 = vsel %vm1397_vm1, %v1333_v47, %v1461_v54  ;;  %vm1395_vm2 = vcmp.ge.f32.partialorder %v1331_v55, 0.0  ;;  %v1459_v62 = vmul.f32 0.1, %v1331_v55  ;;  %v2261_v63 = vpop.f32.mrf.mxu0  ;;  %v1204_v40 = vadd.f32 %v2334_v0, %v2746_v15 }
 0x113   :  { %v2113_v1 = vpack.c.bf16 %v1525_v61, %v1525_v61  ;;  %vm1400_vm3 = vcmp.ge.f32.partialorder %v1336_v59, 0.0  ;;  %v1464_v2 = vmul.f32 0.1, %v1336_v59  ;;  %v1334_v3 = vadd.f32 %v1164_v58, %v539_v60  ;;  %v1195_v9 = vpop.f32.mrf.mxu1 }
 0x114   :  { %v1523_v4 = vsel %vm1395_vm2, %v1331_v55, %v1459_v62  ;;  %v550_v7 = vadd.f32 %v2261_v63, %v2751_v17  ;;  %v541_v8 = vpop.f32.mrf.mxu0  ;;  %v1196_v60 = vadd.f32 %v2746_v15, %v1195_v9 }
 0x115   :  { %1846 = vst.msk [vmem:[%s3228_s6 + $0x6c] sm:$0xf] %vm1818_vm6, %v2113_v1  ;;  %v2111_v10 = vpack.c.bf16 %v1523_v4, %v1523_v4  ;;  %v1528_v11 = vsel %vm1400_vm3, %v1336_v59, %v1464_v2  ;;  %vm1398_vm4 = vcmp.ge.f32.partialorder %v1334_v3, 0.0  ;;  %v1462_v12 = vmul.f32 0.1, %v1334_v3  ;;  %v2966_v20 = vpop.f32.mrf.mxu1 }
 0x116   :  { %v2116_v13 = vpack.c.bf16 %v1528_v11, %v1528_v11  ;;  %v1337_v16 = vadd.f32 %v1175_v5, %v550_v7  ;;  %v542_v18 = vadd.f32 %v2751_v17, %v541_v8  ;;  %v2264_v19 = vpop.f32.mrf.mxu0  ;;  %v1207_v7 = vadd.f32 %v2966_v20, %v2746_v15 }
 0x117   :  { %1844 = vst.msk [vmem:[%s3228_s6 + $0x64] sm:$0xf] %vm1818_vm6, %v2111_v10  ;;  %v1526_v21 = vsel %vm1398_vm4, %v1334_v3, %v1462_v12  ;;  %v563_v22 = vadd.f32 %v2264_v19, %v2751_v17  ;;  %v2977_v27 = vpop.f32.mrf.mxu1 }
 0x118   :  { %1849 = vst.msk [vmem:[%s3228_s6 + $0x78] sm:$0xf] %vm1818_vm6, %v2116_v13  ;;  %v2114_v23 = vpack.c.bf16 %v1526_v21, %v1526_v21  ;;  %vm1401_vm5 = vcmp.ge.f32.partialorder %v1337_v16, 0.0  ;;  %v1465_v24 = vmul.f32 0.1, %v1337_v16  ;;  %v1335_v25 = vadd.f32 %v1167_v14, %v542_v18  ;;  %v554_v26 = vpop.f32.mrf.mxu0 }
 0x119   :  { %v1340_v29 = vadd.f32 %v1188_v6, %v563_v22  ;;  %v555_v30 = vadd.f32 %v2751_v17, %v554_v26  ;;  %v2338_v34 = vpop.f32.mrf.mxu1  ;;  %v1199_v18 = vadd.f32 %v2746_v15, %v2977_v27 }
 0x11a   :  { %1847 = vst.msk [vmem:[%s3228_s6 + $0x70] sm:$0xf] %vm1818_vm6, %v2114_v23  ;;  %v1529_v31 = vsel %vm1401_vm5, %v1337_v16, %v1465_v24  ;;  %vm1399_vm7 = vcmp.ge.f32.partialorder %v1335_v25, 0.0  ;;  %v1463_v32 = vmul.f32 0.1, %v1335_v25  ;;  %v2265_v33 = vpop.f32.mrf.mxu0  ;;  %v1220_v8 = vadd.f32 %v2338_v34, %v2746_v15 }
 0x11b   :  { %v2117_v35 = vpack.c.bf16 %v1529_v31, %v1529_v31  ;;  %vm1404_vm8 = vcmp.ge.f32.partialorder %v1340_v29, 0.0  ;;  %v1468_v36 = vmul.f32 0.1, %v1340_v29  ;;  %v1338_v37 = vadd.f32 %v1180_v28, %v555_v30  ;;  %v1211_v43 = vpop.f32.mrf.mxu1 }
 0x11c   :  { %v1527_v38 = vsel %vm1399_vm7, %v1335_v25, %v1463_v32  ;;  %v566_v41 = vadd.f32 %v2265_v33, %v2751_v17  ;;  %v557_v42 = vpop.f32.mrf.mxu0  ;;  %v1212_v30 = vadd.f32 %v2746_v15, %v1211_v43 }
 0x11d   :  { %1850 = vst.msk [vmem:[%s3228_s6 + $0x7c] sm:$0xf] %vm1818_vm6, %v2117_v35  ;;  %v2115_v44 = vpack.c.bf16 %v1527_v38, %v1527_v38  ;;  %v1532_v45 = vsel %vm1404_vm8, %v1340_v29, %v1468_v36  ;;  %vm1402_vm9 = vcmp.ge.f32.partialorder %v1338_v37, 0.0  ;;  %v1466_v46 = vmul.f32 0.1, %v1338_v37  ;;  %v2996_v52 = vpop.f32.mrf.mxu1 }
 0x11e   :  { %v2120_v47 = vpack.c.bf16 %v1532_v45, %v1532_v45  ;;  %v1341_v49 = vadd.f32 %v1191_v39, %v566_v41  ;;  %v558_v50 = vadd.f32 %v2751_v17, %v557_v42  ;;  %v2268_v51 = vpop.f32.mrf.mxu0  ;;  %v1223_v41 = vadd.f32 %v2996_v52, %v2746_v15 }
 0x11f   :  { %1848 = vst.msk [vmem:[%s3228_s6 + $0x74] sm:$0xf] %vm1818_vm6, %v2115_v44  ;;  %v1530_v53 = vsel %vm1402_vm9, %v1338_v37, %v1466_v46  ;;  %v579_v54 = vadd.f32 %v2268_v51, %v2751_v17  ;;  %v3007_v59 = vpop.f32.mrf.mxu1 }
 0x120   :  { %1853 = vst.msk [vmem:[%s3228_s6 + $0x88] sm:$0xf] %vm1818_vm6, %v2120_v47  ;;  %v2118_v55 = vpack.c.bf16 %v1530_v53, %v1530_v53  ;;  %vm1405_vm10 = vcmp.ge.f32.partialorder %v1341_v49, 0.0  ;;  %v1469_v56 = vmul.f32 0.1, %v1341_v49  ;;  %v1339_v57 = vadd.f32 %v1183_v48, %v558_v50  ;;  %v570_v58 = vpop.f32.mrf.mxu0 }
 0x121   :  { %v1344_v61 = vadd.f32 %v1204_v40, %v579_v54  ;;  %v571_v62 = vadd.f32 %v2751_v17, %v570_v58  ;;  %v2342_v2 = vpop.f32.mrf.mxu1  ;;  %v1215_v50 = vadd.f32 %v2746_v15, %v3007_v59 }
 0x122   :  { %1851 = vst.msk [vmem:[%s3228_s6 + $0x80] sm:$0xf] %vm1818_vm6, %v2118_v55  ;;  %v1533_v63 = vsel %vm1405_vm10, %v1341_v49, %v1469_v56  ;;  %vm1403_vm11 = vcmp.ge.f32.partialorder %v1339_v57, 0.0  ;;  %v1467_v0 = vmul.f32 0.1, %v1339_v57  ;;  %v2269_v1 = vpop.f32.mrf.mxu0  ;;  %v1236_v42 = vadd.f32 %v2342_v2, %v2746_v15 }
 0x123   :  { %v2121_v3 = vpack.c.bf16 %v1533_v63, %v1533_v63  ;;  %vm1408_vm12 = vcmp.ge.f32.partialorder %v1344_v61, 0.0  ;;  %v1472_v4 = vmul.f32 0.1, %v1344_v61  ;;  %v1342_v5 = vadd.f32 %v1196_v60, %v571_v62  ;;  %v1227_v11 = vpop.f32.mrf.mxu1 }
 0x124   :  { %v1531_v6 = vsel %vm1403_vm11, %v1339_v57, %v1467_v0  ;;  %v582_v9 = vadd.f32 %v2269_v1, %v2751_v17  ;;  %v573_v10 = vpop.f32.mrf.mxu0  ;;  %v1228_v62 = vadd.f32 %v2746_v15, %v1227_v11 }
 0x125   :  { %1854 = vst.msk [vmem:[%s3228_s6 + $0x8c] sm:$0xf] %vm1818_vm6, %v2121_v3  ;;  %v2119_v12 = vpack.c.bf16 %v1531_v6, %v1531_v6  ;;  %v1536_v13 = vsel %vm1408_vm12, %v1344_v61, %v1472_v4  ;;  %vm1406_vm13 = vcmp.ge.f32.partialorder %v1342_v5, 0.0  ;;  %v1470_v14 = vmul.f32 0.1, %v1342_v5  ;;  %v3026_v22 = vpop.f32.mrf.mxu1 }
 0x126   :  { %v2124_v16 = vpack.c.bf16 %v1536_v13, %v1536_v13  ;;  %v1345_v19 = vadd.f32 %v1207_v7, %v582_v9  ;;  %v574_v20 = vadd.f32 %v2751_v17, %v573_v10  ;;  %v2272_v21 = vpop.f32.mrf.mxu0  ;;  %v1239_v9 = vadd.f32 %v3026_v22, %v2746_v15 }
 0x127   :  { %1852 = vst.msk [vmem:[%s3228_s6 + $0x84] sm:$0xf] %vm1818_vm6, %v2119_v12  ;;  %v1534_v23 = vsel %vm1406_vm13, %v1342_v5, %v1470_v14  ;;  %v595_v24 = vadd.f32 %v2272_v21, %v2751_v17  ;;  %v3037_v29 = vpop.f32.mrf.mxu1 }
 0x128   :  { %1857 = vst.msk [vmem:[%s3228_s6 + $0x98] sm:$0xf] %vm1818_vm6, %v2124_v16  ;;  %v2122_v25 = vpack.c.bf16 %v1534_v23, %v1534_v23  ;;  %vm1409_vm14 = vcmp.ge.f32.partialorder %v1345_v19, 0.0  ;;  %v1473_v26 = vmul.f32 0.1, %v1345_v19  ;;  %v1343_v27 = vadd.f32 %v1199_v18, %v574_v20  ;;  %v586_v28 = vpop.f32.mrf.mxu0 }
 0x129   :  { %v1348_v31 = vadd.f32 %v1220_v8, %v595_v24  ;;  %v587_v32 = vadd.f32 %v2751_v17, %v586_v28  ;;  %v2346_v36 = vpop.f32.mrf.mxu1  ;;  %v1231_v20 = vadd.f32 %v2746_v15, %v3037_v29 }
 0x12a   :  { %1855 = vst.msk [vmem:[%s3228_s6 + $0x90] sm:$0xf] %vm1818_vm6, %v2122_v25  ;;  %v1537_v33 = vsel %vm1409_vm14, %v1345_v19, %v1473_v26  ;;  %vm1407_vm15 = vcmp.ge.f32.partialorder %v1343_v27, 0.0  ;;  %v1471_v34 = vmul.f32 0.1, %v1343_v27  ;;  %v2273_v35 = vpop.f32.mrf.mxu0  ;;  %v1252_v10 = vadd.f32 %v2346_v36, %v2746_v15 }
 0x12b   :  { %v2125_v37 = vpack.c.bf16 %v1537_v33, %v1537_v33  ;;  %vm1412_vm0 = vcmp.ge.f32.partialorder %v1348_v31, 0.0  ;;  %v1476_v38 = vmul.f32 0.1, %v1348_v31  ;;  %v1346_v39 = vadd.f32 %v1212_v30, %v587_v32  ;;  %v1243_v45 = vpop.f32.mrf.mxu1 }
 0x12c   :  { %v1535_v40 = vsel %vm1407_vm15, %v1343_v27, %v1471_v34  ;;  %v598_v43 = vadd.f32 %v2273_v35, %v2751_v17  ;;  %v589_v44 = vpop.f32.mrf.mxu0  ;;  %v1244_v32 = vadd.f32 %v2746_v15, %v1243_v45 }
 0x12d   :  { %1858 = vst.msk [vmem:[%s3228_s6 + $0x9c] sm:$0xf] %vm1818_vm6, %v2125_v37  ;;  %v2123_v46 = vpack.c.bf16 %v1535_v40, %v1535_v40  ;;  %v1540_v47 = vsel %vm1412_vm0, %v1348_v31, %v1476_v38  ;;  %vm1410_vm1 = vcmp.ge.f32.partialorder %v1346_v39, 0.0  ;;  %v1474_v48 = vmul.f32 0.1, %v1346_v39  ;;  %v3056_v54 = vpop.f32.mrf.mxu1 }
 0x12e   :  { %v2128_v49 = vpack.c.bf16 %v1540_v47, %v1540_v47  ;;  %v1349_v51 = vadd.f32 %v1223_v41, %v598_v43  ;;  %v590_v52 = vadd.f32 %v2751_v17, %v589_v44  ;;  %v2276_v53 = vpop.f32.mrf.mxu0  ;;  %v1255_v43 = vadd.f32 %v3056_v54, %v2746_v15 }
 0x12f   :  { %1856 = vst.msk [vmem:[%s3228_s6 + $0x94] sm:$0xf] %vm1818_vm6, %v2123_v46  ;;  %v1538_v55 = vsel %vm1410_vm1, %v1346_v39, %v1474_v48  ;;  %v611_v56 = vadd.f32 %v2276_v53, %v2751_v17  ;;  %v3067_v61 = vpop.f32.mrf.mxu1 }
 0x130   :  { %1861 = vst.msk [vmem:[%s3228_s6 + $0xa8] sm:$0xf] %vm1818_vm6, %v2128_v49  ;;  %v2126_v57 = vpack.c.bf16 %v1538_v55, %v1538_v55  ;;  %vm1413_vm2 = vcmp.ge.f32.partialorder %v1349_v51, 0.0  ;;  %v1477_v58 = vmul.f32 0.1, %v1349_v51  ;;  %v1347_v59 = vadd.f32 %v1215_v50, %v590_v52  ;;  %v602_v60 = vpop.f32.mrf.mxu0 }
 0x131   :  { %v1352_v63 = vadd.f32 %v1236_v42, %v611_v56  ;;  %v603_v0 = vadd.f32 %v2751_v17, %v602_v60  ;;  %v2350_v4 = vpop.f32.mrf.mxu1  ;;  %v1247_v52 = vadd.f32 %v2746_v15, %v3067_v61 }
 0x132   :  { %1859 = vst.msk [vmem:[%s3228_s6 + $0xa0] sm:$0xf] %vm1818_vm6, %v2126_v57  ;;  %v1541_v1 = vsel %vm1413_vm2, %v1349_v51, %v1477_v58  ;;  %vm1411_vm3 = vcmp.ge.f32.partialorder %v1347_v59, 0.0  ;;  %v1475_v2 = vmul.f32 0.1, %v1347_v59  ;;  %v2277_v3 = vpop.f32.mrf.mxu0  ;;  %v1268_v44 = vadd.f32 %v2350_v4, %v2746_v15 }
 0x133   :  { %v2129_v5 = vpack.c.bf16 %v1541_v1, %v1541_v1  ;;  %vm1416_vm4 = vcmp.ge.f32.partialorder %v1352_v63, 0.0  ;;  %v1480_v6 = vmul.f32 0.1, %v1352_v63  ;;  %v1350_v7 = vadd.f32 %v1228_v62, %v603_v0  ;;  %v3079_v13 = vpop.f32.mrf.mxu1  ;;  %v3125_v57 = vld [vmem:[%s3227_s2] ss:$0 sm:$0xff] }
 0x134   :  { %v1539_v8 = vsel %vm1411_vm3, %v1347_v59, %v1475_v2  ;;  %v614_v11 = vadd.f32 %v2277_v3, %v2751_v17  ;;  %v605_v12 = vpop.f32.mrf.mxu0  ;;  %v3135_v62 = vld [vmem:[%s3226_s5] ss:$0 sm:$0xff] }
 0x135   :  { %1862 = vst.msk [vmem:[%s3228_s6 + $0xac] sm:$0xf] %vm1818_vm6, %v2129_v5  ;;  %v2127_v14 = vpack.c.bf16 %v1539_v8, %v1539_v8  ;;  %v1544_v16 = vsel %vm1416_vm4, %v1352_v63, %v1480_v6  ;;  %vm1414_vm5 = vcmp.ge.f32.partialorder %v1350_v7, 0.0  ;;  %v1478_v18 = vmul.f32 0.1, %v1350_v7  ;;  %v3088_v24 = vpop.f32.mrf.mxu1 }
 0x136   :  { %v2132_v19 = vpack.c.bf16 %v1544_v16, %v1544_v16  ;;  %v1353_v21 = vadd.f32 %v1239_v9, %v614_v11  ;;  %v606_v22 = vadd.f32 %v2751_v17, %v605_v12  ;;  %v2280_v23 = vpop.f32.mrf.mxu0  ;;  %v1260_v63 = vadd.f32 %v3135_v62, %v3079_v13 }
 0x137   :  { %1860 = vst.msk [vmem:[%s3228_s6 + $0xa4] sm:$0xf] %vm1818_vm6, %v2127_v14  ;;  %v1542_v25 = vsel %vm1414_vm5, %v1350_v7, %v1478_v18  ;;  %v627_v26 = vadd.f32 %v2280_v23, %v2751_v17  ;;  %v3099_v31 = vpop.f32.mrf.mxu1 }
 0x138   :  { %1865 = vst.msk [vmem:[%s3228_s6 + $0xb8] sm:$0xf] %vm1818_vm6, %v2132_v19  ;;  %v2130_v27 = vpack.c.bf16 %v1542_v25, %v1542_v25  ;;  %vm1417_vm7 = vcmp.ge.f32.partialorder %v1353_v21, 0.0  ;;  %v1481_v28 = vmul.f32 0.1, %v1353_v21  ;;  %v1351_v29 = vadd.f32 %v1231_v20, %v606_v22  ;;  %v618_v30 = vpop.f32.mrf.mxu0 }
 0x139   :  { %v1356_v33 = vadd.f32 %v1252_v10, %v627_v26  ;;  %v619_v34 = vadd.f32 %v2751_v17, %v618_v30  ;;  %v2354_v38 = vpop.f32.mrf.mxu1  ;;  %v1271_v10 = vadd.f32 %v3135_v62, %v3088_v24  ;;  %v1263_v20 = vadd.f32 %v3135_v62, %v3099_v31 }
 0x13a   :  { %1863 = vst.msk [vmem:[%s3228_s6 + $0xb0] sm:$0xf] %vm1818_vm6, %v2130_v27  ;;  %v1545_v35 = vsel %vm1417_vm7, %v1353_v21, %v1481_v28  ;;  %vm1415_vm8 = vcmp.ge.f32.partialorder %v1351_v29, 0.0  ;;  %v1479_v36 = vmul.f32 0.1, %v1351_v29  ;;  %v2281_v37 = vpop.f32.mrf.mxu0  ;;  %v1284_v11 = vadd.f32 %v3135_v62, %v2354_v38 }
 0x13b   :  { %v2133_v39 = vpack.c.bf16 %v1545_v35, %v1545_v35  ;;  %vm1420_vm9 = vcmp.ge.f32.partialorder %v1356_v33, 0.0  ;;  %v1484_v40 = vmul.f32 0.1, %v1356_v33  ;;  %v1354_v41 = vadd.f32 %v1244_v32, %v619_v34  ;;  %v1275_v47 = vpop.f32.mrf.mxu1 }
 0x13c   :  { %v1543_v42 = vsel %vm1415_vm8, %v1351_v29, %v1479_v36  ;;  %v630_v45 = vadd.f32 %v2281_v37, %v2751_v17  ;;  %v621_v46 = vpop.f32.mrf.mxu0  ;;  %v1276_v31 = vadd.f32 %v3135_v62, %v1275_v47 }
 0x13d   :  { %1866 = vst.msk [vmem:[%s3228_s6 + $0xbc] sm:$0xf] %vm1818_vm6, %v2133_v39  ;;  %v2131_v48 = vpack.c.bf16 %v1543_v42, %v1543_v42  ;;  %v1548_v49 = vsel %vm1420_vm9, %v1356_v33, %v1484_v40  ;;  %vm1418_vm10 = vcmp.ge.f32.partialorder %v1354_v41, 0.0  ;;  %v1482_v50 = vmul.f32 0.1, %v1354_v41  ;;  %v2355_v59 = vpop.f32.mrf.mxu1 }
 0x13e   :  { %v2136_v51 = vpack.c.bf16 %v1548_v49, %v1548_v49  ;;  %v1357_v53 = vadd.f32 %v1255_v43, %v630_v45  ;;  %v622_v54 = vadd.f32 %v2751_v17, %v621_v46  ;;  %v2284_v55 = vpop.f32.mrf.mxu0  ;;  %v1287_v42 = vadd.f32 %v3135_v62, %v2355_v59 }
 0x13f   :  { %1864 = vst.msk [vmem:[%s3228_s6 + $0xb4] sm:$0xf] %vm1818_vm6, %v2131_v48  ;;  %v1546_v56 = vsel %vm1418_vm10, %v1354_v41, %v1482_v50  ;;  %v643_v58 = vadd.f32 %v3125_v57, %v2284_v55  ;;  %v1278_v8 = vpop.f32.mrf.mxu1 }
 0x140   :  { %1869 = vst.msk [vmem:[%s3228_s6 + $0xc8] sm:$0xf] %vm1818_vm6, %v2136_v51  ;;  %v2134_v15 = vpack.c.bf16 %v1546_v56, %v1546_v56  ;;  %vm1421_vm11 = vcmp.ge.f32.partialorder %v1357_v53, 0.0  ;;  %v1485_v17 = vmul.f32 0.1, %v1357_v53  ;;  %v1355_v60 = vadd.f32 %v1247_v52, %v622_v54  ;;  %v634_v61 = vpop.f32.mrf.mxu0 }
 0x141   :  { %v1360_v0 = vadd.f32 %v1268_v44, %v643_v58  ;;  %v635_v1 = vadd.f32 %v3125_v57, %v634_v61  ;;  %v2358_v26 = vpop.f32.mrf.mxu1  ;;  %v1279_v50 = vadd.f32 %v3135_v62, %v1278_v8 }
 0x142   :  { %1867 = vst.msk [vmem:[%s3228_s6 + $0xc0] sm:$0xf] %vm1818_vm6, %v2134_v15  ;;  %v1549_v2 = vsel %vm1421_vm11, %v1357_v53, %v1485_v17  ;;  %vm1419_vm12 = vcmp.ge.f32.partialorder %v1355_v60, 0.0  ;;  %v1483_v3 = vmul.f32 0.1, %v1355_v60  ;;  %v2285_v4 = vpop.f32.mrf.mxu0  ;;  %v1300_v43 = vadd.f32 %v3135_v62, %v2358_v26 }
 0x143   :  { %v2137_v5 = vpack.c.bf16 %v1549_v2, %v1549_v2  ;;  %vm1424_vm13 = vcmp.ge.f32.partialorder %v1360_v0, 0.0  ;;  %v1488_v6 = vmul.f32 0.1, %v1360_v0  ;;  %v1358_v7 = vadd.f32 %v1260_v63, %v635_v1  ;;  %v1291_v40 = vpop.f32.mrf.mxu1 }
 0x144   :  { %v1547_v9 = vsel %vm1419_vm12, %v1355_v60, %v1483_v3  ;;  %v646_v12 = vadd.f32 %v3125_v57, %v2285_v4  ;;  %v637_v13 = vpop.f32.mrf.mxu0  ;;  %v1292_v60 = vadd.f32 %v3135_v62, %v1291_v40 }
 0x145   :  { %1870 = vst.msk [vmem:[%s3228_s6 + $0xcc] sm:$0xf] %vm1818_vm6, %v2137_v5  ;;  %v2135_v14 = vpack.c.bf16 %v1547_v9, %v1547_v9  ;;  %v1552_v16 = vsel %vm1424_vm13, %v1360_v0, %v1488_v6  ;;  %vm1422_vm14 = vcmp.ge.f32.partialorder %v1358_v7, 0.0  ;;  %v1486_v18 = vmul.f32 0.1, %v1358_v7  ;;  %v2359_v55 = vpop.f32.mrf.mxu1 }
 0x146   :  { %v2140_v19 = vpack.c.bf16 %v1552_v16, %v1552_v16  ;;  %v1361_v21 = vadd.f32 %v1271_v10, %v646_v12  ;;  %v638_v22 = vadd.f32 %v3125_v57, %v637_v13  ;;  %v2288_v23 = vpop.f32.mrf.mxu0  ;;  %v1303_v8 = vadd.f32 %v3135_v62, %v2359_v55 }
 0x147   :  { %1868 = vst.msk [vmem:[%s3228_s6 + $0xc4] sm:$0xf] %vm1818_vm6, %v2135_v14  ;;  %v1550_v24 = vsel %vm1422_vm14, %v1358_v7, %v1486_v18  ;;  %v659_v25 = vadd.f32 %v3125_v57, %v2288_v23  ;;  %v1294_v5 = vpop.f32.mrf.mxu1 }
 0x148   :  { %1873 = vst.msk [vmem:[%s3228_s6 + $0xd8] sm:$0xf] %vm1818_vm6, %v2140_v19  ;;  %v2138_v27 = vpack.c.bf16 %v1550_v24, %v1550_v24  ;;  %vm1425_vm15 = vcmp.ge.f32.partialorder %v1361_v21, 0.0  ;;  %v1489_v28 = vmul.f32 0.1, %v1361_v21  ;;  %v1359_v29 = vadd.f32 %v1263_v20, %v638_v22  ;;  %v650_v30 = vpop.f32.mrf.mxu0 }
 0x149   :  { %v1364_v32 = vadd.f32 %v1284_v11, %v659_v25  ;;  %v651_v33 = vadd.f32 %v3125_v57, %v650_v30  ;;  %v1295_v16 = vadd.f32 %v3135_v62, %v1294_v5 }
 0x14a   :  { %1871 = vst.msk [vmem:[%s3228_s6 + $0xd0] sm:$0xf] %vm1818_vm6, %v2138_v27  ;;  %v1553_v34 = vsel %vm1425_vm15, %v1361_v21, %v1489_v28  ;;  %vm1423_vm0 = vcmp.ge.f32.partialorder %v1359_v29, 0.0  ;;  %v1487_v35 = vmul.f32 0.1, %v1359_v29  ;;  %v2289_v36 = vpop.f32.mrf.mxu0 }
 0x14b   :  { %v2141_v37 = vpack.c.bf16 %v1553_v34, %v1553_v34  ;;  %vm1428_vm1 = vcmp.ge.f32.partialorder %v1364_v32, 0.0  ;;  %v1492_v38 = vmul.f32 0.1, %v1364_v32  ;;  %v1362_v39 = vadd.f32 %v1276_v31, %v651_v33 }
 0x14c   :  { %v1551_v41 = vsel %vm1423_vm0, %v1359_v29, %v1487_v35  ;;  %v662_v44 = vadd.f32 %v3125_v57, %v2289_v36  ;;  %v653_v45 = vpop.f32.mrf.mxu0 }
 0x14d   :  { %1874 = vst.msk [vmem:[%s3228_s6 + $0xdc] sm:$0xf] %vm1818_vm6, %v2141_v37  ;;  %v2139_v46 = vpack.c.bf16 %v1551_v41, %v1551_v41  ;;  %v1556_v47 = vsel %vm1428_vm1, %v1364_v32, %v1492_v38  ;;  %vm1426_vm2 = vcmp.ge.f32.partialorder %v1362_v39, 0.0  ;;  %v1490_v48 = vmul.f32 0.1, %v1362_v39 }
 0x14e   :  { %v2144_v49 = vpack.c.bf16 %v1556_v47, %v1556_v47  ;;  %v1365_v51 = vadd.f32 %v1287_v42, %v662_v44  ;;  %v654_v52 = vadd.f32 %v3125_v57, %v653_v45  ;;  %v2292_v53 = vpop.f32.mrf.mxu0 }
 0x14f   :  { %1872 = vst.msk [vmem:[%s3228_s6 + $0xd4] sm:$0xf] %vm1818_vm6, %v2139_v46  ;;  %v1554_v54 = vsel %vm1426_vm2, %v1362_v39, %v1490_v48  ;;  %v675_v56 = vadd.f32 %v3125_v57, %v2292_v53 }
 0x150   :  { %1877 = vst.msk [vmem:[%s3228_s6 + $0xe8] sm:$0xf] %vm1818_vm6, %v2144_v49  ;;  %v2142_v58 = vpack.c.bf16 %v1554_v54, %v1554_v54  ;;  %vm1429_vm3 = vcmp.ge.f32.partialorder %v1365_v51, 0.0  ;;  %v1493_v59 = vmul.f32 0.1, %v1365_v51  ;;  %v1363_v15 = vadd.f32 %v1279_v50, %v654_v52  ;;  %v666_v17 = vpop.f32.mrf.mxu0 }
 0x151   :  { %v1368_v61 = vadd.f32 %v1300_v43, %v675_v56  ;;  %v667_v63 = vadd.f32 %v3125_v57, %v666_v17 }
 0x152   :  { %1875 = vst.msk [vmem:[%s3228_s6 + $0xe0] sm:$0xf] %vm1818_vm6, %v2142_v58  ;;  %v1557_v0 = vsel %vm1429_vm3, %v1365_v51, %v1493_v59  ;;  %vm1427_vm4 = vcmp.ge.f32.partialorder %v1363_v15, 0.0  ;;  %v1491_v1 = vmul.f32 0.1, %v1363_v15  ;;  %v2293_v2 = vpop.f32.mrf.mxu0 }
 0x153   :  { %v2145_v3 = vpack.c.bf16 %v1557_v0, %v1557_v0  ;;  %vm1432_vm5 = vcmp.ge.f32.partialorder %v1368_v61, 0.0  ;;  %v1496_v4 = vmul.f32 0.1, %v1368_v61  ;;  %v1366_v6 = vadd.f32 %v1292_v60, %v667_v63 }
 0x154   :  { %v1555_v7 = vsel %vm1427_vm4, %v1363_v15, %v1491_v1  ;;  %v678_v9 = vadd.f32 %v3125_v57, %v2293_v2  ;;  %v669_v10 = vpop.f32.mrf.mxu0 }
 0x155   :  { %1878 = vst.msk [vmem:[%s3228_s6 + $0xec] sm:$0xf] %vm1818_vm6, %v2145_v3  ;;  %v2143_v11 = vpack.c.bf16 %v1555_v7, %v1555_v7  ;;  %v1560_v12 = vsel %vm1432_vm5, %v1368_v61, %v1496_v4  ;;  %vm1430_vm7 = vcmp.ge.f32.partialorder %v1366_v6, 0.0  ;;  %v1494_v13 = vmul.f32 0.1, %v1366_v6 }
 0x156   :  { %v2148_v14 = vpack.c.bf16 %v1560_v12, %v1560_v12  ;;  %v1369_v18 = vadd.f32 %v1303_v8, %v678_v9  ;;  %v670_v19 = vadd.f32 %v3125_v57, %v669_v10 }
 0x157   :  { %1876 = vst.msk [vmem:[%s3228_s6 + $0xe4] sm:$0xf] %vm1818_vm6, %v2143_v11  ;;  %v1558_v20 = vsel %vm1430_vm7, %v1366_v6, %v1494_v13 }
 0x158   :  { %1881 = vst.msk [vmem:[%s3228_s6 + $0xf8] sm:$0xf] %vm1818_vm6, %v2148_v14  ;;  %v2146_v21 = vpack.c.bf16 %v1558_v20, %v1558_v20  ;;  %vm1433_vm8 = vcmp.ge.f32.partialorder %v1369_v18, 0.0  ;;  %v1497_v22 = vmul.f32 0.1, %v1369_v18  ;;  %v1367_v23 = vadd.f32 %v1295_v16, %v670_v19 }
 0x15a   :  { %1879 = vst.msk [vmem:[%s3228_s6 + $0xf0] sm:$0xf] %vm1818_vm6, %v2146_v21  ;;  %v1561_v57 = vsel %vm1433_vm8, %v1369_v18, %v1497_v22  ;;  %vm1431_vm9 = vcmp.ge.f32.partialorder %v1367_v23, 0.0  ;;  %v1495_v62 = vmul.f32 0.1, %v1367_v23 }
 0x15b   :  { %v2149_v24 = vpack.c.bf16 %v1561_v57, %v1561_v57 }
 0x15c   :  { %v1559_v25 = vsel %vm1431_vm9, %v1367_v23, %v1495_v62 }
 0x15d   :  { %1882 = vst.msk [vmem:[%s3228_s6 + $0xfc] sm:$0xf] %vm1818_vm6, %v2149_v24  ;;  %v2147_v26 = vpack.c.bf16 %v1559_v25, %v1559_v25 }
 0x15f   :  { %1880 = vst.msk [vmem:[%s3228_s6 + $0xf4] sm:$0xf] %vm1818_vm6, %v2147_v26 }

// kernel: _lambda_.21
= control target key start
LH: loop header
LB: loop body
LE: loop exit
PB: predicated region body
PF: predicated region fallthrough
CT: control target
= control target key end

     0   :  { %vm139_vm0 = vcmask 1043456   ;;  %vm114_vm1 = vcmask 588800   ;;  %vm352_vm4 = vcmask 125952   ;;  %s644_s1 = inlined_call_operand.vmem [shape: bf16[72,16], index: 1, kind: input, shape index: {}]   ;;  %s645_s0 = inlined_call_operand.vmem [shape: bf16[128,72], index: 0, kind: input, shape index: {}]   ;;  %s646_s2 = inlined_call_operand.vmem [shape: f32[1,16], index: 2, kind: input, shape index: {}]   ;;  %s647_s3 = inlined_call_operand.vmem [shape: bf16[128,16], index: 3, kind: output, shape index: {}]  }
   0x1   :  { %v478_v0 = vld [vmem:[%s644_s1 + $0x20] ss:$0 sps:$4 sm:$0xff]   ;;  %v479_v1 = vld [vmem:[%s644_s1 + $0x18] sm:$0xff]   ;;  %v480_v3 = vld [vmem:[%s644_s1 + $0x10] sm:$0xff]  }
   0x2   :  { %476 = vmatprep.subr.msk.bf16.mxu0 %vm139_vm0, %v478_v0  ;;  %477 = vmatprep.subr.msk.bf16.mxu1 %vm139_vm0, %v478_v0  ;;  %v141_v2 = vsel %vm139_vm0, %v478_v0, 0  ;;  %v483_v4 = vld [vmem:[%s645_s0] sm:$0xff]   ;;  %v481_v6 = vld [vmem:[%s644_s1 + $0x8] sm:$0xff]   ;;  %v487_v10 = vld [vmem:[%s645_s0 + $0x10] sm:$0xff]  }
   0x3   :  { %441 = vmatpush3.bf16.msra.mxu0 %v141_v2  ;;  %471 = vmatpush3.bf16.msra.mxu1 %v141_v2  ;;  %v484_v5 = vld [vmem:[%s645_s0 + $0x20] sm:$0xff]   ;;  %v485_v8 = vld [vmem:[%s645_s0 + $0x8] sm:$0xff]   ;;  %v488_v11 = vld [vmem:[%s645_s0 + $0x30] sm:$0xff]  }
   0x4   :  { %442 = vmatprep.subr.bf16.mxu0 %v479_v1  ;;  %467 = vmatprep.subr.bf16.mxu1 %v479_v1  ;;  %v482_v7 = vld [vmem:[%s644_s1] sm:$0xff]   ;;  %v486_v9 = vld [vmem:[%s645_s0 + $0x28] sm:$0xff]   ;;  %v489_v12 = vld [vmem:[%s645_s0 + $0x18] sm:$0xff]  }
   0x5   :  { %450 = vmatprep.mubr.msk.bf16.mxu0 %vm114_vm1, %v483_v4  ;;  %458 = vmatprep.mubr.msk.bf16.mxu1 %vm114_vm1, %v484_v5  ;;  %v490_v13 = vld [vmem:[%s645_s0 + $0x38] sm:$0xff]   ;;  %v561_v14 = vld [vmem:[%s646_s2] ss:$0 sm:$0xff] }
   0x7   :  { %443 = vmatpush3.bf16.msra.mxu0 %v479_v1  ;;  %472 = vmatpush3.bf16.msra.mxu1 %v479_v1 }
   0x8   :  { %444 = vmatprep.subr.bf16.mxu0 %v480_v3  ;;  %468 = vmatprep.subr.bf16.mxu1 %v480_v3 }
   0xb   :  { %445 = vmatpush3.bf16.msra.mxu0 %v480_v3  ;;  %473 = vmatpush3.bf16.msra.mxu1 %v480_v3 }
   0xc   :  { %446 = vmatprep.subr.bf16.mxu0 %v481_v6  ;;  %469 = vmatprep.subr.bf16.mxu1 %v481_v6 }
   0xf   :  { %447 = vmatpush3.bf16.msra.mxu0 %v481_v6  ;;  %474 = vmatpush3.bf16.msra.mxu1 %v481_v6 }
  0x10   :  { %448 = vmatprep.subr.bf16.mxu0 %v482_v7  ;;  %470 = vmatprep.subr.bf16.mxu1 %v482_v7 }
  0x13   :  { %449 = vmatpush3.bf16.msra.mxu0 %v482_v7  ;;  %475 = vmatpush3.bf16.msra.mxu1 %v482_v7 }
  0x16   :  { %451 = vmatmul.mubr.msk.bf16.vlgmr.msra.gmra.mxu0 %vm114_vm1, %v485_v8  ;;  %459 = vmatmul.mubr.msk.bf16.vlgmr.msra.gmra.mxu1 %vm114_vm1, %v486_v9 }
  0x17   :  { %454 = vmatprep.mubr.msk.bf16.mxu0 %vm114_vm1, %v487_v10  ;;  %462 = vmatprep.mubr.msk.bf16.mxu1 %vm114_vm1, %v488_v11 }
  0x1e   :  { %455 = vmatmul.mubr.msk.bf16.gmra.mxu0 %vm114_vm1, %v489_v12  ;;  %463 = vmatmul.mubr.msk.bf16.gmra.mxu1 %vm114_vm1, %v490_v13 }
  0xd6   :  { %v452_v15 = vpop.f32.mrf.mxu0  ;;  %v460_v16 = vpop.f32.mrf.mxu1 }
  0xd7   :  { %v186_v17 = vadd.f32 %v452_v15, %v561_v14  ;;  %v218_v18 = vadd.f32 %v460_v16, %v561_v14 }
  0xd8   :  { %v177_v19 = vpop.f32.mrf.mxu0  ;;  %v209_v20 = vpop.f32.mrf.mxu1 }
  0xd9   :  { %vm242_vm2 = vcmp.ge.f32.partialorder %v186_v17, 0.0  ;;  %v258_v21 = vmul.f32 0.1, %v186_v17  ;;  %vm250_vm3 = vcmp.ge.f32.partialorder %v218_v18, 0.0  ;;  %v266_v22 = vmul.f32 0.1, %v218_v18 }
  0xda   :  { %v178_v23 = vadd.f32 %v561_v14, %v177_v19  ;;  %v210_v24 = vadd.f32 %v561_v14, %v209_v20  ;;  %v453_v25 = vpop.f32.mrf.mxu0  ;;  %v461_v26 = vpop.f32.mrf.mxu1 }
  0xdb   :  { %v274_v27 = vsel %vm242_vm2, %v186_v17, %v258_v21  ;;  %v282_v28 = vsel %vm250_vm3, %v218_v18, %v266_v22  ;;  %v189_v29 = vadd.f32 %v453_v25, %v561_v14  ;;  %v221_v30 = vadd.f32 %v461_v26, %v561_v14 }
  0xdc   :  { %v413_v31 = vpack.c.bf16 %v274_v27, %v274_v27  ;;  %v421_v32 = vpack.c.bf16 %v282_v28, %v282_v28  ;;  %vm240_vm5 = vcmp.ge.f32.partialorder %v178_v23, 0.0  ;;  %v256_v33 = vmul.f32 0.1, %v178_v23  ;;  %v180_v34 = vpop.f32.mrf.mxu0  ;;  %v212_v35 = vpop.f32.mrf.mxu1 }
  0xdd   :  { %vm248_vm6 = vcmp.ge.f32.partialorder %v210_v24, 0.0  ;;  %v264_v36 = vmul.f32 0.1, %v210_v24  ;;  %vm243_vm7 = vcmp.ge.f32.partialorder %v189_v29, 0.0  ;;  %v259_v37 = vmul.f32 0.1, %v189_v29 }
  0xde   :  { %355 = vst.msk [vmem:[%s647_s3 + $0x8] sm:$0xf] %vm352_vm4, %v413_v31  ;;  %363 = vst.msk [vmem:[%s647_s3 + $0x28] sm:$0xf] %vm352_vm4, %v421_v32  ;;  %v272_v38 = vsel %vm240_vm5, %v178_v23, %v256_v33  ;;  %vm251_vm8 = vcmp.ge.f32.partialorder %v221_v30, 0.0  ;;  %v181_v40 = vadd.f32 %v561_v14, %v180_v34  ;;  %v456_v41 = vpop.f32.mrf.mxu0  ;;  %v464_v42 = vpop.f32.mrf.mxu1  ;;  %v213_v46 = vadd.f32 %v561_v14, %v212_v35 }
  0xdf   :  { %v267_v39 = vmul.f32 0.1, %v221_v30  ;;  %v411_v43 = vpack.c.bf16 %v272_v38, %v272_v38  ;;  %v280_v44 = vsel %vm248_vm6, %v210_v24, %v264_v36  ;;  %v275_v45 = vsel %vm243_vm7, %v189_v29, %v259_v37 }
  0xe0   :  { %v419_v47 = vpack.c.bf16 %v280_v44, %v280_v44  ;;  %v414_v48 = vpack.c.bf16 %v275_v45, %v275_v45  ;;  %vm241_vm9 = vcmp.ge.f32.partialorder %v181_v40, 0.0  ;;  %v193_v50 = vpop.f32.mrf.mxu0  ;;  %v225_v51 = vpop.f32.mrf.mxu1  ;;  %v257_v53 = vmul.f32 0.1, %v181_v40 }
  0xe1   :  { %v283_v49 = vsel %vm251_vm8, %v221_v30, %v267_v39  ;;  %353 = vst.msk [vmem:[%s647_s3] sm:$0xf] %vm352_vm4, %v411_v43  ;;  %vm249_vm10 = vcmp.ge.f32.partialorder %v213_v46, 0.0  ;;  %v265_v54 = vmul.f32 0.1, %v213_v46  ;;  %v202_v55 = vadd.f32 %v456_v41, %v561_v14 }
  0xe2   :  { %v422_v52 = vpack.c.bf16 %v283_v49, %v283_v49  ;;  %361 = vst.msk [vmem:[%s647_s3 + $0x20] sm:$0xf] %vm352_vm4, %v419_v47  ;;  %356 = vst.msk [vmem:[%s647_s3 + $0xc] sm:$0xf] %vm352_vm4, %v414_v48  ;;  %v234_v56 = vadd.f32 %v464_v42, %v561_v14  ;;  %v194_v57 = vadd.f32 %v561_v14, %v193_v50  ;;  %v457_v59 = vpop.f32.mrf.mxu0  ;;  %v465_v60 = vpop.f32.mrf.mxu1 }
  0xe3   :  { %v226_v58 = vadd.f32 %v561_v14, %v225_v51  ;;  %v273_v61 = vsel %vm241_vm9, %v181_v40, %v257_v53  ;;  %v281_v62 = vsel %vm249_vm10, %v213_v46, %v265_v54  ;;  %v205_v63 = vadd.f32 %v457_v59, %v561_v14 }
  0xe4   :  { %364 = vst.msk [vmem:[%s647_s3 + $0x2c] sm:$0xf] %vm352_vm4, %v422_v52  ;;  %v237_v0 = vadd.f32 %v465_v60, %v561_v14  ;;  %v412_v1 = vpack.c.bf16 %v273_v61, %v273_v61  ;;  %v420_v2 = vpack.c.bf16 %v281_v62, %v281_v62  ;;  %vm246_vm11 = vcmp.ge.f32.partialorder %v202_v55, 0.0  ;;  %v196_v8 = vpop.f32.mrf.mxu0  ;;  %v228_v13 = vpop.f32.mrf.mxu1 }
  0xe5   :  { %v262_v3 = vmul.f32 0.1, %v202_v55  ;;  %vm254_vm12 = vcmp.ge.f32.partialorder %v234_v56, 0.0  ;;  %v270_v4 = vmul.f32 0.1, %v234_v56  ;;  %vm244_vm13 = vcmp.ge.f32.partialorder %v194_v57, 0.0 }
  0xe6   :  { %v260_v5 = vmul.f32 0.1, %v194_v57  ;;  %354 = vst.msk [vmem:[%s647_s3 + $0x4] sm:$0xf] %vm352_vm4, %v412_v1  ;;  %362 = vst.msk [vmem:[%s647_s3 + $0x24] sm:$0xf] %vm352_vm4, %v420_v2  ;;  %v197_v21 = vadd.f32 %v561_v14, %v196_v8  ;;  %v229_v23 = vadd.f32 %v561_v14, %v228_v13 }
  0xe7   :  { %v278_v6 = vsel %vm246_vm11, %v202_v55, %v262_v3  ;;  %vm252_vm14 = vcmp.ge.f32.partialorder %v226_v58, 0.0  ;;  %v268_v7 = vmul.f32 0.1, %v226_v58  ;;  %vm247_vm15 = vcmp.ge.f32.partialorder %v205_v63, 0.0 }
  0xe8   :  { %v417_v9 = vpack.c.bf16 %v278_v6, %v278_v6  ;;  %v286_v10 = vsel %vm254_vm12, %v234_v56, %v270_v4  ;;  %v276_v11 = vsel %vm244_vm13, %v194_v57, %v260_v5  ;;  %v263_v12 = vmul.f32 0.1, %v205_v63 }
  0xe9   :  { %v425_v15 = vpack.c.bf16 %v286_v10, %v286_v10  ;;  %v415_v16 = vpack.c.bf16 %v276_v11, %v276_v11  ;;  %v284_v17 = vsel %vm252_vm14, %v226_v58, %v268_v7  ;;  %vm255_vm0 = vcmp.ge.f32.partialorder %v237_v0, 0.0 }
  0xea   :  { %359 = vst.msk [vmem:[%s647_s3 + $0x18] sm:$0xf] %vm352_vm4, %v417_v9  ;;  %v423_v18 = vpack.c.bf16 %v284_v17, %v284_v17  ;;  %v279_v19 = vsel %vm247_vm15, %v205_v63, %v263_v12  ;;  %v271_v20 = vmul.f32 0.1, %v237_v0  ;;  %vm245_vm1 = vcmp.ge.f32.partialorder %v197_v21, 0.0 }
  0xeb   :  { %367 = vst.msk [vmem:[%s647_s3 + $0x38] sm:$0xf] %vm352_vm4, %v425_v15  ;;  %357 = vst.msk [vmem:[%s647_s3 + $0x10] sm:$0xf] %vm352_vm4, %v415_v16  ;;  %v418_v22 = vpack.c.bf16 %v279_v19, %v279_v19  ;;  %v261_v25 = vmul.f32 0.1, %v197_v21 }
  0xec   :  { %365 = vst.msk [vmem:[%s647_s3 + $0x30] sm:$0xf] %vm352_vm4, %v423_v18  ;;  %v287_v24 = vsel %vm255_vm0, %v237_v0, %v271_v20  ;;  %vm253_vm2 = vcmp.ge.f32.partialorder %v229_v23, 0.0  ;;  %v269_v27 = vmul.f32 0.1, %v229_v23 }
  0xed   :  { %360 = vst.msk [vmem:[%s647_s3 + $0x1c] sm:$0xf] %vm352_vm4, %v418_v22  ;;  %v426_v26 = vpack.c.bf16 %v287_v24, %v287_v24  ;;  %v277_v28 = vsel %vm245_vm1, %v197_v21, %v261_v25 }
  0xee   :  { %v416_v14 = vpack.c.bf16 %v277_v28, %v277_v28  ;;  %v285_v29 = vsel %vm253_vm2, %v229_v23, %v269_v27 }
  0xef   :  { %368 = vst.msk [vmem:[%s647_s3 + $0x3c] sm:$0xf] %vm352_vm4, %v426_v26  ;;  %v424_v30 = vpack.c.bf16 %v285_v29, %v285_v29 }
  0xf0   :  { %358 = vst.msk [vmem:[%s647_s3 + $0x14] sm:$0xf] %vm352_vm4, %v416_v14 }
  0xf1   :  { %366 = vst.msk [vmem:[%s647_s3 + $0x34] sm:$0xf] %vm352_vm4, %v424_v30 }

// kernel: _lambda_.22
= control target key start
LH: loop header
LB: loop body
LE: loop exit
PB: predicated region body
PF: predicated region fallthrough
CT: control target
= control target key end

     0   :  { %v555_v0 = vmov 0   ;;  %vm182_vm0 = vcmask 130048   ;;  %vm416_vm3 = vcmask 125952   ;;  %s744_s1 = inlined_call_operand.vmem [shape: bf16[144,16], index: 1, kind: input, shape index: {}]   ;;  %s745_s0 = inlined_call_operand.vmem [shape: bf16[128,144], index: 0, kind: input, shape index: {}]   ;;  %s746_s2 = inlined_call_operand.vmem [shape: f32[1,16], index: 2, kind: input, shape index: {}]   ;;  %s747_s3 = inlined_call_operand.vmem [shape: bf16[128,16], index: 3, kind: output, shape index: {}]  }
   0x1   :  { %207 = vmatprep.subr.bf16.mxu0 %v555_v0  ;;  %503 = vmatprep.subr.bf16.mxu1 %v555_v0  ;;  %v522_v1 = vld [vmem:[%s744_s1 + $0x38] sm:$0xff]   ;;  %v523_v2 = vld [vmem:[%s744_s1 + $0x30] sm:$0xff]   ;;  %v524_v3 = vld [vmem:[%s744_s1 + $0x28] sm:$0xff]  }
   0x2   :  { %208 = vmatpush1.bf16.msra.mxu0 %v522_v1  ;;  %512 = vmatpush1.bf16.msra.mxu1 %v522_v1  ;;  %v525_v4 = vld [vmem:[%s744_s1 + $0x20] sm:$0xff]   ;;  %v526_v7 = vld [vmem:[%s744_s1 + $0x18] sm:$0xff]   ;;  %v527_v8 = vld [vmem:[%s744_s1 + $0x10] sm:$0xff]  }
   0x3   :  { %209 = vmatprep.subr.bf16.mxu0 %v555_v0  ;;  %504 = vmatprep.subr.bf16.mxu1 %v555_v0  ;;  %v533_v5 = vld [vmem:[%s745_s0 + $0x4] ss:$8 sps:$4 sm:$0xff]   ;;  %v531_v12 = vld [vmem:[%s745_s0] ss:$8 sps:$4 sm:$0xff]   ;;  %v537_v14 = vld [vmem:[%s745_s0 + $0x14] ss:$8 sps:$4 sm:$0xff]  }
   0x4   :  { %v536_v6 = vld [vmem:[%s745_s0 + $0x44] ss:$8 sps:$4 sm:$0xff]   ;;  %463 = vmatprep.mubr.msk.bf16.mxu0 %vm182_vm0, %v533_v5  ;;  %v534_v13 = vld [vmem:[%s745_s0 + $0x40] ss:$8 sps:$4 sm:$0xff]   ;;  %v539_v15 = vld [vmem:[%s745_s0 + $0x54] ss:$8 sps:$4 sm:$0xff]  }
   0x5   :  { %467 = vmatprep.mubr.msk.bf16.mxu1 %vm182_vm0, %v536_v6  ;;  %v528_v9 = vld [vmem:[%s744_s1 + $0x8] sm:$0xff]   ;;  %v529_v10 = vld [vmem:[%s744_s1] sm:$0xff]   ;;  %v541_v16 = vld [vmem:[%s745_s0 + $0x10] ss:$8 sps:$4 sm:$0xff]  }
   0x6   :  { %210 = vmatpush1.bf16.msra.mxu0 %v523_v2  ;;  %513 = vmatpush1.bf16.msra.mxu1 %v523_v2  ;;  %v530_v11 = vld [vmem:[%s744_s1 + $0x40] sm:$0xff]   ;;  %v542_v17 = vld [vmem:[%s745_s0 + $0x50] ss:$8 sps:$4 sm:$0xff]   ;;  %v549_v22 = vld [vmem:[%s745_s0 + $0x34] ss:$8 sps:$4 sm:$0xff]  }
   0x7   :  { %211 = vmatprep.subr.bf16.mxu0 %v555_v0  ;;  %505 = vmatprep.subr.bf16.mxu1 %v555_v0  ;;  %v543_v18 = vld [vmem:[%s745_s0 + $0x24] ss:$8 sps:$4 sm:$0xff]   ;;  %v547_v20 = vld [vmem:[%s745_s0 + $0x20] ss:$8 sps:$4 sm:$0xff]   ;;  %v551_v23 = vld [vmem:[%s745_s0 + $0x74] ss:$8 sps:$4 sm:$0xff]  }
   0x8   :  { %v545_v19 = vld [vmem:[%s745_s0 + $0x64] ss:$8 sps:$4 sm:$0xff]   ;;  %v548_v21 = vld [vmem:[%s745_s0 + $0x60] ss:$8 sps:$4 sm:$0xff]   ;;  %v553_v24 = vld [vmem:[%s745_s0 + $0x30] ss:$8 sps:$4 sm:$0xff]  }
   0x9   :  { %v554_v25 = vld [vmem:[%s745_s0 + $0x70] ss:$8 sps:$4 sm:$0xff]   ;;  %v662_v26 = vld [vmem:[%s746_s2] ss:$0 sm:$0xff] }
   0xa   :  { %212 = vmatpush1.bf16.msra.mxu0 %v524_v3  ;;  %514 = vmatpush1.bf16.msra.mxu1 %v524_v3 }
   0xb   :  { %213 = vmatprep.subr.bf16.mxu0 %v555_v0  ;;  %506 = vmatprep.subr.bf16.mxu1 %v555_v0 }
   0xe   :  { %214 = vmatpush1.bf16.msra.mxu0 %v525_v4  ;;  %515 = vmatpush1.bf16.msra.mxu1 %v525_v4 }
   0xf   :  { %215 = vmatprep.subr.bf16.mxu0 %v555_v0  ;;  %507 = vmatprep.subr.bf16.mxu1 %v555_v0 }
  0x12   :  { %216 = vmatpush1.bf16.msra.mxu0 %v526_v7  ;;  %516 = vmatpush1.bf16.msra.mxu1 %v526_v7 }
  0x13   :  { %217 = vmatprep.subr.bf16.mxu0 %v555_v0  ;;  %508 = vmatprep.subr.bf16.mxu1 %v555_v0 }
  0x16   :  { %218 = vmatpush1.bf16.msra.mxu0 %v527_v8  ;;  %517 = vmatpush1.bf16.msra.mxu1 %v527_v8 }
  0x17   :  { %219 = vmatprep.subr.bf16.mxu0 %v555_v0  ;;  %509 = vmatprep.subr.bf16.mxu1 %v555_v0 }
  0x1a   :  { %220 = vmatpush1.bf16.msra.mxu0 %v528_v9  ;;  %518 = vmatpush1.bf16.msra.mxu1 %v528_v9 }
  0x1b   :  { %221 = vmatprep.subr.bf16.mxu0 %v555_v0  ;;  %510 = vmatprep.subr.bf16.mxu1 %v555_v0 }
  0x1e   :  { %222 = vmatpush1.bf16.msra.mxu0 %v529_v10  ;;  %519 = vmatpush1.bf16.msra.mxu1 %v529_v10 }
  0x1f   :  { %237 = vmatprep.subr.bf16.mxu0 %v555_v0  ;;  %511 = vmatprep.subr.bf16.mxu1 %v555_v0 }
  0x22   :  { %238 = vmatpush2.bf16.msra.mxu0 %v530_v11  ;;  %520 = vmatpush2.bf16.msra.mxu1 %v530_v11 }
  0x25   :  { %240 = vmatmul.mubr.bf16.vlgmr.msra.gmra.mxu0 %v531_v12  ;;  %272 = vmatmul.mubr.bf16.vlgmr.msra.gmra.mxu1 %v534_v13 }
  0x26   :  { %464 = vmatprep.mubr.msk.bf16.mxu0 %vm182_vm0, %v537_v14  ;;  %468 = vmatprep.mubr.msk.bf16.mxu1 %vm182_vm0, %v539_v15 }
  0x2d   :  { %248 = vmatmul.mubr.bf16.gmra.mxu0 %v541_v16  ;;  %280 = vmatmul.mubr.bf16.gmra.mxu1 %v542_v17 }
  0x2e   :  { %465 = vmatprep.mubr.msk.bf16.mxu0 %vm182_vm0, %v543_v18  ;;  %469 = vmatprep.mubr.msk.bf16.mxu1 %vm182_vm0, %v545_v19 }
  0x35   :  { %256 = vmatmul.mubr.bf16.gmra.mxu0 %v547_v20  ;;  %288 = vmatmul.mubr.bf16.gmra.mxu1 %v548_v21 }
  0x36   :  { %466 = vmatprep.mubr.msk.bf16.mxu0 %vm182_vm0, %v549_v22  ;;  %470 = vmatprep.mubr.msk.bf16.mxu1 %vm182_vm0, %v551_v23 }
  0x3d   :  { %264 = vmatmul.mubr.bf16.gmra.mxu0 %v553_v24  ;;  %296 = vmatmul.mubr.bf16.gmra.mxu1 %v554_v25 }
  0xe5   :  { %v241_v27 = vpop.f32.mrf.mxu0  ;;  %v273_v28 = vpop.f32.mrf.mxu1 }
  0xe6   :  { %v242_v29 = vadd.f32 %v662_v26, %v241_v27  ;;  %v274_v30 = vadd.f32 %v662_v26, %v273_v28 }
  0xe7   :  { %v243_v31 = vpop.f32.mrf.mxu0  ;;  %v275_v32 = vpop.f32.mrf.mxu1 }
  0xe8   :  { %vm304_vm1 = vcmp.ge.f32.partialorder %v242_v29, 0.0  ;;  %v320_v33 = vmul.f32 0.1, %v242_v29  ;;  %vm312_vm2 = vcmp.ge.f32.partialorder %v274_v30, 0.0  ;;  %v328_v34 = vmul.f32 0.1, %v274_v30 }
  0xe9   :  { %v244_v35 = vpop.f32.mrf.mxu0  ;;  %v276_v36 = vpop.f32.mrf.mxu1 }
  0xea   :  { %v336_v37 = vsel %vm304_vm1, %v242_v29, %v320_v33  ;;  %v344_v38 = vsel %vm312_vm2, %v274_v30, %v328_v34  ;;  %v245_v39 = vadd.f32 %v662_v26, %v244_v35  ;;  %v277_v40 = vadd.f32 %v662_v26, %v276_v36 }
  0xeb   :  { %v487_v41 = vpack.c.bf16 %v336_v37, %v336_v37  ;;  %v495_v42 = vpack.c.bf16 %v344_v38, %v344_v38  ;;  %v246_v43 = vpop.f32.mrf.mxu0  ;;  %v278_v44 = vpop.f32.mrf.mxu1 }
  0xec   :  { %vm305_vm4 = vcmp.ge.f32.partialorder %v245_v39, 0.0  ;;  %v321_v45 = vmul.f32 0.1, %v245_v39  ;;  %vm313_vm5 = vcmp.ge.f32.partialorder %v277_v40, 0.0  ;;  %v329_v46 = vmul.f32 0.1, %v277_v40 }
  0xed   :  { %417 = vst.msk [vmem:[%s747_s3] sm:$0xf] %vm416_vm3, %v487_v41  ;;  %425 = vst.msk [vmem:[%s747_s3 + $0x20] sm:$0xf] %vm416_vm3, %v495_v42  ;;  %v249_v47 = vpop.f32.mrf.mxu0  ;;  %v281_v48 = vpop.f32.mrf.mxu1 }
  0xee   :  { %v337_v49 = vsel %vm305_vm4, %v245_v39, %v321_v45  ;;  %v345_v50 = vsel %vm313_vm5, %v277_v40, %v329_v46  ;;  %v250_v51 = vadd.f32 %v662_v26, %v249_v47  ;;  %v282_v52 = vadd.f32 %v662_v26, %v281_v48 }
  0xef   :  { %v488_v53 = vpack.c.bf16 %v337_v49, %v337_v49  ;;  %v496_v54 = vpack.c.bf16 %v345_v50, %v345_v50  ;;  %v251_v55 = vpop.f32.mrf.mxu0  ;;  %v283_v56 = vpop.f32.mrf.mxu1 }
  0xf0   :  { %vm306_vm6 = vcmp.ge.f32.partialorder %v250_v51, 0.0  ;;  %v322_v57 = vmul.f32 0.1, %v250_v51  ;;  %vm314_vm7 = vcmp.ge.f32.partialorder %v282_v52, 0.0  ;;  %v330_v58 = vmul.f32 0.1, %v282_v52 }
  0xf1   :  { %418 = vst.msk [vmem:[%s747_s3 + $0x4] sm:$0xf] %vm416_vm3, %v488_v53  ;;  %426 = vst.msk [vmem:[%s747_s3 + $0x24] sm:$0xf] %vm416_vm3, %v496_v54  ;;  %v252_v59 = vpop.f32.mrf.mxu0  ;;  %v284_v60 = vpop.f32.mrf.mxu1 }
  0xf2   :  { %v338_v61 = vsel %vm306_vm6, %v250_v51, %v322_v57  ;;  %v346_v62 = vsel %vm314_vm7, %v282_v52, %v330_v58  ;;  %v253_v63 = vadd.f32 %v662_v26, %v252_v59  ;;  %v285_v0 = vadd.f32 %v662_v26, %v284_v60 }
  0xf3   :  { %v489_v1 = vpack.c.bf16 %v338_v61, %v338_v61  ;;  %v497_v2 = vpack.c.bf16 %v346_v62, %v346_v62  ;;  %v254_v3 = vpop.f32.mrf.mxu0  ;;  %v286_v4 = vpop.f32.mrf.mxu1 }
  0xf4   :  { %vm307_vm8 = vcmp.ge.f32.partialorder %v253_v63, 0.0  ;;  %v323_v5 = vmul.f32 0.1, %v253_v63  ;;  %vm315_vm9 = vcmp.ge.f32.partialorder %v285_v0, 0.0  ;;  %v331_v6 = vmul.f32 0.1, %v285_v0 }
  0xf5   :  { %419 = vst.msk [vmem:[%s747_s3 + $0x8] sm:$0xf] %vm416_vm3, %v489_v1  ;;  %427 = vst.msk [vmem:[%s747_s3 + $0x28] sm:$0xf] %vm416_vm3, %v497_v2  ;;  %v257_v7 = vpop.f32.mrf.mxu0  ;;  %v289_v8 = vpop.f32.mrf.mxu1 }
  0xf6   :  { %v339_v9 = vsel %vm307_vm8, %v253_v63, %v323_v5  ;;  %v347_v10 = vsel %vm315_vm9, %v285_v0, %v331_v6  ;;  %v258_v11 = vadd.f32 %v662_v26, %v257_v7  ;;  %v290_v12 = vadd.f32 %v662_v26, %v289_v8 }
  0xf7   :  { %v490_v13 = vpack.c.bf16 %v339_v9, %v339_v9  ;;  %v498_v14 = vpack.c.bf16 %v347_v10, %v347_v10  ;;  %v259_v15 = vpop.f32.mrf.mxu0  ;;  %v291_v16 = vpop.f32.mrf.mxu1 }
  0xf8   :  { %vm308_vm10 = vcmp.ge.f32.partialorder %v258_v11, 0.0  ;;  %v324_v17 = vmul.f32 0.1, %v258_v11  ;;  %vm316_vm11 = vcmp.ge.f32.partialorder %v290_v12, 0.0  ;;  %v332_v18 = vmul.f32 0.1, %v290_v12 }
  0xf9   :  { %420 = vst.msk [vmem:[%s747_s3 + $0xc] sm:$0xf] %vm416_vm3, %v490_v13  ;;  %428 = vst.msk [vmem:[%s747_s3 + $0x2c] sm:$0xf] %vm416_vm3, %v498_v14  ;;  %v260_v19 = vpop.f32.mrf.mxu0  ;;  %v292_v20 = vpop.f32.mrf.mxu1 }
  0xfa   :  { %v340_v21 = vsel %vm308_vm10, %v258_v11, %v324_v17  ;;  %v348_v22 = vsel %vm316_vm11, %v290_v12, %v332_v18  ;;  %v261_v23 = vadd.f32 %v662_v26, %v260_v19  ;;  %v293_v24 = vadd.f32 %v662_v26, %v292_v20 }
  0xfb   :  { %v491_v25 = vpack.c.bf16 %v340_v21, %v340_v21  ;;  %v499_v27 = vpack.c.bf16 %v348_v22, %v348_v22  ;;  %v262_v28 = vpop.f32.mrf.mxu0  ;;  %v294_v29 = vpop.f32.mrf.mxu1 }
  0xfc   :  { %vm309_vm12 = vcmp.ge.f32.partialorder %v261_v23, 0.0  ;;  %v325_v30 = vmul.f32 0.1, %v261_v23  ;;  %vm317_vm13 = vcmp.ge.f32.partialorder %v293_v24, 0.0  ;;  %v333_v31 = vmul.f32 0.1, %v293_v24 }
  0xfd   :  { %421 = vst.msk [vmem:[%s747_s3 + $0x10] sm:$0xf] %vm416_vm3, %v491_v25  ;;  %429 = vst.msk [vmem:[%s747_s3 + $0x30] sm:$0xf] %vm416_vm3, %v499_v27  ;;  %v265_v32 = vpop.f32.mrf.mxu0  ;;  %v297_v33 = vpop.f32.mrf.mxu1 }
  0xfe   :  { %v341_v34 = vsel %vm309_vm12, %v261_v23, %v325_v30  ;;  %v349_v35 = vsel %vm317_vm13, %v293_v24, %v333_v31  ;;  %v266_v36 = vadd.f32 %v662_v26, %v265_v32  ;;  %v298_v37 = vadd.f32 %v662_v26, %v297_v33 }
  0xff   :  { %v492_v38 = vpack.c.bf16 %v341_v34, %v341_v34  ;;  %v500_v39 = vpack.c.bf16 %v349_v35, %v349_v35  ;;  %v267_v40 = vpop.f32.mrf.mxu0  ;;  %v299_v41 = vpop.f32.mrf.mxu1 }
 0x100   :  { %vm310_vm14 = vcmp.ge.f32.partialorder %v266_v36, 0.0  ;;  %v326_v42 = vmul.f32 0.1, %v266_v36  ;;  %vm318_vm15 = vcmp.ge.f32.partialorder %v298_v37, 0.0  ;;  %v334_v43 = vmul.f32 0.1, %v298_v37 }
 0x101   :  { %422 = vst.msk [vmem:[%s747_s3 + $0x14] sm:$0xf] %vm416_vm3, %v492_v38  ;;  %430 = vst.msk [vmem:[%s747_s3 + $0x34] sm:$0xf] %vm416_vm3, %v500_v39  ;;  %v268_v44 = vpop.f32.mrf.mxu0  ;;  %v300_v45 = vpop.f32.mrf.mxu1 }
 0x102   :  { %v342_v46 = vsel %vm310_vm14, %v266_v36, %v326_v42  ;;  %v350_v47 = vsel %vm318_vm15, %v298_v37, %v334_v43  ;;  %v269_v48 = vadd.f32 %v662_v26, %v268_v44  ;;  %v301_v49 = vadd.f32 %v662_v26, %v300_v45 }
 0x103   :  { %v493_v50 = vpack.c.bf16 %v342_v46, %v342_v46  ;;  %v501_v51 = vpack.c.bf16 %v350_v47, %v350_v47  ;;  %v270_v52 = vpop.f32.mrf.mxu0  ;;  %v302_v53 = vpop.f32.mrf.mxu1 }
 0x104   :  { %vm311_vm0 = vcmp.ge.f32.partialorder %v269_v48, 0.0  ;;  %v327_v54 = vmul.f32 0.1, %v269_v48  ;;  %vm319_vm1 = vcmp.ge.f32.partialorder %v301_v49, 0.0  ;;  %v335_v55 = vmul.f32 0.1, %v301_v49 }
 0x105   :  { %423 = vst.msk [vmem:[%s747_s3 + $0x18] sm:$0xf] %vm416_vm3, %v493_v50  ;;  %431 = vst.msk [vmem:[%s747_s3 + $0x38] sm:$0xf] %vm416_vm3, %v501_v51 }
 0x106   :  { %v343_v56 = vsel %vm311_vm0, %v269_v48, %v327_v54  ;;  %v351_v26 = vsel %vm319_vm1, %v301_v49, %v335_v55 }
 0x107   :  { %v494_v57 = vpack.c.bf16 %v343_v56, %v343_v56  ;;  %v502_v58 = vpack.c.bf16 %v351_v26, %v351_v26 }
 0x109   :  { %424 = vst.msk [vmem:[%s747_s3 + $0x1c] sm:$0xf] %vm416_vm3, %v494_v57  ;;  %432 = vst.msk [vmem:[%s747_s3 + $0x3c] sm:$0xf] %vm416_vm3, %v502_v58 }

// kernel: _lambda_.24
= control target key start
LH: loop header
LB: loop body
LE: loop exit
PB: predicated region body
PF: predicated region fallthrough
CT: control target
= control target key end

     0   :  { %s375_s6 = smov 0   ;;  %s419_s0 = inlined_call_operand.vmem [shape: bf16[8,2,4,2,16], index: 0, kind: input, shape index: {}]   ;;  %s420_s1 = inlined_call_operand.vmem [shape: bf16[8,4,16], index: 1, kind: output, shape index: {}]  }
   0x1 LB: > { %s338_s7 = sadd.s32 4294967295, %s362_s6   ;;  %p342_p0 = scmp.ge.s32.totalorder %s362_s6, 1  ;;  %s362_s6 = sphi %s375_s6, %s11_s6  }
   0x2   : > { %p86_p1 = scmp.lt.s32.totalorder %s362_s6, 9 }
   0x4   : > { %p87_p2 = pnand %p342_p0, %p86_p1 }
   0x5   : > { %p104_p3 = scmp.lt.s32.totalorder (!%p87_p2), %s338_s7, 7 }
   0x6   : > { %90 = sbr.rel (%p87_p2) target bundleno = 55 (0x37), region = 24 }
   0xb   : > { %v209_v0 = vlaneseq  ;;  %s422_s7 = smov (!%p104_p3, %s338_s7), 7  ;;  %v364_v1 = vmov 1983009808   ;;  %vm128_vm0 = vcmask 123904   ;;  %vm185_vm1 = vcmask 130048  }
   0xc   : > { %s343_s8 = sshll.u32 %s422_s7, 3  ;;  %v386_v2 = vunpack.c.l.s4 %v364_v1  ;;  %vm267_vm2 = vcmask 1041409   ;;  %vm270_vm3 = vcmask 1042434   ;;  %vm273_vm4 = vcmask 1043459   ;;  %s344_s12 = sshll.u32 %s422_s7, 1 }
   0xd   : > { %s107_s11 = scalar_lea.vmem %s419_s0, %s343_s8  ;;  %v391_v3 = vshrl.u32 %v209_v0, 7  ;;  %s111_s15 = scalar_lea.vmem %s420_s1, %s344_s12 }
   0xe   : > { %v112_v4 = vld [vmem:[%s107_s11] sm:$0x1]  ;;  %v113_v5 = vld [vmem:[%s107_s11 + $0x1] sm:$0x1]  ;;  %v114_v6 = vld [vmem:[%s107_s11 + $0x2] sm:$0x1]  ;;  %v208_v18 = vunpack.c.0.s8 %v386_v2 }
   0xf   : > { %v115_v7 = vld [vmem:[%s107_s11 + $0x3] sm:$0x1]  ;;  %v116_v8 = vld [vmem:[%s107_s11 + $0x4] sm:$0x1]  ;;  %v117_v9 = vld [vmem:[%s107_s11 + $0x5] sm:$0x1]  ;;  %v120_v10 = vunpack.c.l.bf16 %v112_v4  ;;  %v121_v11 = vunpack.c.l.bf16 %v113_v5  ;;  %v122_v12 = vunpack.c.l.bf16 %v114_v6 }
  0x10   : > { %v118_v13 = vld [vmem:[%s107_s11 + $0x6] sm:$0x1]  ;;  %v119_v14 = vld [vmem:[%s107_s11 + $0x7] sm:$0x1]  ;;  %v123_v15 = vunpack.c.l.bf16 %v115_v7  ;;  %v124_v16 = vunpack.c.l.bf16 %v116_v8  ;;  %v125_v17 = vunpack.c.l.bf16 %v117_v9 }
  0x11   : > { %v126_v19 = vunpack.c.l.bf16 %v118_v13  ;;  %v127_v20 = vunpack.c.l.bf16 %v119_v14  ;;  %v129_v21 = vsel %vm128_vm0, %v120_v10, -inf  ;;  %v136_v22 = vsel %vm128_vm0, %v121_v11, -inf }
  0x12   : > { %v130_v23 = vrot.slane %v129_v21, 4  ;;  %v137_v24 = vrot.slane %v136_v22, 4  ;;  %v143_v25 = vsel %vm128_vm0, %v122_v12, -inf  ;;  %v150_v26 = vsel %vm128_vm0, %v123_v15, -inf }
  0x13   : > { %v144_v27 = vrot.slane %v143_v25, 4  ;;  %v151_v28 = vrot.slane %v150_v26, 4  ;;  %v157_v29 = vsel %vm128_vm0, %v124_v16, -inf  ;;  %v164_v30 = vsel %vm128_vm0, %v125_v17, -inf }
  0x14   : > { %v131_v31 = vmax.f32 %v129_v21, %v130_v23  ;;  %v138_v32 = vmax.f32 %v136_v22, %v137_v24  ;;  %v158_v33 = vrot.slane %v157_v29, 4  ;;  %v165_v34 = vrot.slane %v164_v30, 4 }
  0x15   : > { %v145_v35 = vmax.f32 %v143_v25, %v144_v27  ;;  %v152_v36 = vmax.f32 %v150_v26, %v151_v28  ;;  %v171_v37 = vsel %vm128_vm0, %v126_v19, -inf  ;;  %v178_v38 = vsel %vm128_vm0, %v127_v20, -inf }
  0x16   : > { %v132_v39 = vrot.slane %v131_v31, 2  ;;  %v139_v40 = vrot.slane %v138_v32, 2  ;;  %v159_v41 = vmax.f32 %v157_v29, %v158_v33  ;;  %v166_v42 = vmax.f32 %v164_v30, %v165_v34 }
  0x17   : > { %v146_v43 = vrot.slane %v145_v35, 2  ;;  %v153_v44 = vrot.slane %v152_v36, 2  ;;  %v172_v45 = vrot.slane %v171_v37, 4  ;;  %v179_v46 = vrot.slane %v178_v38, 4 }
  0x18   : > { %v133_v47 = vmax.f32 %v131_v31, %v132_v39  ;;  %v140_v48 = vmax.f32 %v138_v32, %v139_v40  ;;  %v160_v49 = vrot.slane %v159_v41, 2  ;;  %v167_v50 = vrot.slane %v166_v42, 2 }
  0x19   : > { %v147_v51 = vmax.f32 %v145_v35, %v146_v43  ;;  %v154_v52 = vmax.f32 %v152_v36, %v153_v44  ;;  %v173_v53 = vmax.f32 %v171_v37, %v172_v45  ;;  %v180_v54 = vmax.f32 %v178_v38, %v179_v46 }
  0x1a   : > { %v134_v55 = vrot.slane %v133_v47, 1  ;;  %v141_v56 = vrot.slane %v140_v48, 1  ;;  %v161_v57 = vmax.f32 %v159_v41, %v160_v49  ;;  %v168_v58 = vmax.f32 %v166_v42, %v167_v50 }
  0x1b   : > { %v148_v59 = vrot.slane %v147_v51, 1  ;;  %v155_v60 = vrot.slane %v154_v52, 1  ;;  %v174_v61 = vrot.slane %v173_v53, 2  ;;  %v181_v62 = vrot.slane %v180_v54, 2 }
  0x1c   : > { %v135_v63 = vmax.f32 %v133_v47, %v134_v55  ;;  %v142_v0 = vmax.f32 %v140_v48, %v141_v56  ;;  %v162_v1 = vrot.slane %v161_v57, 1  ;;  %v169_v2 = vrot.slane %v168_v58, 1 }
  0x1d   : > { %v149_v4 = vmax.f32 %v147_v51, %v148_v59  ;;  %v156_v5 = vmax.f32 %v154_v52, %v155_v60  ;;  %v175_v6 = vmax.f32 %v173_v53, %v174_v61  ;;  %v182_v7 = vmax.f32 %v180_v54, %v181_v62 }
  0x1e   : > { %v163_v8 = vmax.f32 %v161_v57, %v162_v1  ;;  %v170_v9 = vmax.f32 %v168_v58, %v169_v2  ;;  %v186_v10 = vsel %vm185_vm1, %v135_v63, -inf  ;;  %v189_v11 = vsel %vm185_vm1, %v142_v0, -inf }
  0x1f   : > { %v176_v12 = vrot.slane %v175_v6, 1  ;;  %v183_v13 = vrot.slane %v182_v7, 1  ;;  %v211_v14 = vsub.s32 %v208_v18, %v391_v3  ;;  %v192_v17 = vsel %vm185_vm1, %v149_v4, -inf }
  0x20   : > { %v187_v15 = vsel %vm185_vm1, %v163_v8, -inf  ;;  %v190_v16 = vsel %vm185_vm1, %v170_v9, -inf  ;;  %v195_v19 = vsel %vm185_vm1, %v156_v5, -inf }
  0x21   : > { %v177_v20 = vmax.f32 %v175_v6, %v176_v12  ;;  %v184_v21 = vmax.f32 %v182_v7, %v183_v13  ;;  %v188_v22 = vmax.f32 %v186_v10, %v187_v15  ;;  %v191_v23 = vmax.f32 %v189_v11, %v190_v16 }
  0x23   : > { %v193_v24 = vsel %vm185_vm1, %v177_v20, -inf  ;;  %v196_v25 = vsel %vm185_vm1, %v184_v21, -inf  ;;  %v198_v26 = vpack.c.bf16 %v188_v22, %v188_v22  ;;  %v199_v27 = vpack.c.bf16 %v191_v23, %v191_v23 }
  0x24   : > { %v194_v28 = vmax.f32 %v192_v17, %v193_v24  ;;  %v197_v3 = vmax.f32 %v195_v19, %v196_v25 }
  0x25   : > { %v212_v18 = vrot.slane %v198_v26, %v211_v14  ;;  %v219_v29 = vrot.slane %v199_v27, %v211_v14 }
  0x26   : > { %v200_v30 = vpack.c.bf16 %v194_v28, %v194_v28  ;;  %v201_v31 = vpack.c.bf16 %v197_v3, %v197_v3 }
  0x27   : > { %v240_v32 = vrot.slane %v212_v18, %v211_v14  ;;  %v247_v33 = vrot.slane %v219_v29, %v211_v14 }
  0x28   : > { %v226_v34 = vrot.slane %v200_v30, %v211_v14  ;;  %v233_v35 = vrot.slane %v201_v31, %v211_v14 }
  0x29   : > { %v262_v36 = vunpack.c.l.b16 %v240_v32  ;;  %v263_v37 = vunpack.c.l.b16 %v247_v33 }
  0x2a   : > { %v254_v38 = vrot.slane %v226_v34, %v211_v14  ;;  %v261_v39 = vrot.slane %v233_v35, %v211_v14 }
  0x2b   : > { %v266_v40 = vrot.slane %v263_v37, 7 }
  0x2c   : > { %v264_v41 = vunpack.c.l.b16 %v254_v38  ;;  %v265_v42 = vunpack.c.l.b16 %v261_v39 }
  0x2d   : > { %v268_v43 = vsel %vm267_vm2, %v266_v40, %v262_v36 }
  0x2e   : > { %v269_v44 = vrot.slane %v264_v41, 6  ;;  %v272_v45 = vrot.slane %v265_v42, 5 }
  0x30   : > { %v271_v46 = vsel %vm270_vm3, %v269_v44, %v268_v43 }
  0x31   : > { %v274_v47 = vsel %vm273_vm4, %v272_v45, %v271_v46 }
  0x32   : > { %v275_v48 = vpack.c.b16 %v274_v47, %v274_v47 }
  0x34   : > { %v282_v49 = vrot.slane %v275_v48, %v211_v14 }
  0x36   : > { %284 = vst.msk [vmem:[%s111_s15] sm:$0x3] %vm128_vm0, %v282_v49 }
  0x37 PF: > { %s11_s6 = sadd.s32 1, %s362_s6  }
  0x38   : > { %p8_p4 = scmp.ge.s32.totalorder %s11_s6, 10  }
  0x3a   :  { %10 = sbr.rel (!%p8_p4) target bundleno = 1 (0x1), region = 54 }

// kernel: _lambda_.23
= control target key start
LH: loop header
LB: loop body
LE: loop exit
PB: predicated region body
PF: predicated region fallthrough
CT: control target
= control target key end

     0   :  { %v823_v0 = vmov 0   ;;  %vm191_vm0 = vcmask 130048   ;;  %vm402_vm1 = vcmask 1043456   ;;  %vm377_vm2 = vcmask 64512   ;;  %s1095_s1 = inlined_call_operand.vmem [shape: bf16[144,16], index: 1, kind: input, shape index: {}]   ;;  %s1096_s0 = inlined_call_operand.vmem [shape: bf16[128,144], index: 0, kind: input, shape index: {}]   ;;  %s1097_s3 = inlined_call_operand.vmem [shape: bf16[128,8], index: 3, kind: input, shape index: {}]   ;;  %s1098_s4 = inlined_call_operand.vmem [shape: bf16[8,16], index: 4, kind: input, shape index: {}]   ;;  %s1099_s5 = inlined_call_operand.vmem [shape: f32[1,16], index: 5, kind: input, shape index: {}, may-alias: {2,5}]   ;;  %s1100_s2 = inlined_call_operand.vmem [shape: f32[1,16], index: 2, kind: input, shape index: {}, may-alias: {2,5}]   ;;  %s1101_s6 = inlined_call_operand.vmem [shape: bf16[128,16], index: 6, kind: output, shape index: {}]  }
   0x1   :  { %216 = vmatprep.subr.bf16.mxu0 %v823_v0  ;;  %762 = vmatprep.subr.bf16.mxu1 %v823_v0  ;;  %v782_v1 = vld [vmem:[%s1095_s1 + $0x38] sm:$0xff]   ;;  %v783_v2 = vld [vmem:[%s1095_s1 + $0x30] sm:$0xff]   ;;  %v784_v3 = vld [vmem:[%s1095_s1 + $0x28] sm:$0xff]   ;;  %vm631_vm4 = vcmask 125952  }
   0x2   :  { %217 = vmatpush1.bf16.msra.mxu0 %v782_v1  ;;  %771 = vmatpush1.bf16.msra.mxu1 %v782_v1  ;;  %v785_v4 = vld [vmem:[%s1095_s1 + $0x20] sm:$0xff]   ;;  %v786_v7 = vld [vmem:[%s1095_s1 + $0x18] sm:$0xff]   ;;  %v787_v8 = vld [vmem:[%s1095_s1 + $0x10] sm:$0xff]  }
   0x3   :  { %218 = vmatprep.subr.bf16.mxu0 %v823_v0  ;;  %763 = vmatprep.subr.bf16.mxu1 %v823_v0  ;;  %v793_v5 = vld [vmem:[%s1096_s0 + $0x4] ss:$8 sps:$4 sm:$0xff]   ;;  %v329_v12 = vld [vmem:[%s1098_s4] sm:$0xf]  ;;  %v797_v15 = vld [vmem:[%s1096_s0 + $0x14] ss:$8 sps:$4 sm:$0xff]  }
   0x4   :  { %v796_v6 = vld [vmem:[%s1096_s0 + $0x64] ss:$8 sps:$4 sm:$0xff]   ;;  %678 = vmatprep.mubr.msk.bf16.mxu0 %vm191_vm0, %v793_v5  ;;  %v791_v13 = vld [vmem:[%s1096_s0] ss:$8 sps:$4 sm:$0xff]   ;;  %v404_v16 = vsel %vm402_vm1, %v329_v12, 0  ;;  %v810_v25 = vld [vmem:[%s1097_s3 + $0x10] sm:$0xff]  }
   0x5   :  { %684 = vmatprep.mubr.msk.bf16.mxu1 %vm191_vm0, %v796_v6  ;;  %v788_v9 = vld [vmem:[%s1095_s1 + $0x8] sm:$0xff]   ;;  %v789_v10 = vld [vmem:[%s1095_s1] sm:$0xff]   ;;  %v799_v17 = vld [vmem:[%s1096_s0 + $0x74] ss:$8 sps:$4 sm:$0xff]  }
   0x6   :  { %219 = vmatpush1.bf16.msra.mxu0 %v783_v2  ;;  %772 = vmatpush1.bf16.msra.mxu1 %v783_v2  ;;  %v790_v11 = vld [vmem:[%s1095_s1 + $0x40] sm:$0xff]   ;;  %v801_v18 = vld [vmem:[%s1096_s0 + $0x10] ss:$8 sps:$4 sm:$0xff]   ;;  %v807_v23 = vld [vmem:[%s1097_s3 + $0x8] sm:$0xff]  }
   0x7   :  { %220 = vmatprep.subr.bf16.mxu0 %v823_v0  ;;  %764 = vmatprep.subr.bf16.mxu1 %v823_v0  ;;  %v794_v14 = vld [vmem:[%s1096_s0 + $0x60] ss:$8 sps:$4 sm:$0xff]   ;;  %v802_v19 = vld [vmem:[%s1096_s0 + $0x70] ss:$8 sps:$4 sm:$0xff]   ;;  %v803_v20 = vld [vmem:[%s1096_s0 + $0x24] ss:$8 sps:$4 sm:$0xff]  }
   0x8   :  { %v805_v21 = vld [vmem:[%s1097_s3] sm:$0xff]   ;;  %v808_v24 = vld [vmem:[%s1096_s0 + $0x34] ss:$8 sps:$4 sm:$0xff]   ;;  %v811_v26 = vld [vmem:[%s1096_s0 + $0x30] ss:$8 sps:$4 sm:$0xff]  }
   0x9   :  { %v806_v22 = vld [vmem:[%s1096_s0 + $0x20] ss:$8 sps:$4 sm:$0xff]   ;;  %v812_v27 = vld [vmem:[%s1097_s3 + $0x18] sm:$0xff]   ;;  %v813_v28 = vld [vmem:[%s1096_s0 + $0x44] ss:$8 sps:$4 sm:$0xff]  }
   0xa   :  { %221 = vmatpush1.bf16.msra.mxu0 %v784_v3  ;;  %773 = vmatpush1.bf16.msra.mxu1 %v784_v3  ;;  %v815_v29 = vld [vmem:[%s1097_s3 + $0x20] sm:$0xff]   ;;  %v817_v31 = vld [vmem:[%s1097_s3 + $0x28] sm:$0xff]   ;;  %v818_v32 = vld [vmem:[%s1096_s0 + $0x54] ss:$8 sps:$4 sm:$0xff]  }
   0xb   :  { %222 = vmatprep.subr.bf16.mxu0 %v823_v0  ;;  %765 = vmatprep.subr.bf16.mxu1 %v823_v0  ;;  %v816_v30 = vld [vmem:[%s1096_s0 + $0x40] ss:$8 sps:$4 sm:$0xff]   ;;  %v820_v33 = vld [vmem:[%s1097_s3 + $0x30] sm:$0xff]   ;;  %v822_v35 = vld [vmem:[%s1097_s3 + $0x38] sm:$0xff]  }
   0xc   :  { %v821_v34 = vld [vmem:[%s1096_s0 + $0x50] ss:$8 sps:$4 sm:$0xff]   ;;  %v988_v52 = vld [vmem:[%s1099_s5] ss:$0 sm:$0xff] }
   0xd   :  { %v993_v53 = vld [vmem:[%s1100_s2] ss:$0 sm:$0xff] }
   0xe   :  { %223 = vmatpush1.bf16.msra.mxu0 %v785_v4  ;;  %774 = vmatpush1.bf16.msra.mxu1 %v785_v4 }
   0xf   :  { %224 = vmatprep.subr.bf16.mxu0 %v823_v0  ;;  %766 = vmatprep.subr.bf16.mxu1 %v823_v0 }
  0x12   :  { %225 = vmatpush1.bf16.msra.mxu0 %v786_v7  ;;  %775 = vmatpush1.bf16.msra.mxu1 %v786_v7 }
  0x13   :  { %226 = vmatprep.subr.bf16.mxu0 %v823_v0  ;;  %767 = vmatprep.subr.bf16.mxu1 %v823_v0 }
  0x16   :  { %227 = vmatpush1.bf16.msra.mxu0 %v787_v8  ;;  %776 = vmatpush1.bf16.msra.mxu1 %v787_v8 }
  0x17   :  { %228 = vmatprep.subr.bf16.mxu0 %v823_v0  ;;  %768 = vmatprep.subr.bf16.mxu1 %v823_v0 }
  0x1a   :  { %229 = vmatpush1.bf16.msra.mxu0 %v788_v9  ;;  %777 = vmatpush1.bf16.msra.mxu1 %v788_v9 }
  0x1b   :  { %230 = vmatprep.subr.bf16.mxu0 %v823_v0  ;;  %769 = vmatprep.subr.bf16.mxu1 %v823_v0 }
  0x1e   :  { %231 = vmatpush1.bf16.msra.mxu0 %v789_v10  ;;  %778 = vmatpush1.bf16.msra.mxu1 %v789_v10 }
  0x1f   :  { %246 = vmatprep.subr.bf16.mxu0 %v823_v0  ;;  %770 = vmatprep.subr.bf16.mxu1 %v823_v0 }
  0x22   :  { %247 = vmatpush2.bf16.msra.mxu0 %v790_v11  ;;  %779 = vmatpush2.bf16.msra.mxu1 %v790_v11 }
  0x23   :  { %780 = vmatprep.subr.msk.bf16.mxu1 %vm402_vm1, %v329_v12 }
  0x25   :  { %249 = vmatmul.mubr.bf16.vlgmr.msra.gmra.mxu0 %v791_v13  ;;  %297 = vmatmul.mubr.bf16.vlgmr.msra.gmra.mxu1 %v794_v14 }
  0x26   :  { %745 = vmatpush3.bf16.msra.mxu1 %v404_v16  ;;  %679 = vmatprep.mubr.msk.bf16.mxu0 %vm191_vm0, %v797_v15 }
  0x27   :  { %685 = vmatprep.mubr.msk.bf16.mxu1 %vm191_vm0, %v799_v17 }
  0x2d   :  { %257 = vmatmul.mubr.bf16.gmra.mxu0 %v801_v18  ;;  %305 = vmatmul.mubr.bf16.gmra.mxu1 %v802_v19 }
  0x2e   :  { %680 = vmatprep.mubr.msk.bf16.mxu0 %vm191_vm0, %v803_v20  ;;  %746 = vmatprep.mubr.msk.bf16.mxu1 %vm377_vm2, %v805_v21 }
  0x35   :  { %265 = vmatmul.mubr.bf16.gmra.mxu0 %v806_v22  ;;  %747 = vmatmul.mubr.msk.bf16.vlgmr.msra.gmra.mxu1 %vm377_vm2, %v807_v23 }
  0x36   :  { %681 = vmatprep.mubr.msk.bf16.mxu0 %vm191_vm0, %v808_v24  ;;  %750 = vmatprep.mubr.msk.bf16.mxu1 %vm377_vm2, %v810_v25 }
  0x3d   :  { %273 = vmatmul.mubr.bf16.gmra.mxu0 %v811_v26  ;;  %751 = vmatmul.mubr.msk.bf16.gmra.mxu1 %vm377_vm2, %v812_v27 }
  0x3e   :  { %682 = vmatprep.mubr.msk.bf16.mxu0 %vm191_vm0, %v813_v28  ;;  %754 = vmatprep.mubr.msk.bf16.mxu1 %vm377_vm2, %v815_v29 }
  0x45   :  { %281 = vmatmul.mubr.bf16.gmra.mxu0 %v816_v30  ;;  %755 = vmatmul.mubr.msk.bf16.gmra.mxu1 %vm377_vm2, %v817_v31 }
  0x46   :  { %683 = vmatprep.mubr.msk.bf16.mxu0 %vm191_vm0, %v818_v32  ;;  %758 = vmatprep.mubr.msk.bf16.mxu1 %vm377_vm2, %v820_v33 }
  0x4d   :  { %289 = vmatmul.mubr.bf16.gmra.mxu0 %v821_v34  ;;  %759 = vmatmul.mubr.msk.bf16.gmra.mxu1 %vm377_vm2, %v822_v35 }
  0xe5   :  { %v250_v36 = vpop.f32.mrf.mxu0  ;;  %v977_v37 = vpop.f32.mrf.mxu1 }
  0xe6   :  { %v251_v60 = vadd.f32 %v993_v53, %v250_v36 }
  0xe7   :  { %v252_v38 = vpop.f32.mrf.mxu0  ;;  %v300_v39 = vpop.f32.mrf.mxu1 }
  0xe9   :  { %v253_v40 = vpop.f32.mrf.mxu0  ;;  %v979_v41 = vpop.f32.mrf.mxu1 }
  0xea   :  { %v254_v3 = vadd.f32 %v993_v53, %v253_v40 }
  0xeb   :  { %v255_v42 = vpop.f32.mrf.mxu0  ;;  %v303_v43 = vpop.f32.mrf.mxu1 }
  0xed   :  { %v258_v44 = vpop.f32.mrf.mxu0  ;;  %v981_v45 = vpop.f32.mrf.mxu1 }
  0xee   :  { %v259_v56 = vadd.f32 %v993_v53, %v258_v44 }
  0xef   :  { %v260_v46 = vpop.f32.mrf.mxu0  ;;  %v308_v47 = vpop.f32.mrf.mxu1 }
  0xf1   :  { %v261_v48 = vpop.f32.mrf.mxu0  ;;  %v983_v49 = vpop.f32.mrf.mxu1 }
  0xf2   :  { %v262_v4 = vadd.f32 %v993_v53, %v261_v48 }
  0xf3   :  { %v263_v50 = vpop.f32.mrf.mxu0  ;;  %v311_v51 = vpop.f32.mrf.mxu1 }
  0xf5   :  { %v266_v54 = vpop.f32.mrf.mxu0  ;;  %v748_v55 = vpop.f32.mrf.mxu1 }
  0xf6   :  { %v449_v57 = vadd.f32 %v748_v55, %v988_v52  ;;  %v267_v26 = vadd.f32 %v993_v53, %v266_v54 }
  0xf7   :  { %v268_v58 = vpop.f32.mrf.mxu0  ;;  %v440_v59 = vpop.f32.mrf.mxu1 }
  0xf8   :  { %v505_v61 = vadd.f32 %v449_v57, %v259_v56  ;;  %v441_v62 = vadd.f32 %v988_v52, %v440_v59 }
  0xf9   :  { %v269_v63 = vpop.f32.mrf.mxu0  ;;  %v749_v0 = vpop.f32.mrf.mxu1 }
  0xfa   :  { %vm521_vm3 = vcmp.ge.f32.partialorder %v505_v61, 0.0  ;;  %v537_v1 = vmul.f32 0.1, %v505_v61  ;;  %v503_v2 = vadd.f32 %v441_v62, %v251_v60  ;;  %v452_v5 = vadd.f32 %v749_v0, %v988_v52 }
  0xfb   :  { %v271_v6 = vpop.f32.mrf.mxu0  ;;  %v443_v7 = vpop.f32.mrf.mxu1  ;;  %v270_v40 = vadd.f32 %v993_v53, %v269_v63 }
  0xfc   :  { %v553_v8 = vsel %vm521_vm3, %v505_v61, %v537_v1  ;;  %vm519_vm5 = vcmp.ge.f32.partialorder %v503_v2, 0.0  ;;  %v535_v9 = vmul.f32 0.1, %v503_v2  ;;  %v444_v10 = vadd.f32 %v988_v52, %v443_v7 }
  0xfd   :  { %v721_v11 = vpack.c.bf16 %v553_v8, %v553_v8  ;;  %v506_v12 = vadd.f32 %v452_v5, %v262_v4  ;;  %v274_v13 = vpop.f32.mrf.mxu0  ;;  %v752_v14 = vpop.f32.mrf.mxu1 }
  0xfe   :  { %v551_v15 = vsel %vm519_vm5, %v503_v2, %v535_v9  ;;  %v504_v16 = vadd.f32 %v444_v10, %v254_v3  ;;  %v275_v17 = vadd.f32 %v993_v53, %v274_v13  ;;  %v465_v18 = vadd.f32 %v752_v14, %v988_v52 }
  0xff   :  { %634 = vst.msk [vmem:[%s1101_s6 + $0x8] sm:$0xf] %vm631_vm4, %v721_v11  ;;  %v719_v19 = vpack.c.bf16 %v551_v15, %v551_v15  ;;  %vm522_vm6 = vcmp.ge.f32.partialorder %v506_v12, 0.0  ;;  %v538_v20 = vmul.f32 0.1, %v506_v12  ;;  %v276_v21 = vpop.f32.mrf.mxu0  ;;  %v456_v22 = vpop.f32.mrf.mxu1  ;;  %v307_v10 = vadd.f32 %v993_v53, %v981_v45 }
 0x100   :  { %vm520_vm7 = vcmp.ge.f32.partialorder %v504_v16, 0.0  ;;  %v536_v23 = vmul.f32 0.1, %v504_v16  ;;  %v509_v24 = vadd.f32 %v465_v18, %v275_v17  ;;  %v457_v25 = vadd.f32 %v988_v52, %v456_v22 }
 0x101   :  { %632 = vst.msk [vmem:[%s1101_s6] sm:$0xf] %vm631_vm4, %v719_v19  ;;  %v554_v27 = vsel %vm522_vm6, %v506_v12, %v538_v20  ;;  %v277_v28 = vpop.f32.mrf.mxu0  ;;  %v753_v29 = vpop.f32.mrf.mxu1 }
 0x102   :  { %v722_v30 = vpack.c.bf16 %v554_v27, %v554_v27  ;;  %v552_v31 = vsel %vm520_vm7, %v504_v16, %v536_v23  ;;  %vm525_vm8 = vcmp.ge.f32.partialorder %v509_v24, 0.0  ;;  %v541_v32 = vmul.f32 0.1, %v509_v24 }
 0x103   :  { %v720_v33 = vpack.c.bf16 %v552_v31, %v552_v31  ;;  %v507_v34 = vadd.f32 %v457_v25, %v267_v26  ;;  %v278_v35 = vadd.f32 %v993_v53, %v277_v28  ;;  %v468_v36 = vadd.f32 %v753_v29, %v988_v52  ;;  %v279_v38 = vpop.f32.mrf.mxu0  ;;  %v459_v39 = vpop.f32.mrf.mxu1 }
 0x104   :  { %635 = vst.msk [vmem:[%s1101_s6 + $0xc] sm:$0xf] %vm631_vm4, %v722_v30  ;;  %v557_v42 = vsel %vm525_vm8, %v509_v24, %v541_v32  ;;  %v460_v43 = vadd.f32 %v988_v52, %v459_v39  ;;  %v299_v23 = vadd.f32 %v993_v53, %v977_v37  ;;  %v302_v24 = vadd.f32 %v993_v53, %v979_v41 }
 0x105   :  { %633 = vst.msk [vmem:[%s1101_s6 + $0x4] sm:$0xf] %vm631_vm4, %v720_v33  ;;  %v725_v44 = vpack.c.bf16 %v557_v42, %v557_v42  ;;  %vm523_vm9 = vcmp.ge.f32.partialorder %v507_v34, 0.0  ;;  %v539_v46 = vmul.f32 0.1, %v507_v34  ;;  %v510_v47 = vadd.f32 %v468_v36, %v278_v35  ;;  %v282_v48 = vpop.f32.mrf.mxu0  ;;  %v756_v50 = vpop.f32.mrf.mxu1 }
 0x106   :  { %v508_v51 = vadd.f32 %v460_v43, %v270_v40  ;;  %v283_v54 = vadd.f32 %v993_v53, %v282_v48  ;;  %v481_v11 = vadd.f32 %v756_v50, %v988_v52  ;;  %v310_v25 = vadd.f32 %v993_v53, %v983_v49 }
 0x107   :  { %638 = vst.msk [vmem:[%s1101_s6 + $0x18] sm:$0xf] %vm631_vm4, %v725_v44  ;;  %v555_v55 = vsel %vm523_vm9, %v507_v34, %v539_v46  ;;  %vm526_vm10 = vcmp.ge.f32.partialorder %v510_v47, 0.0  ;;  %v542_v56 = vmul.f32 0.1, %v510_v47  ;;  %v284_v57 = vpop.f32.mrf.mxu0  ;;  %v472_v58 = vpop.f32.mrf.mxu1 }
 0x108   :  { %v723_v59 = vpack.c.bf16 %v555_v55, %v555_v55  ;;  %vm524_vm11 = vcmp.ge.f32.partialorder %v508_v51, 0.0  ;;  %v540_v60 = vmul.f32 0.1, %v508_v51  ;;  %v473_v61 = vadd.f32 %v988_v52, %v472_v58 }
 0x109   :  { %v558_v62 = vsel %vm526_vm10, %v510_v47, %v542_v56  ;;  %v285_v63 = vpop.f32.mrf.mxu0  ;;  %v757_v0 = vpop.f32.mrf.mxu1 }
 0x10a   :  { %636 = vst.msk [vmem:[%s1101_s6 + $0x10] sm:$0xf] %vm631_vm4, %v723_v59  ;;  %v726_v1 = vpack.c.bf16 %v558_v62, %v558_v62  ;;  %v556_v2 = vsel %vm524_vm11, %v508_v51, %v540_v60  ;;  %v511_v3 = vadd.f32 %v473_v61, %v283_v54  ;;  %v286_v8 = vadd.f32 %v993_v53, %v285_v63 }
 0x10b   :  { %v724_v4 = vpack.c.bf16 %v556_v2, %v556_v2  ;;  %v287_v5 = vpop.f32.mrf.mxu0  ;;  %v475_v6 = vpop.f32.mrf.mxu1  ;;  %v484_v34 = vadd.f32 %v757_v0, %v988_v52 }
 0x10c   :  { %639 = vst.msk [vmem:[%s1101_s6 + $0x1c] sm:$0xf] %vm631_vm4, %v726_v1  ;;  %vm527_vm12 = vcmp.ge.f32.partialorder %v511_v3, 0.0  ;;  %v543_v7 = vmul.f32 0.1, %v511_v3  ;;  %v476_v9 = vadd.f32 %v988_v52, %v475_v6 }
 0x10d   :  { %637 = vst.msk [vmem:[%s1101_s6 + $0x14] sm:$0xf] %vm631_vm4, %v724_v4  ;;  %v290_v12 = vpop.f32.mrf.mxu0  ;;  %v760_v13 = vpop.f32.mrf.mxu1 }
 0x10e   :  { %v559_v14 = vsel %vm527_vm12, %v511_v3, %v543_v7  ;;  %v512_v15 = vadd.f32 %v476_v9, %v286_v8  ;;  %v291_v16 = vadd.f32 %v993_v53, %v290_v12  ;;  %v497_v17 = vadd.f32 %v760_v13, %v988_v52 }
 0x10f   :  { %v727_v18 = vpack.c.bf16 %v559_v14, %v559_v14  ;;  %v292_v19 = vpop.f32.mrf.mxu0  ;;  %v488_v20 = vpop.f32.mrf.mxu1 }
 0x110   :  { %vm528_vm13 = vcmp.ge.f32.partialorder %v512_v15, 0.0  ;;  %v544_v45 = vmul.f32 0.1, %v512_v15  ;;  %v513_v21 = vadd.f32 %v481_v11, %v291_v16  ;;  %v517_v22 = vadd.f32 %v497_v17, %v307_v10 }
 0x111   :  { %640 = vst.msk [vmem:[%s1101_s6 + $0x20] sm:$0xf] %vm631_vm4, %v727_v18  ;;  %v489_v26 = vadd.f32 %v988_v52, %v488_v20  ;;  %v293_v27 = vpop.f32.mrf.mxu0  ;;  %v761_v28 = vpop.f32.mrf.mxu1 }
 0x112   :  { %v560_v29 = vsel %vm528_vm13, %v512_v15, %v544_v45  ;;  %vm529_vm14 = vcmp.ge.f32.partialorder %v513_v21, 0.0  ;;  %v545_v30 = vmul.f32 0.1, %v513_v21  ;;  %vm533_vm15 = vcmp.ge.f32.partialorder %v517_v22, 0.0 }
 0x113   :  { %v728_v37 = vpack.c.bf16 %v560_v29, %v560_v29  ;;  %v549_v31 = vmul.f32 0.1, %v517_v22  ;;  %v515_v32 = vadd.f32 %v489_v26, %v299_v23  ;;  %v294_v41 = vadd.f32 %v993_v53, %v293_v27  ;;  %v295_v33 = vpop.f32.mrf.mxu0  ;;  %v491_v49 = vpop.f32.mrf.mxu1 }
 0x114   :  { %v561_v35 = vsel %vm529_vm14, %v513_v21, %v545_v30  ;;  %v500_v36 = vadd.f32 %v761_v28, %v988_v52  ;;  %v492_v38 = vadd.f32 %v988_v52, %v491_v49 }
 0x115   :  { %641 = vst.msk [vmem:[%s1101_s6 + $0x24] sm:$0xf] %vm631_vm4, %v728_v37  ;;  %v729_v39 = vpack.c.bf16 %v561_v35, %v561_v35  ;;  %v565_v40 = vsel %vm533_vm15, %v517_v22, %v549_v31  ;;  %vm531_vm0 = vcmp.ge.f32.partialorder %v515_v32, 0.0  ;;  %v547_v42 = vmul.f32 0.1, %v515_v32 }
 0x116   :  { %v733_v43 = vpack.c.bf16 %v565_v40, %v565_v40  ;;  %v514_v53 = vadd.f32 %v484_v34, %v294_v41  ;;  %v518_v44 = vadd.f32 %v500_v36, %v310_v25  ;;  %v516_v46 = vadd.f32 %v492_v38, %v302_v24 }
 0x117   :  { %642 = vst.msk [vmem:[%s1101_s6 + $0x28] sm:$0xf] %vm631_vm4, %v729_v39  ;;  %v563_v47 = vsel %vm531_vm0, %v515_v32, %v547_v42 }
 0x118   :  { %646 = vst.msk [vmem:[%s1101_s6 + $0x38] sm:$0xf] %vm631_vm4, %v733_v43  ;;  %v731_v52 = vpack.c.bf16 %v563_v47, %v563_v47  ;;  %vm530_vm1 = vcmp.ge.f32.partialorder %v514_v53, 0.0  ;;  %v546_v48 = vmul.f32 0.1, %v514_v53  ;;  %vm534_vm2 = vcmp.ge.f32.partialorder %v518_v44, 0.0 }
 0x119   :  { %v550_v50 = vmul.f32 0.1, %v518_v44  ;;  %vm532_vm3 = vcmp.ge.f32.partialorder %v516_v46, 0.0  ;;  %v548_v51 = vmul.f32 0.1, %v516_v46 }
 0x11a   :  { %644 = vst.msk [vmem:[%s1101_s6 + $0x30] sm:$0xf] %vm631_vm4, %v731_v52  ;;  %v562_v54 = vsel %vm530_vm1, %v514_v53, %v546_v48 }
 0x11b   :  { %v730_v55 = vpack.c.bf16 %v562_v54, %v562_v54  ;;  %v566_v56 = vsel %vm534_vm2, %v518_v44, %v550_v50  ;;  %v564_v57 = vsel %vm532_vm3, %v516_v46, %v548_v51 }
 0x11c   :  { %v734_v58 = vpack.c.bf16 %v566_v56, %v566_v56  ;;  %v732_v59 = vpack.c.bf16 %v564_v57, %v564_v57 }
 0x11d   :  { %643 = vst.msk [vmem:[%s1101_s6 + $0x2c] sm:$0xf] %vm631_vm4, %v730_v55 }
 0x11e   :  { %647 = vst.msk [vmem:[%s1101_s6 + $0x3c] sm:$0xf] %vm631_vm4, %v734_v58  ;;  %645 = vst.msk [vmem:[%s1101_s6 + $0x34] sm:$0xf] %vm631_vm4, %v732_v59 }

// kernel: _lambda_.25
= control target key start
LH: loop header
LB: loop body
LE: loop exit
PB: predicated region body
PF: predicated region fallthrough
CT: control target
= control target key end

     0   :  { %v267_v0 = vmov 0   ;;  %vm116_vm0 = vcmask 130048   ;;  %vm200_vm3 = vcmask 257024   ;;  %s346_s1 = inlined_call_operand.vmem [shape: bf16[144,32], index: 1, kind: input, shape index: {}]   ;;  %s347_s0 = inlined_call_operand.vmem [shape: bf16[32,144], index: 0, kind: input, shape index: {}]   ;;  %s348_s2 = inlined_call_operand.vmem [shape: f32[1,32], index: 2, kind: input, shape index: {}]   ;;  %s349_s3 = inlined_call_operand.vmem [shape: bf16[32,32], index: 3, kind: output, shape index: {}]  }
   0x1   :  { %123 = vmatprep.subr.bf16.mxu0 %v267_v0  ;;  %233 = vmatprep.subr.bf16.mxu1 %v267_v0  ;;  %v252_v1 = vld [vmem:[%s346_s1 + $0x38] sm:$0xff]   ;;  %v253_v2 = vld [vmem:[%s346_s1 + $0x30] sm:$0xff]   ;;  %v254_v3 = vld [vmem:[%s346_s1 + $0x28] sm:$0xff]  }
   0x2   :  { %124 = vmatpush1.bf16.msra.mxu0 %v252_v1  ;;  %242 = vmatpush1.bf16.msra.mxu1 %v252_v1  ;;  %v255_v4 = vld [vmem:[%s346_s1 + $0x20] sm:$0xff]   ;;  %v266_v6 = vld [vmem:[%s347_s0 + $0x14] ss:$8 sps:$4 sm:$0xff]   ;;  %v258_v9 = vld [vmem:[%s346_s1 + $0x8] sm:$0xff]  }
   0x3   :  { %125 = vmatprep.subr.bf16.mxu0 %v267_v0  ;;  %234 = vmatprep.subr.bf16.mxu1 %v267_v0  ;;  %v263_v5 = vld [vmem:[%s347_s0 + $0x4] ss:$8 sps:$4 sm:$0xff]   ;;  %v256_v7 = vld [vmem:[%s346_s1 + $0x18] sm:$0xff]   ;;  %v257_v8 = vld [vmem:[%s346_s1 + $0x10] sm:$0xff]  }
   0x4   :  { %223 = vmatprep.mubr.msk.bf16.mxu0 %vm116_vm0, %v263_v5  ;;  %224 = vmatprep.mubr.msk.bf16.mxu1 %vm116_vm0, %v266_v6  ;;  %v259_v10 = vld [vmem:[%s346_s1] sm:$0xff]   ;;  %v264_v13 = vld [vmem:[%s347_s0 + $0x10] ss:$8 sps:$4 sm:$0xff]  }
   0x5   :  { %v260_v11 = vld [vmem:[%s346_s1 + $0x40] sm:$0xff]  }
   0x6   :  { %126 = vmatpush1.bf16.msra.mxu0 %v253_v2  ;;  %243 = vmatpush1.bf16.msra.mxu1 %v253_v2  ;;  %v261_v12 = vld [vmem:[%s347_s0] ss:$8 sps:$4 sm:$0xff]  }
   0x7   :  { %127 = vmatprep.subr.bf16.mxu0 %v267_v0  ;;  %235 = vmatprep.subr.bf16.mxu1 %v267_v0  ;;  %v209_v14 = vld [vmem:[%s348_s2] ss:$0 sm:$0xff] }
   0xa   :  { %128 = vmatpush1.bf16.msra.mxu0 %v254_v3  ;;  %244 = vmatpush1.bf16.msra.mxu1 %v254_v3 }
   0xb   :  { %129 = vmatprep.subr.bf16.mxu0 %v267_v0  ;;  %236 = vmatprep.subr.bf16.mxu1 %v267_v0 }
   0xe   :  { %130 = vmatpush1.bf16.msra.mxu0 %v255_v4  ;;  %245 = vmatpush1.bf16.msra.mxu1 %v255_v4 }
   0xf   :  { %131 = vmatprep.subr.bf16.mxu0 %v267_v0  ;;  %237 = vmatprep.subr.bf16.mxu1 %v267_v0 }
  0x12   :  { %132 = vmatpush1.bf16.msra.mxu0 %v256_v7  ;;  %246 = vmatpush1.bf16.msra.mxu1 %v256_v7 }
  0x13   :  { %133 = vmatprep.subr.bf16.mxu0 %v267_v0  ;;  %238 = vmatprep.subr.bf16.mxu1 %v267_v0 }
  0x16   :  { %134 = vmatpush1.bf16.msra.mxu0 %v257_v8  ;;  %247 = vmatpush1.bf16.msra.mxu1 %v257_v8 }
  0x17   :  { %135 = vmatprep.subr.bf16.mxu0 %v267_v0  ;;  %239 = vmatprep.subr.bf16.mxu1 %v267_v0 }
  0x1a   :  { %136 = vmatpush1.bf16.msra.mxu0 %v258_v9  ;;  %248 = vmatpush1.bf16.msra.mxu1 %v258_v9 }
  0x1b   :  { %137 = vmatprep.subr.bf16.mxu0 %v267_v0  ;;  %240 = vmatprep.subr.bf16.mxu1 %v267_v0 }
  0x1e   :  { %138 = vmatpush1.bf16.msra.mxu0 %v259_v10  ;;  %249 = vmatpush1.bf16.msra.mxu1 %v259_v10 }
  0x1f   :  { %153 = vmatprep.subr.bf16.mxu0 %v267_v0  ;;  %241 = vmatprep.subr.bf16.mxu1 %v267_v0 }
  0x22   :  { %154 = vmatpush2.bf16.msra.mxu0 %v260_v11  ;;  %250 = vmatpush2.bf16.msra.mxu1 %v260_v11 }
  0x25   :  { %156 = vmatmul.mubr.bf16.vlgmr.msra.gmra.mxu0 %v261_v12  ;;  %164 = vmatmul.mubr.bf16.vlgmr.msra.gmra.mxu1 %v264_v13 }
  0xe5   :  { %v157_v15 = vpop.f32.mrf.mxu0  ;;  %v165_v16 = vpop.f32.mrf.mxu1 }
  0xe6   :  { %v158_v17 = vadd.f32 %v209_v14, %v157_v15  ;;  %v166_v18 = vadd.f32 %v209_v14, %v165_v16 }
  0xe7   :  { %v159_v19 = vpop.f32.mrf.mxu0  ;;  %v167_v20 = vpop.f32.mrf.mxu1 }
  0xe8   :  { %vm172_vm1 = vcmp.ge.f32.partialorder %v158_v17, 0.0  ;;  %v176_v21 = vmul.f32 0.1, %v158_v17  ;;  %vm174_vm2 = vcmp.ge.f32.partialorder %v166_v18, 0.0  ;;  %v178_v22 = vmul.f32 0.1, %v166_v18 }
  0xe9   :  { %v160_v23 = vpop.f32.mrf.mxu0  ;;  %v168_v24 = vpop.f32.mrf.mxu1 }
  0xea   :  { %v180_v25 = vsel %vm172_vm1, %v158_v17, %v176_v21  ;;  %v182_v26 = vsel %vm174_vm2, %v166_v18, %v178_v22  ;;  %v161_v27 = vadd.f32 %v209_v14, %v160_v23  ;;  %v169_v28 = vadd.f32 %v209_v14, %v168_v24 }
  0xeb   :  { %v229_v29 = vpack.c.bf16 %v180_v25, %v180_v25  ;;  %v231_v30 = vpack.c.bf16 %v182_v26, %v182_v26  ;;  %v162_v31 = vpop.f32.mrf.mxu0  ;;  %v170_v32 = vpop.f32.mrf.mxu1 }
  0xec   :  { %vm173_vm4 = vcmp.ge.f32.partialorder %v161_v27, 0.0  ;;  %v177_v33 = vmul.f32 0.1, %v161_v27  ;;  %vm175_vm5 = vcmp.ge.f32.partialorder %v169_v28, 0.0  ;;  %v179_v34 = vmul.f32 0.1, %v169_v28 }
  0xed   :  { %201 = vst.msk [vmem:[%s349_s3] sm:$0xf] %vm200_vm3, %v229_v29  ;;  %203 = vst.msk [vmem:[%s349_s3 + $0x8] sm:$0xf] %vm200_vm3, %v231_v30 }
  0xee   :  { %v181_v35 = vsel %vm173_vm4, %v161_v27, %v177_v33  ;;  %v183_v36 = vsel %vm175_vm5, %v169_v28, %v179_v34 }
  0xef   :  { %v230_v37 = vpack.c.bf16 %v181_v35, %v181_v35  ;;  %v232_v38 = vpack.c.bf16 %v183_v36, %v183_v36 }
  0xf1   :  { %202 = vst.msk [vmem:[%s349_s3 + $0x4] sm:$0xf] %vm200_vm3, %v230_v37  ;;  %204 = vst.msk [vmem:[%s349_s3 + $0xc] sm:$0xf] %vm200_vm3, %v232_v38 }

// kernel: _lambda_.28
= control target key start
LH: loop header
LB: loop body
LE: loop exit
PB: predicated region body
PF: predicated region fallthrough
CT: control target
= control target key end

     0   :  { %s322_s6 = smov 0   ;;  %s343_s0 = inlined_call_operand.vmem [shape: bf16[4,2,2,2,32], index: 0, kind: input, shape index: {}]   ;;  %s344_s1 = inlined_call_operand.vmem [shape: bf16[4,2,32], index: 1, kind: output, shape index: {}]  }
   0x1 LB: > { %s284_s7 = sadd.s32 4294967295, %s308_s6   ;;  %p288_p0 = scmp.ge.s32.totalorder %s308_s6, 1  ;;  %s308_s6 = sphi %s322_s6, %s11_s6  }
   0x2   : > { %p86_p1 = scmp.lt.s32.totalorder %s308_s6, 5 }
   0x4   : > { %p87_p2 = pnand %p288_p0, %p86_p1 }
   0x5   : > { %p103_p3 = scmp.lt.s32.totalorder (!%p87_p2), %s284_s7, 3 }
   0x6   : > { %90 = sbr.rel (%p87_p2) target bundleno = 56 (0x38), region = 24 }
   0xb   : > { %s346_s7 = smov (!%p103_p3, %s284_s7), 3  ;;  %vm118_vm0 = vcmask 254976   ;;  %v310_v24 = vmov 1966171168   ;;  %v161_v26 = vlaneseq  ;;  %vm147_vm1 = vcmask 261120  }
   0xc   : > { %s289_s8 = sshll.u32 %s346_s7, 2  ;;  %v159_v25 = vunpack.c.l.s4 %v310_v24  ;;  %v311_v36 = vmov 1935823168   ;;  %vm217_vm2 = vcmask 1041409   ;;  %s109_s14 = scalar_lea.vmem %s344_s1, %s346_s7  ;;  %vm235_vm3 = vcmask 253952  }
   0xd   : > { %s106_s11 = scalar_lea.vmem %s343_s0, %s289_s8  ;;  %v162_v35 = vshrl.u32 %v161_v26, 7  ;;  %v187_v37 = vunpack.c.l.s4 %v311_v36 }
   0xe   : > { %v110_v0 = vld [vmem:[%s106_s11] sm:$0x1]  ;;  %v111_v1 = vld [vmem:[%s106_s11 + $0x1] sm:$0x1]  ;;  %v112_v2 = vld [vmem:[%s106_s11 + $0x2] sm:$0x1]  ;;  %v160_v41 = vunpack.c.0.s8 %v159_v25 }
   0xf   : > { %v113_v3 = vld [vmem:[%s106_s11 + $0x3] sm:$0x1]  ;;  %v114_v4 = vunpack.c.l.bf16 %v110_v0  ;;  %v115_v5 = vunpack.c.l.bf16 %v111_v1  ;;  %v116_v6 = vunpack.c.l.bf16 %v112_v2  ;;  %v188_v50 = vunpack.c.0.s8 %v187_v37 }
  0x10   : > { %v117_v7 = vunpack.c.l.bf16 %v113_v3  ;;  %v163_v49 = vsub.s32 %v160_v41, %v162_v35 }
  0x11   : > { %v119_v8 = vsel %vm118_vm0, %v114_v4, -inf  ;;  %v126_v9 = vsel %vm118_vm0, %v115_v5, -inf  ;;  %v133_v10 = vsel %vm118_vm0, %v116_v6, -inf  ;;  %v191_v55 = vsub.s32 %v188_v50, %v162_v35 }
  0x12   : > { %v120_v11 = vrot.slane %v119_v8, 4  ;;  %v127_v12 = vrot.slane %v126_v9, 4  ;;  %v134_v13 = vrot.slane %v133_v10, 4  ;;  %v140_v14 = vsel %vm118_vm0, %v117_v7, -inf }
  0x13   : > { %v141_v15 = vrot.slane %v140_v14, 4 }
  0x14   : > { %v121_v16 = vmax.f32 %v119_v8, %v120_v11  ;;  %v128_v17 = vmax.f32 %v126_v9, %v127_v12  ;;  %v135_v18 = vmax.f32 %v133_v10, %v134_v13 }
  0x15   : > { %v142_v19 = vmax.f32 %v140_v14, %v141_v15 }
  0x16   : > { %v122_v20 = vrot.slane %v121_v16, 2  ;;  %v129_v21 = vrot.slane %v128_v17, 2  ;;  %v136_v22 = vrot.slane %v135_v18, 2 }
  0x17   : > { %v143_v23 = vrot.slane %v142_v19, 2 }
  0x18   : > { %v123_v27 = vmax.f32 %v121_v16, %v122_v20  ;;  %v130_v28 = vmax.f32 %v128_v17, %v129_v21  ;;  %v137_v29 = vmax.f32 %v135_v18, %v136_v22 }
  0x19   : > { %v144_v30 = vmax.f32 %v142_v19, %v143_v23 }
  0x1a   : > { %v124_v31 = vrot.slane %v123_v27, 1  ;;  %v131_v32 = vrot.slane %v130_v28, 1  ;;  %v138_v33 = vrot.slane %v137_v29, 1 }
  0x1b   : > { %v145_v34 = vrot.slane %v144_v30, 1 }
  0x1c   : > { %v125_v38 = vmax.f32 %v123_v27, %v124_v31  ;;  %v132_v39 = vmax.f32 %v130_v28, %v131_v32  ;;  %v139_v40 = vmax.f32 %v137_v29, %v138_v33 }
  0x1d   : > { %v146_v42 = vmax.f32 %v144_v30, %v145_v34 }
  0x1e   : > { %v148_v43 = vsel %vm147_vm1, %v125_v38, -inf  ;;  %v149_v44 = vsel %vm147_vm1, %v139_v40, -inf  ;;  %v151_v45 = vsel %vm147_vm1, %v132_v39, -inf }
  0x1f   : > { %v150_v46 = vmax.f32 %v148_v43, %v149_v44  ;;  %v152_v47 = vsel %vm147_vm1, %v146_v42, -inf }
  0x20   : > { %v153_v48 = vmax.f32 %v151_v45, %v152_v47 }
  0x21   : > { %v154_v51 = vpack.c.bf16 %v150_v46, %v150_v46 }
  0x22   : > { %v155_v52 = vpack.c.bf16 %v153_v48, %v153_v48 }
  0x23   : > { %v164_v53 = vrot.slane %v154_v51, %v163_v49 }
  0x24   : > { %v178_v54 = vrot.slane %v155_v52, %v163_v49 }
  0x25   : > { %v171_v56 = vrot.slane %v164_v53, %v163_v49 }
  0x26   : > { %v185_v57 = vrot.slane %v178_v54, %v163_v49 }
  0x27   : > { %v192_v58 = vrot.slane %v171_v56, %v191_v55 }
  0x28   : > { %v206_v59 = vrot.slane %v185_v57, %v191_v55 }
  0x29   : > { %v199_v60 = vrot.slane %v192_v58, %v191_v55 }
  0x2a   : > { %v213_v61 = vrot.slane %v206_v59, %v191_v55 }
  0x2b   : > { %v214_v62 = vunpack.c.l.b16 %v199_v60 }
  0x2c   : > { %v215_v63 = vunpack.c.l.b16 %v213_v61 }
  0x2e   : > { %v216_v0 = vrot.slane %v215_v63, 7 }
  0x30   : > { %v218_v1 = vsel %vm217_vm2, %v216_v0, %v214_v62 }
  0x31   : > { %v219_v2 = vpack.c.b16 %v218_v1, %v218_v1 }
  0x33   : > { %v226_v3 = vrot.slane %v219_v2, %v163_v49 }
  0x35   : > { %v233_v4 = vrot.slane %v226_v3, %v163_v49 }
  0x37   : > { %236 = vst.msk [vmem:[%s109_s14] sm:$0x1] %vm235_vm3, %v233_v4 }
  0x38 PF: > { %s11_s6 = sadd.s32 1, %s308_s6  }
  0x39   : > { %p8_p4 = scmp.ge.s32.totalorder %s11_s6, 6  }
  0x3b   :  { %10 = sbr.rel (!%p8_p4) target bundleno = 1 (0x1), region = 54 }

// kernel: _lambda_.26
= control target key start
LH: loop header
LB: loop body
LE: loop exit
PB: predicated region body
PF: predicated region fallthrough
CT: control target
= control target key end

     0   :  { %vm204_vm0 = vcmask 261120   ;;  %vm337_vm2 = vcmask 257024   ;;  %s558_s1 = inlined_call_operand.vmem [shape: bf16[288,32], index: 1, kind: input, shape index: {}]   ;;  %s559_s0 = inlined_call_operand.vmem [shape: bf16[32,288], index: 0, kind: input, shape index: {}]   ;;  %s560_s2 = inlined_call_operand.vmem [shape: f32[1,32], index: 2, kind: input, shape index: {}]   ;;  %s561_s3 = inlined_call_operand.vmem [shape: bf16[32,32], index: 3, kind: output, shape index: {}]  }
   0x1   :  { %v421_v0 = vld [vmem:[%s558_s1 + $0x78] sm:$0xff]   ;;  %v423_v2 = vld [vmem:[%s558_s1 + $0x70] sm:$0xff]   ;;  %v425_v4 = vld [vmem:[%s558_s1 + $0x68] sm:$0xff]  }
   0x2   :  { %v422_v1 = vld [vmem:[%s558_s1 + $0x38] sm:$0xff]   ;;  %381 = vmatprep.subr.bf16.mxu0 %v421_v0  ;;  %v424_v3 = vld [vmem:[%s558_s1 + $0x30] sm:$0xff]   ;;  %v426_v5 = vld [vmem:[%s558_s1 + $0x28] sm:$0xff]  }
   0x3   :  { %382 = vmatpush3.bf16.msra.mxu0 %v422_v1  ;;  %v427_v6 = vld [vmem:[%s558_s1 + $0x60] sm:$0xff]   ;;  %v429_v8 = vld [vmem:[%s558_s1 + $0x58] sm:$0xff]   ;;  %v436_v10 = vld [vmem:[%s558_s1 + $0x88] sm:$0xff]  }
   0x4   :  { %383 = vmatprep.subr.bf16.mxu0 %v423_v2  ;;  %v428_v7 = vld [vmem:[%s558_s1 + $0x20] sm:$0xff]   ;;  %v430_v9 = vld [vmem:[%s558_s1 + $0x18] sm:$0xff]   ;;  %v431_v11 = vld [vmem:[%s558_s1 + $0x50] sm:$0xff]   ;;  %413 = vmatprep.subr.bf16.mxu1 %v436_v10 }
   0x5   :  { %v432_v12 = vld [vmem:[%s558_s1 + $0x10] sm:$0xff]   ;;  %v433_v13 = vld [vmem:[%s558_s1 + $0x48] sm:$0xff]   ;;  %414 = vmatpush3.bf16.msra.mxu1 %v436_v10  ;;  %v441_v15 = vld [vmem:[%s558_s1 + $0x80] sm:$0xff]  }
   0x6   :  { %v440_v14 = vld [vmem:[%s559_s0 + $0x4] ss:$12 sps:$4 sm:$0xff]   ;;  %v442_v16 = vld [vmem:[%s559_s0 + $0x8] ss:$12 sps:$4 sm:$0xff]   ;;  %415 = vmatprep.subr.bf16.mxu1 %v441_v15  ;;  %v443_v17 = vld [vmem:[%s559_s0 + $0x20] ss:$12 sps:$4 sm:$0xff]  }
   0x7   :  { %384 = vmatpush3.bf16.msra.mxu0 %v424_v3  ;;  %243 = vmatprep.mubr.bf16.mxu0 %v440_v14  ;;  %v434_v18 = vld [vmem:[%s558_s1 + $0x8] sm:$0xff]   ;;  %v435_v19 = vld [vmem:[%s558_s1 + $0x40] sm:$0xff]  }
   0x8   :  { %385 = vmatprep.subr.bf16.mxu0 %v425_v4  ;;  %417 = vmatprep.mubr.msk.bf16.mxu1 %vm204_vm0, %v442_v16  ;;  %v437_v20 = vld [vmem:[%s558_s1] sm:$0xff]   ;;  %v444_v22 = vld [vmem:[%s559_s0 + $0x1c] ss:$12 sps:$4 sm:$0xff]  }
   0x9   :  { %416 = vmatpush3.bf16.msra.mxu1 %v441_v15  ;;  %v438_v21 = vld [vmem:[%s559_s0] ss:$12 sps:$4 sm:$0xff]   ;;  %v446_v23 = vld [vmem:[%s559_s0 + $0x18] ss:$12 sps:$4 sm:$0xff]  }
   0xa   :  { %v346_v28 = vld [vmem:[%s560_s2] ss:$0 sm:$0xff] }
   0xb   :  { %386 = vmatpush3.bf16.msra.mxu0 %v426_v5 }
   0xc   :  { %387 = vmatprep.subr.bf16.mxu0 %v427_v6  ;;  %418 = vmatmul.mubr.msk.bf16.vlgmr.msra.gmra.mxu1 %vm204_vm0, %v443_v17 }
   0xf   :  { %388 = vmatpush3.bf16.msra.mxu0 %v428_v7 }
  0x10   :  { %389 = vmatprep.subr.bf16.mxu0 %v429_v8 }
  0x13   :  { %390 = vmatpush3.bf16.msra.mxu0 %v430_v9 }
  0x14   :  { %391 = vmatprep.subr.bf16.mxu0 %v431_v11 }
  0x17   :  { %392 = vmatpush3.bf16.msra.mxu0 %v432_v12 }
  0x18   :  { %393 = vmatprep.subr.bf16.mxu0 %v433_v13 }
  0x1b   :  { %394 = vmatpush3.bf16.msra.mxu0 %v434_v18 }
  0x1c   :  { %395 = vmatprep.subr.bf16.mxu0 %v435_v19 }
  0x1f   :  { %396 = vmatpush3.bf16.msra.mxu0 %v437_v20 }
  0x22   :  { %244 = vmatmul.mubr.bf16.vlgmr.msra.gmra.mxu0 %v438_v21 }
  0x23   :  { %251 = vmatprep.mubr.bf16.mxu0 %v444_v22 }
  0x2a   :  { %252 = vmatmul.mubr.bf16.gmra.mxu0 %v446_v23 }
  0xcc   :  { %v419_v24 = vpop.f32.mrf.mxu1 }
  0xce   :  { %v294_v26 = vpop.f32.mrf.mxu1 }
  0xd0   :  { %v420_v31 = vpop.f32.mrf.mxu1 }
  0xd2   :  { %v297_v37 = vpop.f32.mrf.mxu1 }
  0xe2   :  { %v397_v25 = vpop.f32.mrf.mxu0 }
  0xe4   :  { %v398_v27 = vpop.f32.mrf.mxu0 }
  0xe5   :  { %v399_v29 = vadd.f32 %v398_v27, %v397_v25 }
  0xe6   :  { %v400_v30 = vpop.f32.mrf.mxu0 }
  0xe7   :  { %v246_v32 = vadd.f32 %v399_v29, %v346_v28 }
  0xe8   :  { %v401_v33 = vpop.f32.mrf.mxu0 }
  0xe9   :  { %v402_v34 = vadd.f32 %v401_v33, %v400_v30  ;;  %v295_v35 = vadd.f32 %v294_v26, %v246_v32 }
  0xea   :  { %v403_v36 = vpop.f32.mrf.mxu0 }
  0xeb   :  { %vm309_vm1 = vcmp.ge.f32.partialorder %v295_v35, 0.0  ;;  %v313_v38 = vmul.f32 0.1, %v295_v35  ;;  %v249_v39 = vadd.f32 %v402_v34, %v346_v28 }
  0xec   :  { %v404_v40 = vpop.f32.mrf.mxu0 }
  0xed   :  { %v317_v41 = vsel %vm309_vm1, %v295_v35, %v313_v38  ;;  %v405_v42 = vadd.f32 %v404_v40, %v403_v36  ;;  %v298_v43 = vadd.f32 %v297_v37, %v249_v39 }
  0xee   :  { %v377_v44 = vpack.c.bf16 %v317_v41, %v317_v41  ;;  %v406_v45 = vpop.f32.mrf.mxu0 }
  0xef   :  { %v254_v46 = vadd.f32 %v405_v42, %v346_v28  ;;  %vm310_vm3 = vcmp.ge.f32.partialorder %v298_v43, 0.0  ;;  %v314_v47 = vmul.f32 0.1, %v298_v43 }
  0xf0   :  { %338 = vst.msk [vmem:[%s561_s3] sm:$0xf] %vm337_vm2, %v377_v44  ;;  %v407_v48 = vpop.f32.mrf.mxu0 }
  0xf1   :  { %v303_v49 = vadd.f32 %v419_v24, %v254_v46  ;;  %v318_v50 = vsel %vm310_vm3, %v298_v43, %v314_v47  ;;  %v408_v51 = vadd.f32 %v407_v48, %v406_v45 }
  0xf2   :  { %v378_v52 = vpack.c.bf16 %v318_v50, %v318_v50 }
  0xf3   :  { %vm311_vm4 = vcmp.ge.f32.partialorder %v303_v49, 0.0  ;;  %v315_v53 = vmul.f32 0.1, %v303_v49  ;;  %v257_v54 = vadd.f32 %v408_v51, %v346_v28 }
  0xf4   :  { %339 = vst.msk [vmem:[%s561_s3 + $0x4] sm:$0xf] %vm337_vm2, %v378_v52 }
  0xf5   :  { %v319_v55 = vsel %vm311_vm4, %v303_v49, %v315_v53  ;;  %v306_v56 = vadd.f32 %v420_v31, %v257_v54 }
  0xf6   :  { %v379_v57 = vpack.c.bf16 %v319_v55, %v319_v55 }
  0xf7   :  { %vm312_vm5 = vcmp.ge.f32.partialorder %v306_v56, 0.0  ;;  %v316_v58 = vmul.f32 0.1, %v306_v56 }
  0xf8   :  { %340 = vst.msk [vmem:[%s561_s3 + $0x8] sm:$0xf] %vm337_vm2, %v379_v57 }
  0xf9   :  { %v320_v59 = vsel %vm312_vm5, %v306_v56, %v316_v58 }
  0xfa   :  { %v380_v60 = vpack.c.bf16 %v320_v59, %v320_v59 }
  0xfc   :  { %341 = vst.msk [vmem:[%s561_s3 + $0xc] sm:$0xf] %vm337_vm2, %v380_v60 }

// kernel: _lambda_.27
= control target key start
LH: loop header
LB: loop body
LE: loop exit
PB: predicated region body
PF: predicated region fallthrough
CT: control target
= control target key end

     0   :  { %vm213_vm0 = vcmask 261120   ;;  %vm347_vm1 = vcmask 130048   ;;  %vm435_vm3 = vcmask 257024   ;;  %s701_s1 = inlined_call_operand.vmem [shape: bf16[288,32], index: 1, kind: input, shape index: {}]   ;;  %s702_s0 = inlined_call_operand.vmem [shape: bf16[32,288], index: 0, kind: input, shape index: {}]   ;;  %s703_s4 = inlined_call_operand.vmem [shape: bf16[16,32], index: 4, kind: input, shape index: {}]   ;;  %s704_s3 = inlined_call_operand.vmem [shape: bf16[32,16], index: 3, kind: input, shape index: {}]   ;;  %s705_s2 = inlined_call_operand.vmem [shape: f32[1,32], index: 2, kind: input, shape index: {}, may-alias: {2,5}]   ;;  %s706_s5 = inlined_call_operand.vmem [shape: f32[1,32], index: 5, kind: input, shape index: {}, may-alias: {2,5}]   ;;  %s707_s6 = inlined_call_operand.vmem [shape: bf16[32,32], index: 6, kind: output, shape index: {}]  }
   0x1   :  { %v534_v0 = vld [vmem:[%s701_s1 + $0x78] sm:$0xff]   ;;  %v536_v2 = vld [vmem:[%s701_s1 + $0x70] sm:$0xff]   ;;  %v538_v4 = vld [vmem:[%s701_s1 + $0x68] sm:$0xff]  }
   0x2   :  { %v535_v1 = vld [vmem:[%s701_s1 + $0x38] sm:$0xff]   ;;  %485 = vmatprep.subr.bf16.mxu0 %v534_v0  ;;  %v537_v3 = vld [vmem:[%s701_s1 + $0x30] sm:$0xff]   ;;  %v539_v5 = vld [vmem:[%s701_s1 + $0x28] sm:$0xff]  }
   0x3   :  { %486 = vmatpush3.bf16.msra.mxu0 %v535_v1  ;;  %v540_v6 = vld [vmem:[%s701_s1 + $0x60] sm:$0xff]   ;;  %v545_v8 = vld [vmem:[%s701_s1 + $0x88] sm:$0xff]   ;;  %v542_v9 = vld [vmem:[%s701_s1 + $0x58] sm:$0xff]  }
   0x4   :  { %487 = vmatprep.subr.bf16.mxu0 %v536_v2  ;;  %v541_v7 = vld [vmem:[%s701_s1 + $0x20] sm:$0xff]   ;;  %v543_v10 = vld [vmem:[%s701_s1 + $0x18] sm:$0xff]   ;;  %520 = vmatprep.subr.bf16.mxu1 %v545_v8  ;;  %v544_v12 = vld [vmem:[%s701_s1 + $0x50] sm:$0xff]  }
   0x5   :  { %521 = vmatpush3.bf16.msra.mxu1 %v545_v8  ;;  %v548_v11 = vld [vmem:[%s701_s1 + $0x80] sm:$0xff]   ;;  %v550_v13 = vld [vmem:[%s702_s0 + $0x8] ss:$12 sps:$4 sm:$0xff]  }
   0x6   :  { %522 = vmatprep.subr.bf16.mxu1 %v548_v11  ;;  %524 = vmatprep.mubr.msk.bf16.mxu1 %vm213_vm0, %v550_v13  ;;  %v552_v14 = vld [vmem:[%s702_s0 + $0x20] ss:$12 sps:$4 sm:$0xff]   ;;  %v546_v15 = vld [vmem:[%s701_s1 + $0x10] sm:$0xff]   ;;  %v560_v25 = vld [vmem:[%s702_s0 + $0x1c] ss:$12 sps:$4 sm:$0xff]  }
   0x7   :  { %488 = vmatpush3.bf16.msra.mxu0 %v537_v3  ;;  %v547_v16 = vld [vmem:[%s701_s1 + $0x48] sm:$0xff]   ;;  %v556_v18 = vld [vmem:[%s702_s0 + $0x4] ss:$12 sps:$4 sm:$0xff]   ;;  %v444_v34 = vld [vmem:[%s705_s2] ss:$0 sm:$0xff] }
   0x8   :  { %489 = vmatprep.subr.bf16.mxu0 %v538_v4  ;;  %v549_v17 = vld [vmem:[%s701_s1 + $0x8] sm:$0xff]   ;;  %v557_v19 = vld [vmem:[%s703_s4] sm:$0xff]   ;;  %252 = vmatprep.mubr.bf16.mxu0 %v556_v18 }
   0x9   :  { %523 = vmatpush3.bf16.msra.mxu1 %v548_v11  ;;  %v558_v20 = vld [vmem:[%s704_s3] sm:$0xff]   ;;  %v559_v22 = vld [vmem:[%s704_s3 + $0x8] sm:$0xff]  }
   0xa   :  { %v551_v21 = vld [vmem:[%s701_s1 + $0x40] sm:$0xff]   ;;  %528 = vmatprep.subr.bf16.mxu1 %v557_v19 }
   0xb   :  { %490 = vmatpush3.bf16.msra.mxu0 %v539_v5  ;;  %v553_v23 = vld [vmem:[%s701_s1] sm:$0xff]  }
   0xc   :  { %491 = vmatprep.subr.bf16.mxu0 %v540_v6  ;;  %525 = vmatmul.mubr.msk.bf16.vlgmr.msra.gmra.mxu1 %vm213_vm0, %v552_v14  ;;  %v554_v24 = vld [vmem:[%s702_s0] ss:$12 sps:$4 sm:$0xff]   ;;  %v562_v26 = vld [vmem:[%s702_s0 + $0x18] ss:$12 sps:$4 sm:$0xff]  }
   0xd   :  { %529 = vmatpush3.bf16.msra.mxu1 %v557_v19  ;;  %530 = vmatprep.mubr.msk.bf16.mxu1 %vm347_vm1, %v558_v20  ;;  %v471_v36 = vld [vmem:[%s706_s5] ss:$0 sm:$0xff] }
   0xf   :  { %492 = vmatpush3.bf16.msra.mxu0 %v541_v7 }
  0x10   :  { %493 = vmatprep.subr.bf16.mxu0 %v542_v9 }
  0x13   :  { %494 = vmatpush3.bf16.msra.mxu0 %v543_v10 }
  0x14   :  { %495 = vmatprep.subr.bf16.mxu0 %v544_v12  ;;  %531 = vmatmul.mubr.msk.bf16.vlgmr.msra.gmra.mxu1 %vm347_vm1, %v559_v22 }
  0x17   :  { %496 = vmatpush3.bf16.msra.mxu0 %v546_v15 }
  0x18   :  { %497 = vmatprep.subr.bf16.mxu0 %v547_v16 }
  0x1b   :  { %498 = vmatpush3.bf16.msra.mxu0 %v549_v17 }
  0x1c   :  { %499 = vmatprep.subr.bf16.mxu0 %v551_v21 }
  0x1f   :  { %500 = vmatpush3.bf16.msra.mxu0 %v553_v23 }
  0x22   :  { %253 = vmatmul.mubr.bf16.vlgmr.msra.gmra.mxu0 %v554_v24 }
  0x23   :  { %260 = vmatprep.mubr.bf16.mxu0 %v560_v25 }
  0x2a   :  { %261 = vmatmul.mubr.bf16.gmra.mxu0 %v562_v26 }
  0xcc   :  { %v526_v27 = vpop.f32.mrf.mxu1 }
  0xce   :  { %v303_v28 = vpop.f32.mrf.mxu1 }
  0xd0   :  { %v527_v29 = vpop.f32.mrf.mxu1 }
  0xd2   :  { %v306_v30 = vpop.f32.mrf.mxu1 }
  0xd4   :  { %v532_v31 = vpop.f32.mrf.mxu1 }
  0xd5   :  { %v397_v58 = vadd.f32 %v532_v31, %v471_v36 }
  0xd6   :  { %v388_v32 = vpop.f32.mrf.mxu1 }
  0xd7   :  { %v389_v41 = vadd.f32 %v471_v36, %v388_v32 }
  0xd8   :  { %v533_v37 = vpop.f32.mrf.mxu1 }
  0xd9   :  { %v400_v4 = vadd.f32 %v533_v37, %v471_v36 }
  0xda   :  { %v391_v43 = vpop.f32.mrf.mxu1 }
  0xdb   :  { %v392_v49 = vadd.f32 %v471_v36, %v391_v43 }
  0xe2   :  { %v501_v33 = vpop.f32.mrf.mxu0 }
  0xe4   :  { %v502_v35 = vpop.f32.mrf.mxu0 }
  0xe5   :  { %v503_v38 = vadd.f32 %v502_v35, %v501_v33 }
  0xe6   :  { %v504_v39 = vpop.f32.mrf.mxu0 }
  0xe7   :  { %v255_v40 = vadd.f32 %v503_v38, %v444_v34 }
  0xe8   :  { %v505_v42 = vpop.f32.mrf.mxu0 }
  0xe9   :  { %v506_v44 = vadd.f32 %v505_v42, %v504_v39  ;;  %v304_v45 = vadd.f32 %v303_v28, %v255_v40 }
  0xea   :  { %v507_v46 = vpop.f32.mrf.mxu0 }
  0xeb   :  { %v258_v47 = vadd.f32 %v506_v44, %v444_v34  ;;  %v403_v48 = vadd.f32 %v389_v41, %v304_v45 }
  0xec   :  { %v508_v50 = vpop.f32.mrf.mxu0 }
  0xed   :  { %vm407_vm2 = vcmp.ge.f32.partialorder %v403_v48, 0.0  ;;  %v411_v51 = vmul.f32 0.1, %v403_v48  ;;  %v509_v52 = vadd.f32 %v508_v50, %v507_v46  ;;  %v307_v53 = vadd.f32 %v306_v30, %v258_v47 }
  0xee   :  { %v510_v54 = vpop.f32.mrf.mxu0 }
  0xef   :  { %v415_v55 = vsel %vm407_vm2, %v403_v48, %v411_v51  ;;  %v263_v56 = vadd.f32 %v509_v52, %v444_v34  ;;  %v404_v57 = vadd.f32 %v392_v49, %v307_v53 }
  0xf0   :  { %v481_v59 = vpack.c.bf16 %v415_v55, %v415_v55  ;;  %v511_v60 = vpop.f32.mrf.mxu0 }
  0xf1   :  { %v312_v61 = vadd.f32 %v526_v27, %v263_v56  ;;  %vm408_vm4 = vcmp.ge.f32.partialorder %v404_v57, 0.0  ;;  %v412_v62 = vmul.f32 0.1, %v404_v57  ;;  %v512_v63 = vadd.f32 %v511_v60, %v510_v54 }
  0xf2   :  { %436 = vst.msk [vmem:[%s707_s6] sm:$0xf] %vm435_vm3, %v481_v59 }
  0xf3   :  { %v405_v0 = vadd.f32 %v397_v58, %v312_v61  ;;  %v416_v1 = vsel %vm408_vm4, %v404_v57, %v412_v62  ;;  %v266_v2 = vadd.f32 %v512_v63, %v444_v34 }
  0xf4   :  { %v482_v3 = vpack.c.bf16 %v416_v1, %v416_v1 }
  0xf5   :  { %vm409_vm5 = vcmp.ge.f32.partialorder %v405_v0, 0.0  ;;  %v413_v5 = vmul.f32 0.1, %v405_v0  ;;  %v315_v6 = vadd.f32 %v527_v29, %v266_v2 }
  0xf6   :  { %437 = vst.msk [vmem:[%s707_s6 + $0x4] sm:$0xf] %vm435_vm3, %v482_v3 }
  0xf7   :  { %v417_v7 = vsel %vm409_vm5, %v405_v0, %v413_v5  ;;  %v406_v8 = vadd.f32 %v400_v4, %v315_v6 }
  0xf8   :  { %v483_v9 = vpack.c.bf16 %v417_v7, %v417_v7 }
  0xf9   :  { %vm410_vm6 = vcmp.ge.f32.partialorder %v406_v8, 0.0  ;;  %v414_v10 = vmul.f32 0.1, %v406_v8 }
  0xfa   :  { %438 = vst.msk [vmem:[%s707_s6 + $0x8] sm:$0xf] %vm435_vm3, %v483_v9 }
  0xfb   :  { %v418_v11 = vsel %vm410_vm6, %v406_v8, %v414_v10 }
  0xfc   :  { %v484_v12 = vpack.c.bf16 %v418_v11, %v418_v11 }
  0xfe   :  { %439 = vst.msk [vmem:[%s707_s6 + $0xc] sm:$0xf] %vm435_vm3, %v484_v12 }

// kernel: _lambda_.29
= control target key start
LH: loop header
LB: loop body
LE: loop exit
PB: predicated region body
PF: predicated region fallthrough
CT: control target
= control target key end

     0   :  { %v351_v1 = vmov 0.0   ;;  %vm352_vm0 = vmmov 0   ;;  %vm178_vm1 = vcmask 261120   ;;  %vm266_vm3 = vcmask 519168   ;;  %s439_s1 = inlined_call_operand.vmem [shape: bf16[288,64], index: 1, kind: input, shape index: {}]   ;;  %s440_s0 = inlined_call_operand.vmem [shape: bf16[8,288], index: 0, kind: input, shape index: {}]   ;;  %s441_s2 = inlined_call_operand.vmem [shape: f32[1,64], index: 2, kind: input, shape index: {}]   ;;  %s442_s3 = inlined_call_operand.vmem [shape: bf16[8,64], index: 3, kind: output, shape index: {}]  }
   0x1   :  { %v330_v0 = vld [vmem:[%s439_s1 + $0x78] sm:$0xff]   ;;  %320 = vmatprep.subr.bf16.mxu1 %v351_v1  ;;  %324 = vmatprep.mubr.msk.bf16.mxu1 %vm352_vm0, %v351_v1  ;;  %v332_v3 = vld [vmem:[%s439_s1 + $0x70] sm:$0xff]   ;;  %v334_v5 = vld [vmem:[%s439_s1 + $0x68] sm:$0xff]  }
   0x2   :  { %v331_v2 = vld [vmem:[%s439_s1 + $0x38] sm:$0xff]   ;;  %295 = vmatprep.subr.bf16.mxu0 %v330_v0  ;;  %v333_v4 = vld [vmem:[%s439_s1 + $0x30] sm:$0xff]   ;;  %v335_v6 = vld [vmem:[%s439_s1 + $0x28] sm:$0xff]  }
   0x3   :  { %296 = vmatpush3.bf16.msra.mxu0 %v331_v2  ;;  %v336_v7 = vld [vmem:[%s439_s1 + $0x60] sm:$0xff]   ;;  %v338_v9 = vld [vmem:[%s439_s1 + $0x58] sm:$0xff]   ;;  %v344_v10 = vld [vmem:[%s439_s1 + $0x88] sm:$0xff]  }
   0x4   :  { %297 = vmatprep.subr.bf16.mxu0 %v332_v3  ;;  %v337_v8 = vld [vmem:[%s439_s1 + $0x20] sm:$0xff]   ;;  %v339_v11 = vld [vmem:[%s439_s1 + $0x18] sm:$0xff]   ;;  %v340_v12 = vld [vmem:[%s439_s1 + $0x50] sm:$0xff]   ;;  %321 = vmatpush3.bf16.msra.mxu1 %v344_v10 }
   0x5   :  { %322 = vmatprep.subr.bf16.mxu1 %v351_v1  ;;  %v347_v13 = vld [vmem:[%s439_s1 + $0x80] sm:$0xff]   ;;  %v341_v15 = vld [vmem:[%s439_s1 + $0x10] sm:$0xff]   ;;  %v350_v17 = vld [vmem:[%s440_s0 + $0x8] ss:$0 sps:$4 sm:$0xff]  }
   0x6   :  { %v15_v14 = vld [vmem:[%s440_s0] sm:$0xff]  ;;  %v342_v18 = vld [vmem:[%s439_s1 + $0x48] sm:$0xff]  }
   0x7   :  { %298 = vmatpush3.bf16.msra.mxu0 %v333_v4  ;;  %v274_v16 = vcombine.high %v15_v14, %v15_v14  ;;  %v343_v19 = vld [vmem:[%s439_s1 + $0x8] sm:$0xff]   ;;  %v345_v20 = vld [vmem:[%s439_s1 + $0x40] sm:$0xff]   ;;  %v273_v22 = vcombine.low %v15_v14, %v15_v14 }
   0x8   :  { %299 = vmatprep.subr.bf16.mxu0 %v334_v5  ;;  %323 = vmatpush3.bf16.msra.mxu1 %v347_v13  ;;  %v346_v21 = vld [vmem:[%s439_s1] sm:$0xff]  }
   0x9   :  { %214 = vmatprep.mubr.bf16.mxu0 %v274_v16  ;;  %v272_v28 = vld [vmem:[%s441_s2] ss:$0 sm:$0xff] }
   0xb   :  { %300 = vmatpush3.bf16.msra.mxu0 %v335_v6  ;;  %325 = vmatmul.mubr.msk.bf16.vlgmr.msra.gmra.mxu1 %vm178_vm1, %v350_v17 }
   0xc   :  { %301 = vmatprep.subr.bf16.mxu0 %v336_v7 }
   0xf   :  { %302 = vmatpush3.bf16.msra.mxu0 %v337_v8 }
  0x10   :  { %303 = vmatprep.subr.bf16.mxu0 %v338_v9 }
  0x13   :  { %304 = vmatpush3.bf16.msra.mxu0 %v339_v11 }
  0x14   :  { %305 = vmatprep.subr.bf16.mxu0 %v340_v12 }
  0x17   :  { %306 = vmatpush3.bf16.msra.mxu0 %v341_v15 }
  0x18   :  { %307 = vmatprep.subr.bf16.mxu0 %v342_v18 }
  0x1b   :  { %308 = vmatpush3.bf16.msra.mxu0 %v343_v19 }
  0x1c   :  { %309 = vmatprep.subr.bf16.mxu0 %v345_v20 }
  0x1f   :  { %310 = vmatpush3.bf16.msra.mxu0 %v346_v21 }
  0x22   :  { %215 = vmatmul.mubr.bf16.vlgmr.msra.gmra.mxu0 %v273_v22 }
  0xcb   :  { %v256_v23 = vpop.f32.mrf.mxu1 }
  0xcd   :  { %v326_v24 = vpop.f32.mrf.mxu1 }
  0xcf   :  { %v259_v25 = vpop.f32.mrf.mxu1 }
  0xd1   :  { %v327_v26 = vpop.f32.mrf.mxu1 }
  0xe2   :  { %v311_v27 = vpop.f32.mrf.mxu0 }
  0xe4   :  { %v312_v29 = vpop.f32.mrf.mxu0 }
  0xe5   :  { %v313_v30 = vadd.f32 %v312_v29, %v311_v27 }
  0xe6   :  { %v314_v31 = vpop.f32.mrf.mxu0 }
  0xe7   :  { %v217_v32 = vadd.f32 %v313_v30, %v272_v28 }
  0xe8   :  { %v315_v33 = vpop.f32.mrf.mxu0 }
  0xe9   :  { %v257_v34 = vadd.f32 %v256_v23, %v217_v32 }
  0xeb   :  { %vm262_vm2 = vcmp.ge.f32.partialorder %v257_v34, 0.0  ;;  %v263_v35 = vmul.f32 0.1, %v257_v34 }
  0xed   :  { %v264_v36 = vsel %vm262_vm2, %v257_v34, %v263_v35 }
  0xee   :  { %v265_v37 = vpack.c.bf16 %v264_v36, %v264_v36 }
  0xf0   :  { %267 = vst.msk [vmem:[%s442_s3] sm:$0xf] %vm266_vm3, %v265_v37 }

// kernel: _lambda_.32
= control target key start
LH: loop header
LB: loop body
LE: loop exit
PB: predicated region body
PF: predicated region fallthrough
CT: control target
= control target key end

     0   :  { %s221_s6 = smov 0   ;;  %s238_s0 = inlined_call_operand.vmem [shape: bf16[2,2,1,2,64], index: 0, kind: input, shape index: {}]   ;;  %s239_s1 = inlined_call_operand.vmem [shape: bf16[2,1,64], index: 1, kind: output, shape index: {}]  }
   0x1 LB: > { %s187_s7 = sadd.s32 4294967295, %s209_s6   ;;  %p191_p0 = scmp.ge.s32.totalorder %s209_s6, 1  ;;  %s209_s6 = sphi %s221_s6, %s11_s6  }
   0x2   : > { %p86_p1 = scmp.lt.s32.totalorder %s209_s6, 3 }
   0x4   : > { %p87_p2 = pnand %p191_p0, %p86_p1 }
   0x5   : > { %p103_p3 = scmp.lt.s32.totalorder (!%p87_p2), %s187_s7, 1 }
   0x6   : > { %90 = sbr.rel (%p87_p2) target bundleno = 37 (0x25), region = 24 }
   0xb   : > { %s241_s7 = smov (!%p103_p3, %s187_s7), 1  ;;  %vm114_vm0 = vcmask 517120   ;;  %vm129_vm1 = vcmask 523264   ;;  %vm134_vm2 = vcmask 516096   ;;  %vm135_vm3 = vsmask.f32 256 }
   0xc   : > { %s192_s8 = sshll.u32 %s241_s7, 1  ;;  %s109_s14 = scalar_lea.vmem %s239_s1, %s241_s7  ;;  %vm136_vm4 = vmand %vm134_vm2, %vm135_vm3 }
   0xd   : > { %s106_s11 = scalar_lea.vmem %s238_s0, %s192_s8  ;;  %v137_v21 = vld [vmem:[%s109_s14] sm:$0x1] }
   0xe   : > { %v110_v0 = vld [vmem:[%s106_s11] sm:$0x1]  ;;  %v111_v1 = vld [vmem:[%s106_s11 + $0x1] sm:$0x1] }
   0xf   : > { %v112_v2 = vunpack.c.l.bf16 %v110_v0  ;;  %v113_v3 = vunpack.c.l.bf16 %v111_v1 }
  0x11   : > { %v115_v4 = vsel %vm114_vm0, %v112_v2, -inf  ;;  %v122_v5 = vsel %vm114_vm0, %v113_v3, -inf }
  0x12   : > { %v116_v6 = vrot.slane %v115_v4, 4  ;;  %v123_v7 = vrot.slane %v122_v5, 4 }
  0x14   : > { %v117_v8 = vmax.f32 %v115_v4, %v116_v6  ;;  %v124_v9 = vmax.f32 %v122_v5, %v123_v7 }
  0x16   : > { %v118_v10 = vrot.slane %v117_v8, 2  ;;  %v125_v11 = vrot.slane %v124_v9, 2 }
  0x18   : > { %v119_v12 = vmax.f32 %v117_v8, %v118_v10  ;;  %v126_v13 = vmax.f32 %v124_v9, %v125_v11 }
  0x1a   : > { %v120_v14 = vrot.slane %v119_v12, 1  ;;  %v127_v15 = vrot.slane %v126_v13, 1 }
  0x1c   : > { %v121_v16 = vmax.f32 %v119_v12, %v120_v14  ;;  %v128_v17 = vmax.f32 %v126_v13, %v127_v15 }
  0x1e   : > { %v130_v18 = vsel %vm129_vm1, %v121_v16, -inf  ;;  %v131_v19 = vsel %vm129_vm1, %v128_v17, -inf }
  0x1f   : > { %v132_v20 = vmax.f32 %v130_v18, %v131_v19 }
  0x21   : > { %v133_v22 = vpack.c.bf16 %v132_v20, %v132_v20 }
  0x23   : > { %v138_v23 = vsel %vm136_vm4, %v133_v22, %v137_v21 }
  0x24   : > { %139 = vst [vmem:[%s109_s14] sm:$0x1] %v138_v23 }
  0x25 PF: > { %s11_s6 = sadd.s32 1, %s209_s6  }
  0x26   : > { %p8_p4 = scmp.ge.s32.totalorder %s11_s6, 4  }
  0x28   :  { %10 = sbr.rel (!%p8_p4) target bundleno = 1 (0x1), region = 54 }

// kernel: _lambda_.30
= control target key start
LH: loop header
LB: loop body
LE: loop exit
PB: predicated region body
PF: predicated region fallthrough
CT: control target
= control target key end

     0   :  { %v611_v35 = vmov 0.0   ;;  %vm612_vm0 = vmmov 0   ;;  %vm330_vm1 = vcmask 523264   ;;  %vm458_vm3 = vcmask 519168   ;;  %s756_s1 = inlined_call_operand.vmem [shape: bf16[576,64], index: 1, kind: input, shape index: {}]   ;;  %s757_s0 = inlined_call_operand.vmem [shape: bf16[8,576], index: 0, kind: input, shape index: {}]   ;;  %s758_s2 = inlined_call_operand.vmem [shape: f32[1,64], index: 2, kind: input, shape index: {}]   ;;  %s759_s3 = inlined_call_operand.vmem [shape: bf16[8,64], index: 3, kind: output, shape index: {}]  }
   0x1   :  { %v570_v0 = vld [vmem:[%s756_s1 + $0x78] sm:$0xff]   ;;  %v574_v4 = vld [vmem:[%s756_s1 + $0x70] sm:$0xff]   ;;  %v578_v8 = vld [vmem:[%s756_s1 + $0x68] sm:$0xff]  }
   0x2   :  { %v571_v1 = vld [vmem:[%s756_s1 + $0x38] sm:$0xff]   ;;  %507 = vmatprep.subr.bf16.mxu0 %v570_v0  ;;  %v575_v5 = vld [vmem:[%s756_s1 + $0x30] sm:$0xff]   ;;  %v579_v9 = vld [vmem:[%s756_s1 + $0x28] sm:$0xff]  }
   0x3   :  { %v572_v2 = vld [vmem:[%s756_s1 + $0xf8] sm:$0xff]   ;;  %508 = vmatpush3.bf16.msra.mxu0 %v571_v1  ;;  %v576_v6 = vld [vmem:[%s756_s1 + $0xf0] sm:$0xff]   ;;  %v580_v10 = vld [vmem:[%s756_s1 + $0xe8] sm:$0xff]  }
   0x4   :  { %v573_v3 = vld [vmem:[%s756_s1 + $0xb8] sm:$0xff]   ;;  %529 = vmatprep.subr.bf16.mxu1 %v572_v2  ;;  %509 = vmatprep.subr.bf16.mxu0 %v574_v4  ;;  %v577_v7 = vld [vmem:[%s756_s1 + $0xb0] sm:$0xff]   ;;  %v581_v11 = vld [vmem:[%s756_s1 + $0xa8] sm:$0xff]  }
   0x5   :  { %530 = vmatpush3.bf16.msra.mxu1 %v573_v3  ;;  %v582_v12 = vld [vmem:[%s756_s1 + $0x60] sm:$0xff]   ;;  %v586_v16 = vld [vmem:[%s756_s1 + $0x58] sm:$0xff]   ;;  %v590_v20 = vld [vmem:[%s756_s1 + $0x50] sm:$0xff]  }
   0x6   :  { %531 = vmatprep.subr.bf16.mxu1 %v576_v6  ;;  %v583_v13 = vld [vmem:[%s756_s1 + $0x20] sm:$0xff]   ;;  %v587_v17 = vld [vmem:[%s756_s1 + $0x18] sm:$0xff]   ;;  %v591_v21 = vld [vmem:[%s756_s1 + $0x10] sm:$0xff]  }
   0x7   :  { %510 = vmatpush3.bf16.msra.mxu0 %v575_v5  ;;  %v584_v14 = vld [vmem:[%s756_s1 + $0xe0] sm:$0xff]   ;;  %v588_v18 = vld [vmem:[%s756_s1 + $0xd8] sm:$0xff]   ;;  %v592_v22 = vld [vmem:[%s756_s1 + $0xd0] sm:$0xff]  }
   0x8   :  { %511 = vmatprep.subr.bf16.mxu0 %v578_v8  ;;  %v585_v15 = vld [vmem:[%s756_s1 + $0xa0] sm:$0xff]   ;;  %v589_v19 = vld [vmem:[%s756_s1 + $0x98] sm:$0xff]   ;;  %v593_v23 = vld [vmem:[%s756_s1 + $0x90] sm:$0xff]  }
   0x9   :  { %532 = vmatpush3.bf16.msra.mxu1 %v577_v7  ;;  %v594_v24 = vld [vmem:[%s756_s1 + $0x48] sm:$0xff]   ;;  %v598_v28 = vld [vmem:[%s756_s1 + $0x40] sm:$0xff]   ;;  %v607_v39 = vld [vmem:[%s756_s1 + $0x118] sm:$0xff]  }
   0xa   :  { %533 = vmatprep.subr.bf16.mxu1 %v580_v10  ;;  %v595_v25 = vld [vmem:[%s756_s1 + $0x8] sm:$0xff]   ;;  %v599_v29 = vld [vmem:[%s756_s1] sm:$0xff]   ;;  %v608_v40 = vld [vmem:[%s756_s1 + $0x110] sm:$0xff]  }
   0xb   :  { %512 = vmatpush3.bf16.msra.mxu0 %v579_v9  ;;  %v596_v26 = vld [vmem:[%s756_s1 + $0xc8] sm:$0xff]   ;;  %v600_v30 = vld [vmem:[%s756_s1 + $0xc0] sm:$0xff]   ;;  %v603_v43 = vld [vmem:[%s757_s0 + $0x10] ss:$0 sps:$4 sm:$0xff]  }
   0xc   :  { %513 = vmatprep.subr.bf16.mxu0 %v582_v12  ;;  %v597_v27 = vld [vmem:[%s756_s1 + $0x88] sm:$0xff]   ;;  %v15_v31 = vld [vmem:[%s757_s0] sm:$0xff] }
   0xd   :  { %534 = vmatpush3.bf16.msra.mxu1 %v581_v11  ;;  %v465_v32 = vcombine.low %v15_v31, %v15_v31  ;;  %v466_v33 = vcombine.high %v15_v31, %v15_v31  ;;  %v604_v34 = vld [vmem:[%s756_s1 + $0x80] sm:$0xff]   ;;  %v16_v36 = vld [vmem:[%s757_s0 + $0x8] sm:$0xff] }
   0xe   :  { %535 = vmatprep.subr.bf16.mxu1 %v584_v14  ;;  %v467_v37 = vcombine.low %v16_v36, %v16_v36  ;;  %v468_v38 = vcombine.high %v16_v36, %v16_v36  ;;  %v609_v41 = vld [vmem:[%s756_s1 + $0x108] sm:$0xff]   ;;  %v610_v42 = vld [vmem:[%s756_s1 + $0x100] sm:$0xff]  }
   0xf   :  { %514 = vmatpush3.bf16.msra.mxu0 %v583_v13  ;;  %366 = vmatprep.mubr.bf16.mxu0 %v466_v33  ;;  %v464_v52 = vld [vmem:[%s758_s2] ss:$0 sm:$0xff] }
  0x10   :  { %515 = vmatprep.subr.bf16.mxu0 %v586_v16  ;;  %406 = vmatprep.mubr.bf16.mxu1 %v468_v38 }
  0x11   :  { %536 = vmatpush3.bf16.msra.mxu1 %v585_v15 }
  0x12   :  { %537 = vmatprep.subr.bf16.mxu1 %v588_v18 }
  0x13   :  { %516 = vmatpush3.bf16.msra.mxu0 %v587_v17 }
  0x14   :  { %517 = vmatprep.subr.bf16.mxu0 %v590_v20 }
  0x15   :  { %538 = vmatpush3.bf16.msra.mxu1 %v589_v19 }
  0x16   :  { %539 = vmatprep.subr.bf16.mxu1 %v592_v22 }
  0x17   :  { %518 = vmatpush3.bf16.msra.mxu0 %v591_v21 }
  0x18   :  { %519 = vmatprep.subr.bf16.mxu0 %v594_v24 }
  0x19   :  { %540 = vmatpush3.bf16.msra.mxu1 %v593_v23 }
  0x1a   :  { %541 = vmatprep.subr.bf16.mxu1 %v596_v26 }
  0x1b   :  { %520 = vmatpush3.bf16.msra.mxu0 %v595_v25 }
  0x1c   :  { %521 = vmatprep.subr.bf16.mxu0 %v598_v28 }
  0x1d   :  { %542 = vmatpush3.bf16.msra.mxu1 %v597_v27 }
  0x1e   :  { %543 = vmatprep.subr.bf16.mxu1 %v600_v30 }
  0x1f   :  { %522 = vmatpush3.bf16.msra.mxu0 %v599_v29 }
  0x20   :  { %556 = vmatprep.subr.bf16.mxu0 %v611_v35 }
  0x21   :  { %544 = vmatpush3.bf16.msra.mxu1 %v604_v34 }
  0x22   :  { %367 = vmatmul.mubr.bf16.vlgmr.msra.gmra.mxu0 %v465_v32 }
  0x23   :  { %557 = vmatpush3.bf16.msra.mxu0 %v607_v39  ;;  %564 = vmatprep.mubr.msk.bf16.mxu0 %vm612_vm0, %v611_v35 }
  0x24   :  { %407 = vmatmul.mubr.bf16.vlgmr.msra.gmra.mxu1 %v467_v37  ;;  %558 = vmatprep.subr.bf16.mxu0 %v611_v35 }
  0x27   :  { %559 = vmatpush3.bf16.msra.mxu0 %v608_v40 }
  0x28   :  { %560 = vmatprep.subr.bf16.mxu0 %v611_v35 }
  0x2b   :  { %561 = vmatpush3.bf16.msra.mxu0 %v609_v41 }
  0x2c   :  { %562 = vmatprep.subr.bf16.mxu0 %v611_v35 }
  0x2f   :  { %563 = vmatpush3.bf16.msra.mxu0 %v610_v42 }
  0x32   :  { %565 = vmatmul.mubr.msk.bf16.vlgmr.msra.gmra.mxu0 %vm330_vm1, %v603_v43 }
  0xe2   :  { %v523_v44 = vpop.f32.mrf.mxu0 }
  0xe4   :  { %v524_v45 = vpop.f32.mrf.mxu0  ;;  %v545_v46 = vpop.f32.mrf.mxu1 }
  0xe5   :  { %v525_v51 = vadd.f32 %v524_v45, %v523_v44 }
  0xe6   :  { %v526_v47 = vpop.f32.mrf.mxu0  ;;  %v546_v48 = vpop.f32.mrf.mxu1 }
  0xe7   :  { %v369_v54 = vadd.f32 %v525_v51, %v464_v52  ;;  %v547_v55 = vadd.f32 %v546_v48, %v545_v46 }
  0xe8   :  { %v527_v49 = vpop.f32.mrf.mxu0  ;;  %v548_v50 = vpop.f32.mrf.mxu1 }
  0xe9   :  { %v409_v56 = vadd.f32 %v547_v55, %v369_v54 }
  0xea   :  { %v549_v53 = vpop.f32.mrf.mxu1 }
  0xf2   :  { %v448_v57 = vpop.f32.mrf.mxu0 }
  0xf3   :  { %v449_v58 = vadd.f32 %v448_v57, %v409_v56 }
  0xf4   :  { %v566_v59 = vpop.f32.mrf.mxu0 }
  0xf5   :  { %vm454_vm2 = vcmp.ge.f32.partialorder %v449_v58, 0.0  ;;  %v455_v60 = vmul.f32 0.1, %v449_v58 }
  0xf6   :  { %v451_v61 = vpop.f32.mrf.mxu0 }
  0xf7   :  { %v456_v62 = vsel %vm454_vm2, %v449_v58, %v455_v60 }
  0xf8   :  { %v457_v63 = vpack.c.bf16 %v456_v62, %v456_v62  ;;  %v567_v0 = vpop.f32.mrf.mxu0 }
  0xfa   :  { %459 = vst.msk [vmem:[%s759_s3] sm:$0xf] %vm458_vm3, %v457_v63 }

// kernel: _lambda_.31
= control target key start
LH: loop header
LB: loop body
LE: loop exit
PB: predicated region body
PF: predicated region fallthrough
CT: control target
= control target key end

     0   :  { %v706_v35 = vmov 0.0   ;;  %vm707_vm0 = vmmov 0   ;;  %vm487_vm1 = vcmask 261120   ;;  %vm339_vm2 = vcmask 523264   ;;  %s878_s1 = inlined_call_operand.vmem [shape: bf16[576,64], index: 1, kind: input, shape index: {}]   ;;  %s879_s0 = inlined_call_operand.vmem [shape: bf16[8,576], index: 0, kind: input, shape index: {}]   ;;  %s880_s4 = inlined_call_operand.vmem [shape: bf16[32,64], index: 4, kind: input, shape index: {}]   ;;  %s881_s3 = inlined_call_operand.vmem [shape: bf16[8,32], index: 3, kind: input, shape index: {}]   ;;  %s882_s2 = inlined_call_operand.vmem [shape: f32[1,64], index: 2, kind: input, shape index: {}, may-alias: {2,5}]   ;;  %s883_s5 = inlined_call_operand.vmem [shape: f32[1,64], index: 5, kind: input, shape index: {}, may-alias: {2,5}]   ;;  %s884_s6 = inlined_call_operand.vmem [shape: bf16[8,64], index: 6, kind: output, shape index: {}]  }
   0x1   :  { %v663_v0 = vld [vmem:[%s878_s1 + $0x78] sm:$0xff]   ;;  %v667_v4 = vld [vmem:[%s878_s1 + $0x70] sm:$0xff]   ;;  %v671_v8 = vld [vmem:[%s878_s1 + $0x68] sm:$0xff]   ;;  %vm536_vm4 = vcmask 519168  }
   0x2   :  { %v664_v1 = vld [vmem:[%s878_s1 + $0x38] sm:$0xff]   ;;  %589 = vmatprep.subr.bf16.mxu0 %v663_v0  ;;  %v668_v5 = vld [vmem:[%s878_s1 + $0x30] sm:$0xff]   ;;  %v672_v9 = vld [vmem:[%s878_s1 + $0x28] sm:$0xff]  }
   0x3   :  { %v665_v2 = vld [vmem:[%s878_s1 + $0xf8] sm:$0xff]   ;;  %590 = vmatpush3.bf16.msra.mxu0 %v664_v1  ;;  %v669_v6 = vld [vmem:[%s878_s1 + $0xf0] sm:$0xff]   ;;  %v673_v10 = vld [vmem:[%s878_s1 + $0xe8] sm:$0xff]  }
   0x4   :  { %v666_v3 = vld [vmem:[%s878_s1 + $0xb8] sm:$0xff]   ;;  %611 = vmatprep.subr.bf16.mxu1 %v665_v2  ;;  %591 = vmatprep.subr.bf16.mxu0 %v667_v4  ;;  %v670_v7 = vld [vmem:[%s878_s1 + $0xb0] sm:$0xff]   ;;  %v674_v11 = vld [vmem:[%s878_s1 + $0xa8] sm:$0xff]  }
   0x5   :  { %612 = vmatpush3.bf16.msra.mxu1 %v666_v3  ;;  %v675_v12 = vld [vmem:[%s878_s1 + $0x60] sm:$0xff]   ;;  %v679_v16 = vld [vmem:[%s878_s1 + $0x58] sm:$0xff]   ;;  %v683_v20 = vld [vmem:[%s878_s1 + $0x50] sm:$0xff]  }
   0x6   :  { %613 = vmatprep.subr.bf16.mxu1 %v669_v6  ;;  %v676_v13 = vld [vmem:[%s878_s1 + $0x20] sm:$0xff]   ;;  %v680_v17 = vld [vmem:[%s878_s1 + $0x18] sm:$0xff]   ;;  %v684_v21 = vld [vmem:[%s878_s1 + $0x10] sm:$0xff]  }
   0x7   :  { %592 = vmatpush3.bf16.msra.mxu0 %v668_v5  ;;  %v677_v14 = vld [vmem:[%s878_s1 + $0xe0] sm:$0xff]   ;;  %v681_v18 = vld [vmem:[%s878_s1 + $0xd8] sm:$0xff]   ;;  %v685_v22 = vld [vmem:[%s878_s1 + $0xd0] sm:$0xff]  }
   0x8   :  { %593 = vmatprep.subr.bf16.mxu0 %v671_v8  ;;  %v678_v15 = vld [vmem:[%s878_s1 + $0xa0] sm:$0xff]   ;;  %v682_v19 = vld [vmem:[%s878_s1 + $0x98] sm:$0xff]   ;;  %v686_v23 = vld [vmem:[%s878_s1 + $0x90] sm:$0xff]  }
   0x9   :  { %614 = vmatpush3.bf16.msra.mxu1 %v670_v7  ;;  %v687_v24 = vld [vmem:[%s878_s1 + $0x48] sm:$0xff]   ;;  %v691_v28 = vld [vmem:[%s878_s1 + $0x40] sm:$0xff]   ;;  %v700_v39 = vld [vmem:[%s878_s1 + $0x118] sm:$0xff]  }
   0xa   :  { %615 = vmatprep.subr.bf16.mxu1 %v673_v10  ;;  %v688_v25 = vld [vmem:[%s878_s1 + $0x8] sm:$0xff]   ;;  %v692_v29 = vld [vmem:[%s878_s1] sm:$0xff]   ;;  %v702_v41 = vld [vmem:[%s878_s1 + $0x110] sm:$0xff]  }
   0xb   :  { %594 = vmatpush3.bf16.msra.mxu0 %v672_v9  ;;  %v689_v26 = vld [vmem:[%s878_s1 + $0xc8] sm:$0xff]   ;;  %v693_v30 = vld [vmem:[%s878_s1 + $0xc0] sm:$0xff]   ;;  %v696_v46 = vld [vmem:[%s879_s0 + $0x10] ss:$0 sps:$4 sm:$0xff]  }
   0xc   :  { %595 = vmatprep.subr.bf16.mxu0 %v675_v12  ;;  %v690_v27 = vld [vmem:[%s878_s1 + $0x88] sm:$0xff]   ;;  %v24_v31 = vld [vmem:[%s879_s0] sm:$0xff] }
   0xd   :  { %616 = vmatpush3.bf16.msra.mxu1 %v674_v11  ;;  %v543_v32 = vcombine.low %v24_v31, %v24_v31  ;;  %v544_v33 = vcombine.high %v24_v31, %v24_v31  ;;  %v697_v34 = vld [vmem:[%s878_s1 + $0x80] sm:$0xff]   ;;  %v25_v36 = vld [vmem:[%s879_s0 + $0x8] sm:$0xff] }
   0xe   :  { %617 = vmatprep.subr.bf16.mxu1 %v677_v14  ;;  %v545_v37 = vcombine.low %v25_v36, %v25_v36  ;;  %v546_v38 = vcombine.high %v25_v36, %v25_v36  ;;  %v701_v40 = vld [vmem:[%s880_s4 + $0x8] sm:$0xff]   ;;  %v703_v42 = vld [vmem:[%s880_s4] sm:$0xff]  }
   0xf   :  { %596 = vmatpush3.bf16.msra.mxu0 %v676_v13  ;;  %375 = vmatprep.mubr.bf16.mxu0 %v544_v33  ;;  %v704_v43 = vld [vmem:[%s878_s1 + $0x108] sm:$0xff]   ;;  %v463_v44 = vld [vmem:[%s881_s3] sm:$0xf] }
  0x10   :  { %597 = vmatprep.subr.bf16.mxu0 %v679_v16  ;;  %415 = vmatprep.mubr.bf16.mxu1 %v546_v38  ;;  %v705_v45 = vld [vmem:[%s878_s1 + $0x100] sm:$0xff]  }
  0x11   :  { %618 = vmatpush3.bf16.msra.mxu1 %v678_v15  ;;  %v542_v55 = vld [vmem:[%s882_s2] ss:$0 sm:$0xff] }
  0x12   :  { %619 = vmatprep.subr.bf16.mxu1 %v681_v18  ;;  %v585_v60 = vld [vmem:[%s883_s5] ss:$0 sm:$0xff] }
  0x13   :  { %598 = vmatpush3.bf16.msra.mxu0 %v680_v17 }
  0x14   :  { %599 = vmatprep.subr.bf16.mxu0 %v683_v20 }
  0x15   :  { %620 = vmatpush3.bf16.msra.mxu1 %v682_v19 }
  0x16   :  { %621 = vmatprep.subr.bf16.mxu1 %v685_v22 }
  0x17   :  { %600 = vmatpush3.bf16.msra.mxu0 %v684_v21 }
  0x18   :  { %601 = vmatprep.subr.bf16.mxu0 %v687_v24 }
  0x19   :  { %622 = vmatpush3.bf16.msra.mxu1 %v686_v23 }
  0x1a   :  { %623 = vmatprep.subr.bf16.mxu1 %v689_v26 }
  0x1b   :  { %602 = vmatpush3.bf16.msra.mxu0 %v688_v25 }
  0x1c   :  { %603 = vmatprep.subr.bf16.mxu0 %v691_v28 }
  0x1d   :  { %624 = vmatpush3.bf16.msra.mxu1 %v690_v27 }
  0x1e   :  { %625 = vmatprep.subr.bf16.mxu1 %v693_v30 }
  0x1f   :  { %604 = vmatpush3.bf16.msra.mxu0 %v692_v29 }
  0x20   :  { %641 = vmatprep.subr.bf16.mxu0 %v706_v35 }
  0x21   :  { %626 = vmatpush3.bf16.msra.mxu1 %v697_v34 }
  0x22   :  { %376 = vmatmul.mubr.bf16.vlgmr.msra.gmra.mxu0 %v543_v32  ;;  %653 = vmatprep.subr.bf16.mxu1 %v706_v35 }
  0x23   :  { %642 = vmatpush3.bf16.msra.mxu0 %v700_v39  ;;  %649 = vmatprep.mubr.msk.bf16.mxu0 %vm707_vm0, %v706_v35 }
  0x24   :  { %416 = vmatmul.mubr.bf16.vlgmr.msra.gmra.mxu1 %v545_v37  ;;  %643 = vmatprep.subr.bf16.mxu0 %v706_v35 }
  0x25   :  { %654 = vmatpush3.bf16.msra.mxu1 %v701_v40  ;;  %657 = vmatprep.mubr.msk.bf16.mxu1 %vm707_vm0, %v706_v35 }
  0x26   :  { %655 = vmatprep.subr.bf16.mxu1 %v706_v35 }
  0x27   :  { %644 = vmatpush3.bf16.msra.mxu0 %v702_v41 }
  0x28   :  { %645 = vmatprep.subr.bf16.mxu0 %v706_v35 }
  0x29   :  { %656 = vmatpush3.bf16.msra.mxu1 %v703_v42 }
  0x2b   :  { %646 = vmatpush3.bf16.msra.mxu0 %v704_v43 }
  0x2c   :  { %658 = vmatmul.mubr.msk.bf16.vlgmr.msra.gmra.mxu1 %vm487_vm1, %v463_v44  ;;  %647 = vmatprep.subr.bf16.mxu0 %v706_v35 }
  0x2f   :  { %648 = vmatpush3.bf16.msra.mxu0 %v705_v45 }
  0x32   :  { %650 = vmatmul.mubr.msk.bf16.vlgmr.msra.gmra.mxu0 %vm339_vm2, %v696_v46 }
  0xe2   :  { %v605_v47 = vpop.f32.mrf.mxu0 }
  0xe4   :  { %v606_v48 = vpop.f32.mrf.mxu0  ;;  %v627_v49 = vpop.f32.mrf.mxu1 }
  0xe5   :  { %v607_v54 = vadd.f32 %v606_v48, %v605_v47 }
  0xe6   :  { %v608_v50 = vpop.f32.mrf.mxu0  ;;  %v628_v51 = vpop.f32.mrf.mxu1 }
  0xe7   :  { %v378_v58 = vadd.f32 %v607_v54, %v542_v55  ;;  %v629_v59 = vadd.f32 %v628_v51, %v627_v49 }
  0xe8   :  { %v609_v52 = vpop.f32.mrf.mxu0  ;;  %v630_v53 = vpop.f32.mrf.mxu1 }
  0xe9   :  { %v418_v0 = vadd.f32 %v629_v59, %v378_v58 }
  0xea   :  { %v631_v56 = vpop.f32.mrf.mxu1 }
  0xec   :  { %v525_v57 = vpop.f32.mrf.mxu1 }
  0xed   :  { %v526_v63 = vadd.f32 %v585_v60, %v525_v57 }
  0xee   :  { %v659_v61 = vpop.f32.mrf.mxu1 }
  0xf0   :  { %v528_v62 = vpop.f32.mrf.mxu1 }
  0xf2   :  { %v457_v1 = vpop.f32.mrf.mxu0  ;;  %v660_v2 = vpop.f32.mrf.mxu1 }
  0xf3   :  { %v458_v3 = vadd.f32 %v457_v1, %v418_v0 }
  0xf4   :  { %v651_v4 = vpop.f32.mrf.mxu0 }
  0xf5   :  { %v531_v5 = vadd.f32 %v526_v63, %v458_v3 }
  0xf6   :  { %v460_v6 = vpop.f32.mrf.mxu0 }
  0xf7   :  { %vm532_vm3 = vcmp.ge.f32.partialorder %v531_v5, 0.0  ;;  %v533_v7 = vmul.f32 0.1, %v531_v5 }
  0xf8   :  { %v652_v8 = vpop.f32.mrf.mxu0 }
  0xf9   :  { %v534_v9 = vsel %vm532_vm3, %v531_v5, %v533_v7 }
  0xfa   :  { %v535_v10 = vpack.c.bf16 %v534_v9, %v534_v9 }
  0xfc   :  { %537 = vst.msk [vmem:[%s884_s6] sm:$0xf] %vm536_vm4, %v535_v10 }

// kernel: _lambda_.33
= control target key start
LH: loop header
LB: loop body
LE: loop exit
PB: predicated region body
PF: predicated region fallthrough
CT: control target
= control target key end

     0   :  { %10 = vsyncpa [#allocation3], 0  ;;  %s3012_s0 = inlined_call_operand.vmem [shape: bf16[2,1,64], index: 0, kind: input, shape index: {}]   ;;  %s3013_s1 = inlined_call_operand.vmem [shape: f32[2,1764,64], index: 1, kind: input, shape index: {}]   ;;  %s3014_s2 = inlined_call_operand.vmem [shape: f32[1764,64], index: 2, kind: input, shape index: {}]   ;;  %s3015_s3 = inlined_call_operand.vmem [shape: f32[64,4], index: 3, kind: input, shape index: {}]   ;;  %s3016_s4 = inlined_call_operand.vmem [shape: f32[4,64], index: 4, kind: input, shape index: {}]   ;;  %s3017_s5 = inlined_call_operand.hbm [shape: f32[2,1,64], index: 5, kind: output, shape index: {}]  }
   0x1   :  { %12 = vsyncpa [#allocation3 + $0x1], 0  ;;  %s1784_s18 = smov 0   ;;  %s1786_s19 = smov 0  }
   0x2   :  { %s1788_s20 = smov 0   ;;  %s1790_s21 = smov 0  }
   0x3 LB: > { %s1805_s22 = sadd.s32 4294967295, %s1749_s21   ;;  %s1597_s23 = sadd.s32 4294967294, %s1749_s21   ;;  %s1749_s21 = sphi %s1790_s21, %s3023_s21   ;;  %s1745_s20 = sphi %s1788_s20, %s3022_s20   ;;  %s1741_s19 = sphi %s1786_s19, %s3021_s19   ;;  %s1737_s18 = sphi %s1784_s18, %s3020_s18  }
   0x4   : > { %s1809_s24 = sadd.s32 1, %s1749_s21   ;;  %s140_s25 = sadd.s32 1, %s1745_s20 }
   0x5   : > { %s137_s26 = ssub.s32 %s1749_s21, %s1809_s24  ;;  %p150_p0 = scmp.ne.s32.totalorder %s1745_s20, %s1741_s19 }
   0x6   : > { %p138_p1 = scmp.eq.s32.totalorder %s137_s26, 0  ;;  %p151_p2 = scmp.eq.s32.totalorder %s1805_s22, 1 }
   0x7   : > { %p156_p3 = scmp.ne.s32.totalorder %s1741_s19, %s1737_s18  ;;  %p157_p4 = scmp.eq.s32.totalorder %s1597_s23, 1 }
   0x8   : > { %s1820_s27 = scalar_select %p138_p1, %s1745_s20, %s140_s25  }
   0x9   : > { %p1822_p5 = por %p151_p2, %p150_p0  ;;  %p1826_p6 = por %p157_p4, %p156_p3 }
   0xa   : > { %p1600_p7 = scmp.ge.s32.totalorder %s1749_s21, 1  ;;  %p198_p8 = scmp.lt.s32.totalorder %s1749_s21, 3 }
   0xc   : > { %p199_p9 = pnand %p1600_p7, %p198_p8 }
   0xd   : > { %p228_p10 = scmp.lt.s32.totalorder (!%p199_p9), %s1805_s22, 1  ;;  %s226_s7 = sand.u32 (!%p199_p9), 1, %s1741_s19  }
   0xe   : > { %202 = sbr.rel (%p199_p9) target bundleno = 917 (0x395), region = 40  ;;  %s1605_s8 = sshll.u32 (!%p199_p9), %s1805_s22, 4 }
   0xf   : > { %s227_s10 = scalar_lea.vmem (!%p199_p9), [#allocation2], %s226_s7  ;;  %s1531_s14 = scalar_lea.hbm (!%p199_p9), %s3017_s5, %s1605_s8 }
  0x10   : > { %s1533_s11 = sshll.u32 (!%p199_p9), %s227_s10, 4  ;;  %s1521_s15 = scalar_lea.sflag (!%p199_p9), [#allocation3], %s226_s7  ;;  %s1534_s11 = int_to_ptr.vmem [resolvable:$true] %s1533_s11 }
  0x11   : > { %s1689_s16 = scalar_lea.vmem (!%p199_p9), %s1534_s11, 16 }
  0x12   : > { %p1690_p11 = scmp.ne.s32.totalorder (!%p199_p9), %s1534_s11, %s1689_s16 }
  0x13   : > { %v1355_v0 = vld [vmem:[%s3015_s3 + $0x38] sm:$0xff]  ;;  %v1751_v1 = vmov 0.0   ;;  %v1354_v2 = vld [vmem:[%s3015_s3 + $0x30] sm:$0xff]  ;;  %vm1752_vm0 = vmmov 0   ;;  %v1353_v3 = vld [vmem:[%s3015_s3 + $0x28] sm:$0xff]  ;;  %s1858_s30 = scalar_select %p228_p10, %s1805_s22, 1 }
  0x14   : > { %1619 = vmatprep.subr.mxu0 %v1751_v1  ;;  %1635 = vmatprep.mubr.msk.f32.mxu0 %vm1752_vm0, %v1751_v1  ;;  %v1352_v4 = vld [vmem:[%s3015_s3 + $0x20] sm:$0xff]  ;;  %v1351_v5 = vld [vmem:[%s3015_s3 + $0x18] sm:$0xff]  ;;  %v1350_v6 = vld [vmem:[%s3015_s3 + $0x10] sm:$0xff]  ;;  %vm899_vm1 = vcmask 523264   ;;  %vm1339_vm2 = vcmask 519168   ;;  %vm1435_vm3 = vcmask 1043456   ;;  %p1691_p12 = pnand %p1690_p11, %p1822_p5 }
  0x15   : > { %1620 = vmatpush3.msra.mxu0 %v1355_v0  ;;  %1638 = vmatprep.subr.mxu1 %v1751_v1  ;;  %v1349_v7 = vld [vmem:[%s3015_s3 + $0x8] sm:$0xff]  ;;  %v1348_v8 = vld [vmem:[%s3015_s3] sm:$0xff]  ;;  %s1643_s6 = smul.u32 1768, %s1858_s30  ;;  %v459_v16 = vld [vmem:[%s3014_s2 + $0x10] sm:$0xff]  ;;  %vm1431_vm4 = vcmask 31744   ;;  %vm1518_vm5 = vcmask 516096  }
  0x16   : > { %1621 = vmatprep.subr.mxu0 %v1751_v1  ;;  %1640 = vmatprep.mubr.msk.f32.mxu1 %vm1752_vm0, %v1751_v1  ;;  %v457_v9 = vld [vmem:[%s3014_s2] sm:$0xff]  ;;  %v458_v12 = vld [vmem:[%s3014_s2 + $0x8] sm:$0xff]  ;;  %v460_v21 = vld [vmem:[%s3014_s2 + $0x18] sm:$0xff]  ;;  %p1692_p13 = pneg %p1691_p12 }
  0x17   : > { %1622 = vmatpush3.msra.mxu0 %v1354_v2  ;;  %s1864_s9 = scalar_lea.vmem %s3013_s1, %s1643_s6  ;;  %v461_v26 = vld [vmem:[%s3014_s2 + $0x20] sm:$0xff]  ;;  %v462_v31 = vld [vmem:[%s3014_s2 + $0x28] sm:$0xff]  ;;  %v463_v36 = vld [vmem:[%s3014_s2 + $0x30] sm:$0xff]  ;;  %s230_s6 = scalar_lea.vmem %s3012_s0, %s1858_s30 }
  0x18   : > { %1623 = vmatprep.subr.mxu0 %v1751_v1  ;;  %v236_v10 = vld [vmem:[%s1864_s9] sm:$0xff]  ;;  %v237_v11 = vld [vmem:[%s1864_s9 + $0x8] sm:$0xff]  ;;  %v238_v15 = vld [vmem:[%s1864_s9 + $0x10] sm:$0xff]  ;;  %s1753_s30 = smov [#allocation2]  }
  0x19   : > { %1624 = vmatpush3.msra.mxu0 %v1353_v3  ;;  %v678_v13 = vmul.f32 %v457_v9, %v236_v10  ;;  %v679_v14 = vmul.f32 %v458_v12, %v237_v11  ;;  %v680_v17 = vmul.f32 %v459_v16, %v238_v15  ;;  %v239_v20 = vld [vmem:[%s1864_s9 + $0x18] sm:$0xff]  ;;  %v240_v25 = vld [vmem:[%s1864_s9 + $0x20] sm:$0xff]  ;;  %v241_v30 = vld [vmem:[%s1864_s9 + $0x28] sm:$0xff]  ;;  %s1693_s17 = sshll.u32 %s1753_s30, 4  ;;  %s1694_s17 = int_to_ptr.vmem [resolvable:$false] %s1693_s17 }
  0x1a   : > { %1625 = vmatprep.subr.mxu0 %v1751_v1  ;;  %v681_v23 = vmul.f32 %v460_v21, %v239_v20  ;;  %v682_v28 = vmul.f32 %v461_v26, %v240_v25  ;;  %v683_v33 = vmul.f32 %v462_v31, %v241_v30  ;;  %v242_v35 = vld [vmem:[%s1864_s9 + $0x30] sm:$0xff]  ;;  %v243_v40 = vld [vmem:[%s1864_s9 + $0x38] sm:$0xff]  ;;  %v244_v45 = vld [vmem:[%s1864_s9 + $0x40] sm:$0xff]  ;;  %s1695_s22 = scalar_lea.vmem %s1694_s17, 32  ;;  %p1696_p0 = scmp.lt.s32.totalorder %s1534_s11, %s1694_s17 }
  0x1b   : > { %1626 = vmatpush3.msra.mxu0 %v1352_v4  ;;  %v900_v18 = vsel %vm899_vm1, %v678_v13, 0.0  ;;  %v901_v19 = vsel %vm899_vm1, %v679_v14, 0.0  ;;  %v903_v24 = vsel %vm899_vm1, %v680_v17, 0.0  ;;  %v684_v38 = vmul.f32 %v463_v36, %v242_v35  ;;  %v464_v41 = vld [vmem:[%s3014_s2 + $0x38] sm:$0xff]  ;;  %v465_v46 = vld [vmem:[%s3014_s2 + $0x40] sm:$0xff]  ;;  %v245_v50 = vld [vmem:[%s1864_s9 + $0x48] sm:$0xff]  ;;  %p1697_p1 = scmp.lt.s32.totalorder %s1695_s22, %s1689_s16 }
  0x1c   : > { %1627 = vmatprep.subr.mxu0 %v1751_v1  ;;  %v902_v22 = vadd.f32 %v901_v19, %v900_v18  ;;  %v905_v29 = vsel %vm899_vm1, %v681_v23, 0.0  ;;  %v907_v34 = vsel %vm899_vm1, %v682_v28, 0.0  ;;  %v909_v39 = vsel %vm899_vm1, %v683_v33, 0.0  ;;  %v466_v51 = vld [vmem:[%s3014_s2 + $0x48] sm:$0xff]  ;;  %v246_v55 = vld [vmem:[%s1864_s9 + $0x50] sm:$0xff]  ;;  %v247_v60 = vld [vmem:[%s1864_s9 + $0x58] sm:$0xff] }
  0x1d   : > { %1628 = vmatpush3.msra.mxu0 %v1351_v5  ;;  %v685_v43 = vmul.f32 %v464_v41, %v243_v40  ;;  %v911_v44 = vsel %vm899_vm1, %v684_v38, 0.0  ;;  %v686_v48 = vmul.f32 %v465_v46, %v244_v45  ;;  %v687_v53 = vmul.f32 %v466_v51, %v245_v50  ;;  %v467_v56 = vld [vmem:[%s3014_s2 + $0x50] sm:$0xff]  ;;  %v468_v61 = vld [vmem:[%s3014_s2 + $0x58] sm:$0xff]  ;;  %v469_v2 = vld [vmem:[%s3014_s2 + $0x60] sm:$0xff]  ;;  %p1698_p2 = por %p1697_p1, %p1696_p0 }
  0x1e   : > { %1629 = vmatprep.subr.mxu0 %v1751_v1  ;;  %v904_v27 = vadd.f32 %v903_v24, %v902_v22  ;;  %v688_v58 = vmul.f32 %v467_v56, %v246_v55  ;;  %v689_v63 = vmul.f32 %v468_v61, %v247_v60  ;;  %v250_v9 = vld [vmem:[%s1864_s9 + $0x70] sm:$0xff]  ;;  %v251_v10 = vld [vmem:[%s1864_s9 + $0x78] sm:$0xff]  ;;  %v470_v11 = vld [vmem:[%s3014_s2 + $0x68] sm:$0xff] }
  0x1f   : > { %1630 = vmatpush3.msra.mxu0 %v1350_v6  ;;  %v913_v49 = vsel %vm899_vm1, %v685_v43, 0.0  ;;  %v915_v54 = vsel %vm899_vm1, %v686_v48, 0.0  ;;  %v917_v59 = vsel %vm899_vm1, %v687_v53, 0.0  ;;  %v471_v13 = vld [vmem:[%s3014_s2 + $0x70] sm:$0xff]  ;;  %v472_v14 = vld [vmem:[%s3014_s2 + $0x78] sm:$0xff]  ;;  %v252_v16 = vld [vmem:[%s1864_s9 + $0x80] sm:$0xff]  ;;  %p1699_p3 = pnand %p1698_p2, %p1692_p13 }
  0x20   : > { %1631 = vmatprep.subr.mxu0 %v1751_v1  ;;  %v906_v32 = vadd.f32 %v905_v29, %v904_v27  ;;  %v919_v0 = vsel %vm899_vm1, %v688_v58, 0.0  ;;  %v921_v5 = vsel %vm899_vm1, %v689_v63, 0.0  ;;  %v473_v17 = vld [vmem:[%s3014_s2 + $0x80] sm:$0xff]  ;;  %v692_v18 = vmul.f32 %v471_v13, %v250_v9  ;;  %v253_v21 = vld [vmem:[%s1864_s9 + $0x88] sm:$0xff]  ;;  %v254_v26 = vld [vmem:[%s1864_s9 + $0x90] sm:$0xff] }
  0x21   : > { %1632 = vmatpush3.msra.mxu0 %v1349_v7  ;;  %v693_v19 = vmul.f32 %v472_v14, %v251_v10  ;;  %v474_v22 = vld [vmem:[%s3014_s2 + $0x88] sm:$0xff]  ;;  %v694_v24 = vmul.f32 %v473_v17, %v252_v16  ;;  %v475_v27 = vld [vmem:[%s3014_s2 + $0x90] sm:$0xff]  ;;  %v255_v31 = vld [vmem:[%s1864_s9 + $0x98] sm:$0xff] }
  0x22   : > { %1633 = vmatprep.subr.mxu0 %v1751_v1  ;;  %v908_v37 = vadd.f32 %v907_v34, %v906_v32  ;;  %v248_v1 = vld [vmem:[%s1864_s9 + $0x60] sm:$0xff]  ;;  %v927_v25 = vsel %vm899_vm1, %v692_v18, 0.0  ;;  %v695_v29 = vmul.f32 %v474_v22, %v253_v21  ;;  %v476_v32 = vld [vmem:[%s3014_s2 + $0x98] sm:$0xff]  ;;  %v696_v34 = vmul.f32 %v475_v27, %v254_v26  ;;  %v257_v41 = vld [vmem:[%s1864_s9 + $0xa8] sm:$0xff] }
  0x23   : > { %1634 = vmatpush3.msra.mxu0 %v1348_v8  ;;  %v690_v4 = vmul.f32 %v469_v2, %v248_v1  ;;  %v249_v8 = vld [vmem:[%s1864_s9 + $0x68] sm:$0xff]  ;;  %v929_v30 = vsel %vm899_vm1, %v693_v19, 0.0  ;;  %v931_v35 = vsel %vm899_vm1, %v694_v24, 0.0  ;;  %v256_v36 = vld [vmem:[%s1864_s9 + $0xa0] sm:$0xff]  ;;  %v258_v46 = vld [vmem:[%s1864_s9 + $0xb0] sm:$0xff] }
  0x24   : > { %v910_v42 = vadd.f32 %v909_v39, %v908_v37  ;;  %v691_v15 = vmul.f32 %v470_v11, %v249_v8  ;;  %v477_v37 = vld [vmem:[%s3014_s2 + $0xa0] sm:$0xff]  ;;  %v697_v39 = vmul.f32 %v476_v32, %v255_v31  ;;  %v933_v40 = vsel %vm899_vm1, %v695_v29, 0.0  ;;  %v259_v51 = vld [vmem:[%s1864_s9 + $0xb8] sm:$0xff]  ;;  %v261_v61 = vld [vmem:[%s1864_s9 + $0xc8] sm:$0xff] }
  0x25   : > { %v923_v7 = vsel %vm899_vm1, %v690_v4, 0.0  ;;  %v935_v45 = vsel %vm899_vm1, %v696_v34, 0.0  ;;  %v260_v56 = vld [vmem:[%s1864_s9 + $0xc0] sm:$0xff]  ;;  %v262_v2 = vld [vmem:[%s1864_s9 + $0xd0] sm:$0xff]  ;;  %v484_v8 = vld [vmem:[%s3014_s2 + $0xd8] sm:$0xff] }
  0x26   : > { %v912_v47 = vadd.f32 %v911_v44, %v910_v42  ;;  %v925_v20 = vsel %vm899_vm1, %v691_v15, 0.0  ;;  %v478_v42 = vld [vmem:[%s3014_s2 + $0xa8] sm:$0xff]  ;;  %v698_v44 = vmul.f32 %v477_v37, %v256_v36  ;;  %v937_v50 = vsel %vm899_vm1, %v697_v39, 0.0  ;;  %v485_v13 = vld [vmem:[%s3014_s2 + $0xe0] sm:$0xff]  ;;  %v266_v22 = vld [vmem:[%s1864_s9 + $0xf0] sm:$0xff] }
  0x27   : > { %v265_v17 = vld [vmem:[%s1864_s9 + $0xe8] sm:$0xff]  ;;  %v267_v27 = vld [vmem:[%s1864_s9 + $0xf8] sm:$0xff]  ;;  %v268_v32 = vld [vmem:[%s1864_s9 + $0x100] sm:$0xff] }
  0x28   : > { %v914_v52 = vadd.f32 %v913_v49, %v912_v47  ;;  %v479_v47 = vld [vmem:[%s3014_s2 + $0xb0] sm:$0xff]  ;;  %v699_v49 = vmul.f32 %v478_v42, %v257_v41  ;;  %v939_v55 = vsel %vm899_vm1, %v698_v44, 0.0  ;;  %v486_v18 = vld [vmem:[%s3014_s2 + $0xe8] sm:$0xff] }
  0x29   : > { %v269_v37 = vld [vmem:[%s1864_s9 + $0x108] sm:$0xff]  ;;  %v270_v42 = vld [vmem:[%s1864_s9 + $0x110] sm:$0xff] }
  0x2a   : > { %v916_v57 = vadd.f32 %v915_v54, %v914_v52  ;;  %v480_v52 = vld [vmem:[%s3014_s2 + $0xb8] sm:$0xff]  ;;  %v700_v54 = vmul.f32 %v479_v47, %v258_v46  ;;  %v941_v60 = vsel %vm899_vm1, %v699_v49, 0.0 }
  0x2b   : > { %v271_v47 = vld [vmem:[%s1864_s9 + $0x118] sm:$0xff] }
  0x2c   : > { %v918_v62 = vadd.f32 %v917_v59, %v916_v57  ;;  %v481_v57 = vld [vmem:[%s3014_s2 + $0xc0] sm:$0xff]  ;;  %v701_v59 = vmul.f32 %v480_v52, %v259_v51  ;;  %v943_v1 = vsel %vm899_vm1, %v700_v54, 0.0 }
  0x2d   : > { %v272_v52 = vld [vmem:[%s1864_s9 + $0x120] sm:$0xff] }
  0x2e   : > { %v920_v3 = vadd.f32 %v919_v0, %v918_v62  ;;  %v482_v62 = vld [vmem:[%s3014_s2 + $0xc8] sm:$0xff]  ;;  %v702_v0 = vmul.f32 %v481_v57, %v260_v56 }
  0x2f   : > { %v273_v57 = vld [vmem:[%s1864_s9 + $0x128] sm:$0xff] }
  0x30   : > { %v922_v6 = vadd.f32 %v921_v5, %v920_v3  ;;  %v483_v3 = vld [vmem:[%s3014_s2 + $0xd0] sm:$0xff]  ;;  %v703_v5 = vmul.f32 %v482_v62, %v261_v61  ;;  %v947_v11 = vsel %vm899_vm1, %v702_v0, 0.0 }
  0x31   : > { %v704_v10 = vmul.f32 %v483_v3, %v262_v2  ;;  %v274_v62 = vld [vmem:[%s1864_s9 + $0x130] sm:$0xff]  ;;  %v275_v3 = vld [vmem:[%s1864_s9 + $0x138] sm:$0xff] }
  0x32   : > { %v924_v12 = vadd.f32 %v923_v7, %v922_v6  ;;  %v945_v6 = vsel %vm899_vm1, %v701_v59, 0.0  ;;  %v263_v7 = vld [vmem:[%s1864_s9 + $0xd8] sm:$0xff]  ;;  %v949_v16 = vsel %vm899_vm1, %v703_v5, 0.0 }
  0x33   : > { %v705_v15 = vmul.f32 %v484_v8, %v263_v7  ;;  %v951_v21 = vsel %vm899_vm1, %v704_v10, 0.0  ;;  %v276_v8 = vld [vmem:[%s1864_s9 + $0x140] sm:$0xff] }
  0x34   : > { %v926_v23 = vadd.f32 %v925_v20, %v924_v12  ;;  %v264_v12 = vld [vmem:[%s1864_s9 + $0xe0] sm:$0xff] }
  0x35   : > { %v706_v20 = vmul.f32 %v485_v13, %v264_v12  ;;  %v953_v26 = vsel %vm899_vm1, %v705_v15, 0.0  ;;  %v277_v13 = vld [vmem:[%s1864_s9 + $0x148] sm:$0xff] }
  0x36   : > { %v928_v28 = vadd.f32 %v927_v25, %v926_v23  ;;  %v487_v23 = vld [vmem:[%s3014_s2 + $0xf0] sm:$0xff]  ;;  %v707_v25 = vmul.f32 %v486_v18, %v265_v17 }
  0x37   : > { %v955_v31 = vsel %vm899_vm1, %v706_v20, 0.0  ;;  %v278_v18 = vld [vmem:[%s1864_s9 + $0x150] sm:$0xff] }
  0x38   : > { %v930_v33 = vadd.f32 %v929_v30, %v928_v28  ;;  %v488_v28 = vld [vmem:[%s3014_s2 + $0xf8] sm:$0xff]  ;;  %v708_v30 = vmul.f32 %v487_v23, %v266_v22  ;;  %v957_v36 = vsel %vm899_vm1, %v707_v25, 0.0 }
  0x39   : > { %v279_v23 = vld [vmem:[%s1864_s9 + $0x158] sm:$0xff] }
  0x3a   : > { %v932_v38 = vadd.f32 %v931_v35, %v930_v33  ;;  %v489_v33 = vld [vmem:[%s3014_s2 + $0x100] sm:$0xff]  ;;  %v709_v35 = vmul.f32 %v488_v28, %v267_v27  ;;  %v959_v41 = vsel %vm899_vm1, %v708_v30, 0.0 }
  0x3b   : > { %v280_v28 = vld [vmem:[%s1864_s9 + $0x160] sm:$0xff] }
  0x3c   : > { %v934_v43 = vadd.f32 %v933_v40, %v932_v38  ;;  %v490_v38 = vld [vmem:[%s3014_s2 + $0x108] sm:$0xff]  ;;  %v710_v40 = vmul.f32 %v489_v33, %v268_v32  ;;  %v961_v46 = vsel %vm899_vm1, %v709_v35, 0.0 }
  0x3d   : > { %v281_v33 = vld [vmem:[%s1864_s9 + $0x168] sm:$0xff] }
  0x3e   : > { %v936_v48 = vadd.f32 %v935_v45, %v934_v43  ;;  %v491_v43 = vld [vmem:[%s3014_s2 + $0x110] sm:$0xff]  ;;  %v711_v45 = vmul.f32 %v490_v38, %v269_v37  ;;  %v963_v51 = vsel %vm899_vm1, %v710_v40, 0.0 }
  0x3f   : > { %v282_v38 = vld [vmem:[%s1864_s9 + $0x170] sm:$0xff] }
  0x40   : > { %v938_v53 = vadd.f32 %v937_v50, %v936_v48  ;;  %v492_v48 = vld [vmem:[%s3014_s2 + $0x118] sm:$0xff]  ;;  %v712_v50 = vmul.f32 %v491_v43, %v270_v42  ;;  %v965_v56 = vsel %vm899_vm1, %v711_v45, 0.0 }
  0x41   : > { %v504_v45 = vld [vmem:[%s3014_s2 + $0x178] sm:$0xff] }
  0x42   : > { %v940_v58 = vadd.f32 %v939_v55, %v938_v53  ;;  %v493_v53 = vld [vmem:[%s3014_s2 + $0x120] sm:$0xff]  ;;  %v713_v55 = vmul.f32 %v492_v48, %v271_v47  ;;  %v967_v61 = vsel %vm899_vm1, %v712_v50, 0.0  ;;  %v285_v50 = vld [vmem:[%s1864_s9 + $0x188] sm:$0xff] }
  0x44   : > { %v942_v63 = vadd.f32 %v941_v60, %v940_v58  ;;  %v494_v58 = vld [vmem:[%s3014_s2 + $0x128] sm:$0xff]  ;;  %v714_v60 = vmul.f32 %v493_v53, %v272_v52  ;;  %v969_v2 = vsel %vm899_vm1, %v713_v55, 0.0 }
  0x46   : > { %v944_v4 = vadd.f32 %v943_v1, %v942_v63  ;;  %v495_v63 = vld [vmem:[%s3014_s2 + $0x130] sm:$0xff]  ;;  %v715_v1 = vmul.f32 %v494_v58, %v273_v57  ;;  %v971_v7 = vsel %vm899_vm1, %v714_v60, 0.0 }
  0x47   : > { %v507_v57 = vld [vmem:[%s3014_s2 + $0x190] sm:$0xff] }
  0x48   : > { %v946_v9 = vadd.f32 %v945_v6, %v944_v4  ;;  %v496_v4 = vld [vmem:[%s3014_s2 + $0x138] sm:$0xff]  ;;  %v716_v6 = vmul.f32 %v495_v63, %v274_v62  ;;  %v973_v12 = vsel %vm899_vm1, %v715_v1, 0.0 }
  0x49   : > { %v508_v62 = vld [vmem:[%s3014_s2 + $0x198] sm:$0xff] }
  0x4a   : > { %v948_v14 = vadd.f32 %v947_v11, %v946_v9  ;;  %v497_v9 = vld [vmem:[%s3014_s2 + $0x140] sm:$0xff]  ;;  %v717_v11 = vmul.f32 %v496_v4, %v275_v3  ;;  %v975_v17 = vsel %vm899_vm1, %v716_v6, 0.0 }
  0x4b   : > { %v288_v3 = vld [vmem:[%s1864_s9 + $0x1a0] sm:$0xff] }
  0x4c   : > { %v950_v19 = vadd.f32 %v949_v16, %v948_v14  ;;  %v498_v14 = vld [vmem:[%s3014_s2 + $0x148] sm:$0xff]  ;;  %v718_v16 = vmul.f32 %v497_v9, %v276_v8  ;;  %v977_v22 = vsel %vm899_vm1, %v717_v11, 0.0  ;;  %v509_v4 = vld [vmem:[%s3014_s2 + $0x1a0] sm:$0xff] }
  0x4d   : > { %v289_v8 = vld [vmem:[%s1864_s9 + $0x1a8] sm:$0xff]  ;;  %v730_v11 = vmul.f32 %v509_v4, %v288_v3 }
  0x4e   : > { %v952_v24 = vadd.f32 %v951_v21, %v950_v19  ;;  %v499_v19 = vld [vmem:[%s3014_s2 + $0x150] sm:$0xff]  ;;  %v719_v21 = vmul.f32 %v498_v14, %v277_v13  ;;  %v979_v27 = vsel %vm899_vm1, %v718_v16, 0.0  ;;  %v510_v9 = vld [vmem:[%s3014_s2 + $0x1a8] sm:$0xff] }
  0x4f   : > { %v290_v13 = vld [vmem:[%s1864_s9 + $0x1b0] sm:$0xff]  ;;  %v731_v16 = vmul.f32 %v510_v9, %v289_v8  ;;  %v301_v4 = vld [vmem:[%s1864_s9 + $0x208] sm:$0xff] }
  0x50   : > { %v954_v29 = vadd.f32 %v953_v26, %v952_v24  ;;  %v500_v24 = vld [vmem:[%s3014_s2 + $0x158] sm:$0xff]  ;;  %v720_v26 = vmul.f32 %v499_v19, %v278_v18  ;;  %v981_v32 = vsel %vm899_vm1, %v719_v21, 0.0  ;;  %v511_v14 = vld [vmem:[%s3014_s2 + $0x1b0] sm:$0xff] }
  0x51   : > { %v291_v18 = vld [vmem:[%s1864_s9 + $0x1b8] sm:$0xff]  ;;  %v732_v21 = vmul.f32 %v511_v14, %v290_v13  ;;  %v302_v9 = vld [vmem:[%s1864_s9 + $0x210] sm:$0xff] }
  0x52   : > { %v956_v34 = vadd.f32 %v955_v31, %v954_v29  ;;  %v501_v29 = vld [vmem:[%s3014_s2 + $0x160] sm:$0xff]  ;;  %v721_v31 = vmul.f32 %v500_v24, %v279_v23  ;;  %v983_v37 = vsel %vm899_vm1, %v720_v26, 0.0  ;;  %v512_v19 = vld [vmem:[%s3014_s2 + $0x1b8] sm:$0xff] }
  0x53   : > { %v292_v23 = vld [vmem:[%s1864_s9 + $0x1c0] sm:$0xff]  ;;  %v733_v26 = vmul.f32 %v512_v19, %v291_v18  ;;  %v303_v14 = vld [vmem:[%s1864_s9 + $0x218] sm:$0xff] }
  0x54   : > { %v958_v39 = vadd.f32 %v957_v36, %v956_v34  ;;  %v502_v34 = vld [vmem:[%s3014_s2 + $0x168] sm:$0xff]  ;;  %v722_v36 = vmul.f32 %v501_v29, %v280_v28  ;;  %v985_v43 = vsel %vm899_vm1, %v721_v31, 0.0  ;;  %v513_v24 = vld [vmem:[%s3014_s2 + $0x1c0] sm:$0xff] }
  0x55   : > { %v723_v42 = vmul.f32 %v502_v34, %v281_v33  ;;  %v293_v28 = vld [vmem:[%s1864_s9 + $0x1c8] sm:$0xff]  ;;  %v734_v31 = vmul.f32 %v513_v24, %v292_v23  ;;  %v294_v33 = vld [vmem:[%s1864_s9 + $0x1d0] sm:$0xff]  ;;  %v304_v19 = vld [vmem:[%s1864_s9 + $0x220] sm:$0xff] }
  0x56   : > { %v960_v44 = vadd.f32 %v959_v41, %v958_v39  ;;  %v503_v39 = vld [vmem:[%s3014_s2 + $0x170] sm:$0xff]  ;;  %v283_v41 = vld [vmem:[%s1864_s9 + $0x178] sm:$0xff]  ;;  %v514_v29 = vld [vmem:[%s3014_s2 + $0x1c8] sm:$0xff] }
  0x57   : > { %v724_v48 = vmul.f32 %v503_v39, %v282_v38  ;;  %v725_v53 = vmul.f32 %v504_v45, %v283_v41  ;;  %v989_v55 = vsel %vm899_vm1, %v723_v42, 0.0  ;;  %v515_v34 = vld [vmem:[%s3014_s2 + $0x1d0] sm:$0xff]  ;;  %v295_v38 = vld [vmem:[%s1864_s9 + $0x1d8] sm:$0xff]  ;;  %v1011_v42 = vsel %vm899_vm1, %v734_v31, 0.0  ;;  %v305_v24 = vld [vmem:[%s1864_s9 + $0x228] sm:$0xff] }
  0x58   : > { %v962_v49 = vadd.f32 %v961_v46, %v960_v44  ;;  %v284_v44 = vld [vmem:[%s1864_s9 + $0x180] sm:$0xff]  ;;  %v516_v39 = vld [vmem:[%s3014_s2 + $0x1d8] sm:$0xff]  ;;  %v736_v41 = vmul.f32 %v515_v34, %v294_v33 }
  0x59   : > { %v505_v46 = vld [vmem:[%s3014_s2 + $0x180] sm:$0xff]  ;;  %v991_v60 = vsel %vm899_vm1, %v724_v48, 0.0  ;;  %v993_v1 = vsel %vm899_vm1, %v725_v53, 0.0  ;;  %v297_v48 = vld [vmem:[%s1864_s9 + $0x1e8] sm:$0xff]  ;;  %v298_v53 = vld [vmem:[%s1864_s9 + $0x1f0] sm:$0xff] }
  0x5a   : > { %v964_v54 = vadd.f32 %v963_v51, %v962_v49  ;;  %v987_v49 = vsel %vm899_vm1, %v722_v36, 0.0  ;;  %v506_v51 = vld [vmem:[%s3014_s2 + $0x188] sm:$0xff]  ;;  %v735_v36 = vmul.f32 %v514_v29, %v293_v28  ;;  %v306_v29 = vld [vmem:[%s1864_s9 + $0x230] sm:$0xff]  ;;  %v307_v34 = vld [vmem:[%s1864_s9 + $0x238] sm:$0xff] }
  0x5c   : > { %v966_v59 = vadd.f32 %v965_v56, %v964_v54  ;;  %v726_v54 = vmul.f32 %v505_v46, %v284_v44  ;;  %v286_v56 = vld [vmem:[%s1864_s9 + $0x190] sm:$0xff]  ;;  %v517_v44 = vld [vmem:[%s3014_s2 + $0x1e0] sm:$0xff]  ;;  %v737_v46 = vmul.f32 %v516_v39, %v295_v38 }
  0x5d   : > { %v308_v39 = vld [vmem:[%s1864_s9 + $0x240] sm:$0xff] }
  0x5e   : > { %v968_v0 = vadd.f32 %v967_v61, %v966_v59  ;;  %v727_v59 = vmul.f32 %v506_v51, %v285_v50  ;;  %v287_v61 = vld [vmem:[%s1864_s9 + $0x198] sm:$0xff] }
  0x5f   : > { %v729_v6 = vmul.f32 %v508_v62, %v287_v61 }
  0x60   : > { %v970_v5 = vadd.f32 %v969_v2, %v968_v0  ;;  %v728_v0 = vmul.f32 %v507_v57, %v286_v56  ;;  %v995_v2 = vsel %vm899_vm1, %v726_v54, 0.0  ;;  %v519_v54 = vld [vmem:[%s3014_s2 + $0x1f0] sm:$0xff]  ;;  %v1017_v57 = vsel %vm899_vm1, %v737_v46, 0.0 }
  0x61   : > { %v740_v61 = vmul.f32 %v519_v54, %v298_v53  ;;  %v311_v54 = vld [vmem:[%s1864_s9 + $0x258] sm:$0xff] }
  0x62   : > { %v972_v10 = vadd.f32 %v971_v7, %v970_v5  ;;  %v997_v7 = vsel %vm899_vm1, %v727_v59, 0.0  ;;  %v520_v59 = vld [vmem:[%s3014_s2 + $0x1f8] sm:$0xff] }
  0x63   : > { %v1023_v8 = vsel %vm899_vm1, %v740_v61, 0.0 }
  0x64   : > { %v974_v15 = vadd.f32 %v973_v12, %v972_v10  ;;  %v999_v12 = vsel %vm899_vm1, %v728_v0, 0.0  ;;  %v521_v0 = vld [vmem:[%s3014_s2 + $0x200] sm:$0xff] }
  0x66   : > { %v976_v20 = vadd.f32 %v975_v17, %v974_v15  ;;  %v1001_v17 = vsel %vm899_vm1, %v729_v6, 0.0 }
  0x68   : > { %v978_v25 = vadd.f32 %v977_v22, %v976_v20  ;;  %v1003_v22 = vsel %vm899_vm1, %v730_v11, 0.0 }
  0x6a   : > { %v980_v30 = vadd.f32 %v979_v27, %v978_v25  ;;  %v1005_v27 = vsel %vm899_vm1, %v731_v16, 0.0 }
  0x6c   : > { %v982_v35 = vadd.f32 %v981_v32, %v980_v30  ;;  %v1007_v32 = vsel %vm899_vm1, %v732_v21, 0.0 }
  0x6e   : > { %v984_v40 = vadd.f32 %v983_v37, %v982_v35  ;;  %v1009_v37 = vsel %vm899_vm1, %v733_v26, 0.0 }
  0x70   : > { %v986_v47 = vadd.f32 %v985_v43, %v984_v40  ;;  %v296_v43 = vld [vmem:[%s1864_s9 + $0x1e0] sm:$0xff] }
  0x71   : > { %v738_v51 = vmul.f32 %v517_v44, %v296_v43  ;;  %v309_v44 = vld [vmem:[%s1864_s9 + $0x248] sm:$0xff] }
  0x72   : > { %v988_v52 = vadd.f32 %v987_v49, %v986_v47  ;;  %v1013_v47 = vsel %vm899_vm1, %v735_v36, 0.0  ;;  %v518_v49 = vld [vmem:[%s3014_s2 + $0x1e8] sm:$0xff] }
  0x73   : > { %v739_v56 = vmul.f32 %v518_v49, %v297_v48  ;;  %v1019_v62 = vsel %vm899_vm1, %v738_v51, 0.0  ;;  %v310_v49 = vld [vmem:[%s1864_s9 + $0x250] sm:$0xff] }
  0x74   : > { %v990_v58 = vadd.f32 %v989_v55, %v988_v52  ;;  %v1015_v52 = vsel %vm899_vm1, %v736_v41, 0.0 }
  0x75   : > { %v1021_v3 = vsel %vm899_vm1, %v739_v56, 0.0 }
  0x76   : > { %v992_v63 = vadd.f32 %v991_v60, %v990_v58  ;;  %v299_v58 = vld [vmem:[%s1864_s9 + $0x1f8] sm:$0xff] }
  0x78   : > { %v994_v5 = vadd.f32 %v993_v1, %v992_v63  ;;  %v300_v63 = vld [vmem:[%s1864_s9 + $0x200] sm:$0xff] }
  0x7a   : > { %v996_v10 = vadd.f32 %v995_v2, %v994_v5  ;;  %v741_v2 = vmul.f32 %v520_v59, %v299_v58  ;;  %v522_v5 = vld [vmem:[%s3014_s2 + $0x208] sm:$0xff]  ;;  %v312_v59 = vld [vmem:[%s1864_s9 + $0x260] sm:$0xff] }
  0x7c   : > { %v998_v15 = vadd.f32 %v997_v7, %v996_v10  ;;  %v742_v7 = vmul.f32 %v521_v0, %v300_v63  ;;  %v523_v10 = vld [vmem:[%s3014_s2 + $0x210] sm:$0xff]  ;;  %v1025_v13 = vsel %vm899_vm1, %v741_v2, 0.0  ;;  %v313_v0 = vld [vmem:[%s1864_s9 + $0x268] sm:$0xff] }
  0x7e   : > { %v1000_v20 = vadd.f32 %v999_v12, %v998_v15  ;;  %v743_v12 = vmul.f32 %v522_v5, %v301_v4  ;;  %v524_v15 = vld [vmem:[%s3014_s2 + $0x218] sm:$0xff]  ;;  %v1027_v18 = vsel %vm899_vm1, %v742_v7, 0.0  ;;  %v314_v5 = vld [vmem:[%s1864_s9 + $0x270] sm:$0xff] }
  0x80   : > { %v1002_v25 = vadd.f32 %v1001_v17, %v1000_v20  ;;  %v744_v17 = vmul.f32 %v523_v10, %v302_v9  ;;  %v525_v20 = vld [vmem:[%s3014_s2 + $0x220] sm:$0xff]  ;;  %v1029_v23 = vsel %vm899_vm1, %v743_v12, 0.0  ;;  %v315_v10 = vld [vmem:[%s1864_s9 + $0x278] sm:$0xff] }
  0x82   : > { %v1004_v30 = vadd.f32 %v1003_v22, %v1002_v25  ;;  %v745_v22 = vmul.f32 %v524_v15, %v303_v14  ;;  %v526_v25 = vld [vmem:[%s3014_s2 + $0x228] sm:$0xff]  ;;  %v1031_v28 = vsel %vm899_vm1, %v744_v17, 0.0  ;;  %v316_v15 = vld [vmem:[%s1864_s9 + $0x280] sm:$0xff] }
  0x84   : > { %v1006_v35 = vadd.f32 %v1005_v27, %v1004_v30  ;;  %v746_v27 = vmul.f32 %v525_v20, %v304_v19  ;;  %v527_v30 = vld [vmem:[%s3014_s2 + $0x230] sm:$0xff]  ;;  %v1033_v33 = vsel %vm899_vm1, %v745_v22, 0.0  ;;  %v317_v20 = vld [vmem:[%s1864_s9 + $0x288] sm:$0xff] }
  0x86   : > { %v1008_v40 = vadd.f32 %v1007_v32, %v1006_v35  ;;  %v747_v32 = vmul.f32 %v526_v25, %v305_v24  ;;  %v528_v35 = vld [vmem:[%s3014_s2 + $0x238] sm:$0xff]  ;;  %v1035_v38 = vsel %vm899_vm1, %v746_v27, 0.0  ;;  %v318_v25 = vld [vmem:[%s1864_s9 + $0x290] sm:$0xff] }
  0x88   : > { %v1010_v45 = vadd.f32 %v1009_v37, %v1008_v40  ;;  %v748_v37 = vmul.f32 %v527_v30, %v306_v29  ;;  %v529_v40 = vld [vmem:[%s3014_s2 + $0x240] sm:$0xff]  ;;  %v1037_v43 = vsel %vm899_vm1, %v747_v32, 0.0  ;;  %v319_v30 = vld [vmem:[%s1864_s9 + $0x298] sm:$0xff] }
  0x8a   : > { %v1012_v50 = vadd.f32 %v1011_v42, %v1010_v45  ;;  %v749_v42 = vmul.f32 %v528_v35, %v307_v34  ;;  %v530_v45 = vld [vmem:[%s3014_s2 + $0x248] sm:$0xff]  ;;  %v1039_v48 = vsel %vm899_vm1, %v748_v37, 0.0  ;;  %v320_v35 = vld [vmem:[%s1864_s9 + $0x2a0] sm:$0xff] }
  0x8c   : > { %v1014_v55 = vadd.f32 %v1013_v47, %v1012_v50  ;;  %v750_v47 = vmul.f32 %v529_v40, %v308_v39  ;;  %v531_v50 = vld [vmem:[%s3014_s2 + $0x250] sm:$0xff]  ;;  %v1041_v53 = vsel %vm899_vm1, %v749_v42, 0.0  ;;  %v321_v40 = vld [vmem:[%s1864_s9 + $0x2a8] sm:$0xff] }
  0x8e   : > { %v1016_v60 = vadd.f32 %v1015_v52, %v1014_v55  ;;  %v751_v52 = vmul.f32 %v530_v45, %v309_v44  ;;  %v532_v55 = vld [vmem:[%s3014_s2 + $0x258] sm:$0xff]  ;;  %v1043_v58 = vsel %vm899_vm1, %v750_v47, 0.0  ;;  %v322_v45 = vld [vmem:[%s1864_s9 + $0x2b0] sm:$0xff] }
  0x90   : > { %v1018_v1 = vadd.f32 %v1017_v57, %v1016_v60  ;;  %v752_v57 = vmul.f32 %v531_v50, %v310_v49  ;;  %v533_v60 = vld [vmem:[%s3014_s2 + $0x260] sm:$0xff]  ;;  %v1045_v63 = vsel %vm899_vm1, %v751_v52, 0.0  ;;  %v323_v50 = vld [vmem:[%s1864_s9 + $0x2b8] sm:$0xff] }
  0x92   : > { %v1020_v6 = vadd.f32 %v1019_v62, %v1018_v1  ;;  %v753_v62 = vmul.f32 %v532_v55, %v311_v54  ;;  %v534_v1 = vld [vmem:[%s3014_s2 + $0x268] sm:$0xff]  ;;  %v1047_v4 = vsel %vm899_vm1, %v752_v57, 0.0  ;;  %v324_v55 = vld [vmem:[%s1864_s9 + $0x2c0] sm:$0xff] }
  0x94   : > { %v1022_v11 = vadd.f32 %v1021_v3, %v1020_v6  ;;  %v754_v3 = vmul.f32 %v533_v60, %v312_v59  ;;  %v535_v6 = vld [vmem:[%s3014_s2 + $0x270] sm:$0xff]  ;;  %v1049_v9 = vsel %vm899_vm1, %v753_v62, 0.0  ;;  %v325_v60 = vld [vmem:[%s1864_s9 + $0x2c8] sm:$0xff] }
  0x96   : > { %v1024_v16 = vadd.f32 %v1023_v8, %v1022_v11  ;;  %v755_v8 = vmul.f32 %v534_v1, %v313_v0  ;;  %v536_v11 = vld [vmem:[%s3014_s2 + $0x278] sm:$0xff]  ;;  %v1051_v14 = vsel %vm899_vm1, %v754_v3, 0.0  ;;  %v326_v1 = vld [vmem:[%s1864_s9 + $0x2d0] sm:$0xff] }
  0x98   : > { %v1026_v21 = vadd.f32 %v1025_v13, %v1024_v16  ;;  %v756_v13 = vmul.f32 %v535_v6, %v314_v5  ;;  %v537_v16 = vld [vmem:[%s3014_s2 + $0x280] sm:$0xff]  ;;  %v1053_v19 = vsel %vm899_vm1, %v755_v8, 0.0  ;;  %v327_v6 = vld [vmem:[%s1864_s9 + $0x2d8] sm:$0xff] }
  0x9a   : > { %v1028_v26 = vadd.f32 %v1027_v18, %v1026_v21  ;;  %v757_v18 = vmul.f32 %v536_v11, %v315_v10  ;;  %v538_v21 = vld [vmem:[%s3014_s2 + $0x288] sm:$0xff]  ;;  %v1055_v24 = vsel %vm899_vm1, %v756_v13, 0.0  ;;  %v328_v11 = vld [vmem:[%s1864_s9 + $0x2e0] sm:$0xff] }
  0x9c   : > { %v1030_v31 = vadd.f32 %v1029_v23, %v1028_v26  ;;  %v758_v23 = vmul.f32 %v537_v16, %v316_v15  ;;  %v539_v26 = vld [vmem:[%s3014_s2 + $0x290] sm:$0xff]  ;;  %v1057_v29 = vsel %vm899_vm1, %v757_v18, 0.0  ;;  %v329_v16 = vld [vmem:[%s1864_s9 + $0x2e8] sm:$0xff] }
  0x9e   : > { %v1032_v36 = vadd.f32 %v1031_v28, %v1030_v31  ;;  %v759_v28 = vmul.f32 %v538_v21, %v317_v20  ;;  %v540_v31 = vld [vmem:[%s3014_s2 + $0x298] sm:$0xff]  ;;  %v1059_v34 = vsel %vm899_vm1, %v758_v23, 0.0  ;;  %v330_v21 = vld [vmem:[%s1864_s9 + $0x2f0] sm:$0xff] }
  0xa0   : > { %v1034_v41 = vadd.f32 %v1033_v33, %v1032_v36  ;;  %v760_v33 = vmul.f32 %v539_v26, %v318_v25  ;;  %v541_v36 = vld [vmem:[%s3014_s2 + $0x2a0] sm:$0xff]  ;;  %v1061_v39 = vsel %vm899_vm1, %v759_v28, 0.0  ;;  %v331_v26 = vld [vmem:[%s1864_s9 + $0x2f8] sm:$0xff] }
  0xa2   : > { %v1036_v46 = vadd.f32 %v1035_v38, %v1034_v41  ;;  %v761_v38 = vmul.f32 %v540_v31, %v319_v30  ;;  %v542_v41 = vld [vmem:[%s3014_s2 + $0x2a8] sm:$0xff]  ;;  %v1063_v44 = vsel %vm899_vm1, %v760_v33, 0.0  ;;  %v332_v31 = vld [vmem:[%s1864_s9 + $0x300] sm:$0xff] }
  0xa4   : > { %v1038_v51 = vadd.f32 %v1037_v43, %v1036_v46  ;;  %v762_v43 = vmul.f32 %v541_v36, %v320_v35  ;;  %v543_v46 = vld [vmem:[%s3014_s2 + $0x2b0] sm:$0xff]  ;;  %v1065_v49 = vsel %vm899_vm1, %v761_v38, 0.0  ;;  %v333_v36 = vld [vmem:[%s1864_s9 + $0x308] sm:$0xff] }
  0xa6   : > { %v1040_v56 = vadd.f32 %v1039_v48, %v1038_v51  ;;  %v763_v48 = vmul.f32 %v542_v41, %v321_v40  ;;  %v544_v51 = vld [vmem:[%s3014_s2 + $0x2b8] sm:$0xff]  ;;  %v1067_v54 = vsel %vm899_vm1, %v762_v43, 0.0  ;;  %v334_v41 = vld [vmem:[%s1864_s9 + $0x310] sm:$0xff] }
  0xa8   : > { %v1042_v61 = vadd.f32 %v1041_v53, %v1040_v56  ;;  %v764_v53 = vmul.f32 %v543_v46, %v322_v45  ;;  %v545_v56 = vld [vmem:[%s3014_s2 + $0x2c0] sm:$0xff]  ;;  %v1069_v59 = vsel %vm899_vm1, %v763_v48, 0.0  ;;  %v335_v46 = vld [vmem:[%s1864_s9 + $0x318] sm:$0xff] }
  0xaa   : > { %v1044_v2 = vadd.f32 %v1043_v58, %v1042_v61  ;;  %v765_v58 = vmul.f32 %v544_v51, %v323_v50  ;;  %v546_v61 = vld [vmem:[%s3014_s2 + $0x2c8] sm:$0xff]  ;;  %v1071_v0 = vsel %vm899_vm1, %v764_v53, 0.0  ;;  %v336_v51 = vld [vmem:[%s1864_s9 + $0x320] sm:$0xff] }
  0xac   : > { %v1046_v7 = vadd.f32 %v1045_v63, %v1044_v2  ;;  %v766_v63 = vmul.f32 %v545_v56, %v324_v55  ;;  %v547_v2 = vld [vmem:[%s3014_s2 + $0x2d0] sm:$0xff]  ;;  %v1073_v5 = vsel %vm899_vm1, %v765_v58, 0.0  ;;  %v337_v56 = vld [vmem:[%s1864_s9 + $0x328] sm:$0xff] }
  0xae   : > { %v1048_v12 = vadd.f32 %v1047_v4, %v1046_v7  ;;  %v767_v4 = vmul.f32 %v546_v61, %v325_v60  ;;  %v548_v7 = vld [vmem:[%s3014_s2 + $0x2d8] sm:$0xff]  ;;  %v1075_v10 = vsel %vm899_vm1, %v766_v63, 0.0  ;;  %v338_v61 = vld [vmem:[%s1864_s9 + $0x330] sm:$0xff] }
  0xb0   : > { %v1050_v17 = vadd.f32 %v1049_v9, %v1048_v12  ;;  %v768_v9 = vmul.f32 %v547_v2, %v326_v1  ;;  %v549_v12 = vld [vmem:[%s3014_s2 + $0x2e0] sm:$0xff]  ;;  %v1077_v15 = vsel %vm899_vm1, %v767_v4, 0.0  ;;  %v339_v2 = vld [vmem:[%s1864_s9 + $0x338] sm:$0xff] }
  0xb2   : > { %v1052_v22 = vadd.f32 %v1051_v14, %v1050_v17  ;;  %v769_v14 = vmul.f32 %v548_v7, %v327_v6  ;;  %v550_v17 = vld [vmem:[%s3014_s2 + $0x2e8] sm:$0xff]  ;;  %v1079_v20 = vsel %vm899_vm1, %v768_v9, 0.0  ;;  %v340_v7 = vld [vmem:[%s1864_s9 + $0x340] sm:$0xff] }
  0xb4   : > { %v1054_v27 = vadd.f32 %v1053_v19, %v1052_v22  ;;  %v770_v19 = vmul.f32 %v549_v12, %v328_v11  ;;  %v551_v22 = vld [vmem:[%s3014_s2 + $0x2f0] sm:$0xff]  ;;  %v1081_v25 = vsel %vm899_vm1, %v769_v14, 0.0  ;;  %v341_v12 = vld [vmem:[%s1864_s9 + $0x348] sm:$0xff] }
  0xb6   : > { %v1056_v32 = vadd.f32 %v1055_v24, %v1054_v27  ;;  %v771_v24 = vmul.f32 %v550_v17, %v329_v16  ;;  %v552_v27 = vld [vmem:[%s3014_s2 + $0x2f8] sm:$0xff]  ;;  %v1083_v30 = vsel %vm899_vm1, %v770_v19, 0.0  ;;  %v342_v17 = vld [vmem:[%s1864_s9 + $0x350] sm:$0xff] }
  0xb8   : > { %v1058_v37 = vadd.f32 %v1057_v29, %v1056_v32  ;;  %v772_v29 = vmul.f32 %v551_v22, %v330_v21  ;;  %v553_v32 = vld [vmem:[%s3014_s2 + $0x300] sm:$0xff]  ;;  %v1085_v35 = vsel %vm899_vm1, %v771_v24, 0.0  ;;  %v343_v22 = vld [vmem:[%s1864_s9 + $0x358] sm:$0xff] }
  0xba   : > { %v1060_v42 = vadd.f32 %v1059_v34, %v1058_v37  ;;  %v773_v34 = vmul.f32 %v552_v27, %v331_v26  ;;  %v554_v37 = vld [vmem:[%s3014_s2 + $0x308] sm:$0xff]  ;;  %v1087_v40 = vsel %vm899_vm1, %v772_v29, 0.0  ;;  %v344_v27 = vld [vmem:[%s1864_s9 + $0x360] sm:$0xff] }
  0xbc   : > { %v1062_v47 = vadd.f32 %v1061_v39, %v1060_v42  ;;  %v774_v39 = vmul.f32 %v553_v32, %v332_v31  ;;  %v555_v42 = vld [vmem:[%s3014_s2 + $0x310] sm:$0xff]  ;;  %v1089_v45 = vsel %vm899_vm1, %v773_v34, 0.0  ;;  %v345_v32 = vld [vmem:[%s1864_s9 + $0x368] sm:$0xff] }
  0xbe   : > { %v1064_v52 = vadd.f32 %v1063_v44, %v1062_v47  ;;  %v775_v44 = vmul.f32 %v554_v37, %v333_v36  ;;  %v556_v47 = vld [vmem:[%s3014_s2 + $0x318] sm:$0xff]  ;;  %v1091_v50 = vsel %vm899_vm1, %v774_v39, 0.0  ;;  %v346_v37 = vld [vmem:[%s1864_s9 + $0x370] sm:$0xff] }
  0xc0   : > { %v1066_v57 = vadd.f32 %v1065_v49, %v1064_v52  ;;  %v776_v49 = vmul.f32 %v555_v42, %v334_v41  ;;  %v557_v52 = vld [vmem:[%s3014_s2 + $0x320] sm:$0xff]  ;;  %v1093_v55 = vsel %vm899_vm1, %v775_v44, 0.0  ;;  %v347_v42 = vld [vmem:[%s1864_s9 + $0x378] sm:$0xff] }
  0xc2   : > { %v1068_v62 = vadd.f32 %v1067_v54, %v1066_v57  ;;  %v777_v54 = vmul.f32 %v556_v47, %v335_v46  ;;  %v558_v57 = vld [vmem:[%s3014_s2 + $0x328] sm:$0xff]  ;;  %v1095_v60 = vsel %vm899_vm1, %v776_v49, 0.0  ;;  %v348_v47 = vld [vmem:[%s1864_s9 + $0x380] sm:$0xff] }
  0xc4   : > { %v1070_v3 = vadd.f32 %v1069_v59, %v1068_v62  ;;  %v778_v59 = vmul.f32 %v557_v52, %v336_v51  ;;  %v559_v62 = vld [vmem:[%s3014_s2 + $0x330] sm:$0xff]  ;;  %v1097_v1 = vsel %vm899_vm1, %v777_v54, 0.0  ;;  %v349_v52 = vld [vmem:[%s1864_s9 + $0x388] sm:$0xff] }
  0xc6   : > { %v1072_v8 = vadd.f32 %v1071_v0, %v1070_v3  ;;  %v779_v0 = vmul.f32 %v558_v57, %v337_v56  ;;  %v560_v3 = vld [vmem:[%s3014_s2 + $0x338] sm:$0xff]  ;;  %v1099_v6 = vsel %vm899_vm1, %v778_v59, 0.0  ;;  %v350_v57 = vld [vmem:[%s1864_s9 + $0x390] sm:$0xff] }
  0xc8   : > { %v1074_v13 = vadd.f32 %v1073_v5, %v1072_v8  ;;  %v780_v5 = vmul.f32 %v559_v62, %v338_v61  ;;  %v561_v8 = vld [vmem:[%s3014_s2 + $0x340] sm:$0xff]  ;;  %v1101_v11 = vsel %vm899_vm1, %v779_v0, 0.0  ;;  %v351_v62 = vld [vmem:[%s1864_s9 + $0x398] sm:$0xff] }
  0xca   : > { %v1076_v18 = vadd.f32 %v1075_v10, %v1074_v13  ;;  %v781_v10 = vmul.f32 %v560_v3, %v339_v2  ;;  %v562_v13 = vld [vmem:[%s3014_s2 + $0x348] sm:$0xff]  ;;  %v1103_v16 = vsel %vm899_vm1, %v780_v5, 0.0  ;;  %v352_v3 = vld [vmem:[%s1864_s9 + $0x3a0] sm:$0xff] }
  0xcc   : > { %v1078_v23 = vadd.f32 %v1077_v15, %v1076_v18  ;;  %v782_v15 = vmul.f32 %v561_v8, %v340_v7  ;;  %v563_v18 = vld [vmem:[%s3014_s2 + $0x350] sm:$0xff]  ;;  %v1105_v21 = vsel %vm899_vm1, %v781_v10, 0.0  ;;  %v353_v8 = vld [vmem:[%s1864_s9 + $0x3a8] sm:$0xff] }
  0xce   : > { %v1080_v28 = vadd.f32 %v1079_v20, %v1078_v23  ;;  %v783_v20 = vmul.f32 %v562_v13, %v341_v12  ;;  %v564_v23 = vld [vmem:[%s3014_s2 + $0x358] sm:$0xff]  ;;  %v1107_v26 = vsel %vm899_vm1, %v782_v15, 0.0  ;;  %v354_v13 = vld [vmem:[%s1864_s9 + $0x3b0] sm:$0xff] }
  0xd0   : > { %v1082_v33 = vadd.f32 %v1081_v25, %v1080_v28  ;;  %v784_v25 = vmul.f32 %v563_v18, %v342_v17  ;;  %v565_v28 = vld [vmem:[%s3014_s2 + $0x360] sm:$0xff]  ;;  %v1109_v31 = vsel %vm899_vm1, %v783_v20, 0.0  ;;  %v355_v18 = vld [vmem:[%s1864_s9 + $0x3b8] sm:$0xff] }
  0xd2   : > { %v1084_v38 = vadd.f32 %v1083_v30, %v1082_v33  ;;  %v785_v30 = vmul.f32 %v564_v23, %v343_v22  ;;  %v566_v33 = vld [vmem:[%s3014_s2 + $0x368] sm:$0xff]  ;;  %v1111_v36 = vsel %vm899_vm1, %v784_v25, 0.0  ;;  %v356_v23 = vld [vmem:[%s1864_s9 + $0x3c0] sm:$0xff] }
  0xd4   : > { %v1086_v43 = vadd.f32 %v1085_v35, %v1084_v38  ;;  %v786_v35 = vmul.f32 %v565_v28, %v344_v27  ;;  %v567_v38 = vld [vmem:[%s3014_s2 + $0x370] sm:$0xff]  ;;  %v1113_v41 = vsel %vm899_vm1, %v785_v30, 0.0  ;;  %v357_v28 = vld [vmem:[%s1864_s9 + $0x3c8] sm:$0xff] }
  0xd6   : > { %v1088_v48 = vadd.f32 %v1087_v40, %v1086_v43  ;;  %v787_v40 = vmul.f32 %v566_v33, %v345_v32  ;;  %v568_v43 = vld [vmem:[%s3014_s2 + $0x378] sm:$0xff]  ;;  %v1115_v46 = vsel %vm899_vm1, %v786_v35, 0.0  ;;  %v358_v33 = vld [vmem:[%s1864_s9 + $0x3d0] sm:$0xff] }
  0xd8   : > { %v1090_v53 = vadd.f32 %v1089_v45, %v1088_v48  ;;  %v788_v45 = vmul.f32 %v567_v38, %v346_v37  ;;  %v569_v48 = vld [vmem:[%s3014_s2 + $0x380] sm:$0xff]  ;;  %v1117_v51 = vsel %vm899_vm1, %v787_v40, 0.0  ;;  %v359_v38 = vld [vmem:[%s1864_s9 + $0x3d8] sm:$0xff] }
  0xda   : > { %v1092_v58 = vadd.f32 %v1091_v50, %v1090_v53  ;;  %v789_v50 = vmul.f32 %v568_v43, %v347_v42  ;;  %v570_v53 = vld [vmem:[%s3014_s2 + $0x388] sm:$0xff]  ;;  %v1119_v56 = vsel %vm899_vm1, %v788_v45, 0.0  ;;  %v360_v43 = vld [vmem:[%s1864_s9 + $0x3e0] sm:$0xff] }
  0xdc   : > { %v1094_v63 = vadd.f32 %v1093_v55, %v1092_v58  ;;  %v790_v55 = vmul.f32 %v569_v48, %v348_v47  ;;  %v571_v58 = vld [vmem:[%s3014_s2 + $0x390] sm:$0xff]  ;;  %v1121_v61 = vsel %vm899_vm1, %v789_v50, 0.0  ;;  %v361_v48 = vld [vmem:[%s1864_s9 + $0x3e8] sm:$0xff] }
  0xde   : > { %v1096_v4 = vadd.f32 %v1095_v60, %v1094_v63  ;;  %v791_v60 = vmul.f32 %v570_v53, %v349_v52  ;;  %v572_v63 = vld [vmem:[%s3014_s2 + $0x398] sm:$0xff]  ;;  %v1123_v2 = vsel %vm899_vm1, %v790_v55, 0.0  ;;  %v362_v53 = vld [vmem:[%s1864_s9 + $0x3f0] sm:$0xff] }
  0xe0   : > { %v1098_v9 = vadd.f32 %v1097_v1, %v1096_v4  ;;  %v792_v1 = vmul.f32 %v571_v58, %v350_v57  ;;  %v573_v4 = vld [vmem:[%s3014_s2 + $0x3a0] sm:$0xff]  ;;  %v1125_v7 = vsel %vm899_vm1, %v791_v60, 0.0  ;;  %v363_v58 = vld [vmem:[%s1864_s9 + $0x3f8] sm:$0xff] }
  0xe2   : > { %v1100_v14 = vadd.f32 %v1099_v6, %v1098_v9  ;;  %v793_v6 = vmul.f32 %v572_v63, %v351_v62  ;;  %v574_v9 = vld [vmem:[%s3014_s2 + $0x3a8] sm:$0xff]  ;;  %v1127_v12 = vsel %vm899_vm1, %v792_v1, 0.0  ;;  %v364_v63 = vld [vmem:[%s1864_s9 + $0x400] sm:$0xff] }
  0xe4   : > { %v1102_v19 = vadd.f32 %v1101_v11, %v1100_v14  ;;  %v794_v11 = vmul.f32 %v573_v4, %v352_v3  ;;  %v575_v14 = vld [vmem:[%s3014_s2 + $0x3b0] sm:$0xff]  ;;  %v1129_v17 = vsel %vm899_vm1, %v793_v6, 0.0  ;;  %v365_v4 = vld [vmem:[%s1864_s9 + $0x408] sm:$0xff] }
  0xe6   : > { %v1104_v24 = vadd.f32 %v1103_v16, %v1102_v19  ;;  %v795_v16 = vmul.f32 %v574_v9, %v353_v8  ;;  %v576_v19 = vld [vmem:[%s3014_s2 + $0x3b8] sm:$0xff]  ;;  %v1131_v22 = vsel %vm899_vm1, %v794_v11, 0.0  ;;  %v366_v9 = vld [vmem:[%s1864_s9 + $0x410] sm:$0xff] }
  0xe8   : > { %v1106_v29 = vadd.f32 %v1105_v21, %v1104_v24  ;;  %v796_v21 = vmul.f32 %v575_v14, %v354_v13  ;;  %v577_v24 = vld [vmem:[%s3014_s2 + $0x3c0] sm:$0xff]  ;;  %v1133_v27 = vsel %vm899_vm1, %v795_v16, 0.0  ;;  %v367_v14 = vld [vmem:[%s1864_s9 + $0x418] sm:$0xff] }
  0xea   : > { %v1108_v34 = vadd.f32 %v1107_v26, %v1106_v29  ;;  %v797_v26 = vmul.f32 %v576_v19, %v355_v18  ;;  %v578_v29 = vld [vmem:[%s3014_s2 + $0x3c8] sm:$0xff]  ;;  %v1135_v32 = vsel %vm899_vm1, %v796_v21, 0.0  ;;  %v368_v19 = vld [vmem:[%s1864_s9 + $0x420] sm:$0xff] }
  0xec   : > { %v1110_v39 = vadd.f32 %v1109_v31, %v1108_v34  ;;  %v798_v31 = vmul.f32 %v577_v24, %v356_v23  ;;  %v579_v34 = vld [vmem:[%s3014_s2 + $0x3d0] sm:$0xff]  ;;  %v1137_v37 = vsel %vm899_vm1, %v797_v26, 0.0  ;;  %v369_v24 = vld [vmem:[%s1864_s9 + $0x428] sm:$0xff] }
  0xee   : > { %v1112_v44 = vadd.f32 %v1111_v36, %v1110_v39  ;;  %v799_v36 = vmul.f32 %v578_v29, %v357_v28  ;;  %v580_v39 = vld [vmem:[%s3014_s2 + $0x3d8] sm:$0xff]  ;;  %v1139_v42 = vsel %vm899_vm1, %v798_v31, 0.0  ;;  %v370_v29 = vld [vmem:[%s1864_s9 + $0x430] sm:$0xff] }
  0xf0   : > { %v1114_v49 = vadd.f32 %v1113_v41, %v1112_v44  ;;  %v800_v41 = vmul.f32 %v579_v34, %v358_v33  ;;  %v581_v44 = vld [vmem:[%s3014_s2 + $0x3e0] sm:$0xff]  ;;  %v1141_v47 = vsel %vm899_vm1, %v799_v36, 0.0  ;;  %v371_v34 = vld [vmem:[%s1864_s9 + $0x438] sm:$0xff] }
  0xf2   : > { %v1116_v54 = vadd.f32 %v1115_v46, %v1114_v49  ;;  %v801_v46 = vmul.f32 %v580_v39, %v359_v38  ;;  %v582_v49 = vld [vmem:[%s3014_s2 + $0x3e8] sm:$0xff]  ;;  %v1143_v52 = vsel %vm899_vm1, %v800_v41, 0.0  ;;  %v372_v39 = vld [vmem:[%s1864_s9 + $0x440] sm:$0xff] }
  0xf4   : > { %v1118_v59 = vadd.f32 %v1117_v51, %v1116_v54  ;;  %v802_v51 = vmul.f32 %v581_v44, %v360_v43  ;;  %v583_v54 = vld [vmem:[%s3014_s2 + $0x3f0] sm:$0xff]  ;;  %v1145_v57 = vsel %vm899_vm1, %v801_v46, 0.0  ;;  %v373_v44 = vld [vmem:[%s1864_s9 + $0x448] sm:$0xff] }
  0xf6   : > { %v1120_v0 = vadd.f32 %v1119_v56, %v1118_v59  ;;  %v803_v56 = vmul.f32 %v582_v49, %v361_v48  ;;  %v584_v59 = vld [vmem:[%s3014_s2 + $0x3f8] sm:$0xff]  ;;  %v1147_v62 = vsel %vm899_vm1, %v802_v51, 0.0  ;;  %v374_v49 = vld [vmem:[%s1864_s9 + $0x450] sm:$0xff] }
  0xf8   : > { %v1122_v5 = vadd.f32 %v1121_v61, %v1120_v0  ;;  %v804_v61 = vmul.f32 %v583_v54, %v362_v53  ;;  %v585_v0 = vld [vmem:[%s3014_s2 + $0x400] sm:$0xff]  ;;  %v1149_v3 = vsel %vm899_vm1, %v803_v56, 0.0  ;;  %v375_v54 = vld [vmem:[%s1864_s9 + $0x458] sm:$0xff] }
  0xfa   : > { %v1124_v10 = vadd.f32 %v1123_v2, %v1122_v5  ;;  %v805_v2 = vmul.f32 %v584_v59, %v363_v58  ;;  %v586_v5 = vld [vmem:[%s3014_s2 + $0x408] sm:$0xff]  ;;  %v1151_v8 = vsel %vm899_vm1, %v804_v61, 0.0  ;;  %v376_v59 = vld [vmem:[%s1864_s9 + $0x460] sm:$0xff] }
  0xfc   : > { %v1126_v15 = vadd.f32 %v1125_v7, %v1124_v10  ;;  %v806_v7 = vmul.f32 %v585_v0, %v364_v63  ;;  %v587_v10 = vld [vmem:[%s3014_s2 + $0x410] sm:$0xff]  ;;  %v1153_v13 = vsel %vm899_vm1, %v805_v2, 0.0  ;;  %v377_v0 = vld [vmem:[%s1864_s9 + $0x468] sm:$0xff] }
  0xfe   : > { %v1128_v20 = vadd.f32 %v1127_v12, %v1126_v15  ;;  %v807_v12 = vmul.f32 %v586_v5, %v365_v4  ;;  %v588_v15 = vld [vmem:[%s3014_s2 + $0x418] sm:$0xff]  ;;  %v1155_v18 = vsel %vm899_vm1, %v806_v7, 0.0  ;;  %v378_v5 = vld [vmem:[%s1864_s9 + $0x470] sm:$0xff] }
 0x100   : > { %v1130_v25 = vadd.f32 %v1129_v17, %v1128_v20  ;;  %v808_v17 = vmul.f32 %v587_v10, %v366_v9  ;;  %v589_v20 = vld [vmem:[%s3014_s2 + $0x420] sm:$0xff]  ;;  %v1157_v23 = vsel %vm899_vm1, %v807_v12, 0.0  ;;  %v379_v10 = vld [vmem:[%s1864_s9 + $0x478] sm:$0xff] }
 0x102   : > { %v1132_v30 = vadd.f32 %v1131_v22, %v1130_v25  ;;  %v809_v22 = vmul.f32 %v588_v15, %v367_v14  ;;  %v590_v25 = vld [vmem:[%s3014_s2 + $0x428] sm:$0xff]  ;;  %v1159_v28 = vsel %vm899_vm1, %v808_v17, 0.0  ;;  %v380_v15 = vld [vmem:[%s1864_s9 + $0x480] sm:$0xff] }
 0x104   : > { %v1134_v35 = vadd.f32 %v1133_v27, %v1132_v30  ;;  %v810_v27 = vmul.f32 %v589_v20, %v368_v19  ;;  %v591_v30 = vld [vmem:[%s3014_s2 + $0x430] sm:$0xff]  ;;  %v1161_v33 = vsel %vm899_vm1, %v809_v22, 0.0  ;;  %v381_v20 = vld [vmem:[%s1864_s9 + $0x488] sm:$0xff] }
 0x106   : > { %v1136_v40 = vadd.f32 %v1135_v32, %v1134_v35  ;;  %v811_v32 = vmul.f32 %v590_v25, %v369_v24  ;;  %v592_v35 = vld [vmem:[%s3014_s2 + $0x438] sm:$0xff]  ;;  %v1163_v38 = vsel %vm899_vm1, %v810_v27, 0.0  ;;  %v382_v25 = vld [vmem:[%s1864_s9 + $0x490] sm:$0xff] }
 0x108   : > { %v1138_v45 = vadd.f32 %v1137_v37, %v1136_v40  ;;  %v812_v37 = vmul.f32 %v591_v30, %v370_v29  ;;  %v593_v40 = vld [vmem:[%s3014_s2 + $0x440] sm:$0xff]  ;;  %v1165_v43 = vsel %vm899_vm1, %v811_v32, 0.0  ;;  %v383_v30 = vld [vmem:[%s1864_s9 + $0x498] sm:$0xff] }
 0x10a   : > { %v1140_v50 = vadd.f32 %v1139_v42, %v1138_v45  ;;  %v813_v42 = vmul.f32 %v592_v35, %v371_v34  ;;  %v594_v45 = vld [vmem:[%s3014_s2 + $0x448] sm:$0xff]  ;;  %v1167_v48 = vsel %vm899_vm1, %v812_v37, 0.0  ;;  %v384_v35 = vld [vmem:[%s1864_s9 + $0x4a0] sm:$0xff] }
 0x10c   : > { %v1142_v55 = vadd.f32 %v1141_v47, %v1140_v50  ;;  %v814_v47 = vmul.f32 %v593_v40, %v372_v39  ;;  %v595_v50 = vld [vmem:[%s3014_s2 + $0x450] sm:$0xff]  ;;  %v1169_v53 = vsel %vm899_vm1, %v813_v42, 0.0  ;;  %v385_v40 = vld [vmem:[%s1864_s9 + $0x4a8] sm:$0xff] }
 0x10e   : > { %v1144_v60 = vadd.f32 %v1143_v52, %v1142_v55  ;;  %v815_v52 = vmul.f32 %v594_v45, %v373_v44  ;;  %v596_v55 = vld [vmem:[%s3014_s2 + $0x458] sm:$0xff]  ;;  %v1171_v58 = vsel %vm899_vm1, %v814_v47, 0.0  ;;  %v386_v45 = vld [vmem:[%s1864_s9 + $0x4b0] sm:$0xff] }
 0x110   : > { %v1146_v1 = vadd.f32 %v1145_v57, %v1144_v60  ;;  %v816_v57 = vmul.f32 %v595_v50, %v374_v49  ;;  %v597_v60 = vld [vmem:[%s3014_s2 + $0x460] sm:$0xff]  ;;  %v1173_v63 = vsel %vm899_vm1, %v815_v52, 0.0  ;;  %v387_v50 = vld [vmem:[%s1864_s9 + $0x4b8] sm:$0xff] }
 0x112   : > { %v1148_v6 = vadd.f32 %v1147_v62, %v1146_v1  ;;  %v817_v62 = vmul.f32 %v596_v55, %v375_v54  ;;  %v598_v1 = vld [vmem:[%s3014_s2 + $0x468] sm:$0xff]  ;;  %v1175_v4 = vsel %vm899_vm1, %v816_v57, 0.0  ;;  %v388_v55 = vld [vmem:[%s1864_s9 + $0x4c0] sm:$0xff] }
 0x114   : > { %v1150_v11 = vadd.f32 %v1149_v3, %v1148_v6  ;;  %v818_v3 = vmul.f32 %v597_v60, %v376_v59  ;;  %v599_v6 = vld [vmem:[%s3014_s2 + $0x470] sm:$0xff]  ;;  %v1177_v9 = vsel %vm899_vm1, %v817_v62, 0.0  ;;  %v389_v60 = vld [vmem:[%s1864_s9 + $0x4c8] sm:$0xff] }
 0x116   : > { %v1152_v16 = vadd.f32 %v1151_v8, %v1150_v11  ;;  %v819_v8 = vmul.f32 %v598_v1, %v377_v0  ;;  %v600_v11 = vld [vmem:[%s3014_s2 + $0x478] sm:$0xff]  ;;  %v1179_v14 = vsel %vm899_vm1, %v818_v3, 0.0  ;;  %v390_v1 = vld [vmem:[%s1864_s9 + $0x4d0] sm:$0xff] }
 0x118   : > { %v1154_v21 = vadd.f32 %v1153_v13, %v1152_v16  ;;  %v820_v13 = vmul.f32 %v599_v6, %v378_v5  ;;  %v601_v16 = vld [vmem:[%s3014_s2 + $0x480] sm:$0xff]  ;;  %v1181_v19 = vsel %vm899_vm1, %v819_v8, 0.0  ;;  %v391_v6 = vld [vmem:[%s1864_s9 + $0x4d8] sm:$0xff] }
 0x11a   : > { %v1156_v26 = vadd.f32 %v1155_v18, %v1154_v21  ;;  %v821_v18 = vmul.f32 %v600_v11, %v379_v10  ;;  %v602_v21 = vld [vmem:[%s3014_s2 + $0x488] sm:$0xff]  ;;  %v1183_v24 = vsel %vm899_vm1, %v820_v13, 0.0  ;;  %v392_v11 = vld [vmem:[%s1864_s9 + $0x4e0] sm:$0xff] }
 0x11c   : > { %v1158_v31 = vadd.f32 %v1157_v23, %v1156_v26  ;;  %v822_v23 = vmul.f32 %v601_v16, %v380_v15  ;;  %v603_v26 = vld [vmem:[%s3014_s2 + $0x490] sm:$0xff]  ;;  %v1185_v29 = vsel %vm899_vm1, %v821_v18, 0.0  ;;  %v393_v16 = vld [vmem:[%s1864_s9 + $0x4e8] sm:$0xff] }
 0x11e   : > { %v1160_v36 = vadd.f32 %v1159_v28, %v1158_v31  ;;  %v823_v28 = vmul.f32 %v602_v21, %v381_v20  ;;  %v604_v31 = vld [vmem:[%s3014_s2 + $0x498] sm:$0xff]  ;;  %v1187_v34 = vsel %vm899_vm1, %v822_v23, 0.0  ;;  %v394_v21 = vld [vmem:[%s1864_s9 + $0x4f0] sm:$0xff] }
 0x120   : > { %v1162_v41 = vadd.f32 %v1161_v33, %v1160_v36  ;;  %v824_v33 = vmul.f32 %v603_v26, %v382_v25  ;;  %v605_v36 = vld [vmem:[%s3014_s2 + $0x4a0] sm:$0xff]  ;;  %v1189_v39 = vsel %vm899_vm1, %v823_v28, 0.0  ;;  %v395_v26 = vld [vmem:[%s1864_s9 + $0x4f8] sm:$0xff] }
 0x122   : > { %v1164_v46 = vadd.f32 %v1163_v38, %v1162_v41  ;;  %v825_v38 = vmul.f32 %v604_v31, %v383_v30  ;;  %v606_v41 = vld [vmem:[%s3014_s2 + $0x4a8] sm:$0xff]  ;;  %v1191_v44 = vsel %vm899_vm1, %v824_v33, 0.0  ;;  %v396_v31 = vld [vmem:[%s1864_s9 + $0x500] sm:$0xff] }
 0x124   : > { %v1166_v51 = vadd.f32 %v1165_v43, %v1164_v46  ;;  %v826_v43 = vmul.f32 %v605_v36, %v384_v35  ;;  %v607_v46 = vld [vmem:[%s3014_s2 + $0x4b0] sm:$0xff]  ;;  %v1193_v49 = vsel %vm899_vm1, %v825_v38, 0.0  ;;  %v397_v36 = vld [vmem:[%s1864_s9 + $0x508] sm:$0xff] }
 0x126   : > { %v1168_v56 = vadd.f32 %v1167_v48, %v1166_v51  ;;  %v827_v48 = vmul.f32 %v606_v41, %v385_v40  ;;  %v608_v51 = vld [vmem:[%s3014_s2 + $0x4b8] sm:$0xff]  ;;  %v1195_v54 = vsel %vm899_vm1, %v826_v43, 0.0  ;;  %v398_v41 = vld [vmem:[%s1864_s9 + $0x510] sm:$0xff] }
 0x128   : > { %v1170_v61 = vadd.f32 %v1169_v53, %v1168_v56  ;;  %v828_v53 = vmul.f32 %v607_v46, %v386_v45  ;;  %v609_v56 = vld [vmem:[%s3014_s2 + $0x4c0] sm:$0xff]  ;;  %v1197_v59 = vsel %vm899_vm1, %v827_v48, 0.0  ;;  %v399_v46 = vld [vmem:[%s1864_s9 + $0x518] sm:$0xff] }
 0x12a   : > { %v1172_v2 = vadd.f32 %v1171_v58, %v1170_v61  ;;  %v829_v58 = vmul.f32 %v608_v51, %v387_v50  ;;  %v610_v61 = vld [vmem:[%s3014_s2 + $0x4c8] sm:$0xff]  ;;  %v1199_v0 = vsel %vm899_vm1, %v828_v53, 0.0  ;;  %v400_v51 = vld [vmem:[%s1864_s9 + $0x520] sm:$0xff] }
 0x12c   : > { %v1174_v7 = vadd.f32 %v1173_v63, %v1172_v2  ;;  %v830_v63 = vmul.f32 %v609_v56, %v388_v55  ;;  %v611_v2 = vld [vmem:[%s3014_s2 + $0x4d0] sm:$0xff]  ;;  %v1201_v5 = vsel %vm899_vm1, %v829_v58, 0.0  ;;  %v401_v56 = vld [vmem:[%s1864_s9 + $0x528] sm:$0xff] }
 0x12e   : > { %v1176_v12 = vadd.f32 %v1175_v4, %v1174_v7  ;;  %v831_v4 = vmul.f32 %v610_v61, %v389_v60  ;;  %v612_v7 = vld [vmem:[%s3014_s2 + $0x4d8] sm:$0xff]  ;;  %v1203_v10 = vsel %vm899_vm1, %v830_v63, 0.0  ;;  %v402_v61 = vld [vmem:[%s1864_s9 + $0x530] sm:$0xff] }
 0x130   : > { %v1178_v17 = vadd.f32 %v1177_v9, %v1176_v12  ;;  %v832_v9 = vmul.f32 %v611_v2, %v390_v1  ;;  %v613_v12 = vld [vmem:[%s3014_s2 + $0x4e0] sm:$0xff]  ;;  %v1205_v15 = vsel %vm899_vm1, %v831_v4, 0.0  ;;  %v403_v2 = vld [vmem:[%s1864_s9 + $0x538] sm:$0xff] }
 0x132   : > { %v1180_v22 = vadd.f32 %v1179_v14, %v1178_v17  ;;  %v833_v14 = vmul.f32 %v612_v7, %v391_v6  ;;  %v614_v17 = vld [vmem:[%s3014_s2 + $0x4e8] sm:$0xff]  ;;  %v1207_v20 = vsel %vm899_vm1, %v832_v9, 0.0  ;;  %v404_v7 = vld [vmem:[%s1864_s9 + $0x540] sm:$0xff] }
 0x134   : > { %v1182_v27 = vadd.f32 %v1181_v19, %v1180_v22  ;;  %v834_v19 = vmul.f32 %v613_v12, %v392_v11  ;;  %v615_v22 = vld [vmem:[%s3014_s2 + $0x4f0] sm:$0xff]  ;;  %v1209_v25 = vsel %vm899_vm1, %v833_v14, 0.0  ;;  %v405_v12 = vld [vmem:[%s1864_s9 + $0x548] sm:$0xff] }
 0x136   : > { %v1184_v32 = vadd.f32 %v1183_v24, %v1182_v27  ;;  %v835_v24 = vmul.f32 %v614_v17, %v393_v16  ;;  %v616_v27 = vld [vmem:[%s3014_s2 + $0x4f8] sm:$0xff]  ;;  %v1211_v30 = vsel %vm899_vm1, %v834_v19, 0.0  ;;  %v406_v17 = vld [vmem:[%s1864_s9 + $0x550] sm:$0xff] }
 0x138   : > { %v1186_v37 = vadd.f32 %v1185_v29, %v1184_v32  ;;  %v836_v29 = vmul.f32 %v615_v22, %v394_v21  ;;  %v617_v32 = vld [vmem:[%s3014_s2 + $0x500] sm:$0xff]  ;;  %v1213_v35 = vsel %vm899_vm1, %v835_v24, 0.0  ;;  %v407_v22 = vld [vmem:[%s1864_s9 + $0x558] sm:$0xff] }
 0x13a   : > { %v1188_v42 = vadd.f32 %v1187_v34, %v1186_v37  ;;  %v837_v34 = vmul.f32 %v616_v27, %v395_v26  ;;  %v618_v37 = vld [vmem:[%s3014_s2 + $0x508] sm:$0xff]  ;;  %v1215_v40 = vsel %vm899_vm1, %v836_v29, 0.0  ;;  %v408_v27 = vld [vmem:[%s1864_s9 + $0x560] sm:$0xff] }
 0x13c   : > { %v1190_v47 = vadd.f32 %v1189_v39, %v1188_v42  ;;  %v838_v39 = vmul.f32 %v617_v32, %v396_v31  ;;  %v619_v42 = vld [vmem:[%s3014_s2 + $0x510] sm:$0xff]  ;;  %v1217_v45 = vsel %vm899_vm1, %v837_v34, 0.0  ;;  %v409_v32 = vld [vmem:[%s1864_s9 + $0x568] sm:$0xff] }
 0x13e   : > { %v1192_v52 = vadd.f32 %v1191_v44, %v1190_v47  ;;  %v839_v44 = vmul.f32 %v618_v37, %v397_v36  ;;  %v620_v47 = vld [vmem:[%s3014_s2 + $0x518] sm:$0xff]  ;;  %v1219_v50 = vsel %vm899_vm1, %v838_v39, 0.0  ;;  %v410_v37 = vld [vmem:[%s1864_s9 + $0x570] sm:$0xff] }
 0x140   : > { %v1194_v57 = vadd.f32 %v1193_v49, %v1192_v52  ;;  %v840_v49 = vmul.f32 %v619_v42, %v398_v41  ;;  %v621_v52 = vld [vmem:[%s3014_s2 + $0x520] sm:$0xff]  ;;  %v1221_v55 = vsel %vm899_vm1, %v839_v44, 0.0  ;;  %v411_v42 = vld [vmem:[%s1864_s9 + $0x578] sm:$0xff] }
 0x142   : > { %v1196_v62 = vadd.f32 %v1195_v54, %v1194_v57  ;;  %v841_v54 = vmul.f32 %v620_v47, %v399_v46  ;;  %v622_v57 = vld [vmem:[%s3014_s2 + $0x528] sm:$0xff]  ;;  %v1223_v60 = vsel %vm899_vm1, %v840_v49, 0.0  ;;  %v412_v47 = vld [vmem:[%s1864_s9 + $0x580] sm:$0xff] }
 0x144   : > { %v1198_v3 = vadd.f32 %v1197_v59, %v1196_v62  ;;  %v842_v59 = vmul.f32 %v621_v52, %v400_v51  ;;  %v623_v62 = vld [vmem:[%s3014_s2 + $0x530] sm:$0xff]  ;;  %v1225_v1 = vsel %vm899_vm1, %v841_v54, 0.0  ;;  %v413_v52 = vld [vmem:[%s1864_s9 + $0x588] sm:$0xff] }
 0x146   : > { %v1200_v8 = vadd.f32 %v1199_v0, %v1198_v3  ;;  %v843_v0 = vmul.f32 %v622_v57, %v401_v56  ;;  %v624_v3 = vld [vmem:[%s3014_s2 + $0x538] sm:$0xff]  ;;  %v1227_v6 = vsel %vm899_vm1, %v842_v59, 0.0  ;;  %v414_v57 = vld [vmem:[%s1864_s9 + $0x590] sm:$0xff] }
 0x148   : > { %v1202_v13 = vadd.f32 %v1201_v5, %v1200_v8  ;;  %v844_v5 = vmul.f32 %v623_v62, %v402_v61  ;;  %v625_v8 = vld [vmem:[%s3014_s2 + $0x540] sm:$0xff]  ;;  %v1229_v11 = vsel %vm899_vm1, %v843_v0, 0.0  ;;  %v415_v62 = vld [vmem:[%s1864_s9 + $0x598] sm:$0xff] }
 0x14a   : > { %v1204_v18 = vadd.f32 %v1203_v10, %v1202_v13  ;;  %v845_v10 = vmul.f32 %v624_v3, %v403_v2  ;;  %v626_v13 = vld [vmem:[%s3014_s2 + $0x548] sm:$0xff]  ;;  %v1231_v16 = vsel %vm899_vm1, %v844_v5, 0.0  ;;  %v416_v3 = vld [vmem:[%s1864_s9 + $0x5a0] sm:$0xff] }
 0x14c   : > { %v1206_v23 = vadd.f32 %v1205_v15, %v1204_v18  ;;  %v846_v15 = vmul.f32 %v625_v8, %v404_v7  ;;  %v627_v18 = vld [vmem:[%s3014_s2 + $0x550] sm:$0xff]  ;;  %v1233_v21 = vsel %vm899_vm1, %v845_v10, 0.0  ;;  %v417_v8 = vld [vmem:[%s1864_s9 + $0x5a8] sm:$0xff] }
 0x14e   : > { %v1208_v28 = vadd.f32 %v1207_v20, %v1206_v23  ;;  %v847_v20 = vmul.f32 %v626_v13, %v405_v12  ;;  %v628_v23 = vld [vmem:[%s3014_s2 + $0x558] sm:$0xff]  ;;  %v1235_v26 = vsel %vm899_vm1, %v846_v15, 0.0  ;;  %v418_v13 = vld [vmem:[%s1864_s9 + $0x5b0] sm:$0xff] }
 0x150   : > { %v1210_v33 = vadd.f32 %v1209_v25, %v1208_v28  ;;  %v848_v25 = vmul.f32 %v627_v18, %v406_v17  ;;  %v629_v28 = vld [vmem:[%s3014_s2 + $0x560] sm:$0xff]  ;;  %v1237_v31 = vsel %vm899_vm1, %v847_v20, 0.0  ;;  %v419_v18 = vld [vmem:[%s1864_s9 + $0x5b8] sm:$0xff] }
 0x152   : > { %v1212_v38 = vadd.f32 %v1211_v30, %v1210_v33  ;;  %v849_v30 = vmul.f32 %v628_v23, %v407_v22  ;;  %v630_v33 = vld [vmem:[%s3014_s2 + $0x568] sm:$0xff]  ;;  %v1239_v36 = vsel %vm899_vm1, %v848_v25, 0.0  ;;  %v420_v23 = vld [vmem:[%s1864_s9 + $0x5c0] sm:$0xff] }
 0x154   : > { %v1214_v43 = vadd.f32 %v1213_v35, %v1212_v38  ;;  %v850_v35 = vmul.f32 %v629_v28, %v408_v27  ;;  %v631_v38 = vld [vmem:[%s3014_s2 + $0x570] sm:$0xff]  ;;  %v1241_v41 = vsel %vm899_vm1, %v849_v30, 0.0  ;;  %v421_v28 = vld [vmem:[%s1864_s9 + $0x5c8] sm:$0xff] }
 0x156   : > { %v1216_v48 = vadd.f32 %v1215_v40, %v1214_v43  ;;  %v851_v40 = vmul.f32 %v630_v33, %v409_v32  ;;  %v632_v43 = vld [vmem:[%s3014_s2 + $0x578] sm:$0xff]  ;;  %v1243_v46 = vsel %vm899_vm1, %v850_v35, 0.0  ;;  %v422_v33 = vld [vmem:[%s1864_s9 + $0x5d0] sm:$0xff] }
 0x158   : > { %v1218_v53 = vadd.f32 %v1217_v45, %v1216_v48  ;;  %v852_v45 = vmul.f32 %v631_v38, %v410_v37  ;;  %v633_v48 = vld [vmem:[%s3014_s2 + $0x580] sm:$0xff]  ;;  %v1245_v51 = vsel %vm899_vm1, %v851_v40, 0.0  ;;  %v423_v38 = vld [vmem:[%s1864_s9 + $0x5d8] sm:$0xff] }
 0x15a   : > { %v1220_v58 = vadd.f32 %v1219_v50, %v1218_v53  ;;  %v853_v50 = vmul.f32 %v632_v43, %v411_v42  ;;  %v634_v53 = vld [vmem:[%s3014_s2 + $0x588] sm:$0xff]  ;;  %v1247_v56 = vsel %vm899_vm1, %v852_v45, 0.0  ;;  %v424_v43 = vld [vmem:[%s1864_s9 + $0x5e0] sm:$0xff] }
 0x15c   : > { %v1222_v63 = vadd.f32 %v1221_v55, %v1220_v58  ;;  %v854_v55 = vmul.f32 %v633_v48, %v412_v47  ;;  %v635_v58 = vld [vmem:[%s3014_s2 + $0x590] sm:$0xff]  ;;  %v1249_v61 = vsel %vm899_vm1, %v853_v50, 0.0  ;;  %v425_v48 = vld [vmem:[%s1864_s9 + $0x5e8] sm:$0xff] }
 0x15e   : > { %v1224_v4 = vadd.f32 %v1223_v60, %v1222_v63  ;;  %v855_v60 = vmul.f32 %v634_v53, %v413_v52  ;;  %v636_v63 = vld [vmem:[%s3014_s2 + $0x598] sm:$0xff]  ;;  %v1251_v2 = vsel %vm899_vm1, %v854_v55, 0.0  ;;  %v426_v53 = vld [vmem:[%s1864_s9 + $0x5f0] sm:$0xff] }
 0x160   : > { %v1226_v9 = vadd.f32 %v1225_v1, %v1224_v4  ;;  %v856_v1 = vmul.f32 %v635_v58, %v414_v57  ;;  %v637_v4 = vld [vmem:[%s3014_s2 + $0x5a0] sm:$0xff]  ;;  %v1253_v7 = vsel %vm899_vm1, %v855_v60, 0.0  ;;  %v427_v58 = vld [vmem:[%s1864_s9 + $0x5f8] sm:$0xff] }
 0x162   : > { %v1228_v14 = vadd.f32 %v1227_v6, %v1226_v9  ;;  %v857_v6 = vmul.f32 %v636_v63, %v415_v62  ;;  %v638_v9 = vld [vmem:[%s3014_s2 + $0x5a8] sm:$0xff]  ;;  %v1255_v12 = vsel %vm899_vm1, %v856_v1, 0.0  ;;  %v428_v63 = vld [vmem:[%s1864_s9 + $0x600] sm:$0xff] }
 0x164   : > { %v1230_v19 = vadd.f32 %v1229_v11, %v1228_v14  ;;  %v858_v11 = vmul.f32 %v637_v4, %v416_v3  ;;  %v639_v14 = vld [vmem:[%s3014_s2 + $0x5b0] sm:$0xff]  ;;  %v1257_v17 = vsel %vm899_vm1, %v857_v6, 0.0  ;;  %v429_v4 = vld [vmem:[%s1864_s9 + $0x608] sm:$0xff] }
 0x166   : > { %v1232_v24 = vadd.f32 %v1231_v16, %v1230_v19  ;;  %v859_v16 = vmul.f32 %v638_v9, %v417_v8  ;;  %v640_v19 = vld [vmem:[%s3014_s2 + $0x5b8] sm:$0xff]  ;;  %v1259_v22 = vsel %vm899_vm1, %v858_v11, 0.0  ;;  %v430_v9 = vld [vmem:[%s1864_s9 + $0x610] sm:$0xff] }
 0x168   : > { %v1234_v29 = vadd.f32 %v1233_v21, %v1232_v24  ;;  %v860_v21 = vmul.f32 %v639_v14, %v418_v13  ;;  %v641_v24 = vld [vmem:[%s3014_s2 + $0x5c0] sm:$0xff]  ;;  %v1261_v27 = vsel %vm899_vm1, %v859_v16, 0.0  ;;  %v431_v14 = vld [vmem:[%s1864_s9 + $0x618] sm:$0xff] }
 0x16a   : > { %v1236_v34 = vadd.f32 %v1235_v26, %v1234_v29  ;;  %v861_v26 = vmul.f32 %v640_v19, %v419_v18  ;;  %v642_v29 = vld [vmem:[%s3014_s2 + $0x5c8] sm:$0xff]  ;;  %v1263_v32 = vsel %vm899_vm1, %v860_v21, 0.0  ;;  %v432_v19 = vld [vmem:[%s1864_s9 + $0x620] sm:$0xff] }
 0x16c   : > { %v1238_v39 = vadd.f32 %v1237_v31, %v1236_v34  ;;  %v862_v31 = vmul.f32 %v641_v24, %v420_v23  ;;  %v643_v34 = vld [vmem:[%s3014_s2 + $0x5d0] sm:$0xff]  ;;  %v1265_v37 = vsel %vm899_vm1, %v861_v26, 0.0  ;;  %v433_v24 = vld [vmem:[%s1864_s9 + $0x628] sm:$0xff] }
 0x16e   : > { %v1240_v44 = vadd.f32 %v1239_v36, %v1238_v39  ;;  %v863_v36 = vmul.f32 %v642_v29, %v421_v28  ;;  %v644_v39 = vld [vmem:[%s3014_s2 + $0x5d8] sm:$0xff]  ;;  %v1267_v42 = vsel %vm899_vm1, %v862_v31, 0.0  ;;  %v434_v29 = vld [vmem:[%s1864_s9 + $0x630] sm:$0xff] }
 0x170   : > { %v1242_v49 = vadd.f32 %v1241_v41, %v1240_v44  ;;  %v864_v41 = vmul.f32 %v643_v34, %v422_v33  ;;  %v645_v44 = vld [vmem:[%s3014_s2 + $0x5e0] sm:$0xff]  ;;  %v1269_v47 = vsel %vm899_vm1, %v863_v36, 0.0  ;;  %v435_v34 = vld [vmem:[%s1864_s9 + $0x638] sm:$0xff] }
 0x172   : > { %v1244_v54 = vadd.f32 %v1243_v46, %v1242_v49  ;;  %v865_v46 = vmul.f32 %v644_v39, %v423_v38  ;;  %v646_v49 = vld [vmem:[%s3014_s2 + $0x5e8] sm:$0xff]  ;;  %v1271_v52 = vsel %vm899_vm1, %v864_v41, 0.0  ;;  %v436_v39 = vld [vmem:[%s1864_s9 + $0x640] sm:$0xff] }
 0x174   : > { %v1246_v59 = vadd.f32 %v1245_v51, %v1244_v54  ;;  %v866_v51 = vmul.f32 %v645_v44, %v424_v43  ;;  %v647_v54 = vld [vmem:[%s3014_s2 + $0x5f0] sm:$0xff]  ;;  %v1273_v57 = vsel %vm899_vm1, %v865_v46, 0.0  ;;  %v437_v44 = vld [vmem:[%s1864_s9 + $0x648] sm:$0xff] }
 0x176   : > { %v1248_v0 = vadd.f32 %v1247_v56, %v1246_v59  ;;  %v867_v56 = vmul.f32 %v646_v49, %v425_v48  ;;  %v648_v59 = vld [vmem:[%s3014_s2 + $0x5f8] sm:$0xff]  ;;  %v1275_v62 = vsel %vm899_vm1, %v866_v51, 0.0  ;;  %v438_v49 = vld [vmem:[%s1864_s9 + $0x650] sm:$0xff] }
 0x178   : > { %v1250_v5 = vadd.f32 %v1249_v61, %v1248_v0  ;;  %v868_v61 = vmul.f32 %v647_v54, %v426_v53  ;;  %v649_v0 = vld [vmem:[%s3014_s2 + $0x600] sm:$0xff]  ;;  %v1277_v3 = vsel %vm899_vm1, %v867_v56, 0.0  ;;  %v439_v54 = vld [vmem:[%s1864_s9 + $0x658] sm:$0xff] }
 0x17a   : > { %v1252_v10 = vadd.f32 %v1251_v2, %v1250_v5  ;;  %v869_v2 = vmul.f32 %v648_v59, %v427_v58  ;;  %v650_v5 = vld [vmem:[%s3014_s2 + $0x608] sm:$0xff]  ;;  %v1279_v8 = vsel %vm899_vm1, %v868_v61, 0.0  ;;  %v440_v59 = vld [vmem:[%s1864_s9 + $0x660] sm:$0xff] }
 0x17c   : > { %v1254_v15 = vadd.f32 %v1253_v7, %v1252_v10  ;;  %v870_v7 = vmul.f32 %v649_v0, %v428_v63  ;;  %v651_v10 = vld [vmem:[%s3014_s2 + $0x610] sm:$0xff]  ;;  %v1281_v13 = vsel %vm899_vm1, %v869_v2, 0.0  ;;  %v441_v0 = vld [vmem:[%s1864_s9 + $0x668] sm:$0xff] }
 0x17e   : > { %v1256_v20 = vadd.f32 %v1255_v12, %v1254_v15  ;;  %v871_v12 = vmul.f32 %v650_v5, %v429_v4  ;;  %v652_v15 = vld [vmem:[%s3014_s2 + $0x618] sm:$0xff]  ;;  %v1283_v18 = vsel %vm899_vm1, %v870_v7, 0.0  ;;  %v442_v5 = vld [vmem:[%s1864_s9 + $0x670] sm:$0xff] }
 0x180   : > { %v1258_v25 = vadd.f32 %v1257_v17, %v1256_v20  ;;  %v872_v17 = vmul.f32 %v651_v10, %v430_v9  ;;  %v653_v20 = vld [vmem:[%s3014_s2 + $0x620] sm:$0xff]  ;;  %v1285_v23 = vsel %vm899_vm1, %v871_v12, 0.0  ;;  %v443_v10 = vld [vmem:[%s1864_s9 + $0x678] sm:$0xff] }
 0x182   : > { %v1260_v30 = vadd.f32 %v1259_v22, %v1258_v25  ;;  %v873_v22 = vmul.f32 %v652_v15, %v431_v14  ;;  %v654_v25 = vld [vmem:[%s3014_s2 + $0x628] sm:$0xff]  ;;  %v1287_v28 = vsel %vm899_vm1, %v872_v17, 0.0  ;;  %v444_v15 = vld [vmem:[%s1864_s9 + $0x680] sm:$0xff] }
 0x184   : > { %v1262_v35 = vadd.f32 %v1261_v27, %v1260_v30  ;;  %v874_v27 = vmul.f32 %v653_v20, %v432_v19  ;;  %v655_v30 = vld [vmem:[%s3014_s2 + $0x630] sm:$0xff]  ;;  %v1289_v33 = vsel %vm899_vm1, %v873_v22, 0.0  ;;  %v445_v20 = vld [vmem:[%s1864_s9 + $0x688] sm:$0xff] }
 0x186   : > { %v1264_v40 = vadd.f32 %v1263_v32, %v1262_v35  ;;  %v875_v32 = vmul.f32 %v654_v25, %v433_v24  ;;  %v656_v35 = vld [vmem:[%s3014_s2 + $0x638] sm:$0xff]  ;;  %v1291_v38 = vsel %vm899_vm1, %v874_v27, 0.0  ;;  %v446_v25 = vld [vmem:[%s1864_s9 + $0x690] sm:$0xff] }
 0x188   : > { %v1266_v45 = vadd.f32 %v1265_v37, %v1264_v40  ;;  %v876_v37 = vmul.f32 %v655_v30, %v434_v29  ;;  %v657_v40 = vld [vmem:[%s3014_s2 + $0x640] sm:$0xff]  ;;  %v1293_v43 = vsel %vm899_vm1, %v875_v32, 0.0  ;;  %v447_v30 = vld [vmem:[%s1864_s9 + $0x698] sm:$0xff] }
 0x18a   : > { %v1268_v50 = vadd.f32 %v1267_v42, %v1266_v45  ;;  %v877_v42 = vmul.f32 %v656_v35, %v435_v34  ;;  %v658_v45 = vld [vmem:[%s3014_s2 + $0x648] sm:$0xff]  ;;  %v1295_v48 = vsel %vm899_vm1, %v876_v37, 0.0  ;;  %v448_v35 = vld [vmem:[%s1864_s9 + $0x6a0] sm:$0xff] }
 0x18c   : > { %v1270_v55 = vadd.f32 %v1269_v47, %v1268_v50  ;;  %v878_v47 = vmul.f32 %v657_v40, %v436_v39  ;;  %v659_v50 = vld [vmem:[%s3014_s2 + $0x650] sm:$0xff]  ;;  %v1297_v53 = vsel %vm899_vm1, %v877_v42, 0.0  ;;  %v449_v40 = vld [vmem:[%s1864_s9 + $0x6a8] sm:$0xff] }
 0x18e   : > { %v1272_v60 = vadd.f32 %v1271_v52, %v1270_v55  ;;  %v879_v52 = vmul.f32 %v658_v45, %v437_v44  ;;  %v660_v55 = vld [vmem:[%s3014_s2 + $0x658] sm:$0xff]  ;;  %v1299_v58 = vsel %vm899_vm1, %v878_v47, 0.0  ;;  %v450_v45 = vld [vmem:[%s1864_s9 + $0x6b0] sm:$0xff] }
 0x190   : > { %v1274_v1 = vadd.f32 %v1273_v57, %v1272_v60  ;;  %v880_v57 = vmul.f32 %v659_v50, %v438_v49  ;;  %v661_v60 = vld [vmem:[%s3014_s2 + $0x660] sm:$0xff]  ;;  %v1301_v63 = vsel %vm899_vm1, %v879_v52, 0.0  ;;  %v451_v50 = vld [vmem:[%s1864_s9 + $0x6b8] sm:$0xff] }
 0x192   : > { %v1276_v6 = vadd.f32 %v1275_v62, %v1274_v1  ;;  %v881_v62 = vmul.f32 %v660_v55, %v439_v54  ;;  %v662_v1 = vld [vmem:[%s3014_s2 + $0x668] sm:$0xff]  ;;  %v1303_v4 = vsel %vm899_vm1, %v880_v57, 0.0  ;;  %v452_v55 = vld [vmem:[%s1864_s9 + $0x6c0] sm:$0xff] }
 0x194   : > { %v1278_v11 = vadd.f32 %v1277_v3, %v1276_v6  ;;  %v882_v3 = vmul.f32 %v661_v60, %v440_v59  ;;  %v663_v6 = vld [vmem:[%s3014_s2 + $0x670] sm:$0xff]  ;;  %v1305_v9 = vsel %vm899_vm1, %v881_v62, 0.0  ;;  %v453_v60 = vld [vmem:[%s1864_s9 + $0x6c8] sm:$0xff] }
 0x196   : > { %v1280_v16 = vadd.f32 %v1279_v8, %v1278_v11  ;;  %v883_v8 = vmul.f32 %v662_v1, %v441_v0  ;;  %v664_v11 = vld [vmem:[%s3014_s2 + $0x678] sm:$0xff]  ;;  %v1307_v14 = vsel %vm899_vm1, %v882_v3, 0.0  ;;  %v454_v1 = vld [vmem:[%s1864_s9 + $0x6d0] sm:$0xff] }
 0x198   : > { %v1282_v21 = vadd.f32 %v1281_v13, %v1280_v16  ;;  %v884_v13 = vmul.f32 %v663_v6, %v442_v5  ;;  %v665_v16 = vld [vmem:[%s3014_s2 + $0x680] sm:$0xff]  ;;  %v1309_v19 = vsel %vm899_vm1, %v883_v8, 0.0  ;;  %v455_v6 = vld [vmem:[%s1864_s9 + $0x6d8] sm:$0xff] }
 0x19a   : > { %v1284_v26 = vadd.f32 %v1283_v18, %v1282_v21  ;;  %v885_v18 = vmul.f32 %v664_v11, %v443_v10  ;;  %v666_v21 = vld [vmem:[%s3014_s2 + $0x688] sm:$0xff]  ;;  %v1311_v24 = vsel %vm899_vm1, %v884_v13, 0.0  ;;  %v456_v11 = vld [vmem:[%s1864_s9 + $0x6e0] sm:$0xf] }
 0x19c   : > { %v1286_v31 = vadd.f32 %v1285_v23, %v1284_v26  ;;  %v886_v23 = vmul.f32 %v665_v16, %v444_v15  ;;  %v667_v26 = vld [vmem:[%s3014_s2 + $0x690] sm:$0xff]  ;;  %v1313_v29 = vsel %vm899_vm1, %v885_v18, 0.0 }
 0x19e   : > { %v1288_v36 = vadd.f32 %v1287_v28, %v1286_v31  ;;  %v887_v28 = vmul.f32 %v666_v21, %v445_v20  ;;  %v668_v31 = vld [vmem:[%s3014_s2 + $0x698] sm:$0xff]  ;;  %v1315_v34 = vsel %vm899_vm1, %v886_v23, 0.0 }
 0x1a0   : > { %v1290_v41 = vadd.f32 %v1289_v33, %v1288_v36  ;;  %v888_v33 = vmul.f32 %v667_v26, %v446_v25  ;;  %v669_v36 = vld [vmem:[%s3014_s2 + $0x6a0] sm:$0xff]  ;;  %v1317_v39 = vsel %vm899_vm1, %v887_v28, 0.0 }
 0x1a2   : > { %v1292_v46 = vadd.f32 %v1291_v38, %v1290_v41  ;;  %v889_v38 = vmul.f32 %v668_v31, %v447_v30  ;;  %v670_v41 = vld [vmem:[%s3014_s2 + $0x6a8] sm:$0xff]  ;;  %v1319_v44 = vsel %vm899_vm1, %v888_v33, 0.0  ;;  %v1430_v31 = vld [vmem:[%s3016_s4] sm:$0xf] }
 0x1a3   : > { %1639 = vmatpush3.msk.msra.mxu1 %vm1435_vm3, %v1430_v31 }
 0x1a4   : > { %v1294_v51 = vadd.f32 %v1293_v43, %v1292_v46  ;;  %v890_v43 = vmul.f32 %v669_v36, %v448_v35  ;;  %v671_v46 = vld [vmem:[%s3014_s2 + $0x6b0] sm:$0xff]  ;;  %v1321_v49 = vsel %vm899_vm1, %v889_v38, 0.0 }
 0x1a6   : > { %v1296_v56 = vadd.f32 %v1295_v48, %v1294_v51  ;;  %v891_v48 = vmul.f32 %v670_v41, %v449_v40  ;;  %v672_v51 = vld [vmem:[%s3014_s2 + $0x6b8] sm:$0xff]  ;;  %v1323_v54 = vsel %vm899_vm1, %v890_v43, 0.0  ;;  %v1515_v41 = vld [vmem:[%s230_s6] sm:$0x1] }
 0x1a8   : > { %v1298_v61 = vadd.f32 %v1297_v53, %v1296_v56  ;;  %v892_v53 = vmul.f32 %v671_v46, %v450_v45  ;;  %v673_v56 = vld [vmem:[%s3014_s2 + $0x6c0] sm:$0xff]  ;;  %v1325_v59 = vsel %vm899_vm1, %v891_v48, 0.0 }
 0x1aa   : > { %v1300_v2 = vadd.f32 %v1299_v58, %v1298_v61  ;;  %v893_v58 = vmul.f32 %v672_v51, %v451_v50  ;;  %v674_v61 = vld [vmem:[%s3014_s2 + $0x6c8] sm:$0xff]  ;;  %v1327_v0 = vsel %vm899_vm1, %v892_v53, 0.0 }
 0x1ac   : > { %v1302_v7 = vadd.f32 %v1301_v63, %v1300_v2  ;;  %v894_v63 = vmul.f32 %v673_v56, %v452_v55  ;;  %v675_v2 = vld [vmem:[%s3014_s2 + $0x6d0] sm:$0xff]  ;;  %v1329_v5 = vsel %vm899_vm1, %v893_v58, 0.0 }
 0x1ae   : > { %v1304_v12 = vadd.f32 %v1303_v4, %v1302_v7  ;;  %v895_v4 = vmul.f32 %v674_v61, %v453_v60  ;;  %v676_v7 = vld [vmem:[%s3014_s2 + $0x6d8] sm:$0xff]  ;;  %v1331_v10 = vsel %vm899_vm1, %v894_v63, 0.0 }
 0x1b0   : > { %v1306_v17 = vadd.f32 %v1305_v9, %v1304_v12  ;;  %v896_v9 = vmul.f32 %v675_v2, %v454_v1  ;;  %v677_v12 = vld [vmem:[%s3014_s2 + $0x6e0] sm:$0xf]  ;;  %v1333_v15 = vsel %vm899_vm1, %v895_v4, 0.0 }
 0x1b2   : > { %v1308_v22 = vadd.f32 %v1307_v14, %v1306_v17  ;;  %v897_v14 = vmul.f32 %v676_v7, %v455_v6  ;;  %v898_v17 = vmul.f32 %v677_v12, %v456_v11  ;;  %v1335_v18 = vsel %vm899_vm1, %v896_v9, 0.0 }
 0x1b4   : > { %v1310_v27 = vadd.f32 %v1309_v19, %v1308_v22  ;;  %v1337_v20 = vsel %vm899_vm1, %v897_v14, 0.0  ;;  %v1340_v22 = vsel %vm1339_vm2, %v898_v17, 0.0 }
 0x1b6   : > { %v1312_v32 = vadd.f32 %v1311_v24, %v1310_v27 }
 0x1b8   : > { %v1314_v37 = vadd.f32 %v1313_v29, %v1312_v32 }
 0x1ba   : > { %v1316_v42 = vadd.f32 %v1315_v34, %v1314_v37 }
 0x1bc   : > { %v1318_v47 = vadd.f32 %v1317_v39, %v1316_v42  ;;  %v1516_v42 = vunpack.c.l.bf16 %v1515_v41 }
 0x1be   : > { %v1320_v52 = vadd.f32 %v1319_v44, %v1318_v47 }
 0x1c0   : > { %v1322_v57 = vadd.f32 %v1321_v49, %v1320_v52 }
 0x1c2   : > { %v1324_v62 = vadd.f32 %v1323_v54, %v1322_v57 }
 0x1c4   : > { %v1326_v3 = vadd.f32 %v1325_v59, %v1324_v62 }
 0x1c6   : > { %v1328_v8 = vadd.f32 %v1327_v0, %v1326_v3 }
 0x1c8   : > { %v1330_v13 = vadd.f32 %v1329_v5, %v1328_v8 }
 0x1ca   : > { %v1332_v16 = vadd.f32 %v1331_v10, %v1330_v13 }
 0x1cc   : > { %v1334_v19 = vadd.f32 %v1333_v15, %v1332_v16 }
 0x1ce   : > { %v1336_v21 = vadd.f32 %v1335_v18, %v1334_v19 }
 0x1d0   : > { %v1338_v23 = vadd.f32 %v1337_v20, %v1336_v21 }
 0x1d2   : > { %v1341_v24 = vadd.f32 %v1340_v22, %v1338_v23 }
 0x1d4   : > { %v1342_v25 = vrot.slane %v1341_v24, 4 }
 0x1d6   : > { %v1343_v26 = vadd.f32 %v1342_v25, %v1341_v24 }
 0x1d8   : > { %v1344_v27 = vrot.slane %v1343_v26, 2 }
 0x1da   : > { %v1345_v28 = vadd.f32 %v1344_v27, %v1343_v26 }
 0x1dc   : > { %v1346_v29 = vrot.slane %v1345_v28, 1 }
 0x1de   : > { %v1347_v30 = vadd.f32 %v1346_v29, %v1345_v28 }
 0x1e0   : > { %1636 = vmatmul.mubr.msk.f32.vlgmr.msra.gmra.mxu0 %vm899_vm1, %v1347_v30 }
 0x2a0   : > { %v1425_v32 = vpop.f32.mrf.mxu0 }
 0x2a1   : > { %v1429_v33 = vmax.f32 %v1425_v32, 0.0 }
 0x2a2   : > { %v1637_v34 = vpop.f32.mrf.mxu0 }
 0x2a3   : > { %1641 = vmatmul.mubr.msk.f32.vlgmr.msra.gmra.mxu1 %vm1431_vm4, %v1429_v33 }
 0x363   : > { %v1505_v35 = vpop.f32.mrf.mxu1 }
 0x364   : > { %v1509_v36 = vsub.f32 0.0, %v1505_v35 }
 0x365   : > { %v1642_v37 = vpop.f32.mrf.mxu1 }
 0x366   : > { %v1510_v38 = vmul.f32 1.442695, %v1509_v36 }
 0x368   : > { %1685 = vpow2.f32 %v1510_v38 }
 0x375   : > { %v1686_v39 = vpop.eup %1685 }
 0x376   : > { %v1512_v40 = vadd.f32 1.0, %v1686_v39 }
 0x378   : > { %1687 = vrcp.f32 %v1512_v40 }
 0x385   : > { %v1688_v43 = vpop.eup %1687 }
 0x386   : > { %v1517_v44 = vmul.f32 %v1688_v43, %v1516_v42 }
 0x388   : > { %1519 = vst.msk [vmem:[%s227_s10] sm:$0x1] %vm1518_vm5, %v1517_v44 }
 0x389   : > { %1702 = shalt.err (!%p1699_p3)
}
 0x38a   : > { %s1703_s9 = scalar_lea.hbm %s1531_s14, 16  ;;  %s1707_s26 = scalar_lea.hbm %s3017_s5, 32 }
 0x38b   : > { %p1704_p4 = scmp.ne.s32.totalorder %s1531_s14, %s1703_s9  ;;  %p1708_p9 = scmp.lt.s32.totalorder %s1531_s14, %s3017_s5 }
 0x38c   : > { %p1709_p10 = scmp.lt.s32.totalorder %s1707_s26, %s1703_s9 }
 0x38d   : > { %p1705_p7 = pnand %p1704_p4, %p1822_p5 }
 0x38e   : > { %p1710_p11 = por %p1709_p10, %p1708_p9 }
 0x38f   : > { %p1706_p8 = pneg %p1705_p7 }
 0x391   : > { %p1711_p12 = pnand %p1710_p11, %p1706_p8 }
 0x393   : > { %1714 = shalt.err (!%p1711_p12)
}
 0x394   : > { %1644 = dma.vmem_to_hbm [thread:$0]  (%p1822_p5), %s1534_s11, 16, %s1531_s14, %s1521_s15  }
 0x395 PF: > { %p1650_p13 = scmp.ge.s32.totalorder %s1749_s21, 2  ;;  %s1545_s8 = sand.u32 1, %s1737_s18  }
 0x396   : > { %s1546_s10 = scalar_lea.sflag [#allocation3], %s1545_s8 }
 0x397   : > { %p1647_p0 = pnand %p1650_p13, %p1826_p6 }
 0x399   : > { %p1648_p1 = pneg %p1647_p0 }
 0x39b   : > { %1732 = dma.done.wait (%p1648_p1), %s1546_s10, 16  }
 0x39c   : > { %1734 = vsyncadd (%p1648_p1), %s1546_s10, 4294967280  ;;  %p15_p2 = scmp.ge.s32.totalorder %s1809_s24, 4   ;;  %s3020_s18 = smov %s1741_s19 }
 0x39d   : > { %s3021_s19 = smov %s1745_s20  ;;  %s3022_s20 = smov %s1820_s27 }
 0x39e   : > { %s3023_s21 = smov %s1809_s24  ;;  %17 = sbr.rel (!%p15_p2) target bundleno = 3 (0x3), region = 78 }
 0x3a3   :  { %1550 = vsyncpa [#allocation3], 1 }
 0x3a4   :  { %1552 = vsyncpa [#allocation3 + $0x1], 1 }

</bundles_post_ra>
